<compile_context>
chip_gen: v5e
topology: v5e:2x2
jax: 0.10.0
libtpu: 0.0.40
codegen_flags: <defaults>
</compile_context>

<pallas_src>
import functools

import jax
import jax.numpy as jnp
from jax import lax
from jax.experimental import pallas as pl
from jax.experimental.pallas import tpu as pltpu

KSIZE = 4          # all ConvTranspose2d layers use 4x4 kernels
LANE = 128         # TPU lane width; GEMM output channels are padded to this
MAX_TM = 512       # max rows per GEMM tile
BN_EPS = 1e-5


def _round_up(x, m):
    return ((x + m - 1) // m) * m


def _pad_m(m):
    """Return (padded_M, tile_M): padded_M % tile_M == 0, tile_M % 16 == 0."""
    if m <= MAX_TM:
        mp = _round_up(m, 16)
        return mp, mp
    return _round_up(m, MAX_TM), MAX_TM


# ----------------------------- Pallas kernels -------------------------------


def _layer1_kernel(x_ref, w_ref, g_ref, b_ref, o_ref, *, n_pix, cpad,
                   inv_count, eps):
    """Layer 1 (1x1 -> 4x4 ConvT) as ONE GEMM; lanes = (pixel q, channel c).

    Fused BatchNorm + ReLU: per-channel stats are obtained by summing rows and
    then reducing the n_pix aligned 128-lane groups with static lane slices
    (no in-kernel reshape / tile needed).
    """
    y = jnp.dot(x_ref[...], w_ref[...], preferred_element_type=jnp.float32)

    s = jnp.sum(y, axis=0, keepdims=True)          # (1, n_pix*cpad)
    sq = jnp.sum(y * y, axis=0, keepdims=True)
    s_c = s[:, 0:cpad]
    sq_c = sq[:, 0:cpad]
    for q in range(1, n_pix):                      # aligned lane-group reduce
        s_c = s_c + s[:, q * cpad:(q + 1) * cpad]
        sq_c = sq_c + sq[:, q * cpad:(q + 1) * cpad]

    mean = s_c * inv_count
    var = jnp.maximum(sq_c * inv_count - mean * mean, 0.0)
    scale = g_ref[...] * lax.rsqrt(var + eps)      # (1, cpad)
    shift = b_ref[...] - mean * scale

    for q in range(n_pix):                         # lane-aligned bf16 stores
        yq = y[:, q * cpad:(q + 1) * cpad]
        o_ref[:, q * cpad:(q + 1) * cpad] = jnp.maximum(
            yq * scale + shift, 0.0).astype(o_ref.dtype)


def _convt_bn_relu_kernel(p_ref, w_ref, g_ref, b_ref, o_ref, sum_ref, sq_ref,
                          *, tm, inv_count, eps, n_rows):
    """Fused per-phase im2col GEMM + batch stats + BatchNorm + ReLU.

    grid = (n_phases, n_m_tiles).  Raw GEMM tiles are written (bf16) into the
    full-array resident output block; per-channel sum / sum^2 accumulate in f32
    VMEM scratch; the final grid step normalizes the whole output in place with
    a fori_loop over tm-row chunks.
    """
    p = pl.program_id(0)
    i = pl.program_id(1)
    n_ph = pl.num_programs(0)
    n_m = pl.num_programs(1)

    @pl.when((p == 0) & (i == 0))
    def _init():
        sum_ref[...] = jnp.zeros_like(sum_ref)
        sq_ref[...] = jnp.zeros_like(sq_ref)

    # bf16 x bf16 -> f32 on the MXU.
    y = jnp.dot(p_ref[...], w_ref[...], preferred_element_type=jnp.float32)
    sum_ref[...] += jnp.sum(y, axis=0, keepdims=True)
    sq_ref[...] += jnp.sum(y * y, axis=0, keepdims=True)

    row = pl.multiple_of((p * n_m + i) * tm, tm)
    o_ref[pl.ds(row, tm), :] = y.astype(o_ref.dtype)     # lane-dense bf16 store

    @pl.when((p == n_ph - 1) & (i == n_m - 1))
    def _finalize():
        mean = sum_ref[...] * inv_count
        var = jnp.maximum(sq_ref[...] * inv_count - mean * mean, 0.0)
        scale = g_ref[...] * lax.rsqrt(var + eps)         # (1, Cpad)
        shift = b_ref[...] - mean * scale                 # (1, Cpad)

        n_chunks = n_rows // tm

        def body(c, carry):
            r = pl.multiple_of(c * tm, tm)
            blk = o_ref[pl.ds(r, tm), :].astype(jnp.float32)
            o_ref[pl.ds(r, tm), :] = jnp.maximum(
                blk * scale + shift, 0.0).astype(o_ref.dtype)
            return carry

        if n_chunks <= 8:
            unroll = n_chunks
        elif n_chunks % 8 == 0:
            unroll = 8
        elif n_chunks % 4 == 0:
            unroll = 4
        else:
            unroll = 1
        lax.fori_loop(0, n_chunks, body, 0, unroll=unroll)


def _convt_tanh_kernel(p_ref, w_ref, o_ref):
    """Final layer: block-diagonal im2col GEMM + tanh (no BN, no bias)."""
    y = jnp.dot(p_ref[...], w_ref[...], preferred_element_type=jnp.float32)
    o_ref[...] = jnp.tanh(y)


# --------------------------- pallas_call wrappers ----------------------------


def _layer1_convt_bn_relu(x2d, w, gamma, beta):
    """x2d: (N, nz) -> (N, 4, 4, Cout) NHWC bf16, BN+ReLU applied."""
    n, nz = x2d.shape
    cout = w.shape[1]
    n_pix = KSIZE * KSIZE
    cpad = _round_up(cout, LANE)
    mp = _round_up(n, 8)

    if mp != n:                                    # zero rows: stats-neutral
        x2d = jnp.pad(x2d, ((0, mp - n), (0, 0)))
    xb = x2d.astype(jnp.bfloat16)
    # (nz, Cout, 4, 4) -> (nz, 16, Cpad) -> (nz, 16*Cpad), pixel q = kh*4 + kw.
    wq = jnp.transpose(w, (0, 2, 3, 1)).reshape(nz, n_pix, cout)
    if cpad != cout:
        wq = jnp.pad(wq, ((0, 0), (0, 0), (0, cpad - cout)))
    wmat = wq.reshape(nz, n_pix * cpad).astype(jnp.bfloat16)
    g = jnp.zeros((1, cpad), jnp.float32).at[0, :cout].set(gamma)
    b = jnp.zeros((1, cpad), jnp.float32).at[0, :cout].set(beta)

    kernel = functools.partial(_layer1_kernel, n_pix=n_pix, cpad=cpad,
                               inv_count=1.0 / float(n * n_pix), eps=BN_EPS)
    y = pl.pallas_call(
        kernel,
        out_shape=jax.ShapeDtypeStruct((mp, n_pix * cpad), jnp.bfloat16),
    )(xb, wmat, g, b)

    y = y.reshape(mp, n_pix, cpad)[:n, :, :cout]
    return y.reshape(n, KSIZE, KSIZE, cout)        # (N, 4, 4, Cout) NHWC


def _fused_convt_bn_relu(patches, wmat, gamma, beta, count):
    """patches: (P, M, K), wmat: (P, K, Cout) -> (P, M, Cout) bf16, BN+ReLU."""
    n_phase, m, k = patches.shape
    cout = wmat.shape[2]
    mp, tm = _pad_m(m)
    cpad = _round_up(cout, LANE)

    if mp != m:                                    # zero rows: stats-neutral
        patches = jnp.pad(patches, ((0, 0), (0, mp - m), (0, 0)))
    if cpad != cout:                               # zero cols: lane-dense output
        wmat = jnp.pad(wmat, ((0, 0), (0, 0), (0, cpad - cout)))
    patches = patches.astype(jnp.bfloat16)
    wmat = wmat.astype(jnp.bfloat16)
    g = jnp.zeros((1, cpad), jnp.float32).at[0, :cout].set(gamma)
    b = jnp.zeros((1, cpad), jnp.float32).at[0, :cout].set(beta)

    n_m = mp // tm
    n_rows = n_phase * mp
    kernel = functools.partial(
        _convt_bn_relu_kernel, tm=tm, inv_count=1.0 / float(count),
        eps=BN_EPS, n_rows=n_rows)

    # Resident bf16 output + double-buffered streamed inputs, with headroom.
    out_bytes = n_rows * cpad * 2
    stream_bytes = 4 * tm * k * 2 + 4 * k * cpad * 2
    vmem_limit = min(max(32 * 1024 * 1024, out_bytes + stream_bytes + (4 << 20)),
                     64 * 1024 * 1024)

    y = pl.pallas_call(
        kernel,
        out_shape=jax.ShapeDtypeStruct((n_rows, cpad), jnp.bfloat16),
        grid=(n_phase, n_m),
        in_specs=[
            pl.BlockSpec((None, tm, k), lambda p, i: (p, i, 0)),      # patches
            pl.BlockSpec((None, k, cpad), lambda p, i: (p, 0, 0)),    # per-phase W
            pl.BlockSpec((1, cpad), lambda p, i: (0, 0)),             # gamma
            pl.BlockSpec((1, cpad), lambda p, i: (0, 0)),             # beta
        ],
        # Full-array resident output: written tile-by-tile, normalized in place
        # on the last grid step, flushed to HBM once.
        out_specs=pl.BlockSpec((n_rows, cpad), lambda p, i: (0, 0)),
        scratch_shapes=[pltpu.VMEM((1, cpad), jnp.float32),   # sum
                        pltpu.VMEM((1, cpad), jnp.float32)],  # sum of squares
        compiler_params=pltpu.CompilerParams(
            dimension_semantics=("arbitrary", "arbitrary"),
            vmem_limit_bytes=vmem_limit),
    )(patches, wmat, g, b)

    return y.reshape(n_phase, mp, cpad)[:, :m, :cout]


def _convt_tanh_blockdiag(patches, wbd):
    """patches: (M, 16*Cin), wbd: (16*Cin, 4*nc) block-diag -> tanh GEMM (M, 4*nc)."""
    m, k = patches.shape
    lanes = wbd.shape[1]
    mp, tm = _pad_m(m)
    cpad = _round_up(lanes, LANE)

    if mp != m:
        patches = jnp.pad(patches, ((0, mp - m), (0, 0)))
    if cpad != lanes:
        wbd = jnp.pad(wbd, ((0, 0), (0, cpad - lanes)))
    patches = patches.astype(jnp.bfloat16)
    wbd = wbd.astype(jnp.bfloat16)

    y = pl.pallas_call(
        _convt_tanh_kernel,
        out_shape=jax.ShapeDtypeStruct((mp, cpad), jnp.float32),
        grid=(mp // tm,),
        in_specs=[
            pl.BlockSpec((tm, k), lambda i: (i, 0)),
            pl.BlockSpec((k, cpad), lambda i: (0, 0)),
        ],
        out_specs=pl.BlockSpec((tm, cpad), lambda i: (i, 0)),
        compiler_params=pltpu.CompilerParams(
            dimension_semantics=("parallel",)),    # no shared state
    )(patches, wbd)

    return y[:m, :lanes]


# ------------------ phase-decomposed ConvTranspose2d glue --------------------
# For stride=2, pad=1, k=4:  out[n, 2m+ph, 2l+pw, co] =
#   sum_{dh,dw,ci} xpad[n, m+ph+dh, l+pw+dw, ci] * w[ci, co, 3-ph-2dh, 3-pw-2dw]
# i.e. 4 independent 2x2 stride-1 convolutions (one per output phase).


def _stride2_patches(x):
    """NHWC x (N,H,W,C) -> phase patches (4, N*H*W, 4*C)."""
    n, h, w, c = x.shape
    xp = jnp.pad(x, ((0, 0), (1, 1), (1, 1), (0, 0)))
    phases = []
    for ph in range(2):
        for pw in range(2):
            taps = [xp[:, ph + dh:ph + dh + h, pw + dw:pw + dw + w, :]
                    for dh in range(2) for dw in range(2)]
            p = jnp.stack(taps, axis=3)                      # (N, H, W, 4, C)
            phases.append(p.reshape(n * h * w, 4 * c))
    return jnp.stack(phases, axis=0)


def _stride2_patches_concat(x):
    """NHWC x -> (N*H*W, 16*C): the 4 phase patch blocks concatenated along K."""
    n, h, w, c = x.shape
    pp = _stride2_patches(x)                                 # (4, M, 4*C)
    return jnp.transpose(pp, (1, 0, 2)).reshape(n * h * w, 16 * c)


def _stride2_weight(w):
    """ConvTranspose2d weight (Cin,Cout,4,4) -> per-phase mats (4, 4*Cin, Cout)."""
    cin, cout = w.shape[0], w.shape[1]
    mats = []
    for ph in range(2):
        for pw in range(2):
            taps = [w[:, :, 3 - ph - 2 * dh, 3 - pw - 2 * dw]
                    for dh in range(2) for dw in range(2)]   # each (Cin, Cout)
            mats.append(jnp.stack(taps, axis=0).reshape(4 * cin, cout))
    return jnp.stack(mats, axis=0)


def _stride2_weight_blockdiag(w):
    """(Cin,Cout,4,4) -> block-diagonal (16*Cin, 4*Cout): phase p occupies
    rows [p*4Cin:(p+1)*4Cin] and cols [p*Cout:(p+1)*Cout]."""
    cin, cout = w.shape[0], w.shape[1]
    per_phase = _stride2_weight(w)                           # (4, 4*Cin, Cout)
    k = 4 * cin
    wbd = jnp.zeros((4 * k, 4 * cout), w.dtype)
    for p in range(4):
        wbd = wbd.at[p * k:(p + 1) * k, p * cout:(p + 1) * cout].set(per_phase[p])
    return wbd


def _interleave_phases(y, n, h, w):
    """Phase outputs (4, N*H*W, C) -> NHWC (N, 2H, 2W, C)."""
    c = y.shape[-1]
    y = y.reshape(2, 2, n, h, w, c).transpose(2, 3, 0, 4, 1, 5)
    return y.reshape(n, 2 * h, 2 * w, c)


# --------------------------------- _netG64 ----------------------------------


def netG64_forward(x, params):
    """x: (N, nz, 1, 1) NCHW latent  ->  (N, nc, 64, 64) NCHW image."""
    n, nz = x.shape[0], x.shape[1]
    x2d = x.reshape(n, nz)

    # Layer 1: ConvT(nz, ngf*8, 4, 1, 0) + BN + ReLU : 1x1 -> 4x4 (one GEMM)
    h = _layer1_convt_bn_relu(x2d, params["w1"], params["g1"], params["b1"])

    # Layers 2-4: ConvT(k=4, s=2, p=1) + BN + ReLU : 4->8->16->32 (bf16)
    for wk, gk, bk in (("w2", "g2", "b2"), ("w3", "g3", "b3"), ("w4", "g4", "b4")):
        nn_, hh, ww, _ = h.shape
        y = _fused_convt_bn_relu(_stride2_patches(h), _stride2_weight(params[wk]),
                                 params[gk], params[bk],
                                 count=nn_ * (2 * hh) * (2 * ww))
        h = _interleave_phases(y, nn_, hh, ww)

    # Layer 5: ConvT(ngf, nc, 4, 2, 1) + tanh : 32 -> 64 (one block-diag GEMM)
    nn_, hh, ww, _ = h.shape
    nc_out = params["w5"].shape[1]
    y = _convt_tanh_blockdiag(_stride2_patches_concat(h),
                              _stride2_weight_blockdiag(params["w5"]))
    y = y.reshape(nn_, hh, ww, 2, 2, nc_out).transpose(0, 1, 3, 2, 4, 5)
    out = y.reshape(nn_, 2 * hh, 2 * ww, nc_out)             # (N,64,64,nc) NHWC
    return jnp.transpose(out, (0, 3, 1, 2))                  # single NCHW relayout


def init_params(key, nz, ngf, nc):
    """Deterministic DCGAN-style init: conv ~ N(0, 0.02), BN gamma ~ N(1, 0.02)."""
    ks = jax.random.split(key, 9)

    def conv_w(k, cin, cout):
        return 0.02 * jax.random.normal(k, (cin, cout, KSIZE, KSIZE), jnp.float32)

    def bn_g(k, c):
        return 1.0 + 0.02 * jax.random.normal(k, (c,), jnp.float32)

    return {
        "w1": conv_w(ks[0], nz, ngf * 8),
        "g1": bn_g(ks[1], ngf * 8), "b1": jnp.zeros((ngf * 8,), jnp.float32),
        "w2": conv_w(ks[2], ngf * 8, ngf * 4),
        "g2": bn_g(ks[3], ngf * 4), "b2": jnp.zeros((ngf * 4,), jnp.float32),
        "w3": conv_w(ks[4], ngf * 4, ngf * 2),
        "g3": bn_g(ks[5], ngf * 2), "b3": jnp.zeros((ngf * 2,), jnp.float32),
        "w4": conv_w(ks[6], ngf * 2, ngf),
        "g4": bn_g(ks[7], ngf), "b4": jnp.zeros((ngf,), jnp.float32),
        "w5": conv_w(ks[8], ngf, nc),
    }


if __name__ == "__main__":
    nz, ngf, nc, batch = 16, 8, 3, 2
    key = jax.random.PRNGKey(0)
    kx, kp = jax.random.split(key)
    x = jax.random.normal(kx, (batch, nz, 1, 1), jnp.float32)   # latent, NCHW
    params = init_params(kp, nz, ngf, nc)

    fwd = jax.jit(netG64_forward)
    out = jax.block_until_ready(fwd(x, params))

    assert out.shape == (batch, nc, 64, 64), out.shape
    assert out.dtype == jnp.float32
    assert bool(jnp.all(jnp.isfinite(out)))
    assert bool(jnp.all(jnp.abs(out) <= 1.0))   # tanh range
    print("KERNEL_OK")
</pallas_src>

<mosaic_0001>
module attributes {stable_mosaic.version = 11 : i64} {
  func.func @_layer1_kernel(%arg0: memref<8x16xbf16, #tpu.memory_space<vmem>>, %arg1: memref<16x2048xbf16, #tpu.memory_space<vmem>>, %arg2: memref<1x128xf32, #tpu.memory_space<vmem>>, %arg3: memref<1x128xf32, #tpu.memory_space<vmem>>, %arg4: memref<8x2048xbf16, #tpu.memory_space<vmem>>) attributes {dimension_semantics = [], scalar_prefetch = 0 : i64, scratch_operands = 0 : i64, tpu.core_type = #tpu.core_type<tc>} {
    %c0 = arith.constant 0 : index
    %c0_0 = arith.constant 0 : index
    %0 = vector.load %arg0[%c0, %c0_0] : memref<8x16xbf16, #tpu.memory_space<vmem>>, vector<8x16xbf16>
    %c0_1 = arith.constant 0 : index
    %c0_2 = arith.constant 0 : index
    %1 = vector.load %arg1[%c0_1, %c0_2] : memref<16x2048xbf16, #tpu.memory_space<vmem>>, vector<16x2048xbf16>
    %cst = arith.constant dense<0.000000e+00> : vector<8x2048xf32>
    %2 = tpu.matmul %0, %1, %cst {dimension_numbers = #tpu.dot_dimension_numbers<[1], [0], [0], [1], [0, 0, 1, 1], [], []>} : vector<8x16xbf16>, vector<16x2048xbf16>, vector<8x2048xf32> -> vector<8x2048xf32>
    %cst_3 = arith.constant dense<0.000000e+00> : vector<2048xf32>
    %3 = vector.multi_reduction <add>, %2, %cst_3 [0] : vector<8x2048xf32> to vector<2048xf32>
    %4 = vector.shape_cast %3 : vector<2048xf32> to vector<1x2048xf32>
    %5 = arith.mulf %2, %2 : vector<8x2048xf32>
    %cst_4 = arith.constant dense<0.000000e+00> : vector<2048xf32>
    %6 = vector.multi_reduction <add>, %5, %cst_4 [0] : vector<8x2048xf32> to vector<2048xf32>
    %7 = vector.shape_cast %6 : vector<2048xf32> to vector<1x2048xf32>
    %8 = vector.extract_strided_slice %4 {offsets = [0, 0], sizes = [1, 128], strides = [1, 1]} : vector<1x2048xf32> to vector<1x128xf32>
    %9 = vector.extract_strided_slice %7 {offsets = [0, 0], sizes = [1, 128], strides = [1, 1]} : vector<1x2048xf32> to vector<1x128xf32>
    %10 = vector.extract_strided_slice %4 {offsets = [0, 128], sizes = [1, 128], strides = [1, 1]} : vector<1x2048xf32> to vector<1x128xf32>
    %11 = arith.addf %8, %10 : vector<1x128xf32>
    %12 = vector.extract_strided_slice %7 {offsets = [0, 128], sizes = [1, 128], strides = [1, 1]} : vector<1x2048xf32> to vector<1x128xf32>
    %13 = arith.addf %9, %12 : vector<1x128xf32>
    %14 = vector.extract_strided_slice %4 {offsets = [0, 256], sizes = [1, 128], strides = [1, 1]} : vector<1x2048xf32> to vector<1x128xf32>
    %15 = arith.addf %11, %14 : vector<1x128xf32>
    %16 = vector.extract_strided_slice %7 {offsets = [0, 256], sizes = [1, 128], strides = [1, 1]} : vector<1x2048xf32> to vector<1x128xf32>
    %17 = arith.addf %13, %16 : vector<1x128xf32>
    %18 = vector.extract_strided_slice %4 {offsets = [0, 384], sizes = [1, 128], strides = [1, 1]} : vector<1x2048xf32> to vector<1x128xf32>
    %19 = arith.addf %15, %18 : vector<1x128xf32>
    %20 = vector.extract_strided_slice %7 {offsets = [0, 384], sizes = [1, 128], strides = [1, 1]} : vector<1x2048xf32> to vector<1x128xf32>
    %21 = arith.addf %17, %20 : vector<1x128xf32>
    %22 = vector.extract_strided_slice %4 {offsets = [0, 512], sizes = [1, 128], strides = [1, 1]} : vector<1x2048xf32> to vector<1x128xf32>
    %23 = arith.addf %19, %22 : vector<1x128xf32>
    %24 = vector.extract_strided_slice %7 {offsets = [0, 512], sizes = [1, 128], strides = [1, 1]} : vector<1x2048xf32> to vector<1x128xf32>
    %25 = arith.addf %21, %24 : vector<1x128xf32>
    %26 = vector.extract_strided_slice %4 {offsets = [0, 640], sizes = [1, 128], strides = [1, 1]} : vector<1x2048xf32> to vector<1x128xf32>
    %27 = arith.addf %23, %26 : vector<1x128xf32>
    %28 = vector.extract_strided_slice %7 {offsets = [0, 640], sizes = [1, 128], strides = [1, 1]} : vector<1x2048xf32> to vector<1x128xf32>
    %29 = arith.addf %25, %28 : vector<1x128xf32>
    %30 = vector.extract_strided_slice %4 {offsets = [0, 768], sizes = [1, 128], strides = [1, 1]} : vector<1x2048xf32> to vector<1x128xf32>
    %31 = arith.addf %27, %30 : vector<1x128xf32>
    %32 = vector.extract_strided_slice %7 {offsets = [0, 768], sizes = [1, 128], strides = [1, 1]} : vector<1x2048xf32> to vector<1x128xf32>
    %33 = arith.addf %29, %32 : vector<1x128xf32>
    %34 = vector.extract_strided_slice %4 {offsets = [0, 896], sizes = [1, 128], strides = [1, 1]} : vector<1x2048xf32> to vector<1x128xf32>
    %35 = arith.addf %31, %34 : vector<1x128xf32>
    %36 = vector.extract_strided_slice %7 {offsets = [0, 896], sizes = [1, 128], strides = [1, 1]} : vector<1x2048xf32> to vector<1x128xf32>
    %37 = arith.addf %33, %36 : vector<1x128xf32>
    %38 = vector.extract_strided_slice %4 {offsets = [0, 1024], sizes = [1, 128], strides = [1, 1]} : vector<1x2048xf32> to vector<1x128xf32>
    %39 = arith.addf %35, %38 : vector<1x128xf32>
    %40 = vector.extract_strided_slice %7 {offsets = [0, 1024], sizes = [1, 128], strides = [1, 1]} : vector<1x2048xf32> to vector<1x128xf32>
    %41 = arith.addf %37, %40 : vector<1x128xf32>
    %42 = vector.extract_strided_slice %4 {offsets = [0, 1152], sizes = [1, 128], strides = [1, 1]} : vector<1x2048xf32> to vector<1x128xf32>
    %43 = arith.addf %39, %42 : vector<1x128xf32>
    %44 = vector.extract_strided_slice %7 {offsets = [0, 1152], sizes = [1, 128], strides = [1, 1]} : vector<1x2048xf32> to vector<1x128xf32>
    %45 = arith.addf %41, %44 : vector<1x128xf32>
    %46 = vector.extract_strided_slice %4 {offsets = [0, 1280], sizes = [1, 128], strides = [1, 1]} : vector<1x2048xf32> to vector<1x128xf32>
    %47 = arith.addf %43, %46 : vector<1x128xf32>
    %48 = vector.extract_strided_slice %7 {offsets = [0, 1280], sizes = [1, 128], strides = [1, 1]} : vector<1x2048xf32> to vector<1x128xf32>
    %49 = arith.addf %45, %48 : vector<1x128xf32>
    %50 = vector.extract_strided_slice %4 {offsets = [0, 1408], sizes = [1, 128], strides = [1, 1]} : vector<1x2048xf32> to vector<1x128xf32>
    %51 = arith.addf %47, %50 : vector<1x128xf32>
    %52 = vector.extract_strided_slice %7 {offsets = [0, 1408], sizes = [1, 128], strides = [1, 1]} : vector<1x2048xf32> to vector<1x128xf32>
    %53 = arith.addf %49, %52 : vector<1x128xf32>
    %54 = vector.extract_strided_slice %4 {offsets = [0, 1536], sizes = [1, 128], strides = [1, 1]} : vector<1x2048xf32> to vector<1x128xf32>
    %55 = arith.addf %51, %54 : vector<1x128xf32>
    %56 = vector.extract_strided_slice %7 {offsets = [0, 1536], sizes = [1, 128], strides = [1, 1]} : vector<1x2048xf32> to vector<1x128xf32>
    %57 = arith.addf %53, %56 : vector<1x128xf32>
    %58 = vector.extract_strided_slice %4 {offsets = [0, 1664], sizes = [1, 128], strides = [1, 1]} : vector<1x2048xf32> to vector<1x128xf32>
    %59 = arith.addf %55, %58 : vector<1x128xf32>
    %60 = vector.extract_strided_slice %7 {offsets = [0, 1664], sizes = [1, 128], strides = [1, 1]} : vector<1x2048xf32> to vector<1x128xf32>
    %61 = arith.addf %57, %60 : vector<1x128xf32>
    %62 = vector.extract_strided_slice %4 {offsets = [0, 1792], sizes = [1, 128], strides = [1, 1]} : vector<1x2048xf32> to vector<1x128xf32>
    %63 = arith.addf %59, %62 : vector<1x128xf32>
    %64 = vector.extract_strided_slice %7 {offsets = [0, 1792], sizes = [1, 128], strides = [1, 1]} : vector<1x2048xf32> to vector<1x128xf32>
    %65 = arith.addf %61, %64 : vector<1x128xf32>
    %66 = vector.extract_strided_slice %4 {offsets = [0, 1920], sizes = [1, 128], strides = [1, 1]} : vector<1x2048xf32> to vector<1x128xf32>
    %67 = arith.addf %63, %66 : vector<1x128xf32>
    %68 = vector.extract_strided_slice %7 {offsets = [0, 1920], sizes = [1, 128], strides = [1, 1]} : vector<1x2048xf32> to vector<1x128xf32>
    %69 = arith.addf %65, %68 : vector<1x128xf32>
    %cst_5 = arith.constant 3.125000e-02 : f32
    %70 = vector.broadcast %cst_5 : f32 to vector<1x128xf32>
    %71 = arith.mulf %67, %70 : vector<1x128xf32>
    %cst_6 = arith.constant 3.125000e-02 : f32
    %72 = vector.broadcast %cst_6 : f32 to vector<1x128xf32>
    %73 = arith.mulf %69, %72 : vector<1x128xf32>
    %74 = arith.mulf %71, %71 : vector<1x128xf32>
    %75 = arith.subf %73, %74 : vector<1x128xf32>
    %cst_7 = arith.constant 0.000000e+00 : f32
    %76 = vector.broadcast %cst_7 : f32 to vector<1x128xf32>
    %77 = arith.maximumf %75, %76 : vector<1x128xf32>
    %c0_8 = arith.constant 0 : index
    %c0_9 = arith.constant 0 : index
    %78 = vector.load %arg2[%c0_8, %c0_9] : memref<1x128xf32, #tpu.memory_space<vmem>>, vector<1x128xf32>
    %cst_10 = arith.constant 9.99999974E-6 : f32
    %79 = vector.broadcast %cst_10 : f32 to vector<1x128xf32>
    %80 = arith.addf %77, %79 : vector<1x128xf32>
    %81 = math.rsqrt %80 : vector<1x128xf32>
    %82 = arith.mulf %78, %81 : vector<1x128xf32>
    %c0_11 = arith.constant 0 : index
    %c0_12 = arith.constant 0 : index
    %83 = vector.load %arg3[%c0_11, %c0_12] : memref<1x128xf32, #tpu.memory_space<vmem>>, vector<1x128xf32>
    %84 = arith.mulf %71, %82 : vector<1x128xf32>
    %85 = arith.subf %83, %84 : vector<1x128xf32>
    %86 = vector.extract_strided_slice %2 {offsets = [0, 0], sizes = [8, 128], strides = [1, 1]} : vector<8x2048xf32> to vector<8x128xf32>
    %87 = vector.broadcast %82 : vector<1x128xf32> to vector<8x128xf32>
    %88 = arith.mulf %86, %87 : vector<8x128xf32>
    %89 = vector.broadcast %85 : vector<1x128xf32> to vector<8x128xf32>
    %90 = arith.addf %88, %89 : vector<8x128xf32>
    %cst_13 = arith.constant 0.000000e+00 : f32
    %91 = vector.broadcast %cst_13 : f32 to vector<8x128xf32>
    %92 = arith.maximumf %90, %91 : vector<8x128xf32>
    %93 = arith.truncf %92 : vector<8x128xf32> to vector<8x128xbf16>
    %c0_14 = arith.constant 0 : index
    %c0_15 = arith.constant 0 : index
    %94 = vector.load %arg4[%c0_14, %c0_15] : memref<8x2048xbf16, #tpu.memory_space<vmem>>, vector<8x128xbf16>
    tpu.vector_store %arg4[%c0_14, %c0_15], %93 {strides = array<i32>} : memref<8x2048xbf16, #tpu.memory_space<vmem>>, vector<8x128xbf16>,
    %95 = vector.extract_strided_slice %2 {offsets = [0, 128], sizes = [8, 128], strides = [1, 1]} : vector<8x2048xf32> to vector<8x128xf32>
    %96 = vector.broadcast %82 : vector<1x128xf32> to vector<8x128xf32>
    %97 = arith.mulf %95, %96 : vector<8x128xf32>
    %98 = vector.broadcast %85 : vector<1x128xf32> to vector<8x128xf32>
    %99 = arith.addf %97, %98 : vector<8x128xf32>
    %cst_16 = arith.constant 0.000000e+00 : f32
    %100 = vector.broadcast %cst_16 : f32 to vector<8x128xf32>
    %101 = arith.maximumf %99, %100 : vector<8x128xf32>
    %102 = arith.truncf %101 : vector<8x128xf32> to vector<8x128xbf16>
    %c0_17 = arith.constant 0 : index
    %c128 = arith.constant 128 : index
    %103 = vector.load %arg4[%c0_17, %c128] : memref<8x2048xbf16, #tpu.memory_space<vmem>>, vector<8x128xbf16>
    tpu.vector_store %arg4[%c0_17, %c128], %102 {strides = array<i32>} : memref<8x2048xbf16, #tpu.memory_space<vmem>>, vector<8x128xbf16>,
    %104 = vector.extract_strided_slice %2 {offsets = [0, 256], sizes = [8, 128], strides = [1, 1]} : vector<8x2048xf32> to vector<8x128xf32>
    %105 = vector.broadcast %82 : vector<1x128xf32> to vector<8x128xf32>
    %106 = arith.mulf %104, %105 : vector<8x128xf32>
    %107 = vector.broadcast %85 : vector<1x128xf32> to vector<8x128xf32>
    %108 = arith.addf %106, %107 : vector<8x128xf32>
    %cst_18 = arith.constant 0.000000e+00 : f32
    %109 = vector.broadcast %cst_18 : f32 to vector<8x128xf32>
    %110 = arith.maximumf %108, %109 : vector<8x128xf32>
    %111 = arith.truncf %110 : vector<8x128xf32> to vector<8x128xbf16>
    %c0_19 = arith.constant 0 : index
    %c256 = arith.constant 256 : index
    %112 = vector.load %arg4[%c0_19, %c256] : memref<8x2048xbf16, #tpu.memory_space<vmem>>, vector<8x128xbf16>
    tpu.vector_store %arg4[%c0_19, %c256], %111 {strides = array<i32>} : memref<8x2048xbf16, #tpu.memory_space<vmem>>, vector<8x128xbf16>,
    %113 = vector.extract_strided_slice %2 {offsets = [0, 384], sizes = [8, 128], strides = [1, 1]} : vector<8x2048xf32> to vector<8x128xf32>
    %114 = vector.broadcast %82 : vector<1x128xf32> to vector<8x128xf32>
    %115 = arith.mulf %113, %114 : vector<8x128xf32>
    %116 = vector.broadcast %85 : vector<1x128xf32> to vector<8x128xf32>
    %117 = arith.addf %115, %116 : vector<8x128xf32>
    %cst_20 = arith.constant 0.000000e+00 : f32
    %118 = vector.broadcast %cst_20 : f32 to vector<8x128xf32>
    %119 = arith.maximumf %117, %118 : vector<8x128xf32>
    %120 = arith.truncf %119 : vector<8x128xf32> to vector<8x128xbf16>
    %c0_21 = arith.constant 0 : index
    %c384 = arith.constant 384 : index
    %121 = vector.load %arg4[%c0_21, %c384] : memref<8x2048xbf16, #tpu.memory_space<vmem>>, vector<8x128xbf16>
    tpu.vector_store %arg4[%c0_21, %c384], %120 {strides = array<i32>} : memref<8x2048xbf16, #tpu.memory_space<vmem>>, vector<8x128xbf16>,
    %122 = vector.extract_strided_slice %2 {offsets = [0, 512], sizes = [8, 128], strides = [1, 1]} : vector<8x2048xf32> to vector<8x128xf32>
    %123 = vector.broadcast %82 : vector<1x128xf32> to vector<8x128xf32>
    %124 = arith.mulf %122, %123 : vector<8x128xf32>
    %125 = vector.broadcast %85 : vector<1x128xf32> to vector<8x128xf32>
    %126 = arith.addf %124, %125 : vector<8x128xf32>
    %cst_22 = arith.constant 0.000000e+00 : f32
    %127 = vector.broadcast %cst_22 : f32 to vector<8x128xf32>
    %128 = arith.maximumf %126, %127 : vector<8x128xf32>
    %129 = arith.truncf %128 : vector<8x128xf32> to vector<8x128xbf16>
    %c0_23 = arith.constant 0 : index
    %c512 = arith.constant 512 : index
    %130 = vector.load %arg4[%c0_23, %c512] : memref<8x2048xbf16, #tpu.memory_space<vmem>>, vector<8x128xbf16>
    tpu.vector_store %arg4[%c0_23, %c512], %129 {strides = array<i32>} : memref<8x2048xbf16, #tpu.memory_space<vmem>>, vector<8x128xbf16>,
    %131 = vector.extract_strided_slice %2 {offsets = [0, 640], sizes = [8, 128], strides = [1, 1]} : vector<8x2048xf32> to vector<8x128xf32>
    %132 = vector.broadcast %82 : vector<1x128xf32> to vector<8x128xf32>
    %133 = arith.mulf %131, %132 : vector<8x128xf32>
    %134 = vector.broadcast %85 : vector<1x128xf32> to vector<8x128xf32>
    %135 = arith.addf %133, %134 : vector<8x128xf32>
    %cst_24 = arith.constant 0.000000e+00 : f32
    %136 = vector.broadcast %cst_24 : f32 to vector<8x128xf32>
    %137 = arith.maximumf %135, %136 : vector<8x128xf32>
    %138 = arith.truncf %137 : vector<8x128xf32> to vector<8x128xbf16>
    %c0_25 = arith.constant 0 : index
    %c640 = arith.constant 640 : index
    %139 = vector.load %arg4[%c0_25, %c640] : memref<8x2048xbf16, #tpu.memory_space<vmem>>, vector<8x128xbf16>
    tpu.vector_store %arg4[%c0_25, %c640], %138 {strides = array<i32>} : memref<8x2048xbf16, #tpu.memory_space<vmem>>, vector<8x128xbf16>,
    %140 = vector.extract_strided_slice %2 {offsets = [0, 768], sizes = [8, 128], strides = [1, 1]} : vector<8x2048xf32> to vector<8x128xf32>
    %141 = vector.broadcast %82 : vector<1x128xf32> to vector<8x128xf32>
    %142 = arith.mulf %140, %141 : vector<8x128xf32>
    %143 = vector.broadcast %85 : vector<1x128xf32> to vector<8x128xf32>
    %144 = arith.addf %142, %143 : vector<8x128xf32>
    %cst_26 = arith.constant 0.000000e+00 : f32
    %145 = vector.broadcast %cst_26 : f32 to vector<8x128xf32>
    %146 = arith.maximumf %144, %145 : vector<8x128xf32>
    %147 = arith.truncf %146 : vector<8x128xf32> to vector<8x128xbf16>
    %c0_27 = arith.constant 0 : index
    %c768 = arith.constant 768 : index
    %148 = vector.load %arg4[%c0_27, %c768] : memref<8x2048xbf16, #tpu.memory_space<vmem>>, vector<8x128xbf16>
    tpu.vector_store %arg4[%c0_27, %c768], %147 {strides = array<i32>} : memref<8x2048xbf16, #tpu.memory_space<vmem>>, vector<8x128xbf16>,
    %149 = vector.extract_strided_slice %2 {offsets = [0, 896], sizes = [8, 128], strides = [1, 1]} : vector<8x2048xf32> to vector<8x128xf32>
    %150 = vector.broadcast %82 : vector<1x128xf32> to vector<8x128xf32>
    %151 = arith.mulf %149, %150 : vector<8x128xf32>
    %152 = vector.broadcast %85 : vector<1x128xf32> to vector<8x128xf32>
    %153 = arith.addf %151, %152 : vector<8x128xf32>
    %cst_28 = arith.constant 0.000000e+00 : f32
    %154 = vector.broadcast %cst_28 : f32 to vector<8x128xf32>
    %155 = arith.maximumf %153, %154 : vector<8x128xf32>
    %156 = arith.truncf %155 : vector<8x128xf32> to vector<8x128xbf16>
    %c0_29 = arith.constant 0 : index
    %c896 = arith.constant 896 : index
    %157 = vector.load %arg4[%c0_29, %c896] : memref<8x2048xbf16, #tpu.memory_space<vmem>>, vector<8x128xbf16>
    tpu.vector_store %arg4[%c0_29, %c896], %156 {strides = array<i32>} : memref<8x2048xbf16, #tpu.memory_space<vmem>>, vector<8x128xbf16>,
    %158 = vector.extract_strided_slice %2 {offsets = [0, 1024], sizes = [8, 128], strides = [1, 1]} : vector<8x2048xf32> to vector<8x128xf32>
    %159 = vector.broadcast %82 : vector<1x128xf32> to vector<8x128xf32>
    %160 = arith.mulf %158, %159 : vector<8x128xf32>
    %161 = vector.broadcast %85 : vector<1x128xf32> to vector<8x128xf32>
    %162 = arith.addf %160, %161 : vector<8x128xf32>
    %cst_30 = arith.constant 0.000000e+00 : f32
    %163 = vector.broadcast %cst_30 : f32 to vector<8x128xf32>
    %164 = arith.maximumf %162, %163 : vector<8x128xf32>
    %165 = arith.truncf %164 : vector<8x128xf32> to vector<8x128xbf16>
    %c0_31 = arith.constant 0 : index
    %c1024 = arith.constant 1024 : index
    %166 = vector.load %arg4[%c0_31, %c1024] : memref<8x2048xbf16, #tpu.memory_space<vmem>>, vector<8x128xbf16>
    tpu.vector_store %arg4[%c0_31, %c1024], %165 {strides = array<i32>} : memref<8x2048xbf16, #tpu.memory_space<vmem>>, vector<8x128xbf16>,
    %167 = vector.extract_strided_slice %2 {offsets = [0, 1152], sizes = [8, 128], strides = [1, 1]} : vector<8x2048xf32> to vector<8x128xf32>
    %168 = vector.broadcast %82 : vector<1x128xf32> to vector<8x128xf32>
    %169 = arith.mulf %167, %168 : vector<8x128xf32>
    %170 = vector.broadcast %85 : vector<1x128xf32> to vector<8x128xf32>
    %171 = arith.addf %169, %170 : vector<8x128xf32>
    %cst_32 = arith.constant 0.000000e+00 : f32
    %172 = vector.broadcast %cst_32 : f32 to vector<8x128xf32>
    %173 = arith.maximumf %171, %172 : vector<8x128xf32>
    %174 = arith.truncf %173 : vector<8x128xf32> to vector<8x128xbf16>
    %c0_33 = arith.constant 0 : index
    %c1152 = arith.constant 1152 : index
    %175 = vector.load %arg4[%c0_33, %c1152] : memref<8x2048xbf16, #tpu.memory_space<vmem>>, vector<8x128xbf16>
    tpu.vector_store %arg4[%c0_33, %c1152], %174 {strides = array<i32>} : memref<8x2048xbf16, #tpu.memory_space<vmem>>, vector<8x128xbf16>,
    %176 = vector.extract_strided_slice %2 {offsets = [0, 1280], sizes = [8, 128], strides = [1, 1]} : vector<8x2048xf32> to vector<8x128xf32>
    %177 = vector.broadcast %82 : vector<1x128xf32> to vector<8x128xf32>
    %178 = arith.mulf %176, %177 : vector<8x128xf32>
    %179 = vector.broadcast %85 : vector<1x128xf32> to vector<8x128xf32>
    %180 = arith.addf %178, %179 : vector<8x128xf32>
    %cst_34 = arith.constant 0.000000e+00 : f32
    %181 = vector.broadcast %cst_34 : f32 to vector<8x128xf32>
    %182 = arith.maximumf %180, %181 : vector<8x128xf32>
    %183 = arith.truncf %182 : vector<8x128xf32> to vector<8x128xbf16>
    %c0_35 = arith.constant 0 : index
    %c1280 = arith.constant 1280 : index
    %184 = vector.load %arg4[%c0_35, %c1280] : memref<8x2048xbf16, #tpu.memory_space<vmem>>, vector<8x128xbf16>
    tpu.vector_store %arg4[%c0_35, %c1280], %183 {strides = array<i32>} : memref<8x2048xbf16, #tpu.memory_space<vmem>>, vector<8x128xbf16>,
    %185 = vector.extract_strided_slice %2 {offsets = [0, 1408], sizes = [8, 128], strides = [1, 1]} : vector<8x2048xf32> to vector<8x128xf32>
    %186 = vector.broadcast %82 : vector<1x128xf32> to vector<8x128xf32>
    %187 = arith.mulf %185, %186 : vector<8x128xf32>
    %188 = vector.broadcast %85 : vector<1x128xf32> to vector<8x128xf32>
    %189 = arith.addf %187, %188 : vector<8x128xf32>
    %cst_36 = arith.constant 0.000000e+00 : f32
    %190 = vector.broadcast %cst_36 : f32 to vector<8x128xf32>
    %191 = arith.maximumf %189, %190 : vector<8x128xf32>
    %192 = arith.truncf %191 : vector<8x128xf32> to vector<8x128xbf16>
    %c0_37 = arith.constant 0 : index
    %c1408 = arith.constant 1408 : index
    %193 = vector.load %arg4[%c0_37, %c1408] : memref<8x2048xbf16, #tpu.memory_space<vmem>>, vector<8x128xbf16>
    tpu.vector_store %arg4[%c0_37, %c1408], %192 {strides = array<i32>} : memref<8x2048xbf16, #tpu.memory_space<vmem>>, vector<8x128xbf16>,
    %194 = vector.extract_strided_slice %2 {offsets = [0, 1536], sizes = [8, 128], strides = [1, 1]} : vector<8x2048xf32> to vector<8x128xf32>
    %195 = vector.broadcast %82 : vector<1x128xf32> to vector<8x128xf32>
    %196 = arith.mulf %194, %195 : vector<8x128xf32>
    %197 = vector.broadcast %85 : vector<1x128xf32> to vector<8x128xf32>
    %198 = arith.addf %196, %197 : vector<8x128xf32>
    %cst_38 = arith.constant 0.000000e+00 : f32
    %199 = vector.broadcast %cst_38 : f32 to vector<8x128xf32>
    %200 = arith.maximumf %198, %199 : vector<8x128xf32>
    %201 = arith.truncf %200 : vector<8x128xf32> to vector<8x128xbf16>
    %c0_39 = arith.constant 0 : index
    %c1536 = arith.constant 1536 : index
    %202 = vector.load %arg4[%c0_39, %c1536] : memref<8x2048xbf16, #tpu.memory_space<vmem>>, vector<8x128xbf16>
    tpu.vector_store %arg4[%c0_39, %c1536], %201 {strides = array<i32>} : memref<8x2048xbf16, #tpu.memory_space<vmem>>, vector<8x128xbf16>,
    %203 = vector.extract_strided_slice %2 {offsets = [0, 1664], sizes = [8, 128], strides = [1, 1]} : vector<8x2048xf32> to vector<8x128xf32>
    %204 = vector.broadcast %82 : vector<1x128xf32> to vector<8x128xf32>
    %205 = arith.mulf %203, %204 : vector<8x128xf32>
    %206 = vector.broadcast %85 : vector<1x128xf32> to vector<8x128xf32>
    %207 = arith.addf %205, %206 : vector<8x128xf32>
    %cst_40 = arith.constant 0.000000e+00 : f32
    %208 = vector.broadcast %cst_40 : f32 to vector<8x128xf32>
    %209 = arith.maximumf %207, %208 : vector<8x128xf32>
    %210 = arith.truncf %209 : vector<8x128xf32> to vector<8x128xbf16>
    %c0_41 = arith.constant 0 : index
    %c1664 = arith.constant 1664 : index
    %211 = vector.load %arg4[%c0_41, %c1664] : memref<8x2048xbf16, #tpu.memory_space<vmem>>, vector<8x128xbf16>
    tpu.vector_store %arg4[%c0_41, %c1664], %210 {strides = array<i32>} : memref<8x2048xbf16, #tpu.memory_space<vmem>>, vector<8x128xbf16>,
    %212 = vector.extract_strided_slice %2 {offsets = [0, 1792], sizes = [8, 128], strides = [1, 1]} : vector<8x2048xf32> to vector<8x128xf32>
    %213 = vector.broadcast %82 : vector<1x128xf32> to vector<8x128xf32>
    %214 = arith.mulf %212, %213 : vector<8x128xf32>
    %215 = vector.broadcast %85 : vector<1x128xf32> to vector<8x128xf32>
    %216 = arith.addf %214, %215 : vector<8x128xf32>
    %cst_42 = arith.constant 0.000000e+00 : f32
    %217 = vector.broadcast %cst_42 : f32 to vector<8x128xf32>
    %218 = arith.maximumf %216, %217 : vector<8x128xf32>
    %219 = arith.truncf %218 : vector<8x128xf32> to vector<8x128xbf16>
    %c0_43 = arith.constant 0 : index
    %c1792 = arith.constant 1792 : index
    %220 = vector.load %arg4[%c0_43, %c1792] : memref<8x2048xbf16, #tpu.memory_space<vmem>>, vector<8x128xbf16>
    tpu.vector_store %arg4[%c0_43, %c1792], %219 {strides = array<i32>} : memref<8x2048xbf16, #tpu.memory_space<vmem>>, vector<8x128xbf16>,
    %221 = vector.extract_strided_slice %2 {offsets = [0, 1920], sizes = [8, 128], strides = [1, 1]} : vector<8x2048xf32> to vector<8x128xf32>
    %222 = vector.broadcast %82 : vector<1x128xf32> to vector<8x128xf32>
    %223 = arith.mulf %221, %222 : vector<8x128xf32>
    %224 = vector.broadcast %85 : vector<1x128xf32> to vector<8x128xf32>
    %225 = arith.addf %223, %224 : vector<8x128xf32>
    %cst_44 = arith.constant 0.000000e+00 : f32
    %226 = vector.broadcast %cst_44 : f32 to vector<8x128xf32>
    %227 = arith.maximumf %225, %226 : vector<8x128xf32>
    %228 = arith.truncf %227 : vector<8x128xf32> to vector<8x128xbf16>
    %c0_45 = arith.constant 0 : index
    %c1920 = arith.constant 1920 : index
    %229 = vector.load %arg4[%c0_45, %c1920] : memref<8x2048xbf16, #tpu.memory_space<vmem>>, vector<8x128xbf16>
    tpu.vector_store %arg4[%c0_45, %c1920], %228 {strides = array<i32>} : memref<8x2048xbf16, #tpu.memory_space<vmem>>, vector<8x128xbf16>,
    return
  }
}

module attributes {stable_mosaic.version = 11 : i64} {
  func.func @_convt_bn_relu_kernel(%arg0: i32, %arg1: i32, %arg2: memref<1x32x256xbf16, #tpu.memory_space<vmem>>, %arg3: memref<1x256x128xbf16, #tpu.memory_space<vmem>>, %arg4: memref<1x128xf32, #tpu.memory_space<vmem>>, %arg5: memref<1x128xf32, #tpu.memory_space<vmem>>, %arg6: memref<128x128xbf16, #tpu.memory_space<vmem>>, %arg7: memref<1x128xf32, #tpu.memory_space<vmem>>, %arg8: memref<1x128xf32, #tpu.memory_space<vmem>>) attributes {dimension_semantics = [#tpu.dimension_semantics<arbitrary>, #tpu.dimension_semantics<arbitrary>], iteration_bounds = array<i64: 4, 1>, scalar_prefetch = 0 : i64, scratch_operands = 2 : i64, tpu.core_type = #tpu.core_type<tc>, window_params = [{transform_indices = @transform_0, window_bounds = array<i64: 1, 32, 256>}, {transform_indices = @transform_1, window_bounds = array<i64: 1, 256, 128>}, {pipeline_mode = #tpu.pipeline_mode<synchronous>, transform_indices = @transform_2, window_bounds = array<i64: 1, 128>}, {pipeline_mode = #tpu.pipeline_mode<synchronous>, transform_indices = @transform_3, window_bounds = array<i64: 1, 128>}, {pipeline_mode = #tpu.pipeline_mode<synchronous>, transform_indices = @transform_4, window_bounds = array<i64: 128, 128>}]} {
    %c0_i32 = arith.constant 0 : i32
    %0 = arith.cmpi eq, %arg0, %c0_i32 : i32
    %c0_i32_0 = arith.constant 0 : i32
    %1 = arith.cmpi eq, %arg1, %c0_i32_0 : i32
    %2 = arith.andi %0, %1 : i1
    %3 = arith.extui %2 : i1 to i32
    %c0_i32_1 = arith.constant 0 : i32
    %4 = arith.cmpi ne, %3, %c0_i32_1 : i32
    scf.if %4 {
      %cst_20 = arith.constant 0.000000e+00 : f32
      %33 = vector.broadcast %cst_20 : f32 to vector<1x128xf32>
      %c0_21 = arith.constant 0 : index
      %c0_22 = arith.constant 0 : index
      %34 = vector.load %arg7[%c0_21, %c0_22] : memref<1x128xf32, #tpu.memory_space<vmem>>, vector<1x128xf32>
      tpu.vector_store %arg7[%c0_21, %c0_22], %33 {strides = array<i32>} : memref<1x128xf32, #tpu.memory_space<vmem>>, vector<1x128xf32>,
      %cst_23 = arith.constant 0.000000e+00 : f32
      %35 = vector.broadcast %cst_23 : f32 to vector<1x128xf32>
      %c0_24 = arith.constant 0 : index
      %c0_25 = arith.constant 0 : index
      %36 = vector.load %arg8[%c0_24, %c0_25] : memref<1x128xf32, #tpu.memory_space<vmem>>, vector<1x128xf32>
      tpu.vector_store %arg8[%c0_24, %c0_25], %35 {strides = array<i32>} : memref<1x128xf32, #tpu.memory_space<vmem>>, vector<1x128xf32>,
    } else {
    }
    %c0 = arith.constant 0 : index
    %c0_2 = arith.constant 0 : index
    %c0_3 = arith.constant 0 : index
    %5 = vector.load %arg2[%c0, %c0_2, %c0_3] : memref<1x32x256xbf16, #tpu.memory_space<vmem>>, vector<1x32x256xbf16>
    %6 = vector.shape_cast %5 : vector<1x32x256xbf16> to vector<32x256xbf16>
    %c0_4 = arith.constant 0 : index
    %c0_5 = arith.constant 0 : index
    %c0_6 = arith.constant 0 : index
    %7 = vector.load %arg3[%c0_4, %c0_5, %c0_6] : memref<1x256x128xbf16, #tpu.memory_space<vmem>>, vector<1x256x128xbf16>
    %8 = vector.shape_cast %7 : vector<1x256x128xbf16> to vector<256x128xbf16>
    %cst = arith.constant dense<0.000000e+00> : vector<32x128xf32>
    %9 = tpu.matmul %6, %8, %cst {dimension_numbers = #tpu.dot_dimension_numbers<[1], [0], [0], [1], [0, 0, 1, 1], [], []>} : vector<32x256xbf16>, vector<256x128xbf16>, vector<32x128xf32> -> vector<32x128xf32>
    %c0_7 = arith.constant 0 : index
    %c0_8 = arith.constant 0 : index
    %10 = vector.load %arg7[%c0_7, %c0_8] : memref<1x128xf32, #tpu.memory_space<vmem>>, vector<1x128xf32>
    %cst_9 = arith.constant dense<0.000000e+00> : vector<128xf32>
    %11 = vector.multi_reduction <add>, %9, %cst_9 [0] : vector<32x128xf32> to vector<128xf32>
    %12 = vector.shape_cast %11 : vector<128xf32> to vector<1x128xf32>
    %13 = arith.addf %10, %12 : vector<1x128xf32>
    %c0_10 = arith.constant 0 : index
    %c0_11 = arith.constant 0 : index
    %14 = vector.load %arg7[%c0_10, %c0_11] : memref<1x128xf32, #tpu.memory_space<vmem>>, vector<1x128xf32>
    tpu.vector_store %arg7[%c0_10, %c0_11], %13 {strides = array<i32>} : memref<1x128xf32, #tpu.memory_space<vmem>>, vector<1x128xf32>,
    %c0_12 = arith.constant 0 : index
    %c0_13 = arith.constant 0 : index
    %15 = vector.load %arg8[%c0_12, %c0_13] : memref<1x128xf32, #tpu.memory_space<vmem>>, vector<1x128xf32>
    %16 = arith.mulf %9, %9 : vector<32x128xf32>
    %cst_14 = arith.constant dense<0.000000e+00> : vector<128xf32>
    %17 = vector.multi_reduction <add>, %16, %cst_14 [0] : vector<32x128xf32> to vector<128xf32>
    %18 = vector.shape_cast %17 : vector<128xf32> to vector<1x128xf32>
    %19 = arith.addf %15, %18 : vector<1x128xf32>
    %c0_15 = arith.constant 0 : index
    %c0_16 = arith.constant 0 : index
    %20 = vector.load %arg8[%c0_15, %c0_16] : memref<1x128xf32, #tpu.memory_space<vmem>>, vector<1x128xf32>
    tpu.vector_store %arg8[%c0_15, %c0_16], %19 {strides = array<i32>} : memref<1x128xf32, #tpu.memory_space<vmem>>, vector<1x128xf32>,
    %c1_i32 = arith.constant 1 : i32
    %21 = arith.muli %arg0, %c1_i32 : i32
    %22 = arith.addi %21, %arg1 : i32
    %c32_i32 = arith.constant 32 : i32
    %23 = arith.muli %22, %c32_i32 : i32
    %24 = tpu.assume_multiple %23, 32 : i32
    %25 = arith.truncf %9 : vector<32x128xf32> to vector<32x128xbf16>
    %26 = arith.index_cast %24 : i32 to index
    %c0_17 = arith.constant 0 : index
    %27 = vector.load %arg6[%26, %c0_17] : memref<128x128xbf16, #tpu.memory_space<vmem>>, vector<32x128xbf16>
    tpu.vector_store %arg6[%26, %c0_17], %25 {strides = array<i32>} : memref<128x128xbf16, #tpu.memory_space<vmem>>, vector<32x128xbf16>,
    %c3_i32 = arith.constant 3 : i32
    %28 = arith.cmpi eq, %arg0, %c3_i32 : i32
    %c0_i32_18 = arith.constant 0 : i32
    %29 = arith.cmpi eq, %arg1, %c0_i32_18 : i32
    %30 = arith.andi %28, %29 : i1
    %31 = arith.extui %30 : i1 to i32
    %c0_i32_19 = arith.constant 0 : i32
    %32 = arith.cmpi ne, %31, %c0_i32_19 : i32
    scf.if %32 {
      %c0_20 = arith.constant 0 : index
      %c0_21 = arith.constant 0 : index
      %33 = vector.load %arg7[%c0_20, %c0_21] : memref<1x128xf32, #tpu.memory_space<vmem>>, vector<1x128xf32>
      %cst_22 = arith.constant 7.812500e-03 : f32
      %34 = vector.broadcast %cst_22 : f32 to vector<1x128xf32>
      %35 = arith.mulf %33, %34 : vector<1x128xf32>
      %c0_23 = arith.constant 0 : index
      %c0_24 = arith.constant 0 : index
      %36 = vector.load %arg8[%c0_23, %c0_24] : memref<1x128xf32, #tpu.memory_space<vmem>>, vector<1x128xf32>
      %cst_25 = arith.constant 7.812500e-03 : f32
      %37 = vector.broadcast %cst_25 : f32 to vector<1x128xf32>
      %38 = arith.mulf %36, %37 : vector<1x128xf32>
      %39 = arith.mulf %35, %35 : vector<1x128xf32>
      %40 = arith.subf %38, %39 : vector<1x128xf32>
      %cst_26 = arith.constant 0.000000e+00 : f32
      %41 = vector.broadcast %cst_26 : f32 to vector<1x128xf32>
      %42 = arith.maximumf %40, %41 : vector<1x128xf32>
      %c0_27 = arith.constant 0 : index
      %c0_28 = arith.constant 0 : index
      %43 = vector.load %arg4[%c0_27, %c0_28] : memref<1x128xf32, #tpu.memory_space<vmem>>, vector<1x128xf32>
      %cst_29 = arith.constant 9.99999974E-6 : f32
      %44 = vector.broadcast %cst_29 : f32 to vector<1x128xf32>
      %45 = arith.addf %42, %44 : vector<1x128xf32>
      %46 = math.rsqrt %45 : vector<1x128xf32>
      %47 = arith.mulf %43, %46 : vector<1x128xf32>
      %c0_30 = arith.constant 0 : index
      %c0_31 = arith.constant 0 : index
      %48 = vector.load %arg5[%c0_30, %c0_31] : memref<1x128xf32, #tpu.memory_space<vmem>>, vector<1x128xf32>
      %49 = arith.mulf %35, %47 : vector<1x128xf32>
      %50 = arith.subf %48, %49 : vector<1x128xf32>
      %c0_i32_32 = arith.constant 0 : i32
      %c32_i32_33 = arith.constant 32 : i32
      %51 = arith.muli %c0_i32_32, %c32_i32_33 : i32
      %52 = tpu.assume_multiple %51, 32 : i32
      %53 = arith.index_cast %52 : i32 to index
      %c0_34 = arith.constant 0 : index
      %54 = vector.load %arg6[%53, %c0_34] : memref<128x128xbf16, #tpu.memory_space<vmem>>, vector<32x128xbf16>
      %55 = arith.extf %54 : vector<32x128xbf16> to vector<32x128xf32>
      %56 = vector.broadcast %47 : vector<1x128xf32> to vector<32x128xf32>
      %57 = arith.mulf %55, %56 : vector<32x128xf32>
      %58 = vector.broadcast %50 : vector<1x128xf32> to vector<32x128xf32>
      %59 = arith.addf %57, %58 : vector<32x128xf32>
      %cst_35 = arith.constant 0.000000e+00 : f32
      %60 = vector.broadcast %cst_35 : f32 to vector<32x128xf32>
      %61 = arith.maximumf %59, %60 : vector<32x128xf32>
      %62 = arith.truncf %61 : vector<32x128xf32> to vector<32x128xbf16>
      %63 = arith.index_cast %52 : i32 to index
      %c0_36 = arith.constant 0 : index
      %64 = vector.load %arg6[%63, %c0_36] : memref<128x128xbf16, #tpu.memory_space<vmem>>, vector<32x128xbf16>
      tpu.vector_store %arg6[%63, %c0_36], %62 {strides = array<i32>} : memref<128x128xbf16, #tpu.memory_space<vmem>>, vector<32x128xbf16>,
      %c1_i32_37 = arith.constant 1 : i32
      %c32_i32_38 = arith.constant 32 : i32
      %65 = arith.muli %c1_i32_37, %c32_i32_38 : i32
      %66 = tpu.assume_multiple %65, 32 : i32
      %67 = arith.index_cast %66 : i32 to index
      %c0_39 = arith.constant 0 : index
      %68 = vector.load %arg6[%67, %c0_39] : memref<128x128xbf16, #tpu.memory_space<vmem>>, vector<32x128xbf16>
      %69 = arith.extf %68 : vector<32x128xbf16> to vector<32x128xf32>
      %70 = vector.broadcast %47 : vector<1x128xf32> to vector<32x128xf32>
      %71 = arith.mulf %69, %70 : vector<32x128xf32>
      %72 = vector.broadcast %50 : vector<1x128xf32> to vector<32x128xf32>
      %73 = arith.addf %71, %72 : vector<32x128xf32>
      %cst_40 = arith.constant 0.000000e+00 : f32
      %74 = vector.broadcast %cst_40 : f32 to vector<32x128xf32>
      %75 = arith.maximumf %73, %74 : vector<32x128xf32>
      %76 = arith.truncf %75 : vector<32x128xf32> to vector<32x128xbf16>
      %77 = arith.index_cast %66 : i32 to index
      %c0_41 = arith.constant 0 : index
      %78 = vector.load %arg6[%77, %c0_41] : memref<128x128xbf16, #tpu.memory_space<vmem>>, vector<32x128xbf16>
      tpu.vector_store %arg6[%77, %c0_41], %76 {strides = array<i32>} : memref<128x128xbf16, #tpu.memory_space<vmem>>, vector<32x128xbf16>,
      %c2_i32 = arith.constant 2 : i32
      %c32_i32_42 = arith.constant 32 : i32
      %79 = arith.muli %c2_i32, %c32_i32_42 : i32
      %80 = tpu.assume_multiple %79, 32 : i32
      %81 = arith.index_cast %80 : i32 to index
      %c0_43 = arith.constant 0 : index
      %82 = vector.load %arg6[%81, %c0_43] : memref<128x128xbf16, #tpu.memory_space<vmem>>, vector<32x128xbf16>
      %83 = arith.extf %82 : vector<32x128xbf16> to vector<32x128xf32>
      %84 = vector.broadcast %47 : vector<1x128xf32> to vector<32x128xf32>
      %85 = arith.mulf %83, %84 : vector<32x128xf32>
      %86 = vector.broadcast %50 : vector<1x128xf32> to vector<32x128xf32>
      %87 = arith.addf %85, %86 : vector<32x128xf32>
      %cst_44 = arith.constant 0.000000e+00 : f32
      %88 = vector.broadcast %cst_44 : f32 to vector<32x128xf32>
      %89 = arith.maximumf %87, %88 : vector<32x128xf32>
      %90 = arith.truncf %89 : vector<32x128xf32> to vector<32x128xbf16>
      %91 = arith.index_cast %80 : i32 to index
      %c0_45 = arith.constant 0 : index
      %92 = vector.load %arg6[%91, %c0_45] : memref<128x128xbf16, #tpu.memory_space<vmem>>, vector<32x128xbf16>
      tpu.vector_store %arg6[%91, %c0_45], %90 {strides = array<i32>} : memref<128x128xbf16, #tpu.memory_space<vmem>>, vector<32x128xbf16>,
      %c3_i32_46 = arith.constant 3 : i32
      %c32_i32_47 = arith.constant 32 : i32
      %93 = arith.muli %c3_i32_46, %c32_i32_47 : i32
      %94 = tpu.assume_multiple %93, 32 : i32
      %95 = arith.index_cast %94 : i32 to index
      %c0_48 = arith.constant 0 : index
      %96 = vector.load %arg6[%95, %c0_48] : memref<128x128xbf16, #tpu.memory_space<vmem>>, vector<32x128xbf16>
      %97 = arith.extf %96 : vector<32x128xbf16> to vector<32x128xf32>
      %98 = vector.broadcast %47 : vector<1x128xf32> to vector<32x128xf32>
      %99 = arith.mulf %97, %98 : vector<32x128xf32>
      %100 = vector.broadcast %50 : vector<1x128xf32> to vector<32x128xf32>
      %101 = arith.addf %99, %100 : vector<32x128xf32>
      %cst_49 = arith.constant 0.000000e+00 : f32
      %102 = vector.broadcast %cst_49 : f32 to vector<32x128xf32>
      %103 = arith.maximumf %101, %102 : vector<32x128xf32>
      %104 = arith.truncf %103 : vector<32x128xf32> to vector<32x128xbf16>
      %105 = arith.index_cast %94 : i32 to index
      %c0_50 = arith.constant 0 : index
      %106 = vector.load %arg6[%105, %c0_50] : memref<128x128xbf16, #tpu.memory_space<vmem>>, vector<32x128xbf16>
      tpu.vector_store %arg6[%105, %c0_50], %104 {strides = array<i32>} : memref<128x128xbf16, #tpu.memory_space<vmem>>, vector<32x128xbf16>,
      %c4_i32 = arith.constant 4 : i32
    } else {
    }
    return
  }
  func.func @transform_0(%arg0: i32, %arg1: i32) -> (i32, i32, i32) {
    %c0_i32 = arith.constant 0 : i32
    %c0_i32_0 = arith.constant 0 : i32
    return %arg0, %arg1, %c0_i32 : i32, i32, i32
  }
  func.func @transform_1(%arg0: i32, %arg1: i32) -> (i32, i32, i32) {
    %c0_i32 = arith.constant 0 : i32
    %c0_i32_0 = arith.constant 0 : i32
    %c0_i32_1 = arith.constant 0 : i32
    return %arg0, %c0_i32, %c0_i32_0 : i32, i32, i32
  }
  func.func @transform_2(%arg0: i32, %arg1: i32) -> (i32, i32) {
    %c0_i32 = arith.constant 0 : i32
    %c0_i32_0 = arith.constant 0 : i32
    %c0_i32_1 = arith.constant 0 : i32
    return %c0_i32, %c0_i32_0 : i32, i32
  }
  func.func @transform_3(%arg0: i32, %arg1: i32) -> (i32, i32) {
    %c0_i32 = arith.constant 0 : i32
    %c0_i32_0 = arith.constant 0 : i32
    %c0_i32_1 = arith.constant 0 : i32
    return %c0_i32, %c0_i32_0 : i32, i32
  }
  func.func @transform_4(%arg0: i32, %arg1: i32) -> (i32, i32) {
    %c0_i32 = arith.constant 0 : i32
    %c0_i32_0 = arith.constant 0 : i32
    %c0_i32_1 = arith.constant 0 : i32
    return %c0_i32, %c0_i32_0 : i32, i32
  }
}

module attributes {stable_mosaic.version = 11 : i64} {
  func.func @_convt_bn_relu_kernel(%arg0: i32, %arg1: i32, %arg2: memref<1x128x128xbf16, #tpu.memory_space<vmem>>, %arg3: memref<1x128x128xbf16, #tpu.memory_space<vmem>>, %arg4: memref<1x128xf32, #tpu.memory_space<vmem>>, %arg5: memref<1x128xf32, #tpu.memory_space<vmem>>, %arg6: memref<512x128xbf16, #tpu.memory_space<vmem>>, %arg7: memref<1x128xf32, #tpu.memory_space<vmem>>, %arg8: memref<1x128xf32, #tpu.memory_space<vmem>>) attributes {dimension_semantics = [#tpu.dimension_semantics<arbitrary>, #tpu.dimension_semantics<arbitrary>], iteration_bounds = array<i64: 4, 1>, scalar_prefetch = 0 : i64, scratch_operands = 2 : i64, tpu.core_type = #tpu.core_type<tc>, window_params = [{transform_indices = @transform_0, window_bounds = array<i64: 1, 128, 128>}, {transform_indices = @transform_1, window_bounds = array<i64: 1, 128, 128>}, {pipeline_mode = #tpu.pipeline_mode<synchronous>, transform_indices = @transform_2, window_bounds = array<i64: 1, 128>}, {pipeline_mode = #tpu.pipeline_mode<synchronous>, transform_indices = @transform_3, window_bounds = array<i64: 1, 128>}, {pipeline_mode = #tpu.pipeline_mode<synchronous>, transform_indices = @transform_4, window_bounds = array<i64: 512, 128>}]} {
    %c0_i32 = arith.constant 0 : i32
    %0 = arith.cmpi eq, %arg0, %c0_i32 : i32
    %c0_i32_0 = arith.constant 0 : i32
    %1 = arith.cmpi eq, %arg1, %c0_i32_0 : i32
    %2 = arith.andi %0, %1 : i1
    %3 = arith.extui %2 : i1 to i32
    %c0_i32_1 = arith.constant 0 : i32
    %4 = arith.cmpi ne, %3, %c0_i32_1 : i32
    scf.if %4 {
      %cst_20 = arith.constant 0.000000e+00 : f32
      %33 = vector.broadcast %cst_20 : f32 to vector<1x128xf32>
      %c0_21 = arith.constant 0 : index
      %c0_22 = arith.constant 0 : index
      %34 = vector.load %arg7[%c0_21, %c0_22] : memref<1x128xf32, #tpu.memory_space<vmem>>, vector<1x128xf32>
      tpu.vector_store %arg7[%c0_21, %c0_22], %33 {strides = array<i32>} : memref<1x128xf32, #tpu.memory_space<vmem>>, vector<1x128xf32>,
      %cst_23 = arith.constant 0.000000e+00 : f32
      %35 = vector.broadcast %cst_23 : f32 to vector<1x128xf32>
      %c0_24 = arith.constant 0 : index
      %c0_25 = arith.constant 0 : index
      %36 = vector.load %arg8[%c0_24, %c0_25] : memref<1x128xf32, #tpu.memory_space<vmem>>, vector<1x128xf32>
      tpu.vector_store %arg8[%c0_24, %c0_25], %35 {strides = array<i32>} : memref<1x128xf32, #tpu.memory_space<vmem>>, vector<1x128xf32>,
    } else {
    }
    %c0 = arith.constant 0 : index
    %c0_2 = arith.constant 0 : index
    %c0_3 = arith.constant 0 : index
    %5 = vector.load %arg2[%c0, %c0_2, %c0_3] : memref<1x128x128xbf16, #tpu.memory_space<vmem>>, vector<1x128x128xbf16>
    %6 = vector.shape_cast %5 : vector<1x128x128xbf16> to vector<128x128xbf16>
    %c0_4 = arith.constant 0 : index
    %c0_5 = arith.constant 0 : index
    %c0_6 = arith.constant 0 : index
    %7 = vector.load %arg3[%c0_4, %c0_5, %c0_6] : memref<1x128x128xbf16, #tpu.memory_space<vmem>>, vector<1x128x128xbf16>
    %8 = vector.shape_cast %7 : vector<1x128x128xbf16> to vector<128x128xbf16>
    %cst = arith.constant dense<0.000000e+00> : vector<128x128xf32>
    %9 = tpu.matmul %6, %8, %cst {dimension_numbers = #tpu.dot_dimension_numbers<[1], [0], [0], [1], [0, 0, 1, 1], [], []>} : vector<128x128xbf16>, vector<128x128xbf16>, vector<128x128xf32> -> vector<128x128xf32>
    %c0_7 = arith.constant 0 : index
    %c0_8 = arith.constant 0 : index
    %10 = vector.load %arg7[%c0_7, %c0_8] : memref<1x128xf32, #tpu.memory_space<vmem>>, vector<1x128xf32>
    %cst_9 = arith.constant dense<0.000000e+00> : vector<128xf32>
    %11 = vector.multi_reduction <add>, %9, %cst_9 [0] : vector<128x128xf32> to vector<128xf32>
    %12 = vector.shape_cast %11 : vector<128xf32> to vector<1x128xf32>
    %13 = arith.addf %10, %12 : vector<1x128xf32>
    %c0_10 = arith.constant 0 : index
    %c0_11 = arith.constant 0 : index
    %14 = vector.load %arg7[%c0_10, %c0_11] : memref<1x128xf32, #tpu.memory_space<vmem>>, vector<1x128xf32>
    tpu.vector_store %arg7[%c0_10, %c0_11], %13 {strides = array<i32>} : memref<1x128xf32, #tpu.memory_space<vmem>>, vector<1x128xf32>,
    %c0_12 = arith.constant 0 : index
    %c0_13 = arith.constant 0 : index
    %15 = vector.load %arg8[%c0_12, %c0_13] : memref<1x128xf32, #tpu.memory_space<vmem>>, vector<1x128xf32>
    %16 = arith.mulf %9, %9 : vector<128x128xf32>
    %cst_14 = arith.constant dense<0.000000e+00> : vector<128xf32>
    %17 = vector.multi_reduction <add>, %16, %cst_14 [0] : vector<128x128xf32> to vector<128xf32>
    %18 = vector.shape_cast %17 : vector<128xf32> to vector<1x128xf32>
    %19 = arith.addf %15, %18 : vector<1x128xf32>
    %c0_15 = arith.constant 0 : index
    %c0_16 = arith.constant 0 : index
    %20 = vector.load %arg8[%c0_15, %c0_16] : memref<1x128xf32, #tpu.memory_space<vmem>>, vector<1x128xf32>
    tpu.vector_store %arg8[%c0_15, %c0_16], %19 {strides = array<i32>} : memref<1x128xf32, #tpu.memory_space<vmem>>, vector<1x128xf32>,
    %c1_i32 = arith.constant 1 : i32
    %21 = arith.muli %arg0, %c1_i32 : i32
    %22 = arith.addi %21, %arg1 : i32
    %c128_i32 = arith.constant 128 : i32
    %23 = arith.muli %22, %c128_i32 : i32
    %24 = tpu.assume_multiple %23, 128 : i32
    %25 = arith.truncf %9 : vector<128x128xf32> to vector<128x128xbf16>
    %26 = arith.index_cast %24 : i32 to index
    %c0_17 = arith.constant 0 : index
    %27 = vector.load %arg6[%26, %c0_17] : memref<512x128xbf16, #tpu.memory_space<vmem>>, vector<128x128xbf16>
    tpu.vector_store %arg6[%26, %c0_17], %25 {strides = array<i32>} : memref<512x128xbf16, #tpu.memory_space<vmem>>, vector<128x128xbf16>,
    %c3_i32 = arith.constant 3 : i32
    %28 = arith.cmpi eq, %arg0, %c3_i32 : i32
    %c0_i32_18 = arith.constant 0 : i32
    %29 = arith.cmpi eq, %arg1, %c0_i32_18 : i32
    %30 = arith.andi %28, %29 : i1
    %31 = arith.extui %30 : i1 to i32
    %c0_i32_19 = arith.constant 0 : i32
    %32 = arith.cmpi ne, %31, %c0_i32_19 : i32
    scf.if %32 {
      %c0_20 = arith.constant 0 : index
      %c0_21 = arith.constant 0 : index
      %33 = vector.load %arg7[%c0_20, %c0_21] : memref<1x128xf32, #tpu.memory_space<vmem>>, vector<1x128xf32>
      %cst_22 = arith.constant 0.001953125 : f32
      %34 = vector.broadcast %cst_22 : f32 to vector<1x128xf32>
      %35 = arith.mulf %33, %34 : vector<1x128xf32>
      %c0_23 = arith.constant 0 : index
      %c0_24 = arith.constant 0 : index
      %36 = vector.load %arg8[%c0_23, %c0_24] : memref<1x128xf32, #tpu.memory_space<vmem>>, vector<1x128xf32>
      %cst_25 = arith.constant 0.001953125 : f32
      %37 = vector.broadcast %cst_25 : f32 to vector<1x128xf32>
      %38 = arith.mulf %36, %37 : vector<1x128xf32>
      %39 = arith.mulf %35, %35 : vector<1x128xf32>
      %40 = arith.subf %38, %39 : vector<1x128xf32>
      %cst_26 = arith.constant 0.000000e+00 : f32
      %41 = vector.broadcast %cst_26 : f32 to vector<1x128xf32>
      %42 = arith.maximumf %40, %41 : vector<1x128xf32>
      %c0_27 = arith.constant 0 : index
      %c0_28 = arith.constant 0 : index
      %43 = vector.load %arg4[%c0_27, %c0_28] : memref<1x128xf32, #tpu.memory_space<vmem>>, vector<1x128xf32>
      %cst_29 = arith.constant 9.99999974E-6 : f32
      %44 = vector.broadcast %cst_29 : f32 to vector<1x128xf32>
      %45 = arith.addf %42, %44 : vector<1x128xf32>
      %46 = math.rsqrt %45 : vector<1x128xf32>
      %47 = arith.mulf %43, %46 : vector<1x128xf32>
      %c0_30 = arith.constant 0 : index
      %c0_31 = arith.constant 0 : index
      %48 = vector.load %arg5[%c0_30, %c0_31] : memref<1x128xf32, #tpu.memory_space<vmem>>, vector<1x128xf32>
      %49 = arith.mulf %35, %47 : vector<1x128xf32>
      %50 = arith.subf %48, %49 : vector<1x128xf32>
      %c0_i32_32 = arith.constant 0 : i32
      %c128_i32_33 = arith.constant 128 : i32
      %51 = arith.muli %c0_i32_32, %c128_i32_33 : i32
      %52 = tpu.assume_multiple %51, 128 : i32
      %53 = arith.index_cast %52 : i32 to index
      %c0_34 = arith.constant 0 : index
      %54 = vector.load %arg6[%53, %c0_34] : memref<512x128xbf16, #tpu.memory_space<vmem>>, vector<128x128xbf16>
      %55 = arith.extf %54 : vector<128x128xbf16> to vector<128x128xf32>
      %56 = vector.broadcast %47 : vector<1x128xf32> to vector<128x128xf32>
      %57 = arith.mulf %55, %56 : vector<128x128xf32>
      %58 = vector.broadcast %50 : vector<1x128xf32> to vector<128x128xf32>
      %59 = arith.addf %57, %58 : vector<128x128xf32>
      %cst_35 = arith.constant 0.000000e+00 : f32
      %60 = vector.broadcast %cst_35 : f32 to vector<128x128xf32>
      %61 = arith.maximumf %59, %60 : vector<128x128xf32>
      %62 = arith.truncf %61 : vector<128x128xf32> to vector<128x128xbf16>
      %63 = arith.index_cast %52 : i32 to index
      %c0_36 = arith.constant 0 : index
      %64 = vector.load %arg6[%63, %c0_36] : memref<512x128xbf16, #tpu.memory_space<vmem>>, vector<128x128xbf16>
      tpu.vector_store %arg6[%63, %c0_36], %62 {strides = array<i32>} : memref<512x128xbf16, #tpu.memory_space<vmem>>, vector<128x128xbf16>,
      %c1_i32_37 = arith.constant 1 : i32
      %c128_i32_38 = arith.constant 128 : i32
      %65 = arith.muli %c1_i32_37, %c128_i32_38 : i32
      %66 = tpu.assume_multiple %65, 128 : i32
      %67 = arith.index_cast %66 : i32 to index
      %c0_39 = arith.constant 0 : index
      %68 = vector.load %arg6[%67, %c0_39] : memref<512x128xbf16, #tpu.memory_space<vmem>>, vector<128x128xbf16>
      %69 = arith.extf %68 : vector<128x128xbf16> to vector<128x128xf32>
      %70 = vector.broadcast %47 : vector<1x128xf32> to vector<128x128xf32>
      %71 = arith.mulf %69, %70 : vector<128x128xf32>
      %72 = vector.broadcast %50 : vector<1x128xf32> to vector<128x128xf32>
      %73 = arith.addf %71, %72 : vector<128x128xf32>
      %cst_40 = arith.constant 0.000000e+00 : f32
      %74 = vector.broadcast %cst_40 : f32 to vector<128x128xf32>
      %75 = arith.maximumf %73, %74 : vector<128x128xf32>
      %76 = arith.truncf %75 : vector<128x128xf32> to vector<128x128xbf16>
      %77 = arith.index_cast %66 : i32 to index
      %c0_41 = arith.constant 0 : index
      %78 = vector.load %arg6[%77, %c0_41] : memref<512x128xbf16, #tpu.memory_space<vmem>>, vector<128x128xbf16>
      tpu.vector_store %arg6[%77, %c0_41], %76 {strides = array<i32>} : memref<512x128xbf16, #tpu.memory_space<vmem>>, vector<128x128xbf16>,
      %c2_i32 = arith.constant 2 : i32
      %c128_i32_42 = arith.constant 128 : i32
      %79 = arith.muli %c2_i32, %c128_i32_42 : i32
      %80 = tpu.assume_multiple %79, 128 : i32
      %81 = arith.index_cast %80 : i32 to index
      %c0_43 = arith.constant 0 : index
      %82 = vector.load %arg6[%81, %c0_43] : memref<512x128xbf16, #tpu.memory_space<vmem>>, vector<128x128xbf16>
      %83 = arith.extf %82 : vector<128x128xbf16> to vector<128x128xf32>
      %84 = vector.broadcast %47 : vector<1x128xf32> to vector<128x128xf32>
      %85 = arith.mulf %83, %84 : vector<128x128xf32>
      %86 = vector.broadcast %50 : vector<1x128xf32> to vector<128x128xf32>
      %87 = arith.addf %85, %86 : vector<128x128xf32>
      %cst_44 = arith.constant 0.000000e+00 : f32
      %88 = vector.broadcast %cst_44 : f32 to vector<128x128xf32>
      %89 = arith.maximumf %87, %88 : vector<128x128xf32>
      %90 = arith.truncf %89 : vector<128x128xf32> to vector<128x128xbf16>
      %91 = arith.index_cast %80 : i32 to index
      %c0_45 = arith.constant 0 : index
      %92 = vector.load %arg6[%91, %c0_45] : memref<512x128xbf16, #tpu.memory_space<vmem>>, vector<128x128xbf16>
      tpu.vector_store %arg6[%91, %c0_45], %90 {strides = array<i32>} : memref<512x128xbf16, #tpu.memory_space<vmem>>, vector<128x128xbf16>,
      %c3_i32_46 = arith.constant 3 : i32
      %c128_i32_47 = arith.constant 128 : i32
      %93 = arith.muli %c3_i32_46, %c128_i32_47 : i32
      %94 = tpu.assume_multiple %93, 128 : i32
      %95 = arith.index_cast %94 : i32 to index
      %c0_48 = arith.constant 0 : index
      %96 = vector.load %arg6[%95, %c0_48] : memref<512x128xbf16, #tpu.memory_space<vmem>>, vector<128x128xbf16>
      %97 = arith.extf %96 : vector<128x128xbf16> to vector<128x128xf32>
      %98 = vector.broadcast %47 : vector<1x128xf32> to vector<128x128xf32>
      %99 = arith.mulf %97, %98 : vector<128x128xf32>
      %100 = vector.broadcast %50 : vector<1x128xf32> to vector<128x128xf32>
      %101 = arith.addf %99, %100 : vector<128x128xf32>
      %cst_49 = arith.constant 0.000000e+00 : f32
      %102 = vector.broadcast %cst_49 : f32 to vector<128x128xf32>
      %103 = arith.maximumf %101, %102 : vector<128x128xf32>
      %104 = arith.truncf %103 : vector<128x128xf32> to vector<128x128xbf16>
      %105 = arith.index_cast %94 : i32 to index
      %c0_50 = arith.constant 0 : index
      %106 = vector.load %arg6[%105, %c0_50] : memref<512x128xbf16, #tpu.memory_space<vmem>>, vector<128x128xbf16>
      tpu.vector_store %arg6[%105, %c0_50], %104 {strides = array<i32>} : memref<512x128xbf16, #tpu.memory_space<vmem>>, vector<128x128xbf16>,
      %c4_i32 = arith.constant 4 : i32
    } else {
    }
    return
  }
  func.func @transform_0(%arg0: i32, %arg1: i32) -> (i32, i32, i32) {
    %c0_i32 = arith.constant 0 : i32
    %c0_i32_0 = arith.constant 0 : i32
    return %arg0, %arg1, %c0_i32 : i32, i32, i32
  }
  func.func @transform_1(%arg0: i32, %arg1: i32) -> (i32, i32, i32) {
    %c0_i32 = arith.constant 0 : i32
    %c0_i32_0 = arith.constant 0 : i32
    %c0_i32_1 = arith.constant 0 : i32
    return %arg0, %c0_i32, %c0_i32_0 : i32, i32, i32
  }
  func.func @transform_2(%arg0: i32, %arg1: i32) -> (i32, i32) {
    %c0_i32 = arith.constant 0 : i32
    %c0_i32_0 = arith.constant 0 : i32
    %c0_i32_1 = arith.constant 0 : i32
    return %c0_i32, %c0_i32_0 : i32, i32
  }
  func.func @transform_3(%arg0: i32, %arg1: i32) -> (i32, i32) {
    %c0_i32 = arith.constant 0 : i32
    %c0_i32_0 = arith.constant 0 : i32
    %c0_i32_1 = arith.constant 0 : i32
    return %c0_i32, %c0_i32_0 : i32, i32
  }
  func.func @transform_4(%arg0: i32, %arg1: i32) -> (i32, i32) {
    %c0_i32 = arith.constant 0 : i32
    %c0_i32_0 = arith.constant 0 : i32
    %c0_i32_1 = arith.constant 0 : i32
    return %c0_i32, %c0_i32_0 : i32, i32
  }
}

module attributes {stable_mosaic.version = 11 : i64} {
  func.func @_convt_bn_relu_kernel(%arg0: i32, %arg1: i32, %arg2: memref<1x512x64xbf16, #tpu.memory_space<vmem>>, %arg3: memref<1x64x128xbf16, #tpu.memory_space<vmem>>, %arg4: memref<1x128xf32, #tpu.memory_space<vmem>>, %arg5: memref<1x128xf32, #tpu.memory_space<vmem>>, %arg6: memref<2048x128xbf16, #tpu.memory_space<vmem>>, %arg7: memref<1x128xf32, #tpu.memory_space<vmem>>, %arg8: memref<1x128xf32, #tpu.memory_space<vmem>>) attributes {dimension_semantics = [#tpu.dimension_semantics<arbitrary>, #tpu.dimension_semantics<arbitrary>], iteration_bounds = array<i64: 4, 1>, scalar_prefetch = 0 : i64, scratch_operands = 2 : i64, tpu.core_type = #tpu.core_type<tc>, window_params = [{transform_indices = @transform_0, window_bounds = array<i64: 1, 512, 64>}, {transform_indices = @transform_1, window_bounds = array<i64: 1, 64, 128>}, {pipeline_mode = #tpu.pipeline_mode<synchronous>, transform_indices = @transform_2, window_bounds = array<i64: 1, 128>}, {pipeline_mode = #tpu.pipeline_mode<synchronous>, transform_indices = @transform_3, window_bounds = array<i64: 1, 128>}, {pipeline_mode = #tpu.pipeline_mode<synchronous>, transform_indices = @transform_4, window_bounds = array<i64: 2048, 128>}]} {
    %c0_i32 = arith.constant 0 : i32
    %0 = arith.cmpi eq, %arg0, %c0_i32 : i32
    %c0_i32_0 = arith.constant 0 : i32
    %1 = arith.cmpi eq, %arg1, %c0_i32_0 : i32
    %2 = arith.andi %0, %1 : i1
    %3 = arith.extui %2 : i1 to i32
    %c0_i32_1 = arith.constant 0 : i32
    %4 = arith.cmpi ne, %3, %c0_i32_1 : i32
    scf.if %4 {
      %cst_20 = arith.constant 0.000000e+00 : f32
      %33 = vector.broadcast %cst_20 : f32 to vector<1x128xf32>
      %c0_21 = arith.constant 0 : index
      %c0_22 = arith.constant 0 : index
      %34 = vector.load %arg7[%c0_21, %c0_22] : memref<1x128xf32, #tpu.memory_space<vmem>>, vector<1x128xf32>
      tpu.vector_store %arg7[%c0_21, %c0_22], %33 {strides = array<i32>} : memref<1x128xf32, #tpu.memory_space<vmem>>, vector<1x128xf32>,
      %cst_23 = arith.constant 0.000000e+00 : f32
      %35 = vector.broadcast %cst_23 : f32 to vector<1x128xf32>
      %c0_24 = arith.constant 0 : index
      %c0_25 = arith.constant 0 : index
      %36 = vector.load %arg8[%c0_24, %c0_25] : memref<1x128xf32, #tpu.memory_space<vmem>>, vector<1x128xf32>
      tpu.vector_store %arg8[%c0_24, %c0_25], %35 {strides = array<i32>} : memref<1x128xf32, #tpu.memory_space<vmem>>, vector<1x128xf32>,
    } else {
    }
    %c0 = arith.constant 0 : index
    %c0_2 = arith.constant 0 : index
    %c0_3 = arith.constant 0 : index
    %5 = vector.load %arg2[%c0, %c0_2, %c0_3] : memref<1x512x64xbf16, #tpu.memory_space<vmem>>, vector<1x512x64xbf16>
    %6 = vector.shape_cast %5 : vector<1x512x64xbf16> to vector<512x64xbf16>
    %c0_4 = arith.constant 0 : index
    %c0_5 = arith.constant 0 : index
    %c0_6 = arith.constant 0 : index
    %7 = vector.load %arg3[%c0_4, %c0_5, %c0_6] : memref<1x64x128xbf16, #tpu.memory_space<vmem>>, vector<1x64x128xbf16>
    %8 = vector.shape_cast %7 : vector<1x64x128xbf16> to vector<64x128xbf16>
    %cst = arith.constant dense<0.000000e+00> : vector<512x128xf32>
    %9 = tpu.matmul %6, %8, %cst {dimension_numbers = #tpu.dot_dimension_numbers<[1], [0], [0], [1], [0, 0, 1, 1], [], []>} : vector<512x64xbf16>, vector<64x128xbf16>, vector<512x128xf32> -> vector<512x128xf32>
    %c0_7 = arith.constant 0 : index
    %c0_8 = arith.constant 0 : index
    %10 = vector.load %arg7[%c0_7, %c0_8] : memref<1x128xf32, #tpu.memory_space<vmem>>, vector<1x128xf32>
    %cst_9 = arith.constant dense<0.000000e+00> : vector<128xf32>
    %11 = vector.multi_reduction <add>, %9, %cst_9 [0] : vector<512x128xf32> to vector<128xf32>
    %12 = vector.shape_cast %11 : vector<128xf32> to vector<1x128xf32>
    %13 = arith.addf %10, %12 : vector<1x128xf32>
    %c0_10 = arith.constant 0 : index
    %c0_11 = arith.constant 0 : index
    %14 = vector.load %arg7[%c0_10, %c0_11] : memref<1x128xf32, #tpu.memory_space<vmem>>, vector<1x128xf32>
    tpu.vector_store %arg7[%c0_10, %c0_11], %13 {strides = array<i32>} : memref<1x128xf32, #tpu.memory_space<vmem>>, vector<1x128xf32>,
    %c0_12 = arith.constant 0 : index
    %c0_13 = arith.constant 0 : index
    %15 = vector.load %arg8[%c0_12, %c0_13] : memref<1x128xf32, #tpu.memory_space<vmem>>, vector<1x128xf32>
    %16 = arith.mulf %9, %9 : vector<512x128xf32>
    %cst_14 = arith.constant dense<0.000000e+00> : vector<128xf32>
    %17 = vector.multi_reduction <add>, %16, %cst_14 [0] : vector<512x128xf32> to vector<128xf32>
    %18 = vector.shape_cast %17 : vector<128xf32> to vector<1x128xf32>
    %19 = arith.addf %15, %18 : vector<1x128xf32>
    %c0_15 = arith.constant 0 : index
    %c0_16 = arith.constant 0 : index
    %20 = vector.load %arg8[%c0_15, %c0_16] : memref<1x128xf32, #tpu.memory_space<vmem>>, vector<1x128xf32>
    tpu.vector_store %arg8[%c0_15, %c0_16], %19 {strides = array<i32>} : memref<1x128xf32, #tpu.memory_space<vmem>>, vector<1x128xf32>,
    %c1_i32 = arith.constant 1 : i32
    %21 = arith.muli %arg0, %c1_i32 : i32
    %22 = arith.addi %21, %arg1 : i32
    %c512_i32 = arith.constant 512 : i32
    %23 = arith.muli %22, %c512_i32 : i32
    %24 = tpu.assume_multiple %23, 512 : i32
    %25 = arith.truncf %9 : vector<512x128xf32> to vector<512x128xbf16>
    %26 = arith.index_cast %24 : i32 to index
    %c0_17 = arith.constant 0 : index
    %27 = vector.load %arg6[%26, %c0_17] : memref<2048x128xbf16, #tpu.memory_space<vmem>>, vector<512x128xbf16>
    tpu.vector_store %arg6[%26, %c0_17], %25 {strides = array<i32>} : memref<2048x128xbf16, #tpu.memory_space<vmem>>, vector<512x128xbf16>,
    %c3_i32 = arith.constant 3 : i32
    %28 = arith.cmpi eq, %arg0, %c3_i32 : i32
    %c0_i32_18 = arith.constant 0 : i32
    %29 = arith.cmpi eq, %arg1, %c0_i32_18 : i32
    %30 = arith.andi %28, %29 : i1
    %31 = arith.extui %30 : i1 to i32
    %c0_i32_19 = arith.constant 0 : i32
    %32 = arith.cmpi ne, %31, %c0_i32_19 : i32
    scf.if %32 {
      %c0_20 = arith.constant 0 : index
      %c0_21 = arith.constant 0 : index
      %33 = vector.load %arg7[%c0_20, %c0_21] : memref<1x128xf32, #tpu.memory_space<vmem>>, vector<1x128xf32>
      %cst_22 = arith.constant 4.8828125E-4 : f32
      %34 = vector.broadcast %cst_22 : f32 to vector<1x128xf32>
      %35 = arith.mulf %33, %34 : vector<1x128xf32>
      %c0_23 = arith.constant 0 : index
      %c0_24 = arith.constant 0 : index
      %36 = vector.load %arg8[%c0_23, %c0_24] : memref<1x128xf32, #tpu.memory_space<vmem>>, vector<1x128xf32>
      %cst_25 = arith.constant 4.8828125E-4 : f32
      %37 = vector.broadcast %cst_25 : f32 to vector<1x128xf32>
      %38 = arith.mulf %36, %37 : vector<1x128xf32>
      %39 = arith.mulf %35, %35 : vector<1x128xf32>
      %40 = arith.subf %38, %39 : vector<1x128xf32>
      %cst_26 = arith.constant 0.000000e+00 : f32
      %41 = vector.broadcast %cst_26 : f32 to vector<1x128xf32>
      %42 = arith.maximumf %40, %41 : vector<1x128xf32>
      %c0_27 = arith.constant 0 : index
      %c0_28 = arith.constant 0 : index
      %43 = vector.load %arg4[%c0_27, %c0_28] : memref<1x128xf32, #tpu.memory_space<vmem>>, vector<1x128xf32>
      %cst_29 = arith.constant 9.99999974E-6 : f32
      %44 = vector.broadcast %cst_29 : f32 to vector<1x128xf32>
      %45 = arith.addf %42, %44 : vector<1x128xf32>
      %46 = math.rsqrt %45 : vector<1x128xf32>
      %47 = arith.mulf %43, %46 : vector<1x128xf32>
      %c0_30 = arith.constant 0 : index
      %c0_31 = arith.constant 0 : index
      %48 = vector.load %arg5[%c0_30, %c0_31] : memref<1x128xf32, #tpu.memory_space<vmem>>, vector<1x128xf32>
      %49 = arith.mulf %35, %47 : vector<1x128xf32>
      %50 = arith.subf %48, %49 : vector<1x128xf32>
      %c0_i32_32 = arith.constant 0 : i32
      %c512_i32_33 = arith.constant 512 : i32
      %51 = arith.muli %c0_i32_32, %c512_i32_33 : i32
      %52 = tpu.assume_multiple %51, 512 : i32
      %53 = arith.index_cast %52 : i32 to index
      %c0_34 = arith.constant 0 : index
      %54 = vector.load %arg6[%53, %c0_34] : memref<2048x128xbf16, #tpu.memory_space<vmem>>, vector<512x128xbf16>
      %55 = arith.extf %54 : vector<512x128xbf16> to vector<512x128xf32>
      %56 = vector.broadcast %47 : vector<1x128xf32> to vector<512x128xf32>
      %57 = arith.mulf %55, %56 : vector<512x128xf32>
      %58 = vector.broadcast %50 : vector<1x128xf32> to vector<512x128xf32>
      %59 = arith.addf %57, %58 : vector<512x128xf32>
      %cst_35 = arith.constant 0.000000e+00 : f32
      %60 = vector.broadcast %cst_35 : f32 to vector<512x128xf32>
      %61 = arith.maximumf %59, %60 : vector<512x128xf32>
      %62 = arith.truncf %61 : vector<512x128xf32> to vector<512x128xbf16>
      %63 = arith.index_cast %52 : i32 to index
      %c0_36 = arith.constant 0 : index
      %64 = vector.load %arg6[%63, %c0_36] : memref<2048x128xbf16, #tpu.memory_space<vmem>>, vector<512x128xbf16>
      tpu.vector_store %arg6[%63, %c0_36], %62 {strides = array<i32>} : memref<2048x128xbf16, #tpu.memory_space<vmem>>, vector<512x128xbf16>,
      %c1_i32_37 = arith.constant 1 : i32
      %c512_i32_38 = arith.constant 512 : i32
      %65 = arith.muli %c1_i32_37, %c512_i32_38 : i32
      %66 = tpu.assume_multiple %65, 512 : i32
      %67 = arith.index_cast %66 : i32 to index
      %c0_39 = arith.constant 0 : index
      %68 = vector.load %arg6[%67, %c0_39] : memref<2048x128xbf16, #tpu.memory_space<vmem>>, vector<512x128xbf16>
      %69 = arith.extf %68 : vector<512x128xbf16> to vector<512x128xf32>
      %70 = vector.broadcast %47 : vector<1x128xf32> to vector<512x128xf32>
      %71 = arith.mulf %69, %70 : vector<512x128xf32>
      %72 = vector.broadcast %50 : vector<1x128xf32> to vector<512x128xf32>
      %73 = arith.addf %71, %72 : vector<512x128xf32>
      %cst_40 = arith.constant 0.000000e+00 : f32
      %74 = vector.broadcast %cst_40 : f32 to vector<512x128xf32>
      %75 = arith.maximumf %73, %74 : vector<512x128xf32>
      %76 = arith.truncf %75 : vector<512x128xf32> to vector<512x128xbf16>
      %77 = arith.index_cast %66 : i32 to index
      %c0_41 = arith.constant 0 : index
      %78 = vector.load %arg6[%77, %c0_41] : memref<2048x128xbf16, #tpu.memory_space<vmem>>, vector<512x128xbf16>
      tpu.vector_store %arg6[%77, %c0_41], %76 {strides = array<i32>} : memref<2048x128xbf16, #tpu.memory_space<vmem>>, vector<512x128xbf16>,
      %c2_i32 = arith.constant 2 : i32
      %c512_i32_42 = arith.constant 512 : i32
      %79 = arith.muli %c2_i32, %c512_i32_42 : i32
      %80 = tpu.assume_multiple %79, 512 : i32
      %81 = arith.index_cast %80 : i32 to index
      %c0_43 = arith.constant 0 : index
      %82 = vector.load %arg6[%81, %c0_43] : memref<2048x128xbf16, #tpu.memory_space<vmem>>, vector<512x128xbf16>
      %83 = arith.extf %82 : vector<512x128xbf16> to vector<512x128xf32>
      %84 = vector.broadcast %47 : vector<1x128xf32> to vector<512x128xf32>
      %85 = arith.mulf %83, %84 : vector<512x128xf32>
      %86 = vector.broadcast %50 : vector<1x128xf32> to vector<512x128xf32>
      %87 = arith.addf %85, %86 : vector<512x128xf32>
      %cst_44 = arith.constant 0.000000e+00 : f32
      %88 = vector.broadcast %cst_44 : f32 to vector<512x128xf32>
      %89 = arith.maximumf %87, %88 : vector<512x128xf32>
      %90 = arith.truncf %89 : vector<512x128xf32> to vector<512x128xbf16>
      %91 = arith.index_cast %80 : i32 to index
      %c0_45 = arith.constant 0 : index
      %92 = vector.load %arg6[%91, %c0_45] : memref<2048x128xbf16, #tpu.memory_space<vmem>>, vector<512x128xbf16>
      tpu.vector_store %arg6[%91, %c0_45], %90 {strides = array<i32>} : memref<2048x128xbf16, #tpu.memory_space<vmem>>, vector<512x128xbf16>,
      %c3_i32_46 = arith.constant 3 : i32
      %c512_i32_47 = arith.constant 512 : i32
      %93 = arith.muli %c3_i32_46, %c512_i32_47 : i32
      %94 = tpu.assume_multiple %93, 512 : i32
      %95 = arith.index_cast %94 : i32 to index
      %c0_48 = arith.constant 0 : index
      %96 = vector.load %arg6[%95, %c0_48] : memref<2048x128xbf16, #tpu.memory_space<vmem>>, vector<512x128xbf16>
      %97 = arith.extf %96 : vector<512x128xbf16> to vector<512x128xf32>
      %98 = vector.broadcast %47 : vector<1x128xf32> to vector<512x128xf32>
      %99 = arith.mulf %97, %98 : vector<512x128xf32>
      %100 = vector.broadcast %50 : vector<1x128xf32> to vector<512x128xf32>
      %101 = arith.addf %99, %100 : vector<512x128xf32>
      %cst_49 = arith.constant 0.000000e+00 : f32
      %102 = vector.broadcast %cst_49 : f32 to vector<512x128xf32>
      %103 = arith.maximumf %101, %102 : vector<512x128xf32>
      %104 = arith.truncf %103 : vector<512x128xf32> to vector<512x128xbf16>
      %105 = arith.index_cast %94 : i32 to index
      %c0_50 = arith.constant 0 : index
      %106 = vector.load %arg6[%105, %c0_50] : memref<2048x128xbf16, #tpu.memory_space<vmem>>, vector<512x128xbf16>
      tpu.vector_store %arg6[%105, %c0_50], %104 {strides = array<i32>} : memref<2048x128xbf16, #tpu.memory_space<vmem>>, vector<512x128xbf16>,
      %c4_i32 = arith.constant 4 : i32
    } else {
    }
    return
  }
  func.func @transform_0(%arg0: i32, %arg1: i32) -> (i32, i32, i32) {
    %c0_i32 = arith.constant 0 : i32
    %c0_i32_0 = arith.constant 0 : i32
    return %arg0, %arg1, %c0_i32 : i32, i32, i32
  }
  func.func @transform_1(%arg0: i32, %arg1: i32) -> (i32, i32, i32) {
    %c0_i32 = arith.constant 0 : i32
    %c0_i32_0 = arith.constant 0 : i32
    %c0_i32_1 = arith.constant 0 : i32
    return %arg0, %c0_i32, %c0_i32_0 : i32, i32, i32
  }
  func.func @transform_2(%arg0: i32, %arg1: i32) -> (i32, i32) {
    %c0_i32 = arith.constant 0 : i32
    %c0_i32_0 = arith.constant 0 : i32
    %c0_i32_1 = arith.constant 0 : i32
    return %c0_i32, %c0_i32_0 : i32, i32
  }
  func.func @transform_3(%arg0: i32, %arg1: i32) -> (i32, i32) {
    %c0_i32 = arith.constant 0 : i32
    %c0_i32_0 = arith.constant 0 : i32
    %c0_i32_1 = arith.constant 0 : i32
    return %c0_i32, %c0_i32_0 : i32, i32
  }
  func.func @transform_4(%arg0: i32, %arg1: i32) -> (i32, i32) {
    %c0_i32 = arith.constant 0 : i32
    %c0_i32_0 = arith.constant 0 : i32
    %c0_i32_1 = arith.constant 0 : i32
    return %c0_i32, %c0_i32_0 : i32, i32
  }
}

module attributes {stable_mosaic.version = 11 : i64} {
  func.func @_convt_tanh_kernel(%arg0: i32, %arg1: memref<512x128xbf16, #tpu.memory_space<vmem>>, %arg2: memref<128x128xbf16, #tpu.memory_space<vmem>>, %arg3: memref<512x128xf32, #tpu.memory_space<vmem>>) attributes {dimension_semantics = [#tpu.dimension_semantics<parallel>], iteration_bounds = array<i64: 4>, scalar_prefetch = 0 : i64, scratch_operands = 0 : i64, tpu.core_type = #tpu.core_type<tc>, window_params = [{transform_indices = @transform_0, window_bounds = array<i64: 512, 128>}, {pipeline_mode = #tpu.pipeline_mode<synchronous>, transform_indices = @transform_1, window_bounds = array<i64: 128, 128>}, {transform_indices = @transform_2, window_bounds = array<i64: 512, 128>}]} {
    %c0 = arith.constant 0 : index
    %c0_0 = arith.constant 0 : index
    %0 = vector.load %arg1[%c0, %c0_0] : memref<512x128xbf16, #tpu.memory_space<vmem>>, vector<512x128xbf16>
    %c0_1 = arith.constant 0 : index
    %c0_2 = arith.constant 0 : index
    %1 = vector.load %arg2[%c0_1, %c0_2] : memref<128x128xbf16, #tpu.memory_space<vmem>>, vector<128x128xbf16>
    %cst = arith.constant dense<0.000000e+00> : vector<512x128xf32>
    %2 = tpu.matmul %0, %1, %cst {dimension_numbers = #tpu.dot_dimension_numbers<[1], [0], [0], [1], [0, 0, 1, 1], [], []>} : vector<512x128xbf16>, vector<128x128xbf16>, vector<512x128xf32> -> vector<512x128xf32>
    %3 = math.tanh %2 : vector<512x128xf32>
    %c0_3 = arith.constant 0 : index
    %c0_4 = arith.constant 0 : index
    %4 = vector.load %arg3[%c0_3, %c0_4] : memref<512x128xf32, #tpu.memory_space<vmem>>, vector<512x128xf32>
    tpu.vector_store %arg3[%c0_3, %c0_4], %3 {strides = array<i32>} : memref<512x128xf32, #tpu.memory_space<vmem>>, vector<512x128xf32>,
    return
  }
  func.func @transform_0(%arg0: i32) -> (i32, i32) {
    %c0_i32 = arith.constant 0 : i32
    %c0_i32_0 = arith.constant 0 : i32
    return %arg0, %c0_i32 : i32, i32
  }
  func.func @transform_1(%arg0: i32) -> (i32, i32) {
    %c0_i32 = arith.constant 0 : i32
    %c0_i32_0 = arith.constant 0 : i32
    %c0_i32_1 = arith.constant 0 : i32
    return %c0_i32, %c0_i32_0 : i32, i32
  }
  func.func @transform_2(%arg0: i32) -> (i32, i32) {
    %c0_i32 = arith.constant 0 : i32
    %c0_i32_0 = arith.constant 0 : i32
    return %arg0, %c0_i32 : i32, i32
  }
}

</mosaic_0001>

<bundles_post_ra>
// kernel: netG64_forward.6
= control target key start
LH: loop header
LB: loop body
LE: loop exit
PB: predicated region body
PF: predicated region fallthrough
CT: control target
= control target key end

     0   :  { %s1014_s15 = smov 0   ;;  %s1016_s16 = smov 0   ;;  %s1145_s0 = inlined_call_operand.vmem [shape: bf16[4,32,256], index: 0, kind: input, shape index: {}]   ;;  %s1146_s1 = inlined_call_operand.vmem [shape: bf16[4,256,128], index: 1, kind: input, shape index: {}]   ;;  %s1147_s2 = inlined_call_operand.vmem [shape: f32[1,128], index: 2, kind: input, shape index: {}]   ;;  %s1148_s3 = inlined_call_operand.vmem [shape: f32[1,128], index: 3, kind: input, shape index: {}]   ;;  %s1149_s4 = inlined_call_operand.vmem [shape: bf16[128,128], index: 4, kind: output, shape index: {}]  }
   0x1   :  { %s1018_s17 = smov 0  }
   0x2 LB: > { %s26_s18 = sadd.s32 1, %s982_s16  ;;  %p685_p0 = scmp.ge.s32.totalorder %s986_s17, 1  ;;  %s986_s17 = sphi %s1018_s17, %s14_s17   ;;  %s982_s16 = sphi %s1016_s16, %s1151_s16   ;;  %s978_s15 = sphi %s1014_s15, %s1150_s15  }
   0x3   : > { %p28_p1 = scmp.ge.s32.totalorder %s26_s18, 4  ;;  %p187_p2 = scmp.lt.s32.totalorder %s986_s17, 5 }
   0x5   : > { %s1153_s18 = smov (%p28_p1, %s26_s18), 0  ;;  %p188_p3 = pnand %p685_p0, %p187_p2 }
   0x6   : > { %p219_p4 = scmp.lt.s32.totalorder (!%p188_p3), %s978_s15, 3  ;;  %p234_p5 = scmp.eq.s32.totalorder (!%p188_p3), %s978_s15, 0 }
   0x7   : > { %191 = sbr.rel (%p188_p3) target bundleno = 269 (0x10d), region = 36 }
   0xc   : > { %s220_s19 = scalar_select %p219_p4, %s978_s15, 3  ;;  %v988_v0 = vmov (%p234_p5), 0.0  }
   0xd   : > { %239 = sbr.rel (!%p234_p5) target bundleno = 18 (0x12), region = 40  ;;  %240 = vst [vmem:[#allocation2] sm:$0x1] (%p234_p5), %v988_v0 }
   0xe   : > { %s800_s20 = sshll.u32 %s220_s19, 5  ;;  %s801_s21 = sshll.u32 %s220_s19, 7  ;;  %241 = vst [vmem:[#allocation3] sm:$0x1] (%p234_p5), %v988_v0 }
   0xf   : > { %s1040_s24 = scalar_lea.vmem %s1145_s0, %s800_s20  ;;  %s1045_s27 = scalar_lea.vmem %s1146_s1, %s801_s21 }
  0x12 PF: > { %v814_v1 = vld [vmem:[%s1045_s27 + $0x38] sm:$0xff]  ;;  %v813_v3 = vld [vmem:[%s1045_s27 + $0x30] sm:$0xff]  ;;  %v812_v5 = vld [vmem:[%s1045_s27 + $0x28] sm:$0xff]  ;;  %p474_p6 = scmp.eq.s32.totalorder %s978_s15, 3  ;;  %s771_s28 = sshll.u32 %s978_s15, 5 }
  0x13   : > { %v822_v2 = vld [vmem:[%s1045_s27 + $0x78] sm:$0xff]  ;;  %394 = vmatpush.bf16.msra.mxu0 %v814_v1  ;;  %921 = vmatpush.bf16.msra.mxu2 %v814_v1  ;;  %v821_v4 = vld [vmem:[%s1045_s27 + $0x70] sm:$0xff]  ;;  %v820_v6 = vld [vmem:[%s1045_s27 + $0x68] sm:$0xff]  ;;  %s466_s29 = sshra.s32 %s771_s28, 3 }
  0x14   : > { %413 = vmatpush.bf16.msra.mxu1 %v822_v2  ;;  %929 = vmatpush.bf16.msra.mxu3 %v822_v2  ;;  %v811_v7 = vld [vmem:[%s1045_s27 + $0x20] sm:$0xff]  ;;  %v810_v9 = vld [vmem:[%s1045_s27 + $0x18] sm:$0xff]  ;;  %v809_v11 = vld [vmem:[%s1045_s27 + $0x10] sm:$0xff]  ;;  %s772_s30 = sshll.u32 %s466_s29, 2 }
  0x15   : > { %v819_v8 = vld [vmem:[%s1045_s27 + $0x60] sm:$0xff]  ;;  %v818_v10 = vld [vmem:[%s1045_s27 + $0x58] sm:$0xff]  ;;  %v817_v12 = vld [vmem:[%s1045_s27 + $0x50] sm:$0xff]  ;;  %s469_s7 = scalar_lea.vmem %s1149_s4, %s772_s30 }
  0x16   : > { %v808_v13 = vld [vmem:[%s1045_s27 + $0x8] sm:$0xff]  ;;  %v807_v15 = vld [vmem:[%s1045_s27] sm:$0xff]  ;;  %v701_v19 = vld [vmem:[%s1040_s24 + $0x10] sm:$0xf] }
  0x17   : > { %395 = vmatpush.bf16.msra.mxu0 %v813_v3  ;;  %922 = vmatpush.bf16.msra.mxu2 %v813_v3  ;;  %v816_v14 = vld [vmem:[%s1045_s27 + $0x48] sm:$0xff]  ;;  %v815_v16 = vld [vmem:[%s1045_s27 + $0x40] sm:$0xff]  ;;  %v806_v20 = vld [vmem:[%s1040_s24 + $0x14] sm:$0xf0] }
  0x18   : > { %414 = vmatpush.bf16.msra.mxu1 %v821_v4  ;;  %930 = vmatpush.bf16.msra.mxu3 %v821_v4  ;;  %v693_v17 = vld [vmem:[%s1040_s24] sm:$0xf]  ;;  %v804_v18 = vld [vmem:[%s1040_s24 + $0x4] sm:$0xf0]  ;;  %v803_v21 = vld [vmem:[%s1040_s24 + $0x4] sm:$0xf]  ;;  %v702_v26 = vor.u32 %v806_v20, %v701_v19 }
  0x19   : > { %v695_v22 = vld [vmem:[%s1040_s24 + $0x8] sm:$0xf0]  ;;  %v805_v23 = vld [vmem:[%s1040_s24 + $0x14] sm:$0xf]  ;;  %v703_v24 = vld [vmem:[%s1040_s24 + $0x18] sm:$0xf0]  ;;  %v694_v25 = vor.u32 %v804_v18, %v693_v17 }
  0x1a   : > { %v698_v27 = vor.u32 %v803_v21, %v695_v22  ;;  %v706_v28 = vor.u32 %v805_v23, %v703_v24  ;;  %v432_v62 = vld [vmem:[#allocation2] sm:$0x1]  ;;  %v444_v1 = vld [vmem:[#allocation3] sm:$0x1] }
  0x1b   : > { %396 = vmatpush.bf16.msra.mxu0 %v812_v5  ;;  %923 = vmatpush.bf16.msra.mxu2 %v812_v5  ;;  %v486_v20 = vld [vmem:[%s1147_s2] sm:$0x1] (%p474_p6) }
  0x1c   : > { %415 = vmatpush.bf16.msra.mxu1 %v820_v6  ;;  %931 = vmatpush.bf16.msra.mxu3 %v820_v6 }
  0x1f   : > { %397 = vmatpush.bf16.msra.mxu0 %v811_v7  ;;  %924 = vmatpush.bf16.msra.mxu2 %v811_v7 }
  0x20   : > { %416 = vmatpush.bf16.msra.mxu1 %v819_v8  ;;  %932 = vmatpush.bf16.msra.mxu3 %v819_v8 }
  0x23   : > { %398 = vmatpush.bf16.msra.mxu0 %v810_v9  ;;  %925 = vmatpush.bf16.msra.mxu2 %v810_v9 }
  0x24   : > { %417 = vmatpush.bf16.msra.mxu1 %v818_v10  ;;  %933 = vmatpush.bf16.msra.mxu3 %v818_v10 }
  0x27   : > { %399 = vmatpush.bf16.msra.mxu0 %v809_v11  ;;  %926 = vmatpush.bf16.msra.mxu2 %v809_v11 }
  0x28   : > { %418 = vmatpush.bf16.msra.mxu1 %v817_v12  ;;  %934 = vmatpush.bf16.msra.mxu3 %v817_v12 }
  0x2b   : > { %400 = vmatpush.bf16.msra.mxu0 %v808_v13  ;;  %927 = vmatpush.bf16.msra.mxu2 %v808_v13 }
  0x2c   : > { %419 = vmatpush.bf16.msra.mxu1 %v816_v14  ;;  %935 = vmatpush.bf16.msra.mxu3 %v816_v14 }
  0x2f   : > { %401 = vmatpush.bf16.msra.mxu0 %v807_v15  ;;  %928 = vmatpush.bf16.msra.mxu2 %v807_v15 }
  0x30   : > { %420 = vmatpush.bf16.msra.mxu1 %v815_v16  ;;  %936 = vmatpush.bf16.msra.mxu3 %v815_v16 }
  0x32   : > { %402 = vmatmul.bf16.vlgmr.msra.gmra.mxu0 %v694_v25  ;;  %407 = vmatmul.bf16.vlgmr.msra.gmra.mxu2 %v702_v26 }
  0x33   : > { %421 = vmatmul.bf16.vlgmr.msra.gmra.mxu1 %v698_v27  ;;  %426 = vmatmul.bf16.vlgmr.msra.gmra.mxu3 %v706_v28 }
  0xaf   : > { %v403_v29 = vpop.f32.mrf.mxu0 }
  0xb0   : > { %v422_v30 = vpop.f32.mrf.mxu1 }
  0xb1   : > { %v423_v32 = vadd.f32 %v422_v30, %v403_v29 }
  0xb3   : > { %v445_v37 = vmul.f32 %v423_v32, %v423_v32 }
  0xb5   : > { %v408_v31 = vpop.f32.mrf.mxu2 }
  0xb6   : > { %v427_v33 = vpop.f32.mrf.mxu3 }
  0xb7   : > { %v405_v34 = vpop.f32.mrf.mxu0  ;;  %v428_v38 = vadd.f32 %v427_v33, %v408_v31 }
  0xb8   : > { %v424_v35 = vpop.f32.mrf.mxu1 }
  0xb9   : > { %v425_v36 = vadd.f32 %v424_v35, %v405_v34  ;;  %v447_v45 = vmul.f32 %v428_v38, %v428_v38 }
  0xbb   : > { %v433_v39 = vadd.f32 %v425_v36, %v423_v32  ;;  %v446_v40 = vmul.f32 %v425_v36, %v425_v36  ;;  %v827_v41 = vpack.c.bf16 %v425_v36, %v423_v32  ;;  %v499_v36 = vld [vmem:[%s1148_s3] sm:$0x1] (%p474_p6) }
  0xbd   : > { %v449_v42 = vadd.f32 %v446_v40, %v445_v37  ;;  %828 = vst [vmem:[%s469_s7] sm:$0xff] %v827_v41   ;;  %v410_v43 = vpop.f32.mrf.mxu2  ;;  %v434_v47 = vadd.f32 %v433_v39, %v428_v38 }
  0xbe   : > { %v429_v44 = vpop.f32.mrf.mxu3 }
  0xbf   : > { %v430_v46 = vadd.f32 %v429_v44, %v410_v43  ;;  %v450_v50 = vadd.f32 %v449_v42, %v447_v45 }
  0xc1   : > { %v435_v48 = vadd.f32 %v434_v47, %v430_v46  ;;  %v448_v49 = vmul.f32 %v430_v46, %v430_v46  ;;  %v832_v51 = vpack.c.bf16 %v430_v46, %v428_v38 }
  0xc3   : > { %v436_v52 = vrot.slane %v435_v48, 4  ;;  %v451_v53 = vadd.f32 %v450_v50, %v448_v49  ;;  %906 = vst [vmem:[%s469_s7 + $0x8] sm:$0xff] %v832_v51  }
  0xc5   : > { %v437_v54 = vadd.f32 %v436_v52, %v435_v48  ;;  %v452_v55 = vrot.slane %v451_v53, 4 }
  0xc7   : > { %v438_v56 = vrot.slane %v437_v54, 2  ;;  %v453_v57 = vadd.f32 %v452_v55, %v451_v53 }
  0xc9   : > { %v439_v58 = vadd.f32 %v438_v56, %v437_v54  ;;  %v454_v59 = vrot.slane %v453_v57, 2 }
  0xca   : > { %v835_v18 = vld [vmem:[%s1149_s4] sm:$0xff] (%p474_p6)   ;;  %v907_v19 = vld [vmem:[%s1149_s4 + $0x8] sm:$0xff] (%p474_p6)   ;;  %v909_v22 = vld [vmem:[%s1149_s4 + $0x10] sm:$0xff] (%p474_p6)  }
  0xcb   : > { %v440_v60 = vrot.slane %v439_v58, 1  ;;  %v455_v61 = vadd.f32 %v454_v59, %v453_v57  ;;  %v910_v23 = vld [vmem:[%s1149_s4 + $0x18] sm:$0xff] (%p474_p6)   ;;  %v913_v24 = vld [vmem:[%s1149_s4 + $0x20] sm:$0xff] (%p474_p6)   ;;  %v836_v26 = vunpack.c.l.bf16 (%p474_p6), %v835_v18  ;;  %v837_v27 = vunpack.c.h.bf16 (%p474_p6), %v835_v18  ;;  %v914_v29 = vld [vmem:[%s1149_s4 + $0x28] sm:$0xff] (%p474_p6)  }
  0xcc   : > { %v840_v28 = vunpack.c.l.bf16 (%p474_p6), %v907_v19  ;;  %v841_v31 = vunpack.c.h.bf16 (%p474_p6), %v907_v19  ;;  %v854_v32 = vunpack.c.l.bf16 (%p474_p6), %v909_v22  ;;  %v855_v33 = vunpack.c.h.bf16 (%p474_p6), %v909_v22  ;;  %v917_v34 = vld [vmem:[%s1149_s4 + $0x30] sm:$0xff] (%p474_p6)   ;;  %v1105_v35 = vld [vmem:[%s1149_s4 + $0x38] sm:$0xff] (%p474_p6)  }
  0xcd   : > { %v441_v63 = vadd.f32 %v440_v60, %v439_v58  ;;  %v456_v0 = vrot.slane %v455_v61, 1  ;;  %v858_v37 = vunpack.c.l.bf16 (%p474_p6), %v910_v23  ;;  %v859_v38 = vunpack.c.h.bf16 (%p474_p6), %v910_v23 }
  0xce   : > { %v872_v39 = vunpack.c.l.bf16 (%p474_p6), %v913_v24  ;;  %v873_v40 = vunpack.c.h.bf16 (%p474_p6), %v913_v24  ;;  %v876_v43 = vunpack.c.l.bf16 (%p474_p6), %v914_v29  ;;  %v877_v44 = vunpack.c.h.bf16 (%p474_p6), %v914_v29 }
  0xcf   : > { %v442_v2 = vadd.f32 %v441_v63, %v432_v62  ;;  %v457_v3 = vadd.f32 %v456_v0, %v455_v61  ;;  %478 = sbr.rel (!%p474_p6) target bundleno = 269 (0x10d), region = 44  ;;  %v890_v45 = vunpack.c.l.bf16 (%p474_p6), %v917_v34  ;;  %v891_v46 = vunpack.c.h.bf16 (%p474_p6), %v917_v34 }
  0xd0   : > { %v894_v47 = vunpack.c.l.bf16 (%p474_p6), %v1105_v35  ;;  %v895_v48 = vunpack.c.h.bf16 (%p474_p6), %v1105_v35 }
  0xd1   : > { %443 = vst [vmem:[#allocation2] sm:$0x1] %v442_v2  ;;  %v458_v4 = vadd.f32 %v457_v3, %v444_v1 }
  0xd3   : > { %459 = vst [vmem:[#allocation3] sm:$0x1] %v458_v4 }
  0xd8   : > { %v479_v5 = vld [vmem:[#allocation2] sm:$0x1] }
  0xd9   : > { %v480_v7 = vmul.f32 0.0078125, %v479_v5 }
  0xda   : > { %v481_v6 = vld [vmem:[#allocation3] sm:$0x1] }
  0xdb   : > { %v482_v8 = vmul.f32 0.0078125, %v481_v6  ;;  %v483_v9 = vmul.f32 %v480_v7, %v480_v7 }
  0xdd   : > { %v484_v10 = vsub.f32 %v482_v8, %v483_v9 }
  0xdf   : > { %v485_v11 = vmax.f32 %v484_v10, 0.0 }
  0xe1   : > { %v487_v12 = vadd.f32 1e-05, %v485_v11 }
  0xe3   : > { %962 = vrsqrt.f32 %v487_v12  ;;  %vm494_vm0 = vweird.f32 %v487_v12 }
  0xe9   : > { %v963_v13 = vpop.eup %962 }
  0xea   : > { %v489_v14 = vmul.f32 %v963_v13, %v487_v12  ;;  %vm495_vm1 = vweird.f32 %v963_v13 }
  0xeb   : > { %vm496_vm2 = vmor %vm494_vm0, %vm495_vm1 }
  0xec   : > { %v490_v15 = vmul.f32 %v963_v13, %v489_v14 }
  0xee   : > { %v491_v16 = vmul.f32 0.5, %v490_v15 }
  0xf0   : > { %v492_v17 = vsub.f32 1.5, %v491_v16 }
  0xf2   : > { %v493_v21 = vmul.f32 %v963_v13, %v492_v17 }
  0xf4   : > { %v497_v25 = vsel %vm496_vm2, %v963_v13, %v493_v21 }
  0xf5   : > { %v498_v30 = vmul.f32 %v497_v25, %v486_v20 }
  0xf7   : > { %v500_v41 = vmul.f32 %v498_v30, %v480_v7  ;;  %v511_v42 = vperm.slane %v498_v30, 0 }
  0xf9   : > { %v501_v49 = vsub.f32 %v499_v36, %v500_v41  ;;  %v513_v50 = vmul.f32 %v836_v26, %v511_v42  ;;  %v514_v51 = vmul.f32 %v837_v27, %v511_v42  ;;  %v515_v52 = vmul.f32 %v840_v28, %v511_v42 }
  0xfa   : > { %v516_v53 = vmul.f32 %v841_v31, %v511_v42  ;;  %v545_v54 = vmul.f32 %v854_v32, %v511_v42  ;;  %v546_v55 = vmul.f32 %v855_v33, %v511_v42  ;;  %v547_v56 = vmul.f32 %v858_v37, %v511_v42 }
  0xfb   : > { %v518_v57 = vperm.slane %v501_v49, 0  ;;  %v548_v58 = vmul.f32 %v859_v38, %v511_v42  ;;  %v574_v59 = vmul.f32 %v872_v39, %v511_v42  ;;  %v575_v60 = vmul.f32 %v873_v40, %v511_v42 }
  0xfc   : > { %v576_v61 = vmul.f32 %v876_v43, %v511_v42  ;;  %v577_v62 = vmul.f32 %v877_v44, %v511_v42  ;;  %v603_v63 = vmul.f32 %v890_v45, %v511_v42  ;;  %v604_v0 = vmul.f32 %v891_v46, %v511_v42 }
  0xfd   : > { %v520_v1 = vadd.f32 %v518_v57, %v513_v50  ;;  %v521_v2 = vadd.f32 %v518_v57, %v514_v51  ;;  %v522_v3 = vadd.f32 %v518_v57, %v515_v52  ;;  %v523_v4 = vadd.f32 %v518_v57, %v516_v53 }
  0xfe   : > { %v549_v5 = vadd.f32 %v545_v54, %v518_v57  ;;  %v550_v6 = vadd.f32 %v546_v55, %v518_v57  ;;  %v551_v7 = vadd.f32 %v547_v56, %v518_v57  ;;  %v552_v8 = vadd.f32 %v548_v58, %v518_v57 }
  0xff   : > { %v524_v9 = vmax.f32 %v520_v1, 0.0  ;;  %v525_v10 = vmax.f32 %v521_v2, 0.0  ;;  %v526_v11 = vmax.f32 %v522_v3, 0.0  ;;  %v527_v12 = vmax.f32 %v523_v4, 0.0 }
 0x100   : > { %v553_v13 = vmax.f32 %v549_v5, 0.0  ;;  %v554_v14 = vmax.f32 %v550_v6, 0.0  ;;  %v555_v15 = vmax.f32 %v551_v7, 0.0  ;;  %v556_v16 = vmax.f32 %v552_v8, 0.0 }
 0x101   : > { %v845_v17 = vpack.c.bf16 %v525_v10, %v524_v9  ;;  %v850_v18 = vpack.c.bf16 %v527_v12, %v526_v11  ;;  %v578_v19 = vadd.f32 %v574_v59, %v518_v57  ;;  %v579_v20 = vadd.f32 %v575_v60, %v518_v57 }
 0x102   : > { %v863_v21 = vpack.c.bf16 %v554_v14, %v553_v13  ;;  %v868_v22 = vpack.c.bf16 %v556_v16, %v555_v15  ;;  %v580_v23 = vadd.f32 %v576_v61, %v518_v57  ;;  %v581_v24 = vadd.f32 %v577_v62, %v518_v57 }
 0x103   : > { %846 = vst [vmem:[%s1149_s4] sm:$0xff] %v845_v17   ;;  %v582_v25 = vmax.f32 %v578_v19, 0.0  ;;  %v583_v26 = vmax.f32 %v579_v20, 0.0  ;;  %v607_v27 = vadd.f32 %v603_v63, %v518_v57  ;;  %v608_v28 = vadd.f32 %v604_v0, %v518_v57 }
 0x104   : > { %908 = vst [vmem:[%s1149_s4 + $0x8] sm:$0xff] %v850_v18   ;;  %v584_v29 = vmax.f32 %v580_v23, 0.0  ;;  %v585_v30 = vmax.f32 %v581_v24, 0.0  ;;  %v605_v31 = vmul.f32 %v894_v47, %v511_v42  ;;  %v606_v32 = vmul.f32 %v895_v48, %v511_v42 }
 0x105   : > { %911 = vst [vmem:[%s1149_s4 + $0x10] sm:$0xff] %v863_v21   ;;  %v881_v33 = vpack.c.bf16 %v583_v26, %v582_v25  ;;  %v611_v34 = vmax.f32 %v607_v27, 0.0  ;;  %v612_v35 = vmax.f32 %v608_v28, 0.0 }
 0x106   : > { %912 = vst [vmem:[%s1149_s4 + $0x18] sm:$0xff] %v868_v22   ;;  %v886_v36 = vpack.c.bf16 %v585_v30, %v584_v29  ;;  %v609_v37 = vadd.f32 %v605_v31, %v518_v57  ;;  %v610_v38 = vadd.f32 %v606_v32, %v518_v57 }
 0x107   : > { %915 = vst [vmem:[%s1149_s4 + $0x20] sm:$0xff] %v881_v33   ;;  %v899_v39 = vpack.c.bf16 %v612_v35, %v611_v34 }
 0x108   : > { %916 = vst [vmem:[%s1149_s4 + $0x28] sm:$0xff] %v886_v36   ;;  %v613_v40 = vmax.f32 %v609_v37, 0.0  ;;  %v614_v41 = vmax.f32 %v610_v38, 0.0 }
 0x109   : > { %919 = vst [vmem:[%s1149_s4 + $0x30] sm:$0xff] %v899_v39  }
 0x10a   : > { %v904_v42 = vpack.c.bf16 %v614_v41, %v613_v40 }
 0x10c   : > { %920 = vst [vmem:[%s1149_s4 + $0x38] sm:$0xff] %v904_v42  }
 0x10d PF: > { %s14_s17 = sadd.s32 1, %s986_s17   ;;  %s1150_s15 = smov %s982_s16 }
 0x10e   : > { %p11_p7 = scmp.ge.s32.totalorder %s14_s17, 6   ;;  %s1151_s16 = smov %s1153_s18 }
 0x110   :  { %13 = sbr.rel (!%p11_p7) target bundleno = 2 (0x2), region = 77 }

// kernel: netG64_forward.5
= control target key start
LH: loop header
LB: loop body
LE: loop exit
PB: predicated region body
PF: predicated region fallthrough
CT: control target
= control target key end

     0   :  { %vm115_vm0 = vcmask 130048   ;;  %s1098_s1 = inlined_call_operand.vmem [shape: bf16[16,2048], index: 1, kind: input, shape index: {}]   ;;  %s1099_s0 = inlined_call_operand.vmem [shape: bf16[8,16], index: 0, kind: input, shape index: {}]   ;;  %s1100_s2 = inlined_call_operand.vmem [shape: f32[1,128], index: 2, kind: input, shape index: {}]   ;;  %s1101_s3 = inlined_call_operand.vmem [shape: f32[1,128], index: 3, kind: input, shape index: {}]   ;;  %s1102_s4 = inlined_call_operand.vmem [shape: bf16[8,2048], index: 4, kind: output, shape index: {}]  }
   0x1   :  { %v678_v0 = vld [vmem:[%s1098_s1] sm:$0xf]  ;;  %v756_v2 = vld [vmem:[%s1098_s1 + $0x4] sm:$0xf]  ;;  %v686_v5 = vld [vmem:[%s1098_s1 + $0x8] sm:$0xf] }
   0x2   :  { %v764_v1 = vld [vmem:[%s1098_s1 + $0x3c] sm:$0xf0]  ;;  %v680_v4 = vld [vmem:[%s1098_s1 + $0x40] sm:$0xf0]  ;;  %v765_v6 = vld [vmem:[%s1098_s1 + $0x44] sm:$0xf0] }
   0x3   :  { %v679_v3 = vor.u32 %v764_v1, %v678_v0  ;;  %v683_v7 = vor.u32 %v756_v2, %v680_v4  ;;  %v687_v8 = vor.u32 %v765_v6, %v686_v5  ;;  %v757_v9 = vld [vmem:[%s1098_s1 + $0xc] sm:$0xf]  ;;  %v826_v11 = vld [vmem:[%s1099_s0] sm:$0xf]  ;;  %v702_v13 = vld [vmem:[%s1098_s1 + $0x18] sm:$0xf] }
   0x4   :  { %v688_v10 = vld [vmem:[%s1098_s1 + $0x48] sm:$0xf0]  ;;  %v767_v14 = vld [vmem:[%s1098_s1 + $0x54] sm:$0xf0]  ;;  %v694_v15 = vld [vmem:[%s1098_s1 + $0x10] sm:$0xf] }
   0x5   :  { %126 = vmatpush.bf16.msra.mxu0 %v679_v3  ;;  %v691_v12 = vor.u32 %v757_v9, %v688_v10  ;;  %139 = vmatpush.bf16.msra.mxu1 %v683_v7  ;;  %v703_v16 = vor.u32 %v767_v14, %v702_v13  ;;  %v766_v17 = vld [vmem:[%s1098_s1 + $0x4c] sm:$0xf0]  ;;  %v759_v18 = vld [vmem:[%s1098_s1 + $0x1c] sm:$0xf]  ;;  %v758_v22 = vld [vmem:[%s1098_s1 + $0x14] sm:$0xf] }
   0x6   :  { %152 = vmatpush.bf16.msra.mxu2 %v687_v8  ;;  %v704_v19 = vld [vmem:[%s1098_s1 + $0x58] sm:$0xf0]  ;;  %v695_v20 = vor.u32 %v766_v17, %v694_v15  ;;  %v696_v23 = vld [vmem:[%s1098_s1 + $0x50] sm:$0xf0]  ;;  %v718_v24 = vld [vmem:[%s1098_s1 + $0x28] sm:$0xf] }
   0x7   :  { %165 = vmatpush.bf16.msra.mxu3 %v691_v12  ;;  %v707_v21 = vor.u32 %v759_v18, %v704_v19  ;;  %v699_v25 = vor.u32 %v758_v22, %v696_v23  ;;  %v769_v26 = vld [vmem:[%s1098_s1 + $0x64] sm:$0xf0]  ;;  %v710_v27 = vld [vmem:[%s1098_s1 + $0x20] sm:$0xf]  ;;  %v761_v31 = vld [vmem:[%s1098_s1 + $0x2c] sm:$0xf] }
   0x8   :  { %740 = vmatmul.msk.bf16.vlgmr.msra.gmra.mxu0 %vm115_vm0, %v826_v11  ;;  %v768_v28 = vld [vmem:[%s1098_s1 + $0x5c] sm:$0xf0]  ;;  %741 = vmatmul.msk.bf16.vlgmr.msra.gmra.mxu1 %vm115_vm0, %v826_v11  ;;  %v719_v29 = vor.u32 %v769_v26, %v718_v24  ;;  %v720_v32 = vld [vmem:[%s1098_s1 + $0x68] sm:$0xf0]  ;;  %v760_v33 = vld [vmem:[%s1098_s1 + $0x24] sm:$0xf] }
   0x9   :  { %742 = vmatmul.msk.bf16.vlgmr.msra.gmra.mxu2 %vm115_vm0, %v826_v11  ;;  %v711_v30 = vor.u32 %v768_v28, %v710_v27  ;;  %178 = vmatpush.bf16.msrb.mxu0 %v695_v20  ;;  %v723_v34 = vor.u32 %v761_v31, %v720_v32  ;;  %v712_v35 = vld [vmem:[%s1098_s1 + $0x60] sm:$0xf0]  ;;  %v734_v37 = vld [vmem:[%s1098_s1 + $0x38] sm:$0xf]  ;;  %v726_v39 = vld [vmem:[%s1098_s1 + $0x30] sm:$0xf] }
   0xa   :  { %204 = vmatpush.bf16.msrb.mxu2 %v703_v16  ;;  %743 = vmatmul.msk.bf16.vlgmr.msra.gmra.mxu3 %vm115_vm0, %v826_v11  ;;  %v715_v36 = vor.u32 %v760_v33, %v712_v35  ;;  %v771_v38 = vld [vmem:[%s1098_s1 + $0x74] sm:$0xf0]  ;;  %v770_v40 = vld [vmem:[%s1098_s1 + $0x6c] sm:$0xf0]  ;;  %v763_v41 = vld [vmem:[%s1098_s1 + $0x3c] sm:$0xf] }
   0xb   :  { %217 = vmatpush.bf16.msrb.mxu3 %v707_v21  ;;  %191 = vmatpush.bf16.msrb.mxu1 %v699_v25  ;;  %v736_v42 = vld [vmem:[%s1098_s1 + $0x78] sm:$0xf0]  ;;  %v762_v43 = vld [vmem:[%s1098_s1 + $0x34] sm:$0xf]  ;;  %v735_v45 = vor.u32 %v771_v38, %v734_v37  ;;  %v727_v46 = vor.u32 %v770_v40, %v726_v39 }
   0xc   :  { %v728_v44 = vld [vmem:[%s1098_s1 + $0x70] sm:$0xf0]  ;;  %v739_v47 = vor.u32 %v763_v41, %v736_v42 }
   0xd   :  { %230 = vmatpush.bf16.msra.mxu0 %v711_v30  ;;  %v731_v48 = vor.u32 %v762_v43, %v728_v44 }
   0xe   :  { %256 = vmatpush.bf16.msra.mxu2 %v719_v29 }
   0xf   :  { %269 = vmatpush.bf16.msra.mxu3 %v723_v34  ;;  %243 = vmatpush.bf16.msra.mxu1 %v715_v36 }
  0x18   :  { %744 = vmatmul.msk.bf16.vlgmr.msrb.gmra.mxu0 %vm115_vm0, %v826_v11  ;;  %745 = vmatmul.msk.bf16.vlgmr.msrb.gmra.mxu1 %vm115_vm0, %v826_v11 }
  0x19   :  { %746 = vmatmul.msk.bf16.vlgmr.msrb.gmra.mxu2 %vm115_vm0, %v826_v11  ;;  %282 = vmatpush.bf16.msrb.mxu0 %v727_v46 }
  0x1a   :  { %747 = vmatmul.msk.bf16.vlgmr.msrb.gmra.mxu3 %vm115_vm0, %v826_v11  ;;  %308 = vmatpush.bf16.msrb.mxu2 %v735_v45 }
  0x1b   :  { %321 = vmatpush.bf16.msrb.mxu3 %v739_v47  ;;  %295 = vmatpush.bf16.msrb.mxu1 %v731_v48 }
  0x28   :  { %748 = vmatmul.msk.bf16.vlgmr.msra.gmra.mxu0 %vm115_vm0, %v826_v11  ;;  %749 = vmatmul.msk.bf16.vlgmr.msra.gmra.mxu1 %vm115_vm0, %v826_v11 }
  0x29   :  { %750 = vmatmul.msk.bf16.vlgmr.msra.gmra.mxu2 %vm115_vm0, %v826_v11 }
  0x2a   :  { %751 = vmatmul.msk.bf16.vlgmr.msra.gmra.mxu3 %vm115_vm0, %v826_v11 }
  0x38   :  { %752 = vmatmul.msk.bf16.vlgmr.msrb.gmra.mxu0 %vm115_vm0, %v826_v11  ;;  %753 = vmatmul.msk.bf16.vlgmr.msrb.gmra.mxu1 %vm115_vm0, %v826_v11 }
  0x39   :  { %754 = vmatmul.msk.bf16.vlgmr.msrb.gmra.mxu2 %vm115_vm0, %v826_v11 }
  0x3a   :  { %755 = vmatmul.msk.bf16.vlgmr.msrb.gmra.mxu3 %vm115_vm0, %v826_v11 }
  0x85   :  { %v932_v49 = vpop.f32.mrf.mxu0  ;;  %v937_v52 = vpop.f32.mrf.mxu1 }
  0x86   :  { %v327_v50 = vrot.slane %v932_v49, 4  ;;  %v423_v51 = vmul.f32 %v932_v49, %v932_v49  ;;  %v333_v53 = vrot.slane %v937_v52, 4  ;;  %v424_v54 = vmul.f32 %v937_v52, %v937_v52 }
  0x88   :  { %v328_v55 = vadd.f32 %v327_v50, %v932_v49  ;;  %v439_v56 = vrot.slane %v423_v51, 4  ;;  %v334_v57 = vadd.f32 %v333_v53, %v937_v52  ;;  %v445_v58 = vrot.slane %v424_v54, 4 }
  0x8a   :  { %v329_v59 = vrot.slane %v328_v55, 2  ;;  %v440_v60 = vadd.f32 %v439_v56, %v423_v51  ;;  %v335_v61 = vrot.slane %v334_v57, 2  ;;  %v446_v62 = vadd.f32 %v445_v58, %v424_v54 }
  0x8c   :  { %v330_v63 = vadd.f32 %v329_v59, %v328_v55  ;;  %v441_v0 = vrot.slane %v440_v60, 2  ;;  %v944_v1 = vpop.f32.mrf.mxu2  ;;  %v336_v2 = vadd.f32 %v335_v61, %v334_v57  ;;  %v447_v3 = vrot.slane %v446_v62, 2 }
  0x8d   :  { %v339_v4 = vrot.slane %v944_v1, 4  ;;  %v425_v5 = vmul.f32 %v944_v1, %v944_v1  ;;  %v949_v6 = vpop.f32.mrf.mxu3  ;;  %v130_v7 = vpop.f32.mrf.mxu0 }
  0x8e   :  { %v442_v8 = vadd.f32 %v441_v0, %v440_v60  ;;  %v345_v9 = vrot.slane %v949_v6, 4  ;;  %v426_v10 = vmul.f32 %v949_v6, %v949_v6  ;;  %v143_v11 = vpop.f32.mrf.mxu1  ;;  %v448_v12 = vadd.f32 %v447_v3, %v446_v62 }
  0x8f   :  { %v340_v13 = vadd.f32 %v339_v4, %v944_v1  ;;  %v451_v14 = vrot.slane %v425_v5, 4  ;;  %v331_v17 = vrot.slane %v330_v63, 1  ;;  %v337_v18 = vrot.slane %v336_v2, 1 }
  0x90   :  { %v346_v15 = vadd.f32 %v345_v9, %v949_v6  ;;  %v457_v16 = vrot.slane %v426_v10, 4  ;;  %v443_v21 = vrot.slane %v442_v8, 1  ;;  %v449_v22 = vrot.slane %v448_v12, 1 }
  0x91   :  { %v341_v19 = vrot.slane %v340_v13, 2  ;;  %v452_v20 = vadd.f32 %v451_v14, %v425_v5  ;;  %v332_v30 = vadd.f32 %v331_v17, %v330_v63  ;;  %v338_v31 = vadd.f32 %v337_v18, %v336_v2 }
  0x92   :  { %v347_v23 = vrot.slane %v346_v15, 2  ;;  %v458_v24 = vadd.f32 %v457_v16, %v426_v10  ;;  %v444_v36 = vadd.f32 %v443_v21, %v442_v8  ;;  %v450_v37 = vadd.f32 %v449_v22, %v448_v12 }
  0x93   :  { %v342_v25 = vadd.f32 %v341_v19, %v340_v13  ;;  %v453_v26 = vrot.slane %v452_v20, 2  ;;  %v535_v50 = vadd.f32 %v338_v31, %v332_v30 }
  0x94   :  { %v348_v27 = vadd.f32 %v347_v23, %v346_v15  ;;  %v459_v28 = vrot.slane %v458_v24, 2  ;;  %v156_v29 = vpop.f32.mrf.mxu2  ;;  %v536_v57 = vadd.f32 %v450_v37, %v444_v36 }
  0x95   :  { %v343_v32 = vrot.slane %v342_v25, 1  ;;  %v454_v33 = vadd.f32 %v453_v26, %v452_v20  ;;  %v169_v34 = vpop.f32.mrf.mxu3  ;;  %v956_v35 = vpop.f32.mrf.mxu0 }
  0x96   :  { %v351_v38 = vrot.slane %v956_v35, 4  ;;  %v427_v39 = vmul.f32 %v956_v35, %v956_v35  ;;  %v961_v40 = vpop.f32.mrf.mxu1  ;;  %v349_v45 = vrot.slane %v348_v27, 1  ;;  %v460_v46 = vadd.f32 %v459_v28, %v458_v24 }
  0x97   :  { %v344_v41 = vadd.f32 %v343_v32, %v342_v25  ;;  %v455_v42 = vrot.slane %v454_v33, 1  ;;  %v357_v43 = vrot.slane %v961_v40, 4  ;;  %v428_v44 = vmul.f32 %v961_v40, %v961_v40 }
  0x98   :  { %v352_v47 = vadd.f32 %v351_v38, %v956_v35  ;;  %v463_v48 = vrot.slane %v427_v39, 4  ;;  %v350_v61 = vadd.f32 %v349_v45, %v348_v27  ;;  %v461_v62 = vrot.slane %v460_v46, 1 }
  0x99   :  { %v456_v51 = vadd.f32 %v455_v42, %v454_v33  ;;  %v358_v53 = vadd.f32 %v357_v43, %v961_v40  ;;  %v469_v54 = vrot.slane %v428_v44, 4  ;;  %v537_v58 = vadd.f32 %v535_v50, %v344_v41 }
  0x9a   :  { %v353_v55 = vrot.slane %v352_v47, 2  ;;  %v464_v56 = vadd.f32 %v463_v48, %v427_v39  ;;  %v462_v23 = vadd.f32 %v461_v62, %v460_v46 }
  0x9b   :  { %v359_v59 = vrot.slane %v358_v53, 2  ;;  %v470_v60 = vadd.f32 %v469_v54, %v428_v44  ;;  %v538_v3 = vadd.f32 %v536_v57, %v456_v51  ;;  %v539_v15 = vadd.f32 %v537_v58, %v350_v61 }
  0x9c   :  { %v354_v63 = vadd.f32 %v353_v55, %v352_v47  ;;  %v465_v0 = vrot.slane %v464_v56, 2  ;;  %v968_v2 = vpop.f32.mrf.mxu2 }
  0x9d   :  { %v360_v4 = vadd.f32 %v359_v59, %v358_v53  ;;  %v471_v5 = vrot.slane %v470_v60, 2  ;;  %v363_v7 = vrot.slane %v968_v2, 4  ;;  %v971_v8 = vpop.f32.mrf.mxu3  ;;  %v182_v9 = vpop.f32.mrf.mxu0  ;;  %v429_v12 = vmul.f32 %v968_v2, %v968_v2 }
  0x9e   :  { %v355_v10 = vrot.slane %v354_v63, 1  ;;  %v466_v11 = vadd.f32 %v465_v0, %v464_v56  ;;  %v369_v13 = vrot.slane %v971_v8, 4  ;;  %v195_v14 = vpop.f32.mrf.mxu1  ;;  %v430_v18 = vmul.f32 %v971_v8, %v971_v8 }
  0x9f   :  { %v361_v16 = vrot.slane %v360_v4, 1  ;;  %v364_v17 = vadd.f32 %v363_v7, %v968_v2  ;;  %v475_v21 = vrot.slane %v429_v12, 4  ;;  %v472_v24 = vadd.f32 %v471_v5, %v470_v60 }
  0xa0   :  { %v356_v19 = vadd.f32 %v355_v10, %v354_v63  ;;  %v467_v20 = vrot.slane %v466_v11, 1  ;;  %v370_v22 = vadd.f32 %v369_v13, %v971_v8  ;;  %v481_v26 = vrot.slane %v430_v18, 4 }
  0xa1   :  { %v365_v25 = vrot.slane %v364_v17, 2  ;;  %v476_v29 = vadd.f32 %v475_v21, %v429_v12  ;;  %v540_v33 = vadd.f32 %v538_v3, %v462_v23  ;;  %v362_v34 = vadd.f32 %v361_v16, %v360_v4 }
  0xa2   :  { %v468_v27 = vadd.f32 %v467_v20, %v466_v11  ;;  %v541_v28 = vadd.f32 %v539_v15, %v356_v19  ;;  %v371_v30 = vrot.slane %v370_v22, 2  ;;  %v482_v32 = vadd.f32 %v481_v26, %v430_v18 }
  0xa3   :  { %v366_v31 = vadd.f32 %v365_v25, %v364_v17  ;;  %v477_v36 = vrot.slane %v476_v29, 2  ;;  %v473_v39 = vrot.slane %v472_v24, 1 }
  0xa4   :  { %v372_v37 = vadd.f32 %v371_v30, %v370_v22  ;;  %v208_v38 = vpop.f32.mrf.mxu2  ;;  %v483_v42 = vrot.slane %v482_v32, 2  ;;  %v542_v45 = vadd.f32 %v540_v33, %v468_v27  ;;  %v543_v46 = vadd.f32 %v541_v28, %v362_v34 }
  0xa5   :  { %v367_v41 = vrot.slane %v366_v31, 1  ;;  %v221_v43 = vpop.f32.mrf.mxu3  ;;  %v980_v44 = vpop.f32.mrf.mxu0  ;;  %v478_v47 = vadd.f32 %v477_v36, %v476_v29  ;;  %v474_v60 = vadd.f32 %v473_v39, %v472_v24 }
  0xa6   :  { %v375_v48 = vrot.slane %v980_v44, 4  ;;  %v983_v50 = vpop.f32.mrf.mxu1  ;;  %v373_v53 = vrot.slane %v372_v37, 1  ;;  %v431_v54 = vmul.f32 %v980_v44, %v980_v44  ;;  %v484_v57 = vadd.f32 %v483_v42, %v482_v32 }
  0xa7   :  { %v368_v51 = vadd.f32 %v367_v41, %v366_v31  ;;  %v381_v55 = vrot.slane %v983_v50, 4  ;;  %v479_v56 = vrot.slane %v478_v47, 1  ;;  %v432_v59 = vmul.f32 %v983_v50, %v983_v50 }
  0xa8   :  { %v376_v58 = vadd.f32 %v375_v48, %v980_v44  ;;  %v487_v61 = vrot.slane %v431_v54, 4  ;;  %v544_v4 = vadd.f32 %v542_v45, %v474_v60  ;;  %v374_v10 = vadd.f32 %v373_v53, %v372_v37 }
  0xa9   :  { %v382_v62 = vadd.f32 %v381_v55, %v983_v50  ;;  %v545_v63 = vadd.f32 %v543_v46, %v368_v51  ;;  %v493_v3 = vrot.slane %v432_v59, 4  ;;  %v480_v5 = vadd.f32 %v479_v56, %v478_v47 }
  0xaa   :  { %v377_v0 = vrot.slane %v376_v58, 2  ;;  %v488_v7 = vadd.f32 %v487_v61, %v431_v54  ;;  %v485_v11 = vrot.slane %v484_v57, 1 }
  0xab   :  { %v383_v9 = vrot.slane %v382_v62, 2  ;;  %v494_v13 = vadd.f32 %v493_v3, %v432_v59  ;;  %v547_v21 = vadd.f32 %v545_v63, %v374_v10  ;;  %v546_v26 = vadd.f32 %v544_v4, %v480_v5 }
  0xac   :  { %v378_v12 = vadd.f32 %v377_v0, %v376_v58  ;;  %v992_v14 = vpop.f32.mrf.mxu2  ;;  %v489_v15 = vrot.slane %v488_v7, 2  ;;  %v486_v39 = vadd.f32 %v485_v11, %v484_v57 }
  0xad   :  { %v384_v16 = vadd.f32 %v383_v9, %v382_v62  ;;  %v387_v17 = vrot.slane %v992_v14, 4  ;;  %v433_v18 = vmul.f32 %v992_v14, %v992_v14  ;;  %v997_v19 = vpop.f32.mrf.mxu3  ;;  %v234_v20 = vpop.f32.mrf.mxu0  ;;  %v495_v23 = vrot.slane %v494_v13, 2 }
  0xae   :  { %v379_v22 = vrot.slane %v378_v12, 1  ;;  %v393_v24 = vrot.slane %v997_v19, 4  ;;  %v247_v25 = vpop.f32.mrf.mxu1  ;;  %v490_v27 = vadd.f32 %v489_v15, %v488_v7  ;;  %v434_v33 = vmul.f32 %v997_v19, %v997_v19 }
  0xaf   :  { %v388_v28 = vadd.f32 %v387_v17, %v992_v14  ;;  %v499_v29 = vrot.slane %v433_v18, 4  ;;  %v496_v31 = vadd.f32 %v495_v23, %v494_v13  ;;  %v385_v36 = vrot.slane %v384_v16, 1 }
  0xb0   :  { %v380_v30 = vadd.f32 %v379_v22, %v378_v12  ;;  %v394_v32 = vadd.f32 %v393_v24, %v997_v19  ;;  %v491_v34 = vrot.slane %v490_v27, 1  ;;  %v505_v43 = vrot.slane %v434_v33, 4 }
  0xb1   :  { %v389_v37 = vrot.slane %v388_v28, 2  ;;  %v500_v38 = vadd.f32 %v499_v29, %v433_v18  ;;  %v497_v41 = vrot.slane %v496_v31, 1  ;;  %v548_v51 = vadd.f32 %v546_v26, %v486_v39 }
  0xb2   :  { %v395_v42 = vrot.slane %v394_v32, 2  ;;  %v492_v45 = vadd.f32 %v491_v34, %v490_v27  ;;  %v549_v46 = vadd.f32 %v547_v21, %v380_v30  ;;  %v506_v54 = vadd.f32 %v505_v43, %v434_v33 }
  0xb3   :  { %v390_v47 = vadd.f32 %v389_v37, %v388_v28  ;;  %v501_v48 = vrot.slane %v500_v38, 2  ;;  %v386_v56 = vadd.f32 %v385_v36, %v384_v16  ;;  %v498_v58 = vadd.f32 %v497_v41, %v496_v31 }
  0xb4   :  { %v396_v53 = vadd.f32 %v395_v42, %v394_v32  ;;  %v260_v55 = vpop.f32.mrf.mxu2  ;;  %v550_v63 = vadd.f32 %v548_v51, %v492_v45  ;;  %v507_v57 = vrot.slane %v506_v54, 2 }
  0xb5   :  { %v391_v59 = vrot.slane %v390_v47, 1  ;;  %v502_v60 = vadd.f32 %v501_v48, %v500_v38  ;;  %v273_v61 = vpop.f32.mrf.mxu3  ;;  %v1004_v62 = vpop.f32.mrf.mxu0  ;;  %v551_v5 = vadd.f32 %v549_v46, %v386_v56 }
  0xb6   :  { %v399_v0 = vrot.slane %v1004_v62, 4  ;;  %v435_v3 = vmul.f32 %v1004_v62, %v1004_v62  ;;  %v1009_v4 = vpop.f32.mrf.mxu1  ;;  %v397_v11 = vrot.slane %v396_v53, 1  ;;  %v508_v12 = vadd.f32 %v507_v57, %v506_v54 }
  0xb7   :  { %v392_v7 = vadd.f32 %v391_v59, %v390_v47  ;;  %v503_v9 = vrot.slane %v502_v60, 1  ;;  %v405_v10 = vrot.slane %v1009_v4, 4  ;;  %v436_v18 = vmul.f32 %v1009_v4, %v1009_v4 }
  0xb8   :  { %v400_v13 = vadd.f32 %v399_v0, %v1004_v62  ;;  %v511_v15 = vrot.slane %v435_v3, 4  ;;  %v552_v20 = vadd.f32 %v550_v63, %v498_v58  ;;  %v509_v24 = vrot.slane %v508_v12, 1 }
  0xb9   :  { %v504_v16 = vadd.f32 %v503_v9, %v502_v60  ;;  %v406_v17 = vadd.f32 %v405_v10, %v1009_v4  ;;  %v553_v21 = vadd.f32 %v551_v5, %v392_v7  ;;  %v517_v26 = vrot.slane %v436_v18, 4 }
  0xba   :  { %v401_v22 = vrot.slane %v400_v13, 2  ;;  %v512_v23 = vadd.f32 %v511_v15, %v435_v3  ;;  %v398_v28 = vadd.f32 %v397_v11, %v396_v53  ;;  %v510_v46 = vadd.f32 %v509_v24, %v508_v12 }
  0xbb   :  { %v407_v25 = vrot.slane %v406_v17, 2  ;;  %v554_v27 = vadd.f32 %v552_v20, %v504_v16  ;;  %v518_v33 = vadd.f32 %v517_v26, %v436_v18 }
  0xbc   :  { %v402_v29 = vadd.f32 %v401_v22, %v400_v13  ;;  %v513_v30 = vrot.slane %v512_v23, 2  ;;  %v1016_v31 = vpop.f32.mrf.mxu2  ;;  %v555_v39 = vadd.f32 %v553_v21, %v398_v28 }
  0xbd   :  { %v408_v32 = vadd.f32 %v407_v25, %v406_v17  ;;  %v411_v34 = vrot.slane %v1016_v31, 4  ;;  %v437_v36 = vmul.f32 %v1016_v31, %v1016_v31  ;;  %v1021_v37 = vpop.f32.mrf.mxu3  ;;  %v286_v38 = vpop.f32.mrf.mxu0  ;;  %v519_v47 = vrot.slane %v518_v33, 2 }
  0xbe   :  { %v403_v41 = vrot.slane %v402_v29, 1  ;;  %v514_v42 = vadd.f32 %v513_v30, %v512_v23  ;;  %v417_v43 = vrot.slane %v1021_v37, 4  ;;  %v299_v45 = vpop.f32.mrf.mxu1  ;;  %v438_v56 = vmul.f32 %v1021_v37, %v1021_v37 }
  0xbf   :  { %v412_v48 = vadd.f32 %v411_v34, %v1016_v31  ;;  %v523_v51 = vrot.slane %v437_v36, 4  ;;  %v409_v58 = vrot.slane %v408_v32, 1  ;;  %v520_v59 = vadd.f32 %v519_v47, %v518_v33 }
  0xc0   :  { %v404_v53 = vadd.f32 %v403_v41, %v402_v29  ;;  %v515_v54 = vrot.slane %v514_v42, 1  ;;  %v418_v55 = vadd.f32 %v417_v43, %v1021_v37  ;;  %v556_v63 = vadd.f32 %v554_v27, %v510_v46 }
  0xc1   :  { %v413_v60 = vrot.slane %v412_v48, 2  ;;  %v524_v61 = vadd.f32 %v523_v51, %v437_v36  ;;  %v529_v3 = vrot.slane %v438_v56, 4  ;;  %v521_v7 = vrot.slane %v520_v59, 1 }
  0xc2   :  { %v516_v57 = vadd.f32 %v515_v54, %v514_v42  ;;  %v419_v0 = vrot.slane %v418_v55, 2  ;;  %v557_v5 = vadd.f32 %v555_v39, %v404_v53  ;;  %v410_v16 = vadd.f32 %v409_v58, %v408_v32 }
  0xc3   :  { %v414_v9 = vadd.f32 %v413_v60, %v412_v48  ;;  %v525_v10 = vrot.slane %v524_v61, 2  ;;  %v530_v12 = vadd.f32 %v529_v3, %v438_v56  ;;  %v522_v23 = vadd.f32 %v521_v7, %v520_v59  ;;  %v570_v56 = vld [vmem:[%s1100_s2] sm:$0x1] }
  0xc4   :  { %v420_v11 = vadd.f32 %v419_v0, %v418_v55  ;;  %v312_v13 = vpop.f32.mrf.mxu2  ;;  %v558_v15 = vadd.f32 %v556_v63, %v516_v57  ;;  %v559_v24 = vadd.f32 %v557_v5, %v410_v16 }
  0xc5   :  { %v415_v17 = vrot.slane %v414_v9, 1  ;;  %v526_v18 = vadd.f32 %v525_v10, %v524_v61  ;;  %v325_v20 = vpop.f32.mrf.mxu3  ;;  %v531_v22 = vrot.slane %v530_v12, 2  ;;  %v583_v61 = vld [vmem:[%s1101_s3] sm:$0x1] }
  0xc6   :  { %v421_v21 = vrot.slane %v420_v11, 1  ;;  %v560_v28 = vadd.f32 %v558_v15, %v522_v23 }
  0xc7   :  { %v416_v25 = vadd.f32 %v415_v17, %v414_v9  ;;  %v527_v26 = vrot.slane %v526_v18, 1  ;;  %v532_v27 = vadd.f32 %v531_v22, %v530_v12 }
  0xc8   :  { %v422_v33 = vadd.f32 %v421_v21, %v420_v11 }
  0xc9   :  { %v528_v29 = vadd.f32 %v527_v26, %v526_v18  ;;  %v561_v30 = vadd.f32 %v559_v24, %v416_v25  ;;  %v533_v34 = vrot.slane %v532_v27, 1 }
  0xcb   :  { %v562_v36 = vadd.f32 %v560_v28, %v528_v29  ;;  %v563_v38 = vadd.f32 %v561_v30, %v422_v33  ;;  %v534_v39 = vadd.f32 %v533_v34, %v532_v27 }
  0xcd   :  { %v565_v41 = vmul.f32 0.03125, %v563_v38  ;;  %v564_v32 = vadd.f32 %v562_v36, %v534_v39 }
  0xcf   :  { %v567_v42 = vmul.f32 %v565_v41, %v565_v41  ;;  %v566_v43 = vmul.f32 0.03125, %v564_v32 }
  0xd1   :  { %v568_v45 = vsub.f32 %v566_v43, %v567_v42 }
  0xd3   :  { %v569_v46 = vmax.f32 %v568_v45, 0.0 }
  0xd5   :  { %v571_v47 = vadd.f32 1e-05, %v569_v46 }
  0xd7   :  { %772 = vrsqrt.f32 %v571_v47  ;;  %vm578_vm2 = vweird.f32 %v571_v47 }
  0xdd   :  { %v773_v48 = vpop.eup %772 }
  0xde   :  { %v573_v51 = vmul.f32 %v773_v48, %v571_v47  ;;  %vm579_vm1 = vweird.f32 %v773_v48 }
  0xdf   :  { %vm580_vm3 = vmor %vm578_vm2, %vm579_vm1 }
  0xe0   :  { %v574_v53 = vmul.f32 %v773_v48, %v573_v51 }
  0xe2   :  { %v575_v54 = vmul.f32 0.5, %v574_v53 }
  0xe4   :  { %v576_v55 = vsub.f32 1.5, %v575_v54 }
  0xe6   :  { %v577_v58 = vmul.f32 %v773_v48, %v576_v55 }
  0xe8   :  { %v581_v59 = vsel %vm580_vm3, %v773_v48, %v577_v58 }
  0xe9   :  { %v582_v60 = vmul.f32 %v581_v59, %v570_v56 }
  0xeb   :  { %v584_v63 = vmul.f32 %v582_v60, %v565_v41  ;;  %v587_v57 = vperm.slane %v582_v60, 0 }
  0xed   :  { %v585_v0 = vsub.f32 %v583_v61, %v584_v63  ;;  %v589_v3 = vmul.f32 %v587_v57, %v932_v49  ;;  %v597_v5 = vmul.f32 %v587_v57, %v937_v52  ;;  %v602_v7 = vmul.f32 %v587_v57, %v944_v1 }
  0xee   :  { %v607_v9 = vmul.f32 %v587_v57, %v949_v6  ;;  %v612_v10 = vmul.f32 %v587_v57, %v956_v35  ;;  %v617_v12 = vmul.f32 %v587_v57, %v961_v40  ;;  %v622_v13 = vmul.f32 %v587_v57, %v968_v2 }
  0xef   :  { %v591_v11 = vperm.slane %v585_v0, 0  ;;  %v627_v15 = vmul.f32 %v587_v57, %v971_v8  ;;  %v632_v16 = vmul.f32 %v587_v57, %v980_v44  ;;  %v637_v17 = vmul.f32 %v587_v57, %v983_v50 }
  0xf0   :  { %v642_v49 = vmul.f32 %v587_v57, %v992_v14  ;;  %v647_v52 = vmul.f32 %v587_v57, %v997_v19  ;;  %v652_v50 = vmul.f32 %v587_v57, %v1004_v62  ;;  %v657_v14 = vmul.f32 %v587_v57, %v1009_v4 }
  0xf1   :  { %v593_v1 = vadd.f32 %v591_v11, %v589_v3  ;;  %v598_v18 = vadd.f32 %v597_v5, %v591_v11  ;;  %v603_v6 = vadd.f32 %v602_v7, %v591_v11  ;;  %v608_v20 = vadd.f32 %v607_v9, %v591_v11 }
  0xf2   :  { %v613_v35 = vadd.f32 %v612_v10, %v591_v11  ;;  %v618_v21 = vadd.f32 %v617_v12, %v591_v11  ;;  %v623_v22 = vadd.f32 %v622_v13, %v591_v11  ;;  %v628_v40 = vadd.f32 %v627_v15, %v591_v11 }
  0xf3   :  { %v594_v23 = vmax.f32 %v593_v1, 0.0  ;;  %v599_v2 = vmax.f32 %v598_v18, 0.0  ;;  %v604_v24 = vmax.f32 %v603_v6, 0.0  ;;  %v609_v8 = vmax.f32 %v608_v20, 0.0 }
  0xf4   :  { %v614_v25 = vmax.f32 %v613_v35, 0.0  ;;  %v619_v44 = vmax.f32 %v618_v21, 0.0  ;;  %v624_v28 = vmax.f32 %v623_v22, 0.0  ;;  %v629_v34 = vmax.f32 %v628_v40, 0.0 }
  0xf5   :  { %v595_v26 = vpack.c.bf16 %v594_v23, %v594_v23  ;;  %v600_v19 = vpack.c.bf16 %v599_v2, %v599_v2  ;;  %v605_v27 = vpack.c.bf16 %v604_v24, %v604_v24  ;;  %v610_v29 = vpack.c.bf16 %v609_v8, %v609_v8 }
  0xf6   :  { %v615_v30 = vpack.c.bf16 %v614_v25, %v614_v25  ;;  %v620_v33 = vpack.c.bf16 %v619_v44, %v619_v44  ;;  %v633_v36 = vadd.f32 %v632_v16, %v591_v11  ;;  %v638_v38 = vadd.f32 %v637_v17, %v591_v11 }
  0xf7   :  { %596 = vst [vmem:[%s1102_s4] sm:$0xf] %v595_v26  ;;  %v643_v39 = vadd.f32 %v642_v49, %v591_v11  ;;  %v648_v41 = vadd.f32 %v647_v52, %v591_v11  ;;  %v653_v62 = vadd.f32 %v652_v50, %v591_v11  ;;  %v658_v4 = vadd.f32 %v657_v14, %v591_v11 }
  0xf8   :  { %601 = vst [vmem:[%s1102_s4 + $0x4] sm:$0xf] %v600_v19  ;;  %v662_v32 = vmul.f32 %v587_v57, %v1016_v31  ;;  %v667_v42 = vmul.f32 %v587_v57, %v1021_v37  ;;  %v625_v43 = vpack.c.bf16 %v624_v28, %v624_v28  ;;  %v634_v45 = vmax.f32 %v633_v36, 0.0 }
  0xf9   :  { %606 = vst [vmem:[%s1102_s4 + $0x8] sm:$0xf] %v605_v27  ;;  %v639_v46 = vmax.f32 %v638_v38, 0.0  ;;  %v644_v47 = vmax.f32 %v643_v39, 0.0  ;;  %v630_v48 = vpack.c.bf16 %v629_v34, %v629_v34  ;;  %v649_v51 = vmax.f32 %v648_v41, 0.0 }
  0xfa   :  { %611 = vst [vmem:[%s1102_s4 + $0xc] sm:$0xf] %v610_v29  ;;  %v663_v53 = vadd.f32 %v662_v32, %v591_v11  ;;  %v668_v54 = vadd.f32 %v667_v42, %v591_v11  ;;  %v635_v31 = vpack.c.bf16 %v634_v45, %v634_v45  ;;  %v654_v37 = vmax.f32 %v653_v62, 0.0 }
  0xfb   :  { %616 = vst [vmem:[%s1102_s4 + $0x10] sm:$0xf] %v615_v30  ;;  %v640_v55 = vpack.c.bf16 %v639_v46, %v639_v46  ;;  %v659_v56 = vmax.f32 %v658_v4, 0.0  ;;  %v645_v58 = vpack.c.bf16 %v644_v47, %v644_v47  ;;  %v650_v60 = vpack.c.bf16 %v649_v51, %v649_v51 }
  0xfc   :  { %621 = vst [vmem:[%s1102_s4 + $0x14] sm:$0xf] %v620_v33  ;;  %v664_v59 = vmax.f32 %v663_v53, 0.0  ;;  %v669_v61 = vmax.f32 %v668_v54, 0.0  ;;  %v655_v63 = vpack.c.bf16 %v654_v37, %v654_v37 }
  0xfd   :  { %626 = vst [vmem:[%s1102_s4 + $0x18] sm:$0xf] %v625_v43  ;;  %v660_v57 = vpack.c.bf16 %v659_v56, %v659_v56 }
  0xfe   :  { %631 = vst [vmem:[%s1102_s4 + $0x1c] sm:$0xf] %v630_v48  ;;  %v665_v0 = vpack.c.bf16 %v664_v59, %v664_v59  ;;  %v670_v3 = vpack.c.bf16 %v669_v61, %v669_v61 }
  0xff   :  { %636 = vst [vmem:[%s1102_s4 + $0x20] sm:$0xf] %v635_v31 }
 0x100   :  { %641 = vst [vmem:[%s1102_s4 + $0x24] sm:$0xf] %v640_v55 }
 0x101   :  { %646 = vst [vmem:[%s1102_s4 + $0x28] sm:$0xf] %v645_v58 }
 0x102   :  { %651 = vst [vmem:[%s1102_s4 + $0x2c] sm:$0xf] %v650_v60 }
 0x103   :  { %656 = vst [vmem:[%s1102_s4 + $0x30] sm:$0xf] %v655_v63 }
 0x104   :  { %661 = vst [vmem:[%s1102_s4 + $0x34] sm:$0xf] %v660_v57 }
 0x105   :  { %666 = vst [vmem:[%s1102_s4 + $0x38] sm:$0xf] %v665_v0 }
 0x106   :  { %671 = vst [vmem:[%s1102_s4 + $0x3c] sm:$0xf] %v670_v3 }

// kernel: netG64_forward.7
= control target key start
LH: loop header
LB: loop body
LE: loop exit
PB: predicated region body
PF: predicated region fallthrough
CT: control target
= control target key end

     0   :  { %s1751_s15 = smov 0   ;;  %s1753_s16 = smov 0   ;;  %s2339_s0 = inlined_call_operand.vmem [shape: bf16[4,128,128], index: 0, kind: input, shape index: {}]   ;;  %s2340_s1 = inlined_call_operand.vmem [shape: bf16[4,128,128], index: 1, kind: input, shape index: {}]   ;;  %s2341_s2 = inlined_call_operand.vmem [shape: f32[1,128], index: 2, kind: input, shape index: {}]   ;;  %s2342_s3 = inlined_call_operand.vmem [shape: f32[1,128], index: 3, kind: input, shape index: {}]   ;;  %s2343_s4 = inlined_call_operand.vmem [shape: bf16[512,128], index: 4, kind: output, shape index: {}]  }
   0x1   :  { %s1755_s17 = smov 0  }
   0x2 LB: > { %s26_s18 = sadd.s32 1, %s1719_s16  ;;  %p1062_p0 = scmp.ge.s32.totalorder %s1723_s17, 1  ;;  %s1723_s17 = sphi %s1755_s17, %s14_s17   ;;  %s1719_s16 = sphi %s1753_s16, %s2357_s16   ;;  %s1715_s15 = sphi %s1751_s15, %s2356_s15  }
   0x3   : > { %p28_p1 = scmp.ge.s32.totalorder %s26_s18, 4  ;;  %p186_p2 = scmp.lt.s32.totalorder %s1723_s17, 5 }
   0x5   : > { %s2359_s18 = smov (%p28_p1, %s26_s18), 0  ;;  %p187_p3 = pnand %p1062_p0, %p186_p2 }
   0x6   : > { %p217_p4 = scmp.lt.s32.totalorder (!%p187_p3), %s1715_s15, 3  ;;  %p231_p5 = scmp.eq.s32.totalorder (!%p187_p3), %s1715_s15, 0 }
   0x7   : > { %190 = sbr.rel (%p187_p3) target bundleno = 350 (0x15e), region = 36 }
   0xc   : > { %s218_s19 = scalar_select %p217_p4, %s1715_s15, 3  ;;  %v1725_v0 = vmov (%p231_p5), 0.0  }
   0xd   : > { %236 = sbr.rel (!%p231_p5) target bundleno = 18 (0x12), region = 40  ;;  %237 = vst [vmem:[#allocation2] sm:$0x1] (%p231_p5), %v1725_v0 }
   0xe   : > { %s1233_s20 = sshll.u32 %s218_s19, 6  ;;  %238 = vst [vmem:[#allocation3] sm:$0x1] (%p231_p5), %v1725_v0 }
   0xf   : > { %s1777_s23 = scalar_lea.vmem %s2339_s0, %s1233_s20  ;;  %s1782_s26 = scalar_lea.vmem %s2340_s1, %s1233_s20 }
  0x12 PF: > { %v1251_v1 = vld [vmem:[%s1782_s26 + $0x38] sm:$0xff]  ;;  %v1250_v2 = vld [vmem:[%s1782_s26 + $0x30] sm:$0xff]  ;;  %v1249_v3 = vld [vmem:[%s1782_s26 + $0x28] sm:$0xff]  ;;  %p518_p6 = scmp.eq.s32.totalorder %s1715_s15, 3  ;;  %s1132_s27 = sshll.u32 %s1715_s15, 7 }
  0x13   : > { %367 = vmatpush.bf16.msra.mxu0 %v1251_v1  ;;  %1650 = vmatpush.bf16.msra.mxu1 %v1251_v1  ;;  %v1248_v4 = vld [vmem:[%s1782_s26 + $0x20] sm:$0xff]  ;;  %v1247_v5 = vld [vmem:[%s1782_s26 + $0x18] sm:$0xff]  ;;  %v1246_v6 = vld [vmem:[%s1782_s26 + $0x10] sm:$0xff]  ;;  %s498_s28 = sshra.s32 %s1132_s27, 3 }
  0x14   : > { %1651 = vmatpush.bf16.msra.mxu2 %v1251_v1  ;;  %1652 = vmatpush.bf16.msra.mxu3 %v1251_v1  ;;  %v1245_v7 = vld [vmem:[%s1782_s26 + $0x8] sm:$0xff]  ;;  %v1244_v8 = vld [vmem:[%s1782_s26] sm:$0xff]  ;;  %v1238_v10 = vld [vmem:[%s1777_s23 + $0x10] sm:$0xff]  ;;  %s1133_s29 = sshll.u32 %s498_s28, 2 }
  0x15   : > { %v1236_v9 = vld [vmem:[%s1777_s23] sm:$0xff]  ;;  %v1242_v12 = vld [vmem:[%s1777_s23 + $0x30] sm:$0xff]  ;;  %v1237_v13 = vld [vmem:[%s1777_s23 + $0x8] sm:$0xff]  ;;  %s1807_s6 = scalar_lea.vmem %s2343_s4, %s1133_s29 }
  0x16   : > { %v1240_v11 = vld [vmem:[%s1777_s23 + $0x20] sm:$0xff]  ;;  %v1239_v14 = vld [vmem:[%s1777_s23 + $0x18] sm:$0xff]  ;;  %v1241_v15 = vld [vmem:[%s1777_s23 + $0x28] sm:$0xff] }
  0x17   : > { %368 = vmatpush.bf16.msra.mxu0 %v1250_v2  ;;  %1653 = vmatpush.bf16.msra.mxu1 %v1250_v2  ;;  %v1243_v16 = vld [vmem:[%s1777_s23 + $0x38] sm:$0xff] }
  0x18   : > { %1654 = vmatpush.bf16.msra.mxu2 %v1250_v2  ;;  %1655 = vmatpush.bf16.msra.mxu3 %v1250_v2 }
  0x1b   : > { %369 = vmatpush.bf16.msra.mxu0 %v1249_v3  ;;  %1656 = vmatpush.bf16.msra.mxu1 %v1249_v3 }
  0x1c   : > { %1657 = vmatpush.bf16.msra.mxu2 %v1249_v3  ;;  %1658 = vmatpush.bf16.msra.mxu3 %v1249_v3 }
  0x1f   : > { %370 = vmatpush.bf16.msra.mxu0 %v1248_v4  ;;  %1659 = vmatpush.bf16.msra.mxu1 %v1248_v4 }
  0x20   : > { %1660 = vmatpush.bf16.msra.mxu2 %v1248_v4  ;;  %1661 = vmatpush.bf16.msra.mxu3 %v1248_v4 }
  0x23   : > { %371 = vmatpush.bf16.msra.mxu0 %v1247_v5  ;;  %1662 = vmatpush.bf16.msra.mxu1 %v1247_v5 }
  0x24   : > { %1663 = vmatpush.bf16.msra.mxu2 %v1247_v5  ;;  %1664 = vmatpush.bf16.msra.mxu3 %v1247_v5 }
  0x27   : > { %372 = vmatpush.bf16.msra.mxu0 %v1246_v6  ;;  %1665 = vmatpush.bf16.msra.mxu1 %v1246_v6 }
  0x28   : > { %1666 = vmatpush.bf16.msra.mxu2 %v1246_v6  ;;  %1667 = vmatpush.bf16.msra.mxu3 %v1246_v6 }
  0x2b   : > { %373 = vmatpush.bf16.msra.mxu0 %v1245_v7  ;;  %1668 = vmatpush.bf16.msra.mxu1 %v1245_v7 }
  0x2c   : > { %1669 = vmatpush.bf16.msra.mxu2 %v1245_v7  ;;  %1670 = vmatpush.bf16.msra.mxu3 %v1245_v7 }
  0x2f   : > { %374 = vmatpush.bf16.msra.mxu0 %v1244_v8  ;;  %1671 = vmatpush.bf16.msra.mxu1 %v1244_v8 }
  0x30   : > { %1672 = vmatpush.bf16.msra.mxu2 %v1244_v8  ;;  %1673 = vmatpush.bf16.msra.mxu3 %v1244_v8 }
  0x32   : > { %375 = vmatmul.bf16.vlgmr.msra.gmra.mxu0 %v1236_v9  ;;  %385 = vmatmul.bf16.vlgmr.msra.gmra.mxu1 %v1238_v10 }
  0x33   : > { %395 = vmatmul.bf16.vlgmr.msra.gmra.mxu2 %v1240_v11  ;;  %405 = vmatmul.bf16.vlgmr.msra.gmra.mxu3 %v1242_v12 }
  0x42   : > { %380 = vmatmul.bf16.gmra.mxu0 %v1237_v13  ;;  %390 = vmatmul.bf16.gmra.mxu1 %v1239_v14 }
  0x43   : > { %400 = vmatmul.bf16.gmra.mxu2 %v1241_v15  ;;  %410 = vmatmul.bf16.gmra.mxu3 %v1243_v16 }
  0xaf   : > { %v376_v17 = vpop.f32.mrf.mxu0  ;;  %v386_v18 = vpop.f32.mrf.mxu1 }
  0xb0   : > { %v441_v32 = vmul.f32 %v376_v17, %v376_v17  ;;  %v445_v46 = vmul.f32 %v386_v18, %v386_v18 }
  0xb6   : > { %v396_v19 = vpop.f32.mrf.mxu2  ;;  %v1802_v20 = vpop.f32.mrf.mxu3 }
  0xb7   : > { %v378_v21 = vpop.f32.mrf.mxu0  ;;  %v388_v22 = vpop.f32.mrf.mxu1  ;;  %v449_v62 = vmul.f32 %v396_v19, %v396_v19  ;;  %v453_v10 = vmul.f32 %v1802_v20, %v1802_v20 }
  0xb8   : > { %v1256_v23 = vpack.c.bf16 %v378_v21, %v376_v17  ;;  %v1266_v24 = vpack.c.bf16 %v388_v22, %v386_v18  ;;  %v442_v31 = vmul.f32 %v378_v21, %v378_v21  ;;  %v417_v33 = vadd.f32 %v378_v21, %v376_v17 }
  0xb9   : > { %v446_v49 = vmul.f32 %v388_v22, %v388_v22 }
  0xba   : > { %1257 = vst [vmem:[%s1807_s6] sm:$0xff] %v1256_v23   ;;  %v457_v35 = vadd.f32 %v442_v31, %v441_v32 }
  0xbb   : > { %1582 = vst [vmem:[%s1807_s6 + $0x10] sm:$0xff] %v1266_v24  }
  0xbe   : > { %v398_v25 = vpop.f32.mrf.mxu2  ;;  %v408_v26 = vpop.f32.mrf.mxu3 }
  0xbf   : > { %v381_v27 = vpop.f32.mrf.mxu0  ;;  %v391_v28 = vpop.f32.mrf.mxu1  ;;  %v1276_v29 = vpack.c.bf16 %v398_v25, %v396_v19  ;;  %v1286_v30 = vpack.c.bf16 %v408_v26, %v1802_v20  ;;  %v450_v1 = vmul.f32 %v398_v25, %v398_v25  ;;  %v454_v13 = vmul.f32 %v408_v26, %v408_v26 }
  0xc0   : > { %v443_v34 = vmul.f32 %v381_v27, %v381_v27  ;;  %v418_v36 = vadd.f32 %v417_v33, %v381_v27  ;;  %v447_v52 = vmul.f32 %v391_v28, %v391_v28  ;;  %v416_v33 = vld [vmem:[#allocation2] sm:$0x1] }
  0xc1   : > { %1584 = vst [vmem:[%s1807_s6 + $0x20] sm:$0xff] %v1276_v29  }
  0xc2   : > { %1586 = vst [vmem:[%s1807_s6 + $0x30] sm:$0xff] %v1286_v30   ;;  %v458_v41 = vadd.f32 %v457_v35, %v443_v34 }
  0xc6   : > { %v401_v37 = vpop.f32.mrf.mxu2  ;;  %v411_v38 = vpop.f32.mrf.mxu3 }
  0xc7   : > { %v383_v39 = vpop.f32.mrf.mxu0  ;;  %v393_v40 = vpop.f32.mrf.mxu1  ;;  %v451_v5 = vmul.f32 %v401_v37, %v401_v37  ;;  %v455_v17 = vmul.f32 %v411_v38, %v411_v38 }
  0xc8   : > { %v419_v42 = vadd.f32 %v418_v36, %v383_v39  ;;  %v444_v43 = vmul.f32 %v383_v39, %v383_v39  ;;  %v1261_v44 = vpack.c.bf16 %v383_v39, %v381_v27  ;;  %v1271_v45 = vpack.c.bf16 %v393_v40, %v391_v28 }
  0xc9   : > { %v448_v60 = vmul.f32 %v393_v40, %v393_v40 }
  0xca   : > { %v420_v47 = vadd.f32 %v419_v42, %v386_v18  ;;  %v459_v48 = vadd.f32 %v458_v41, %v444_v43  ;;  %1581 = vst [vmem:[%s1807_s6 + $0x8] sm:$0xff] %v1261_v44  }
  0xcb   : > { %1583 = vst [vmem:[%s1807_s6 + $0x18] sm:$0xff] %v1271_v45  }
  0xcc   : > { %v460_v50 = vadd.f32 %v459_v48, %v445_v46  ;;  %v421_v51 = vadd.f32 %v420_v47, %v388_v22 }
  0xce   : > { %v422_v53 = vadd.f32 %v421_v51, %v391_v28  ;;  %v461_v54 = vadd.f32 %v460_v50, %v446_v49  ;;  %v403_v55 = vpop.f32.mrf.mxu2  ;;  %v413_v56 = vpop.f32.mrf.mxu3 }
  0xcf   : > { %v1281_v57 = vpack.c.bf16 %v403_v55, %v401_v37  ;;  %v1291_v58 = vpack.c.bf16 %v413_v56, %v411_v38  ;;  %v452_v9 = vmul.f32 %v403_v55, %v403_v55  ;;  %v456_v22 = vmul.f32 %v413_v56, %v413_v56 }
  0xd0   : > { %v423_v59 = vadd.f32 %v422_v53, %v393_v40  ;;  %v462_v61 = vadd.f32 %v461_v54, %v447_v52 }
  0xd1   : > { %1585 = vst [vmem:[%s1807_s6 + $0x28] sm:$0xff] %v1281_v57  }
  0xd2   : > { %v424_v63 = vadd.f32 %v423_v59, %v396_v19  ;;  %v463_v0 = vadd.f32 %v462_v61, %v448_v60  ;;  %1587 = vst [vmem:[%s1807_s6 + $0x38] sm:$0xff] %v1291_v58  }
  0xd4   : > { %v464_v2 = vadd.f32 %v463_v0, %v449_v62  ;;  %v425_v3 = vadd.f32 %v424_v63, %v398_v25 }
  0xd6   : > { %v426_v4 = vadd.f32 %v425_v3, %v401_v37  ;;  %v465_v6 = vadd.f32 %v464_v2, %v450_v1 }
  0xd8   : > { %v466_v7 = vadd.f32 %v465_v6, %v451_v5  ;;  %v427_v8 = vadd.f32 %v426_v4, %v403_v55 }
  0xd9   : > { %v1830_v48 = vld [vmem:[%s2343_s4] sm:$0xff] (%p518_p6)   ;;  %v1835_v49 = vld [vmem:[%s2343_s4 + $0x8] sm:$0xff] (%p518_p6)   ;;  %v1840_v51 = vld [vmem:[%s2343_s4 + $0x10] sm:$0xff] (%p518_p6)  }
  0xda   : > { %v428_v11 = vadd.f32 %v427_v8, %v1802_v20  ;;  %v467_v12 = vadd.f32 %v466_v7, %v452_v9  ;;  %v1845_v52 = vld [vmem:[%s2343_s4 + $0x18] sm:$0xff] (%p518_p6)   ;;  %v1295_v54 = vunpack.c.l.bf16 (%p518_p6), %v1830_v48  ;;  %v1296_v55 = vunpack.c.h.bf16 (%p518_p6), %v1830_v48  ;;  %v1853_v57 = vld [vmem:[%s2343_s4 + $0x20] sm:$0xff] (%p518_p6)   ;;  %v1858_v58 = vld [vmem:[%s2343_s4 + $0x28] sm:$0xff] (%p518_p6)  }
  0xdb   : > { %v1300_v59 = vunpack.c.h.bf16 (%p518_p6), %v1835_v49  ;;  %v1303_v60 = vunpack.c.l.bf16 (%p518_p6), %v1840_v51  ;;  %v1304_v61 = vunpack.c.h.bf16 (%p518_p6), %v1840_v51  ;;  %v1307_v62 = vunpack.c.l.bf16 (%p518_p6), %v1845_v52  ;;  %v1867_v63 = vld [vmem:[%s2343_s4 + $0x30] sm:$0xff] (%p518_p6)   ;;  %v1872_v0 = vld [vmem:[%s2343_s4 + $0x38] sm:$0xff] (%p518_p6)   ;;  %v1878_v3 = vld [vmem:[%s2343_s4 + $0x40] sm:$0xff] (%p518_p6)  }
  0xdc   : > { %v468_v14 = vadd.f32 %v467_v12, %v453_v10  ;;  %v429_v15 = vadd.f32 %v428_v11, %v408_v26  ;;  %v440_v26 = vld [vmem:[#allocation3] sm:$0x1]  ;;  %v1308_v2 = vunpack.c.h.bf16 (%p518_p6), %v1845_v52  ;;  %v1883_v4 = vld [vmem:[%s2343_s4 + $0x48] sm:$0xff] (%p518_p6)   ;;  %v1311_v5 = vunpack.c.l.bf16 (%p518_p6), %v1853_v57  ;;  %v1892_v9 = vld [vmem:[%s2343_s4 + $0x50] sm:$0xff] (%p518_p6)  }
  0xdd   : > { %v1312_v6 = vunpack.c.h.bf16 (%p518_p6), %v1853_v57  ;;  %v1315_v7 = vunpack.c.l.bf16 (%p518_p6), %v1858_v58  ;;  %v1316_v8 = vunpack.c.h.bf16 (%p518_p6), %v1858_v58  ;;  %v1319_v11 = vunpack.c.l.bf16 (%p518_p6), %v1867_v63 }
  0xde   : > { %v430_v16 = vadd.f32 %v429_v15, %v411_v38  ;;  %v469_v18 = vadd.f32 %v468_v14, %v454_v13  ;;  %v1320_v12 = vunpack.c.h.bf16 (%p518_p6), %v1867_v63  ;;  %v1323_v13 = vunpack.c.l.bf16 (%p518_p6), %v1872_v0  ;;  %v1900_v14 = vld [vmem:[%s2343_s4 + $0x58] sm:$0xff] (%p518_p6)   ;;  %v1905_v15 = vld [vmem:[%s2343_s4 + $0x60] sm:$0xff] (%p518_p6)  }
  0xe0   : > { %v470_v19 = vadd.f32 %v469_v18, %v455_v17  ;;  %v431_v21 = vadd.f32 %v430_v16, %v413_v56  ;;  %v1299_v56 = vunpack.c.l.bf16 (%p518_p6), %v1835_v49  ;;  %v1324_v17 = vunpack.c.h.bf16 (%p518_p6), %v1872_v0 }
  0xe1   : > { %v1367_v18 = vunpack.c.l.bf16 (%p518_p6), %v1878_v3 }
  0xe2   : > { %v432_v23 = vrot.slane %v431_v21, 4  ;;  %v471_v24 = vadd.f32 %v470_v19, %v456_v22  ;;  %v1368_v19 = vunpack.c.h.bf16 (%p518_p6), %v1878_v3  ;;  %v1920_v22 = vld [vmem:[%s2343_s4 + $0x68] sm:$0xff] (%p518_p6)  }
  0xe4   : > { %v433_v25 = vadd.f32 %v432_v23, %v431_v21  ;;  %v472_v27 = vrot.slane %v471_v24, 4  ;;  %v1371_v21 = vunpack.c.l.bf16 (%p518_p6), %v1883_v4  ;;  %v1925_v23 = vld [vmem:[%s2343_s4 + $0x70] sm:$0xff] (%p518_p6)  }
  0xe6   : > { %v434_v28 = vrot.slane %v433_v25, 2  ;;  %v473_v29 = vadd.f32 %v472_v27, %v471_v24  ;;  %v530_v24 = vld [vmem:[%s2341_s2] sm:$0x1] (%p518_p6)  ;;  %v1372_v27 = vunpack.c.h.bf16 (%p518_p6), %v1883_v4 }
  0xe8   : > { %v435_v30 = vadd.f32 %v434_v28, %v433_v25  ;;  %v474_v31 = vrot.slane %v473_v29, 2  ;;  %v1375_v28 = vunpack.c.l.bf16 (%p518_p6), %v1892_v9 }
  0xea   : > { %v436_v32 = vrot.slane %v435_v30, 1  ;;  %v475_v20 = vadd.f32 %v474_v31, %v473_v29  ;;  %v1376_v29 = vunpack.c.h.bf16 (%p518_p6), %v1892_v9  ;;  %v1379_v31 = vunpack.c.l.bf16 (%p518_p6), %v1900_v14 }
  0xec   : > { %v437_v34 = vadd.f32 %v436_v32, %v435_v30  ;;  %v476_v35 = vrot.slane %v475_v20, 1  ;;  %v1936_v30 = vld [vmem:[%s2343_s4 + $0x78] sm:$0xff] (%p518_p6)   ;;  %v1380_v32 = vunpack.c.h.bf16 (%p518_p6), %v1900_v14 }
  0xee   : > { %v438_v36 = vadd.f32 %v437_v34, %v416_v33  ;;  %v477_v37 = vadd.f32 %v476_v35, %v475_v20  ;;  %522 = sbr.rel (!%p518_p6) target bundleno = 350 (0x15e), region = 44  ;;  %v1383_v20 = vunpack.c.l.bf16 (%p518_p6), %v1905_v15  ;;  %v1384_v33 = vunpack.c.h.bf16 (%p518_p6), %v1905_v15  ;;  %v1945_v34 = vld [vmem:[%s2343_s4 + $0x80] sm:$0xff] (%p518_p6)   ;;  %v1950_v35 = vld [vmem:[%s2343_s4 + $0x88] sm:$0xff] (%p518_p6)  }
  0xf0   : > { %439 = vst [vmem:[#allocation2] sm:$0x1] %v438_v36  ;;  %v478_v38 = vadd.f32 %v477_v37, %v440_v26  ;;  %v1387_v36 = vunpack.c.l.bf16 (%p518_p6), %v1920_v22  ;;  %v1388_v37 = vunpack.c.h.bf16 (%p518_p6), %v1920_v22 }
  0xf2   : > { %479 = vst [vmem:[#allocation3] sm:$0x1] %v478_v38  ;;  %v1391_v38 = vunpack.c.l.bf16 (%p518_p6), %v1925_v23 }
  0xf7   : > { %v523_v39 = vld [vmem:[#allocation2] sm:$0x1] }
  0xf8   : > { %v1823_v41 = vmul.f32 0.001953125, %v523_v39  ;;  %v1960_v39 = vld [vmem:[%s2343_s4 + $0x90] sm:$0xff]  }
  0xf9   : > { %v525_v40 = vld [vmem:[#allocation3] sm:$0x1] }
  0xfa   : > { %v526_v42 = vmul.f32 0.001953125, %v525_v40  ;;  %v527_v43 = vmul.f32 %v1823_v41, %v1823_v41 }
  0xfc   : > { %v528_v44 = vsub.f32 %v526_v42, %v527_v43  ;;  %v1392_v42 = vunpack.c.h.bf16 %v1925_v23  ;;  %v1395_v43 = vunpack.c.l.bf16 %v1936_v30  ;;  %v2346_v23 = vunpack.c.h.bf16 %v1936_v30 }
  0xfd   : > { %v2348_v30 = vunpack.c.h.bf16 %v1945_v34 }
  0xfe   : > { %v529_v45 = vmax.f32 %v528_v44, 0.0 }
 0x100   : > { %v531_v46 = vadd.f32 1e-05, %v529_v45  ;;  %v1968_v45 = vld [vmem:[%s2343_s4 + $0x98] sm:$0xff]  }
 0x102   : > { %1699 = vrsqrt.f32 %v531_v46  ;;  %vm538_vm0 = vweird.f32 %v531_v46 }
 0x108   : > { %v1700_v47 = vpop.eup %1699 }
 0x109   : > { %v533_v50 = vmul.f32 %v1700_v47, %v531_v46  ;;  %vm539_vm1 = vweird.f32 %v1700_v47  ;;  %v543_v46 = vld [vmem:[%s2342_s3] sm:$0x1] }
 0x10a   : > { %vm1909_vm2 = vmor %vm538_vm0, %vm539_vm1 }
 0x10b   : > { %v534_v53 = vmul.f32 %v1700_v47, %v533_v50 }
 0x10d   : > { %v535_v1 = vmul.f32 0.5, %v534_v53 }
 0x10f   : > { %v536_v10 = vsub.f32 1.5, %v535_v1  ;;  %v1980_v1 = vld [vmem:[%s2343_s4 + $0xa0] sm:$0xff]  }
 0x111   : > { %v537_v25 = vmul.f32 %v1700_v47, %v536_v10 }
 0x113   : > { %v541_v26 = vsel %vm1909_vm2, %v1700_v47, %v537_v25 }
 0x114   : > { %v542_v40 = vmul.f32 %v541_v26, %v530_v24  ;;  %v1447_v24 = vunpack.c.l.bf16 %v1960_v39 }
 0x116   : > { %v544_v10 = vmul.f32 %v542_v40, %v1823_v41  ;;  %v1983_v16 = vperm.slane %v542_v40, 0 }
 0x118   : > { %v545_v47 = vsub.f32 %v543_v46, %v544_v10  ;;  %v581_v44 = vmul.f32 %v1295_v54, %v1983_v16  ;;  %v582_v41 = vmul.f32 %v1296_v55, %v1983_v16  ;;  %v583_v40 = vmul.f32 %v1299_v56, %v1983_v16 }
 0x119   : > { %v584_v50 = vmul.f32 %v1300_v59, %v1983_v16  ;;  %v585_v46 = vmul.f32 %v1303_v60, %v1983_v16  ;;  %v586_v54 = vmul.f32 %v1304_v61, %v1983_v16  ;;  %v587_v48 = vmul.f32 %v1307_v62, %v1983_v16 }
 0x11a   : > { %v2012_v55 = vperm.slane %v545_v47, 0  ;;  %v588_v56 = vmul.f32 %v1308_v2, %v1983_v16  ;;  %v589_v49 = vmul.f32 %v1311_v5, %v1983_v16  ;;  %v590_v59 = vmul.f32 %v1312_v6, %v1983_v16 }
 0x11b   : > { %v591_v51 = vmul.f32 %v1315_v7, %v1983_v16  ;;  %v592_v60 = vmul.f32 %v1316_v8, %v1983_v16  ;;  %v593_v61 = vmul.f32 %v1319_v11, %v1983_v16  ;;  %v594_v52 = vmul.f32 %v1320_v12, %v1983_v16 }
 0x11c   : > { %v600_v62 = vadd.f32 %v2012_v55, %v581_v44  ;;  %v601_v2 = vadd.f32 %v2012_v55, %v582_v41  ;;  %v602_v5 = vadd.f32 %v2012_v55, %v583_v40  ;;  %v603_v57 = vadd.f32 %v2012_v55, %v584_v50 }
 0x11d   : > { %v604_v6 = vadd.f32 %v2012_v55, %v585_v46  ;;  %v605_v7 = vadd.f32 %v2012_v55, %v586_v54  ;;  %v606_v47 = vadd.f32 %v2012_v55, %v587_v48  ;;  %v607_v58 = vadd.f32 %v2012_v55, %v588_v56 }
 0x11e   : > { %v616_v8 = vmax.f32 %v600_v62, 0.0  ;;  %v617_v11 = vmax.f32 %v601_v2, 0.0  ;;  %v618_v10 = vmax.f32 %v602_v5, 0.0  ;;  %v619_v12 = vmax.f32 %v603_v57, 0.0 }
 0x11f   : > { %v620_v63 = vmax.f32 %v604_v6, 0.0  ;;  %v621_v44 = vmax.f32 %v605_v7, 0.0  ;;  %v622_v53 = vmax.f32 %v606_v47, 0.0  ;;  %v623_v41 = vmax.f32 %v607_v58, 0.0 }
 0x120   : > { %v1328_v26 = vpack.c.bf16 %v617_v11, %v616_v8  ;;  %v1333_v40 = vpack.c.bf16 %v619_v12, %v618_v10  ;;  %v608_v50 = vadd.f32 %v2012_v55, %v589_v49  ;;  %v609_v46 = vadd.f32 %v2012_v55, %v590_v59 }
 0x121   : > { %v1338_v25 = vpack.c.bf16 %v621_v44, %v620_v63  ;;  %v1343_v54 = vpack.c.bf16 %v623_v41, %v622_v53  ;;  %v610_v48 = vadd.f32 %v2012_v55, %v591_v51  ;;  %v611_v56 = vadd.f32 %v2012_v55, %v592_v60 }
 0x122   : > { %1329 = vst [vmem:[%s2343_s4] sm:$0xff] %v1328_v26   ;;  %v624_v62 = vmax.f32 %v608_v50, 0.0  ;;  %v625_v2 = vmax.f32 %v609_v46, 0.0  ;;  %v612_v5 = vadd.f32 %v2012_v55, %v593_v61  ;;  %v613_v57 = vadd.f32 %v2012_v55, %v594_v52 }
 0x123   : > { %1595 = vst [vmem:[%s2343_s4 + $0x8] sm:$0xff] %v1333_v40   ;;  %v626_v63 = vmax.f32 %v610_v48, 0.0  ;;  %v627_v53 = vmax.f32 %v611_v56, 0.0  ;;  %v595_v49 = vmul.f32 %v1323_v13, %v1983_v16  ;;  %v596_v26 = vmul.f32 %v1324_v17, %v1983_v16 }
 0x124   : > { %1596 = vst [vmem:[%s2343_s4 + $0x10] sm:$0xff] %v1338_v25   ;;  %v1348_v59 = vpack.c.bf16 %v625_v2, %v624_v62  ;;  %v628_v51 = vmax.f32 %v612_v5, 0.0  ;;  %v629_v60 = vmax.f32 %v613_v57, 0.0  ;;  %v697_v61 = vmul.f32 %v1367_v18, %v1983_v16 }
 0x125   : > { %1597 = vst [vmem:[%s2343_s4 + $0x18] sm:$0xff] %v1343_v54   ;;  %v1353_v13 = vpack.c.bf16 %v627_v53, %v626_v63  ;;  %v614_v52 = vadd.f32 %v2012_v55, %v595_v49  ;;  %v615_v0 = vadd.f32 %v2012_v55, %v596_v26  ;;  %v698_v17 = vmul.f32 %v1368_v19, %v1983_v16 }
 0x126   : > { %1598 = vst [vmem:[%s2343_s4 + $0x20] sm:$0xff] %v1348_v59   ;;  %v1358_v25 = vpack.c.bf16 %v629_v60, %v628_v51  ;;  %v713_v18 = vadd.f32 %v697_v61, %v2012_v55  ;;  %v699_v6 = vmul.f32 %v1371_v21, %v1983_v16  ;;  %v700_v7 = vmul.f32 %v1372_v27, %v1983_v16 }
 0x127   : > { %1599 = vst [vmem:[%s2343_s4 + $0x28] sm:$0xff] %v1353_v13   ;;  %v630_v3 = vmax.f32 %v614_v52, 0.0  ;;  %v631_v19 = vmax.f32 %v615_v0, 0.0  ;;  %v714_v47 = vadd.f32 %v698_v17, %v2012_v55  ;;  %v701_v58 = vmul.f32 %v1375_v28, %v1983_v16 }
 0x128   : > { %1600 = vst [vmem:[%s2343_s4 + $0x30] sm:$0xff] %v1358_v25   ;;  %v729_v21 = vmax.f32 %v713_v18, 0.0  ;;  %v715_v4 = vadd.f32 %v699_v6, %v2012_v55  ;;  %v716_v27 = vadd.f32 %v700_v7, %v2012_v55  ;;  %v702_v8 = vmul.f32 %v1376_v29, %v1983_v16 }
 0x129   : > { %v1363_v11 = vpack.c.bf16 %v631_v19, %v630_v3  ;;  %v730_v10 = vmax.f32 %v714_v47, 0.0  ;;  %v717_v12 = vadd.f32 %v701_v58, %v2012_v55  ;;  %v703_v28 = vmul.f32 %v1379_v31, %v1983_v16 }
 0x12a   : > { %v731_v44 = vmax.f32 %v715_v4, 0.0  ;;  %v732_v41 = vmax.f32 %v716_v27, 0.0  ;;  %v718_v40 = vadd.f32 %v702_v8, %v2012_v55  ;;  %v704_v50 = vmul.f32 %v1380_v32, %v1983_v16 }
 0x12b   : > { %1601 = vst [vmem:[%s2343_s4 + $0x38] sm:$0xff] %v1363_v11   ;;  %v1400_v9 = vpack.c.bf16 %v730_v10, %v729_v21  ;;  %v733_v29 = vmax.f32 %v717_v12, 0.0  ;;  %v719_v46 = vadd.f32 %v703_v28, %v2012_v55  ;;  %v705_v31 = vmul.f32 %v1383_v20, %v1983_v16 }
 0x12c   : > { %v1405_v54 = vpack.c.bf16 %v732_v41, %v731_v44  ;;  %v734_v48 = vmax.f32 %v718_v40, 0.0  ;;  %v720_v56 = vadd.f32 %v704_v50, %v2012_v55  ;;  %v706_v14 = vmul.f32 %v1384_v33, %v1983_v16 }
 0x12d   : > { %1610 = vst [vmem:[%s2343_s4 + $0x40] sm:$0xff] %v1400_v9   ;;  %v735_v32 = vmax.f32 %v719_v46, 0.0  ;;  %v721_v62 = vadd.f32 %v705_v31, %v2012_v55  ;;  %v707_v2 = vmul.f32 %v1387_v36, %v1983_v16  ;;  %v708_v20 = vmul.f32 %v1388_v37, %v1983_v16 }
 0x12e   : > { %1611 = vst [vmem:[%s2343_s4 + $0x48] sm:$0xff] %v1405_v54   ;;  %v1410_v15 = vpack.c.bf16 %v734_v48, %v733_v29  ;;  %v736_v33 = vmax.f32 %v720_v56, 0.0  ;;  %v722_v5 = vadd.f32 %v706_v14, %v2012_v55  ;;  %v709_v57 = vmul.f32 %v1391_v38, %v1983_v16  ;;  %v1623_v54 = vld [vmem:[%s2343_s4 + $0xa8] sm:$0xff]  }
 0x12f   : > { %v737_v63 = vmax.f32 %v721_v62, 0.0  ;;  %v723_v53 = vadd.f32 %v707_v2, %v2012_v55  ;;  %v724_v36 = vadd.f32 %v708_v20, %v2012_v55  ;;  %v710_v22 = vmul.f32 %v1392_v42, %v1983_v16 }
 0x130   : > { %1612 = vst [vmem:[%s2343_s4 + $0x50] sm:$0xff] %v1410_v15   ;;  %v1415_v37 = vpack.c.bf16 %v736_v33, %v735_v32  ;;  %v738_v49 = vmax.f32 %v722_v5, 0.0  ;;  %v725_v26 = vadd.f32 %v709_v57, %v2012_v55  ;;  %v711_v38 = vmul.f32 %v1395_v43, %v1983_v16 }
 0x131   : > { %v739_v59 = vmax.f32 %v723_v53, 0.0  ;;  %v740_v51 = vmax.f32 %v724_v36, 0.0  ;;  %v726_v60 = vadd.f32 %v710_v22, %v2012_v55  ;;  %v712_v42 = vmul.f32 %v2346_v23, %v1983_v16  ;;  %v1625_v22 = vld [vmem:[%s2343_s4 + $0xb8] sm:$0xff]   ;;  %v1634_v23 = vld [vmem:[%s2343_s4 + $0xc0] sm:$0xff]  }
 0x132   : > { %1613 = vst [vmem:[%s2343_s4 + $0x58] sm:$0xff] %v1415_v37   ;;  %v1420_v61 = vpack.c.bf16 %v738_v49, %v737_v63  ;;  %v741_v13 = vmax.f32 %v725_v26, 0.0  ;;  %v727_v52 = vadd.f32 %v711_v38, %v2012_v55  ;;  %v2347_v0 = vunpack.c.l.bf16 %v1945_v34 }
 0x133   : > { %v1425_v17 = vpack.c.bf16 %v740_v51, %v739_v59  ;;  %v742_v25 = vmax.f32 %v726_v60, 0.0  ;;  %v728_v18 = vadd.f32 %v712_v42, %v2012_v55  ;;  %v811_v6 = vmul.f32 %v2348_v30, %v1983_v16 }
 0x134   : > { %v810_v43 = vmul.f32 %v2347_v0, %v1983_v16  ;;  %1614 = vst [vmem:[%s2343_s4 + $0x60] sm:$0xff] %v1420_v61   ;;  %v743_v7 = vmax.f32 %v727_v52, 0.0  ;;  %v2349_v19 = vunpack.c.l.bf16 %v1950_v35  ;;  %v2350_v58 = vunpack.c.h.bf16 %v1950_v35 }
 0x135   : > { %1615 = vst [vmem:[%s2343_s4 + $0x68] sm:$0xff] %v1425_v17   ;;  %v1430_v34 = vpack.c.bf16 %v742_v25, %v741_v13  ;;  %v744_v4 = vmax.f32 %v728_v18, 0.0  ;;  %v827_v27 = vadd.f32 %v811_v6, %v2012_v55  ;;  %v814_v8 = vmul.f32 %v1447_v24, %v1983_v16 }
 0x136   : > { %v826_v3 = vadd.f32 %v810_v43, %v2012_v55  ;;  %v812_v47 = vmul.f32 %v2349_v19, %v1983_v16  ;;  %v813_v21 = vmul.f32 %v2350_v58, %v1983_v16  ;;  %v2351_v35 = vunpack.c.h.bf16 %v1960_v39 }
 0x137   : > { %1616 = vst [vmem:[%s2343_s4 + $0x70] sm:$0xff] %v1430_v34   ;;  %v1435_v44 = vpack.c.bf16 %v744_v4, %v743_v7  ;;  %v843_v41 = vmax.f32 %v827_v27, 0.0  ;;  %v830_v40 = vadd.f32 %v814_v8, %v2012_v55  ;;  %v2352_v24 = vunpack.c.l.bf16 %v1968_v45 }
 0x138   : > { %v842_v11 = vmax.f32 %v826_v3, 0.0  ;;  %v828_v10 = vadd.f32 %v812_v47, %v2012_v55  ;;  %v829_v12 = vadd.f32 %v813_v21, %v2012_v55  ;;  %v815_v28 = vmul.f32 %v2351_v35, %v1983_v16  ;;  %v1635_v3 = vld [vmem:[%s2343_s4 + $0xc8] sm:$0xff]  }
 0x139   : > { %v816_v50 = vmul.f32 %v2352_v24, %v1983_v16  ;;  %v2353_v39 = vunpack.c.h.bf16 %v1968_v45  ;;  %1617 = vst [vmem:[%s2343_s4 + $0x78] sm:$0xff] %v1435_v44   ;;  %v846_v56 = vmax.f32 %v830_v40, 0.0  ;;  %v2354_v32 = vunpack.c.l.bf16 %v1980_v1  ;;  %v1624_v45 = vld [vmem:[%s2343_s4 + $0xb0] sm:$0xff]  }
 0x13a   : > { %v844_v9 = vmax.f32 %v828_v10, 0.0  ;;  %v845_v29 = vmax.f32 %v829_v12, 0.0  ;;  %v831_v46 = vadd.f32 %v815_v28, %v2012_v55  ;;  %v1472_v48 = vpack.c.bf16 %v843_v41, %v842_v11  ;;  %v1636_v11 = vld [vmem:[%s2343_s4 + $0xd0] sm:$0xff]  }
 0x13b   : > { %v817_v31 = vmul.f32 %v2353_v39, %v1983_v16  ;;  %v832_v14 = vadd.f32 %v816_v50, %v2012_v55  ;;  %v818_v62 = vmul.f32 %v2354_v32, %v1983_v16  ;;  %v2355_v33 = vunpack.c.h.bf16 %v1980_v1  ;;  %v1637_v50 = vld [vmem:[%s2343_s4 + $0xd8] sm:$0xff]  }
 0x13c   : > { %v1477_v2 = vpack.c.bf16 %v845_v29, %v844_v9  ;;  %v847_v20 = vmax.f32 %v831_v46, 0.0  ;;  %1626 = vst [vmem:[%s2343_s4 + $0x80] sm:$0xff] %v1472_v48   ;;  %v1459_v53 = vunpack.c.l.bf16 %v1623_v54  ;;  %v1460_v36 = vunpack.c.h.bf16 %v1623_v54 }
 0x13d   : > { %v833_v15 = vadd.f32 %v817_v31, %v2012_v55  ;;  %v819_v5 = vmul.f32 %v2355_v33, %v1983_v16  ;;  %v848_v57 = vmax.f32 %v832_v14, 0.0  ;;  %v834_v63 = vadd.f32 %v818_v62, %v2012_v55  ;;  %v1638_v14 = vld [vmem:[%s2343_s4 + $0xe0] sm:$0xff]  }
 0x13e   : > { %1627 = vst [vmem:[%s2343_s4 + $0x88] sm:$0xff] %v1477_v2   ;;  %v1482_v37 = vpack.c.bf16 %v847_v20, %v846_v56  ;;  %v1463_v26 = vunpack.c.l.bf16 %v1624_v45  ;;  %v820_v59 = vmul.f32 %v1459_v53, %v1983_v16  ;;  %v821_v51 = vmul.f32 %v1460_v36, %v1983_v16 }
 0x13f   : > { %v849_v1 = vmax.f32 %v833_v15, 0.0  ;;  %v835_v49 = vadd.f32 %v819_v5, %v2012_v55  ;;  %v850_v38 = vmax.f32 %v834_v63, 0.0  ;;  %v1464_v60 = vunpack.c.h.bf16 %v1624_v45 }
 0x140   : > { %1628 = vst [vmem:[%s2343_s4 + $0x90] sm:$0xff] %v1482_v37   ;;  %v822_v13 = vmul.f32 %v1463_v26, %v1983_v16  ;;  %v1467_v52 = vunpack.c.l.bf16 %v1625_v22  ;;  %v836_v0 = vadd.f32 %v820_v59, %v2012_v55  ;;  %v837_v43 = vadd.f32 %v821_v51, %v2012_v55 }
 0x141   : > { %v1487_v42 = vpack.c.bf16 %v849_v1, %v848_v57  ;;  %v851_v61 = vmax.f32 %v835_v49, 0.0  ;;  %v823_v17 = vmul.f32 %v1464_v60, %v1983_v16  ;;  %v1468_v25 = vunpack.c.h.bf16 %v1625_v22  ;;  %v1639_v22 = vld [vmem:[%s2343_s4 + $0xe8] sm:$0xff]  }
 0x142   : > { %v838_v30 = vadd.f32 %v822_v13, %v2012_v55  ;;  %v824_v6 = vmul.f32 %v1467_v52, %v1983_v16  ;;  %v1511_v7 = vunpack.c.l.bf16 %v1634_v23  ;;  %v852_v19 = vmax.f32 %v836_v0, 0.0 }
 0x143   : > { %1629 = vst [vmem:[%s2343_s4 + $0x98] sm:$0xff] %v1487_v42   ;;  %v1492_v18 = vpack.c.bf16 %v851_v61, %v850_v38  ;;  %v853_v47 = vmax.f32 %v837_v43, 0.0  ;;  %v839_v58 = vadd.f32 %v823_v17, %v2012_v55  ;;  %v825_v21 = vmul.f32 %v1468_v25, %v1983_v16 }
 0x144   : > { %v854_v34 = vmax.f32 %v838_v30, 0.0  ;;  %v840_v4 = vadd.f32 %v824_v6, %v2012_v55  ;;  %v1512_v27 = vunpack.c.h.bf16 %v1634_v23  ;;  %v923_v8 = vmul.f32 %v1511_v7, %v1983_v16  ;;  %v1640_v23 = vld [vmem:[%s2343_s4 + $0xf0] sm:$0xff]  }
 0x145   : > { %1630 = vst [vmem:[%s2343_s4 + $0xa0] sm:$0xff] %v1492_v18   ;;  %v1497_v10 = vpack.c.bf16 %v853_v47, %v852_v19  ;;  %v855_v12 = vmax.f32 %v839_v58, 0.0  ;;  %v841_v35 = vadd.f32 %v825_v21, %v2012_v55  ;;  %v1515_v28 = vunpack.c.l.bf16 %v1635_v3  ;;  %v1641_v18 = vld [vmem:[%s2343_s4 + $0xf8] sm:$0xff]  }
 0x146   : > { %v856_v44 = vmax.f32 %v840_v4, 0.0  ;;  %v924_v41 = vmul.f32 %v1512_v27, %v1983_v16  ;;  %v939_v40 = vadd.f32 %v923_v8, %v2012_v55  ;;  %v1516_v24 = vunpack.c.h.bf16 %v1635_v3 }
 0x147   : > { %1631 = vst [vmem:[%s2343_s4 + $0xa8] sm:$0xff] %v1497_v10   ;;  %v1502_v9 = vpack.c.bf16 %v855_v12, %v854_v34  ;;  %v857_v29 = vmax.f32 %v841_v35, 0.0  ;;  %v925_v46 = vmul.f32 %v1515_v28, %v1983_v16  ;;  %v1519_v39 = vunpack.c.l.bf16 %v1636_v11 }
 0x148   : > { %v940_v31 = vadd.f32 %v924_v41, %v2012_v55  ;;  %v955_v54 = vmax.f32 %v939_v40, 0.0  ;;  %v926_v48 = vmul.f32 %v1516_v24, %v1983_v16  ;;  %v1520_v56 = vunpack.c.h.bf16 %v1636_v11 }
 0x149   : > { %1632 = vst [vmem:[%s2343_s4 + $0xb0] sm:$0xff] %v1502_v9   ;;  %v1507_v32 = vpack.c.bf16 %v857_v29, %v856_v44  ;;  %v941_v62 = vadd.f32 %v925_v46, %v2012_v55  ;;  %v927_v45 = vmul.f32 %v1519_v39, %v1983_v16  ;;  %v1523_v2 = vunpack.c.l.bf16 %v1637_v50 }
 0x14a   : > { %v956_v20 = vmax.f32 %v940_v31, 0.0  ;;  %v942_v15 = vadd.f32 %v926_v48, %v2012_v55  ;;  %v928_v33 = vmul.f32 %v1520_v56, %v1983_v16  ;;  %v1524_v5 = vunpack.c.h.bf16 %v1637_v50 }
 0x14b   : > { %1633 = vst [vmem:[%s2343_s4 + $0xb8] sm:$0xff] %v1507_v32   ;;  %v957_v57 = vmax.f32 %v941_v62, 0.0  ;;  %v943_v63 = vadd.f32 %v927_v45, %v2012_v55  ;;  %v929_v53 = vmul.f32 %v1523_v2, %v1983_v16  ;;  %v1527_v36 = vunpack.c.l.bf16 %v1638_v14 }
 0x14c   : > { %v1544_v37 = vpack.c.bf16 %v956_v20, %v955_v54  ;;  %v958_v1 = vmax.f32 %v942_v15, 0.0  ;;  %v944_v49 = vadd.f32 %v928_v33, %v2012_v55  ;;  %v930_v26 = vmul.f32 %v1524_v5, %v1983_v16 }
 0x14d   : > { %v959_v38 = vmax.f32 %v943_v63, 0.0  ;;  %v945_v59 = vadd.f32 %v929_v53, %v2012_v55  ;;  %v1528_v51 = vunpack.c.h.bf16 %v1638_v14  ;;  %v931_v60 = vmul.f32 %v1527_v36, %v1983_v16 }
 0x14e   : > { %1642 = vst [vmem:[%s2343_s4 + $0xc0] sm:$0xff] %v1544_v37   ;;  %v1549_v42 = vpack.c.bf16 %v958_v1, %v957_v57  ;;  %v960_v61 = vmax.f32 %v944_v49, 0.0  ;;  %v946_v13 = vadd.f32 %v930_v26, %v2012_v55  ;;  %v1531_v52 = vunpack.c.l.bf16 %v1639_v22 }
 0x14f   : > { %v961_v0 = vmax.f32 %v945_v59, 0.0  ;;  %v932_v43 = vmul.f32 %v1528_v51, %v1983_v16  ;;  %v947_v17 = vadd.f32 %v931_v60, %v2012_v55  ;;  %v1532_v25 = vunpack.c.h.bf16 %v1639_v22 }
 0x150   : > { %1643 = vst [vmem:[%s2343_s4 + $0xc8] sm:$0xff] %v1549_v42   ;;  %v1554_v30 = vpack.c.bf16 %v960_v61, %v959_v38  ;;  %v962_v6 = vmax.f32 %v946_v13, 0.0  ;;  %v933_v7 = vmul.f32 %v1531_v52, %v1983_v16  ;;  %v1535_v3 = vunpack.c.l.bf16 %v1640_v23 }
 0x151   : > { %v948_v19 = vadd.f32 %v932_v43, %v2012_v55  ;;  %v963_v47 = vmax.f32 %v947_v17, 0.0  ;;  %v934_v58 = vmul.f32 %v1532_v25, %v1983_v16  ;;  %v1536_v21 = vunpack.c.h.bf16 %v1640_v23 }
 0x152   : > { %1644 = vst [vmem:[%s2343_s4 + $0xd0] sm:$0xff] %v1554_v30   ;;  %v1559_v34 = vpack.c.bf16 %v962_v6, %v961_v0  ;;  %v949_v4 = vadd.f32 %v933_v7, %v2012_v55  ;;  %v935_v27 = vmul.f32 %v1535_v3, %v1983_v16  ;;  %v1539_v8 = vunpack.c.l.bf16 %v1641_v18 }
 0x153   : > { %v964_v11 = vmax.f32 %v948_v19, 0.0  ;;  %v950_v10 = vadd.f32 %v934_v58, %v2012_v55  ;;  %v936_v12 = vmul.f32 %v1536_v21, %v1983_v16  ;;  %v1540_v35 = vunpack.c.h.bf16 %v1641_v18 }
 0x154   : > { %1645 = vst [vmem:[%s2343_s4 + $0xd8] sm:$0xff] %v1559_v34   ;;  %v965_v28 = vmax.f32 %v949_v4, 0.0  ;;  %v951_v44 = vadd.f32 %v935_v27, %v2012_v55  ;;  %v937_v41 = vmul.f32 %v1539_v8, %v1983_v16 }
 0x155   : > { %v1564_v40 = vpack.c.bf16 %v964_v11, %v963_v47  ;;  %v966_v24 = vmax.f32 %v950_v10, 0.0  ;;  %v952_v50 = vadd.f32 %v936_v12, %v2012_v55  ;;  %v938_v9 = vmul.f32 %v1540_v35, %v1983_v16 }
 0x156   : > { %v967_v29 = vmax.f32 %v951_v44, 0.0  ;;  %v953_v46 = vadd.f32 %v937_v41, %v2012_v55 }
 0x157   : > { %1646 = vst [vmem:[%s2343_s4 + $0xe0] sm:$0xff] %v1564_v40   ;;  %v1569_v39 = vpack.c.bf16 %v966_v24, %v965_v28  ;;  %v968_v31 = vmax.f32 %v952_v50, 0.0  ;;  %v954_v54 = vadd.f32 %v938_v9, %v2012_v55 }
 0x158   : > { %v969_v48 = vmax.f32 %v953_v46, 0.0 }
 0x159   : > { %1647 = vst [vmem:[%s2343_s4 + $0xe8] sm:$0xff] %v1569_v39   ;;  %v1574_v56 = vpack.c.bf16 %v968_v31, %v967_v29  ;;  %v970_v14 = vmax.f32 %v954_v54, 0.0 }
 0x15b   : > { %1648 = vst [vmem:[%s2343_s4 + $0xf0] sm:$0xff] %v1574_v56   ;;  %v1579_v16 = vpack.c.bf16 %v970_v14, %v969_v48 }
 0x15d   : > { %1649 = vst [vmem:[%s2343_s4 + $0xf8] sm:$0xff] %v1579_v16  }
 0x15e PF: > { %s14_s17 = sadd.s32 1, %s1723_s17   ;;  %s2356_s15 = smov %s1719_s16 }
 0x15f   : > { %p11_p7 = scmp.ge.s32.totalorder %s14_s17, 6   ;;  %s2357_s16 = smov %s2359_s18 }
 0x161   :  { %13 = sbr.rel (!%p11_p7) target bundleno = 2 (0x2), region = 77 }

// kernel: netG64_forward.8
= control target key start
LH: loop header
LB: loop body
LE: loop exit
PB: predicated region body
PF: predicated region fallthrough
CT: control target
= control target key end

     0   :  { %s5289_s15 = smov 0   ;;  %s5291_s16 = smov 0   ;;  %s7189_s0 = inlined_call_operand.vmem [shape: bf16[4,512,64], index: 0, kind: input, shape index: {}]   ;;  %s7190_s1 = inlined_call_operand.vmem [shape: bf16[4,64,128], index: 1, kind: input, shape index: {}]   ;;  %s7191_s2 = inlined_call_operand.vmem [shape: f32[1,128], index: 2, kind: input, shape index: {}]   ;;  %s7192_s3 = inlined_call_operand.vmem [shape: f32[1,128], index: 3, kind: input, shape index: {}]   ;;  %s7193_s4 = inlined_call_operand.vmem [shape: bf16[2048,128], index: 4, kind: output, shape index: {}]  }
   0x1   :  { %s5293_s17 = smov 0  }
   0x2 LB: > { %s26_s18 = sadd.s32 1, %s5257_s16  ;;  %p2992_p0 = scmp.ge.s32.totalorder %s5261_s17, 1  ;;  %s5261_s17 = sphi %s5293_s17, %s14_s17   ;;  %s5257_s16 = sphi %s5291_s16, %s7207_s16   ;;  %s5253_s15 = sphi %s5289_s15, %s7206_s15  }
   0x3   : > { %p28_p1 = scmp.ge.s32.totalorder %s26_s18, 4  ;;  %p186_p2 = scmp.lt.s32.totalorder %s5261_s17, 5 }
   0x5   : > { %s7209_s18 = smov (%p28_p1, %s26_s18), 0  ;;  %p187_p3 = pnand %p2992_p0, %p186_p2 }
   0x6   : > { %p217_p4 = scmp.lt.s32.totalorder (!%p187_p3), %s5253_s15, 3  ;;  %p232_p5 = scmp.eq.s32.totalorder (!%p187_p3), %s5253_s15, 0 }
   0x7   : > { %190 = sbr.rel (%p187_p3) target bundleno = 718 (0x2ce), region = 36 }
   0xc   : > { %s218_s19 = scalar_select %p217_p4, %s5253_s15, 3  ;;  %v5263_v0 = vmov (%p232_p5), 0.0  }
   0xd   : > { %237 = sbr.rel (!%p232_p5) target bundleno = 18 (0x12), region = 40  ;;  %238 = vst [vmem:[#allocation2] sm:$0x1] (%p232_p5), %v5263_v0 }
   0xe   : > { %s3563_s20 = sshll.u32 %s218_s19, 8  ;;  %s3564_s21 = sshll.u32 %s218_s19, 5  ;;  %239 = vst [vmem:[#allocation3] sm:$0x1] (%p232_p5), %v5263_v0 }
   0xf   : > { %s5315_s24 = scalar_lea.vmem %s7189_s0, %s3563_s20  ;;  %s230_s27 = scalar_lea.vmem %s7190_s1, %s3564_s21 }
  0x12 PF: > { %v3601_v1 = vld [vmem:[%s230_s27 + $0x18] sm:$0xff]  ;;  %v3600_v2 = vld [vmem:[%s230_s27 + $0x10] sm:$0xff]  ;;  %v3599_v3 = vld [vmem:[%s230_s27 + $0x8] sm:$0xff]  ;;  %vm496_vm0 = vcmask 523264   ;;  %s3174_s28 = sshll.u32 %s5253_s15, 9  ;;  %p1104_p6 = scmp.eq.s32.totalorder %s5253_s15, 3 }
  0x13   : > { %597 = vmatpush.bf16.msra.mxu0 %v3601_v1  ;;  %5200 = vmatpush.bf16.msra.mxu1 %v3601_v1  ;;  %v3598_v4 = vld [vmem:[%s230_s27] sm:$0xff]  ;;  %v3567_v7 = vld [vmem:[%s5315_s24 + $0x8] sm:$0xff]  ;;  %v3568_v10 = vld [vmem:[%s5315_s24 + $0x10] sm:$0xff]  ;;  %s1036_s29 = sshra.s32 %s3174_s28, 3 }
  0x14   : > { %5201 = vmatpush.bf16.msra.mxu2 %v3601_v1  ;;  %5202 = vmatpush.bf16.msra.mxu3 %v3601_v1  ;;  %v3566_v5 = vld [vmem:[%s5315_s24] sm:$0xff]  ;;  %v3575_v8 = vld [vmem:[%s5315_s24 + $0x48] sm:$0xff]  ;;  %v3576_v11 = vld [vmem:[%s5315_s24 + $0x50] sm:$0xff]  ;;  %s3175_s30 = sshll.u32 %s1036_s29, 2 }
  0x15   : > { %v3574_v6 = vld [vmem:[%s5315_s24 + $0x40] sm:$0xff]  ;;  %v3583_v12 = vld [vmem:[%s5315_s24 + $0x88] sm:$0xff]  ;;  %v3569_v13 = vld [vmem:[%s5315_s24 + $0x18] sm:$0xff]  ;;  %s5386_s7 = scalar_lea.vmem %s7193_s4, %s3175_s30 }
  0x16   : > { %v3582_v9 = vld [vmem:[%s5315_s24 + $0x80] sm:$0xff]  ;;  %v3577_v14 = vld [vmem:[%s5315_s24 + $0x58] sm:$0xff]  ;;  %v3584_v15 = vld [vmem:[%s5315_s24 + $0x90] sm:$0xff] }
  0x17   : > { %598 = vmatpush.bf16.msra.mxu0 %v3600_v2  ;;  %5203 = vmatpush.bf16.msra.mxu1 %v3600_v2  ;;  %v3590_v16 = vld [vmem:[%s5315_s24 + $0xc0] sm:$0xff]  ;;  %v3585_v19 = vld [vmem:[%s5315_s24 + $0x98] sm:$0xff]  ;;  %v3591_v20 = vld [vmem:[%s5315_s24 + $0xc8] sm:$0xff] }
  0x18   : > { %5204 = vmatpush.bf16.msra.mxu2 %v3600_v2  ;;  %5205 = vmatpush.bf16.msra.mxu3 %v3600_v2  ;;  %v3570_v17 = vld [vmem:[%s5315_s24 + $0x20] sm:$0xff]  ;;  %v3571_v21 = vld [vmem:[%s5315_s24 + $0x28] sm:$0xff]  ;;  %v3592_v24 = vld [vmem:[%s5315_s24 + $0xd0] sm:$0xff] }
  0x19   : > { %v3578_v18 = vld [vmem:[%s5315_s24 + $0x60] sm:$0xff]  ;;  %v3579_v22 = vld [vmem:[%s5315_s24 + $0x68] sm:$0xff]  ;;  %v3572_v25 = vld [vmem:[%s5315_s24 + $0x30] sm:$0xff] }
  0x1a   : > { %v3586_v23 = vld [vmem:[%s5315_s24 + $0xa0] sm:$0xff]  ;;  %v3580_v26 = vld [vmem:[%s5315_s24 + $0x70] sm:$0xff]  ;;  %v3587_v27 = vld [vmem:[%s5315_s24 + $0xa8] sm:$0xff] }
  0x1b   : > { %599 = vmatpush.bf16.msra.mxu0 %v3599_v3  ;;  %5206 = vmatpush.bf16.msra.mxu1 %v3599_v3  ;;  %v3593_v28 = vld [vmem:[%s5315_s24 + $0xd8] sm:$0xff]  ;;  %v3588_v31 = vld [vmem:[%s5315_s24 + $0xb0] sm:$0xff]  ;;  %v3594_v32 = vld [vmem:[%s5315_s24 + $0xe0] sm:$0xff] }
  0x1c   : > { %5207 = vmatpush.bf16.msra.mxu2 %v3599_v3  ;;  %5208 = vmatpush.bf16.msra.mxu3 %v3599_v3  ;;  %v3573_v29 = vld [vmem:[%s5315_s24 + $0x38] sm:$0xff]  ;;  %v3595_v36 = vld [vmem:[%s5315_s24 + $0xe8] sm:$0xff]  ;;  %v3596_v50 = vld [vmem:[%s5315_s24 + $0xf0] sm:$0xff] }
  0x1d   : > { %v3581_v30 = vld [vmem:[%s5315_s24 + $0x78] sm:$0xff] }
  0x1e   : > { %v3589_v35 = vld [vmem:[%s5315_s24 + $0xb8] sm:$0xff] }
  0x1f   : > { %600 = vmatpush.bf16.msra.mxu0 %v3598_v4  ;;  %5209 = vmatpush.bf16.msra.mxu1 %v3598_v4  ;;  %v3597_v2 = vld [vmem:[%s5315_s24 + $0xf8] sm:$0xff] }
  0x20   : > { %5210 = vmatpush.bf16.msra.mxu2 %v3598_v4  ;;  %5211 = vmatpush.bf16.msra.mxu3 %v3598_v4 }
  0x22   : > { %3142 = vmatmul.msk.bf16.vlgmr.msra.gmra.mxu0 %vm496_vm0, %v3566_v5  ;;  %3150 = vmatmul.msk.bf16.vlgmr.msra.gmra.mxu1 %vm496_vm0, %v3574_v6 }
  0x23   : > { %3158 = vmatmul.msk.bf16.vlgmr.msra.gmra.mxu2 %vm496_vm0, %v3582_v9  ;;  %3166 = vmatmul.msk.bf16.vlgmr.msra.gmra.mxu3 %vm496_vm0, %v3590_v16 }
  0x32   : > { %3143 = vmatmul.msk.bf16.gmra.mxu0 %vm496_vm0, %v3567_v7  ;;  %3151 = vmatmul.msk.bf16.gmra.mxu1 %vm496_vm0, %v3575_v8 }
  0x33   : > { %3159 = vmatmul.msk.bf16.gmra.mxu2 %vm496_vm0, %v3583_v12  ;;  %3167 = vmatmul.msk.bf16.gmra.mxu3 %vm496_vm0, %v3591_v20 }
  0x42   : > { %3144 = vmatmul.msk.bf16.gmra.mxu0 %vm496_vm0, %v3568_v10  ;;  %3152 = vmatmul.msk.bf16.gmra.mxu1 %vm496_vm0, %v3576_v11 }
  0x43   : > { %3160 = vmatmul.msk.bf16.gmra.mxu2 %vm496_vm0, %v3584_v15  ;;  %3168 = vmatmul.msk.bf16.gmra.mxu3 %vm496_vm0, %v3592_v24 }
  0x52   : > { %3145 = vmatmul.msk.bf16.gmra.mxu0 %vm496_vm0, %v3569_v13  ;;  %3153 = vmatmul.msk.bf16.gmra.mxu1 %vm496_vm0, %v3577_v14 }
  0x53   : > { %3161 = vmatmul.msk.bf16.gmra.mxu2 %vm496_vm0, %v3585_v19  ;;  %3169 = vmatmul.msk.bf16.gmra.mxu3 %vm496_vm0, %v3593_v28 }
  0x62   : > { %3146 = vmatmul.msk.bf16.gmra.mxu0 %vm496_vm0, %v3570_v17  ;;  %3154 = vmatmul.msk.bf16.gmra.mxu1 %vm496_vm0, %v3578_v18 }
  0x63   : > { %3162 = vmatmul.msk.bf16.gmra.mxu2 %vm496_vm0, %v3586_v23  ;;  %3170 = vmatmul.msk.bf16.gmra.mxu3 %vm496_vm0, %v3594_v32 }
  0x72   : > { %3147 = vmatmul.msk.bf16.gmra.mxu0 %vm496_vm0, %v3571_v21  ;;  %3155 = vmatmul.msk.bf16.gmra.mxu1 %vm496_vm0, %v3579_v22 }
  0x73   : > { %3163 = vmatmul.msk.bf16.gmra.mxu2 %vm496_vm0, %v3587_v27  ;;  %3171 = vmatmul.msk.bf16.gmra.mxu3 %vm496_vm0, %v3595_v36 }
  0x82   : > { %3148 = vmatmul.msk.bf16.gmra.mxu0 %vm496_vm0, %v3572_v25  ;;  %3156 = vmatmul.msk.bf16.gmra.mxu1 %vm496_vm0, %v3580_v26 }
  0x83   : > { %3164 = vmatmul.msk.bf16.gmra.mxu2 %vm496_vm0, %v3588_v31  ;;  %3172 = vmatmul.msk.bf16.gmra.mxu3 %vm496_vm0, %v3596_v50 }
  0x92   : > { %3149 = vmatmul.msk.bf16.gmra.mxu0 %vm496_vm0, %v3573_v29  ;;  %3157 = vmatmul.msk.bf16.gmra.mxu1 %vm496_vm0, %v3581_v30 }
  0x93   : > { %3165 = vmatmul.msk.bf16.gmra.mxu2 %vm496_vm0, %v3589_v35  ;;  %3173 = vmatmul.msk.bf16.gmra.mxu3 %vm496_vm0, %v3597_v2 }
  0x9f   : > { %v602_v33 = vpop.f32.mrf.mxu0  ;;  %v5377_v34 = vpop.f32.mrf.mxu1 }
  0xa0   : > { %v835_v39 = vmul.f32 %v602_v33, %v602_v33 }
  0xa6   : > { %v5400_v56 = vpop.f32.mrf.mxu2  ;;  %v5438_v16 = vpop.f32.mrf.mxu3 }
  0xa7   : > { %v604_v37 = vpop.f32.mrf.mxu0  ;;  %v5388_v38 = vpop.f32.mrf.mxu1 }
  0xa8   : > { %v763_v40 = vadd.f32 %v604_v37, %v602_v33  ;;  %v836_v41 = vmul.f32 %v604_v37, %v604_v37  ;;  %v3606_v42 = vpack.c.bf16 %v604_v37, %v602_v33  ;;  %v3646_v43 = vpack.c.bf16 %v5388_v38, %v5377_v34 }
  0xaa   : > { %v899_v44 = vadd.f32 %v836_v41, %v835_v39  ;;  %3607 = vst [vmem:[%s5386_s7] sm:$0xff] %v3606_v42  }
  0xab   : > { %4922 = vst [vmem:[%s5386_s7 + $0x40] sm:$0xff] %v3646_v43  }
  0xae   : > { %v5410_v63 = vpop.f32.mrf.mxu2  ;;  %v5448_v21 = vpop.f32.mrf.mxu3 }
  0xaf   : > { %v607_v45 = vpop.f32.mrf.mxu0  ;;  %v5394_v46 = vpop.f32.mrf.mxu1  ;;  %v3686_v0 = vpack.c.bf16 %v5410_v63, %v5400_v56  ;;  %v3726_v23 = vpack.c.bf16 %v5448_v21, %v5438_v16 }
  0xb0   : > { %v764_v47 = vadd.f32 %v763_v40, %v607_v45  ;;  %v837_v48 = vmul.f32 %v607_v45, %v607_v45 }
  0xb1   : > { %4930 = vst [vmem:[%s5386_s7 + $0x80] sm:$0xff] %v3686_v0  }
  0xb2   : > { %v900_v49 = vadd.f32 %v899_v44, %v837_v48  ;;  %4938 = vst [vmem:[%s5386_s7 + $0xc0] sm:$0xff] %v3726_v23  }
  0xb6   : > { %v5421_v6 = vpop.f32.mrf.mxu2  ;;  %v5460_v28 = vpop.f32.mrf.mxu3 }
  0xb7   : > { %v609_v51 = vpop.f32.mrf.mxu0  ;;  %v5398_v52 = vpop.f32.mrf.mxu1 }
  0xb8   : > { %v765_v53 = vadd.f32 %v764_v47, %v609_v51  ;;  %v838_v54 = vmul.f32 %v609_v51, %v609_v51  ;;  %v3611_v55 = vpack.c.bf16 %v609_v51, %v607_v45  ;;  %v3651_v57 = vpack.c.bf16 %v5398_v52, %v5394_v46 }
  0xba   : > { %v901_v58 = vadd.f32 %v900_v49, %v838_v54  ;;  %4915 = vst [vmem:[%s5386_s7 + $0x8] sm:$0xff] %v3611_v55  }
  0xbb   : > { %4923 = vst [vmem:[%s5386_s7 + $0x48] sm:$0xff] %v3651_v57  }
  0xbe   : > { %v5429_v10 = vpop.f32.mrf.mxu2  ;;  %v5470_v33 = vpop.f32.mrf.mxu3 }
  0xbf   : > { %v612_v59 = vpop.f32.mrf.mxu0  ;;  %v5406_v60 = vpop.f32.mrf.mxu1  ;;  %v3691_v11 = vpack.c.bf16 %v5429_v10, %v5421_v6  ;;  %v3731_v36 = vpack.c.bf16 %v5470_v33, %v5460_v28 }
  0xc0   : > { %v5408_v61 = vadd.f32 %v765_v53, %v612_v59  ;;  %v839_v62 = vmul.f32 %v612_v59, %v612_v59 }
  0xc1   : > { %4931 = vst [vmem:[%s5386_s7 + $0x88] sm:$0xff] %v3691_v11  }
  0xc2   : > { %v5414_v1 = vadd.f32 %v901_v58, %v839_v62  ;;  %4939 = vst [vmem:[%s5386_s7 + $0xc8] sm:$0xff] %v3731_v36  }
  0xc6   : > { %v5436_v15 = vpop.f32.mrf.mxu2  ;;  %v5482_v42 = vpop.f32.mrf.mxu3 }
  0xc7   : > { %v614_v3 = vpop.f32.mrf.mxu0  ;;  %v5419_v4 = vpop.f32.mrf.mxu1 }
  0xc8   : > { %v3616_v5 = vpack.c.bf16 %v614_v3, %v612_v59  ;;  %v3656_v7 = vpack.c.bf16 %v5419_v4, %v5406_v60  ;;  %v840_v50 = vmul.f32 %v614_v3, %v614_v3  ;;  %v767_v53 = vadd.f32 %v5408_v61, %v614_v3 }
  0xca   : > { %4916 = vst [vmem:[%s5386_s7 + $0x10] sm:$0xff] %v3616_v5   ;;  %v903_v55 = vadd.f32 %v5414_v1, %v840_v50 }
  0xcb   : > { %4924 = vst [vmem:[%s5386_s7 + $0x50] sm:$0xff] %v3656_v7  }
  0xce   : > { %v5446_v20 = vpop.f32.mrf.mxu2  ;;  %v5492_v48 = vpop.f32.mrf.mxu3 }
  0xcf   : > { %v617_v8 = vpop.f32.mrf.mxu0  ;;  %v5427_v9 = vpop.f32.mrf.mxu1  ;;  %v3696_v22 = vpack.c.bf16 %v5446_v20, %v5436_v15  ;;  %v3736_v51 = vpack.c.bf16 %v5492_v48, %v5482_v42 }
  0xd0   : > { %v841_v54 = vmul.f32 %v617_v8, %v617_v8  ;;  %v768_v57 = vadd.f32 %v767_v53, %v617_v8 }
  0xd1   : > { %4932 = vst [vmem:[%s5386_s7 + $0x90] sm:$0xff] %v3696_v22  }
  0xd2   : > { %4940 = vst [vmem:[%s5386_s7 + $0xd0] sm:$0xff] %v3736_v51   ;;  %v904_v0 = vadd.f32 %v903_v55, %v841_v54 }
  0xd6   : > { %v5458_v27 = vpop.f32.mrf.mxu2 }
  0xd7   : > { %v619_v12 = vpop.f32.mrf.mxu0  ;;  %v5434_v13 = vpop.f32.mrf.mxu1 }
  0xd8   : > { %v3621_v14 = vpack.c.bf16 %v619_v12, %v617_v8  ;;  %v3661_v17 = vpack.c.bf16 %v5434_v13, %v5427_v9  ;;  %v842_v58 = vmul.f32 %v619_v12, %v619_v12  ;;  %v769_v2 = vadd.f32 %v768_v57, %v619_v12 }
  0xda   : > { %4917 = vst [vmem:[%s5386_s7 + $0x18] sm:$0xff] %v3621_v14   ;;  %v5506_v14 = vpop.f32.mrf.mxu3  ;;  %v905_v3 = vadd.f32 %v904_v0, %v842_v58 }
  0xdb   : > { %4925 = vst [vmem:[%s5386_s7 + $0x58] sm:$0xff] %v3661_v17  }
  0xde   : > { %v5468_v32 = vpop.f32.mrf.mxu2 }
  0xdf   : > { %v622_v18 = vpop.f32.mrf.mxu0  ;;  %v5444_v19 = vpop.f32.mrf.mxu1  ;;  %v3701_v35 = vpack.c.bf16 %v5468_v32, %v5458_v27 }
  0xe0   : > { %v843_v5 = vmul.f32 %v622_v18, %v622_v18  ;;  %v770_v1 = vadd.f32 %v769_v2, %v622_v18 }
  0xe1   : > { %4933 = vst [vmem:[%s5386_s7 + $0x98] sm:$0xff] %v3701_v35  }
  0xe2   : > { %v906_v8 = vadd.f32 %v905_v3, %v843_v5 }
  0xe6   : > { %v5480_v41 = vpop.f32.mrf.mxu2 }
  0xe7   : > { %v624_v24 = vpop.f32.mrf.mxu0  ;;  %v5456_v25 = vpop.f32.mrf.mxu1 }
  0xe8   : > { %v3626_v26 = vpack.c.bf16 %v624_v24, %v622_v18  ;;  %v3666_v29 = vpack.c.bf16 %v5456_v25, %v5444_v19  ;;  %v844_v17 = vmul.f32 %v624_v24, %v624_v24  ;;  %v771_v22 = vadd.f32 %v770_v1, %v624_v24  ;;  %v5517_v18 = vpop.f32.mrf.mxu3 }
  0xea   : > { %4918 = vst [vmem:[%s5386_s7 + $0x20] sm:$0xff] %v3626_v26   ;;  %v907_v12 = vadd.f32 %v906_v8, %v844_v17  ;;  %v851_v8 = vmul.f32 %v5377_v34, %v5377_v34 }
  0xeb   : > { %4926 = vst [vmem:[%s5386_s7 + $0x60] sm:$0xff] %v3666_v29  }
  0xee   : > { %v5490_v47 = vpop.f32.mrf.mxu2 }
  0xef   : > { %v627_v30 = vpop.f32.mrf.mxu0  ;;  %v5466_v31 = vpop.f32.mrf.mxu1  ;;  %v3706_v49 = vpack.c.bf16 %v5490_v47, %v5480_v41 }
  0xf0   : > { %v845_v23 = vmul.f32 %v627_v30, %v627_v30  ;;  %v772_v26 = vadd.f32 %v771_v22, %v627_v30  ;;  %v5529_v17 = vpop.f32.mrf.mxu3 }
  0xf1   : > { %4934 = vst [vmem:[%s5386_s7 + $0xa0] sm:$0xff] %v3706_v49  }
  0xf6   : > { %v5504_v11 = vpop.f32.mrf.mxu2 }
  0xf7   : > { %v629_v37 = vpop.f32.mrf.mxu0  ;;  %v5478_v39 = vpop.f32.mrf.mxu1 }
  0xf8   : > { %v3631_v40 = vpack.c.bf16 %v629_v37, %v627_v30  ;;  %v3671_v43 = vpack.c.bf16 %v5478_v39, %v5466_v31  ;;  %v846_v29 = vmul.f32 %v629_v37, %v629_v37  ;;  %v3741_v30 = vpack.c.bf16 %v5517_v18, %v5506_v14 }
  0xfa   : > { %4919 = vst [vmem:[%s5386_s7 + $0x28] sm:$0xff] %v3631_v40   ;;  %v908_v40 = vadd.f32 %v907_v12, %v845_v23  ;;  %v852_v12 = vmul.f32 %v5388_v38, %v5388_v38 }
  0xfb   : > { %4927 = vst [vmem:[%s5386_s7 + $0x68] sm:$0xff] %v3671_v43   ;;  %v773_v43 = vadd.f32 %v772_v26, %v629_v37 }
  0xfc   : > { %v909_v24 = vadd.f32 %v908_v40, %v846_v29  ;;  %4941 = vst [vmem:[%s5386_s7 + $0xd8] sm:$0xff] %v3741_v30  }
  0xfe   : > { %v5515_v50 = vpop.f32.mrf.mxu2 }
  0xff   : > { %v632_v44 = vpop.f32.mrf.mxu0  ;;  %v5488_v45 = vpop.f32.mrf.mxu1  ;;  %v3711_v51 = vpack.c.bf16 %v5515_v50, %v5504_v11 }
 0x100   : > { %v847_v49 = vmul.f32 %v632_v44, %v632_v44  ;;  %v774_v53 = vadd.f32 %v773_v43, %v632_v44 }
 0x101   : > { %4935 = vst [vmem:[%s5386_s7 + $0xa8] sm:$0xff] %v3711_v51  }
 0x102   : > { %v910_v55 = vadd.f32 %v909_v24, %v847_v49 }
 0x106   : > { %v5527_v1 = vpop.f32.mrf.mxu2 }
 0x107   : > { %v634_v59 = vpop.f32.mrf.mxu0  ;;  %v5502_v62 = vpop.f32.mrf.mxu1 }
 0x108   : > { %v3636_v7 = vpack.c.bf16 %v634_v59, %v632_v44  ;;  %v3676_v61 = vpack.c.bf16 %v5502_v62, %v5488_v45  ;;  %v848_v54 = vmul.f32 %v634_v59, %v634_v59  ;;  %v775_v57 = vadd.f32 %v774_v53, %v634_v59  ;;  %v5549_v53 = vpop.f32.mrf.mxu3 }
 0x10a   : > { %4920 = vst [vmem:[%s5386_s7 + $0x30] sm:$0xff] %v3636_v7   ;;  %v911_v37 = vadd.f32 %v910_v55, %v848_v54  ;;  %v3746_v54 = vpack.c.bf16 %v5549_v53, %v5529_v17 }
 0x10b   : > { %4928 = vst [vmem:[%s5386_s7 + $0x70] sm:$0xff] %v3676_v61  }
 0x10c   : > { %4942 = vst [vmem:[%s5386_s7 + $0xe0] sm:$0xff] %v3746_v54   ;;  %v864_v54 = vmul.f32 %v5502_v62, %v5502_v62 }
 0x10e   : > { %v5547_v24 = vpop.f32.mrf.mxu2 }
 0x10f   : > { %v637_v35 = vpop.f32.mrf.mxu0  ;;  %v5513_v36 = vpop.f32.mrf.mxu1 }
 0x110   : > { %v849_v58 = vmul.f32 %v637_v35, %v637_v35  ;;  %v776_v0 = vadd.f32 %v775_v57, %v637_v35 }
 0x112   : > { %v912_v7 = vadd.f32 %v911_v37, %v849_v58  ;;  %v857_v37 = vmul.f32 %v5427_v9, %v5427_v9 }
 0x117   : > { %v639_v2 = vpop.f32.mrf.mxu0  ;;  %v5525_v5 = vpop.f32.mrf.mxu1 }
 0x118   : > { %v777_v61 = vadd.f32 %v776_v0, %v639_v2  ;;  %v850_v3 = vmul.f32 %v639_v2, %v639_v2  ;;  %v3641_v44 = vpack.c.bf16 %v639_v2, %v637_v35  ;;  %v3681_v59 = vpack.c.bf16 %v5525_v5, %v5513_v36 }
 0x119   : > { %v853_v35 = vmul.f32 %v5394_v46, %v5394_v46 }
 0x11a   : > { %v778_v22 = vadd.f32 %v777_v61, %v5377_v34  ;;  %v913_v23 = vadd.f32 %v912_v7, %v850_v3  ;;  %4921 = vst [vmem:[%s5386_s7 + $0x38] sm:$0xff] %v3641_v44   ;;  %v854_v34 = vmul.f32 %v5398_v52, %v5398_v52  ;;  %v858_v7 = vmul.f32 %v5434_v13, %v5434_v13  ;;  %v5569_v3 = vpop.f32.mrf.mxu2  ;;  %v5571_v44 = vpop.f32.mrf.mxu3 }
 0x11b   : > { %4929 = vst [vmem:[%s5386_s7 + $0x78] sm:$0xff] %v3681_v59  }
 0x11c   : > { %v779_v26 = vadd.f32 %v778_v22, %v5388_v38  ;;  %v914_v29 = vadd.f32 %v913_v23, %v851_v8  ;;  %v3716_v38 = vpack.c.bf16 %v5547_v24, %v5527_v1  ;;  %v860_v22 = vmul.f32 %v5456_v25, %v5456_v25 }
 0x11e   : > { %v780_v40 = vadd.f32 %v779_v26, %v5394_v46  ;;  %v915_v43 = vadd.f32 %v914_v29, %v852_v12  ;;  %v855_v46 = vmul.f32 %v5406_v60, %v5406_v60  ;;  %4936 = vst [vmem:[%s5386_s7 + $0xb0] sm:$0xff] %v3716_v38   ;;  %v862_v29 = vmul.f32 %v5478_v39, %v5478_v39 }
 0x120   : > { %v781_v49 = vadd.f32 %v780_v40, %v5398_v52  ;;  %v916_v51 = vadd.f32 %v915_v43, %v853_v35  ;;  %v856_v52 = vmul.f32 %v5419_v4, %v5419_v4 }
 0x122   : > { %v782_v30 = vadd.f32 %v781_v49, %v5406_v60  ;;  %v917_v55 = vadd.f32 %v916_v51, %v854_v34  ;;  %v5585_v40 = vpop.f32.mrf.mxu2  ;;  %v5587_v43 = vpop.f32.mrf.mxu3  ;;  %v863_v49 = vmul.f32 %v5488_v45, %v5488_v45 }
 0x123   : > { %v3751_v34 = vpack.c.bf16 %v5587_v43, %v5571_v44 }
 0x124   : > { %v783_v57 = vadd.f32 %v782_v30, %v5419_v4  ;;  %v918_v58 = vadd.f32 %v917_v55, %v855_v46  ;;  %v859_v4 = vmul.f32 %v5444_v19, %v5444_v19  ;;  %v865_v55 = vmul.f32 %v5513_v36, %v5513_v36 }
 0x125   : > { %4943 = vst [vmem:[%s5386_s7 + $0xe8] sm:$0xff] %v3751_v34   ;;  %v875_v34 = vmul.f32 %v5480_v41, %v5480_v41 }
 0x126   : > { %v919_v0 = vadd.f32 %v918_v58, %v856_v52  ;;  %v784_v2 = vadd.f32 %v783_v57, %v5427_v9 }
 0x128   : > { %v785_v60 = vadd.f32 %v784_v2, %v5434_v13  ;;  %v920_v61 = vadd.f32 %v919_v0, %v857_v37  ;;  %v861_v13 = vmul.f32 %v5466_v31, %v5466_v31  ;;  %v867_v37 = vmul.f32 %v5400_v56, %v5400_v56 }
 0x129   : > { %v868_v2 = vmul.f32 %v5410_v63, %v5410_v63 }
 0x12a   : > { %v786_v59 = vadd.f32 %v785_v60, %v5444_v19  ;;  %v921_v8 = vadd.f32 %v920_v61, %v858_v7  ;;  %v5607_v58 = vpop.f32.mrf.mxu3  ;;  %v869_v60 = vmul.f32 %v5421_v6, %v5421_v6 }
 0x12c   : > { %v787_v9 = vadd.f32 %v786_v59, %v5456_v25  ;;  %v922_v23 = vadd.f32 %v921_v8, %v859_v4  ;;  %v3721_v25 = vpack.c.bf16 %v5585_v40, %v5569_v3  ;;  %v870_v4 = vmul.f32 %v5429_v10, %v5429_v10 }
 0x12e   : > { %v788_v12 = vadd.f32 %v787_v9, %v5466_v31  ;;  %v923_v26 = vadd.f32 %v922_v23, %v860_v22  ;;  %4937 = vst [vmem:[%s5386_s7 + $0xb8] sm:$0xff] %v3721_v25  }
 0x130   : > { %v789_v19 = vadd.f32 %v788_v12, %v5478_v39  ;;  %v924_v35 = vadd.f32 %v923_v26, %v861_v13 }
 0x132   : > { %v790_v31 = vadd.f32 %v789_v19, %v5488_v45  ;;  %v925_v51 = vadd.f32 %v924_v35, %v862_v29  ;;  %v866_v45 = vmul.f32 %v5525_v5, %v5525_v5  ;;  %v5621_v8 = vpop.f32.mrf.mxu3  ;;  %v874_v19 = vmul.f32 %v5468_v32, %v5468_v32 }
 0x133   : > { %v3756_v22 = vpack.c.bf16 %v5621_v8, %v5607_v58 }
 0x134   : > { %v926_v38 = vadd.f32 %v925_v51, %v863_v49  ;;  %v791_v39 = vadd.f32 %v790_v31, %v5502_v62  ;;  %v876_v49 = vmul.f32 %v5490_v47, %v5490_v47 }
 0x135   : > { %4944 = vst [vmem:[%s5386_s7 + $0xf0] sm:$0xff] %v3756_v22  }
 0x136   : > { %v927_v46 = vadd.f32 %v926_v38, %v864_v54  ;;  %v792_v30 = vadd.f32 %v791_v39, %v5513_v36  ;;  %v877_v38 = vmul.f32 %v5504_v11, %v5504_v11 }
 0x138   : > { %v928_v52 = vadd.f32 %v927_v46, %v865_v55  ;;  %v793_v57 = vadd.f32 %v792_v30, %v5525_v5  ;;  %v878_v46 = vmul.f32 %v5515_v50, %v5515_v50 }
 0x13a   : > { %v794_v62 = vadd.f32 %v793_v57, %v5400_v56  ;;  %v929_v0 = vadd.f32 %v928_v52, %v866_v45  ;;  %v5638_v25 = vpop.f32.mrf.mxu3 }
 0x13c   : > { %v795_v36 = vadd.f32 %v794_v62, %v5410_v63  ;;  %v930_v7 = vadd.f32 %v929_v0, %v867_v37  ;;  %v871_v63 = vmul.f32 %v5436_v15, %v5436_v15  ;;  %v880_v37 = vmul.f32 %v5547_v24, %v5547_v24 }
 0x13d   : > { %v881_v0 = vmul.f32 %v5569_v3, %v5569_v3 }
 0x13e   : > { %v796_v5 = vadd.f32 %v795_v36, %v5421_v6  ;;  %v931_v61 = vadd.f32 %v930_v7, %v868_v2  ;;  %v872_v6 = vmul.f32 %v5446_v20, %v5446_v20  ;;  %v882_v7 = vmul.f32 %v5585_v40, %v5585_v40 }
 0x140   : > { %v797_v59 = vadd.f32 %v796_v5, %v5429_v10  ;;  %v932_v56 = vadd.f32 %v931_v61, %v869_v60  ;;  %v873_v10 = vmul.f32 %v5458_v27, %v5458_v27 }
 0x142   : > { %v798_v9 = vadd.f32 %v797_v59, %v5436_v15  ;;  %v933_v23 = vadd.f32 %v932_v56, %v870_v4  ;;  %v759_v30 = vpop.f32.mrf.mxu3 }
 0x143   : > { %v3761_v55 = vpack.c.bf16 %v759_v30, %v5638_v25 }
 0x144   : > { %v799_v13 = vadd.f32 %v798_v9, %v5446_v20  ;;  %v934_v12 = vadd.f32 %v933_v23, %v871_v63 }
 0x145   : > { %4945 = vst [vmem:[%s5386_s7 + $0xf8] sm:$0xff] %v3761_v55   ;;  %v898_v55 = vmul.f32 %v759_v30, %v759_v30 }
 0x146   : > { %v935_v26 = vadd.f32 %v934_v12, %v872_v6  ;;  %v800_v29 = vadd.f32 %v799_v13, %v5458_v27 }
 0x148   : > { %v801_v35 = vadd.f32 %v800_v29, %v5468_v32  ;;  %v936_v15 = vadd.f32 %v935_v26, %v873_v10 }
 0x14a   : > { %v802_v20 = vadd.f32 %v801_v35, %v5480_v41  ;;  %v937_v31 = vadd.f32 %v936_v15, %v874_v19 }
 0x14c   : > { %v803_v27 = vadd.f32 %v802_v20, %v5490_v47  ;;  %v938_v51 = vadd.f32 %v937_v31, %v875_v34  ;;  %v879_v47 = vmul.f32 %v5527_v1, %v5527_v1 }
 0x14e   : > { %v804_v32 = vadd.f32 %v803_v27, %v5504_v11  ;;  %v939_v39 = vadd.f32 %v938_v51, %v876_v49  ;;  %v894_v49 = vmul.f32 %v5587_v43, %v5587_v43 }
 0x150   : > { %v805_v54 = vadd.f32 %v804_v32, %v5515_v50  ;;  %v940_v41 = vadd.f32 %v939_v39, %v877_v38  ;;  %v895_v38 = vmul.f32 %v5607_v58, %v5607_v58  ;;  %v896_v39 = vmul.f32 %v5621_v8, %v5621_v8 }
 0x152   : > { %v941_v52 = vadd.f32 %v940_v41, %v878_v46  ;;  %v806_v57 = vadd.f32 %v805_v54, %v5527_v1  ;;  %v883_v1 = vmul.f32 %v5438_v16, %v5438_v16  ;;  %v897_v46 = vmul.f32 %v5638_v25, %v5638_v25 }
 0x154   : > { %v942_v45 = vadd.f32 %v941_v52, %v879_v47  ;;  %v807_v11 = vadd.f32 %v806_v57, %v5547_v24  ;;  %v884_v24 = vmul.f32 %v5448_v21, %v5448_v21 }
 0x156   : > { %v943_v62 = vadd.f32 %v942_v45, %v880_v37  ;;  %v808_v50 = vadd.f32 %v807_v11, %v5569_v3  ;;  %v885_v3 = vmul.f32 %v5460_v28, %v5460_v28 }
 0x158   : > { %v944_v2 = vadd.f32 %v943_v62, %v881_v0  ;;  %v809_v36 = vadd.f32 %v808_v50, %v5585_v40  ;;  %v886_v40 = vmul.f32 %v5470_v33, %v5470_v33 }
 0x15a   : > { %v810_v60 = vadd.f32 %v809_v36, %v5438_v16  ;;  %v945_v5 = vadd.f32 %v944_v2, %v882_v7  ;;  %v887_v16 = vmul.f32 %v5482_v42, %v5482_v42  ;;  %v834_v7 = vld [vmem:[#allocation3] sm:$0x1] }
 0x15c   : > { %v811_v61 = vadd.f32 %v810_v60, %v5448_v21  ;;  %v946_v4 = vadd.f32 %v945_v5, %v883_v1  ;;  %v888_v21 = vmul.f32 %v5492_v48, %v5492_v48 }
 0x15e   : > { %v812_v59 = vadd.f32 %v811_v61, %v5460_v28  ;;  %v947_v56 = vadd.f32 %v946_v4, %v884_v24  ;;  %v889_v28 = vmul.f32 %v5506_v14, %v5506_v14 }
 0x160   : > { %v813_v22 = vadd.f32 %v812_v59, %v5470_v33  ;;  %v948_v63 = vadd.f32 %v947_v56, %v885_v3  ;;  %v890_v33 = vmul.f32 %v5517_v18, %v5517_v18 }
 0x162   : > { %v814_v9 = vadd.f32 %v813_v22, %v5482_v42  ;;  %v949_v23 = vadd.f32 %v948_v63, %v886_v40  ;;  %v891_v42 = vmul.f32 %v5529_v17, %v5529_v17  ;;  %v5720_v22 = vld [vmem:[%s7193_s4] sm:$0xff] (%p1104_p6)   ;;  %v5725_v63 = vld [vmem:[%s7193_s4 + $0x8] sm:$0xff] (%p1104_p6)  }
 0x164   : > { %v815_v6 = vadd.f32 %v814_v9, %v5492_v48  ;;  %v950_v13 = vadd.f32 %v949_v23, %v887_v16  ;;  %v892_v48 = vmul.f32 %v5549_v53, %v5549_v53  ;;  %v5730_v9 = vld [vmem:[%s7193_s4 + $0x10] sm:$0xff] (%p1104_p6)   ;;  %v5735_v23 = vld [vmem:[%s7193_s4 + $0x18] sm:$0xff] (%p1104_p6)  }
 0x166   : > { %v951_v12 = vadd.f32 %v950_v13, %v888_v21  ;;  %v816_v10 = vadd.f32 %v815_v6, %v5506_v14  ;;  %v893_v14 = vmul.f32 %v5571_v44, %v5571_v44  ;;  %v3765_v6 = vunpack.c.l.bf16 (%p1104_p6), %v5720_v22 }
 0x167   : > { %v3766_v13 = vunpack.c.h.bf16 (%p1104_p6), %v5720_v22 }
 0x168   : > { %v817_v26 = vadd.f32 %v816_v10, %v5517_v18  ;;  %v952_v29 = vadd.f32 %v951_v12, %v889_v28  ;;  %v3769_v28 = vunpack.c.l.bf16 (%p1104_p6), %v5725_v63  ;;  %v5743_v12 = vld [vmem:[%s7193_s4 + $0x20] sm:$0xff] (%p1104_p6)   ;;  %v5748_v10 = vld [vmem:[%s7193_s4 + $0x28] sm:$0xff] (%p1104_p6)  }
 0x16a   : > { %v818_v19 = vadd.f32 %v817_v26, %v5529_v17  ;;  %v953_v35 = vadd.f32 %v952_v29, %v890_v33  ;;  %v3770_v33 = vunpack.c.h.bf16 (%p1104_p6), %v5725_v63  ;;  %v3773_v26 = vunpack.c.l.bf16 (%p1104_p6), %v5730_v9 }
 0x16b   : > { %v3774_v29 = vunpack.c.h.bf16 (%p1104_p6), %v5730_v9 }
 0x16c   : > { %v819_v15 = vadd.f32 %v818_v19, %v5549_v53  ;;  %v954_v34 = vadd.f32 %v953_v35, %v891_v42  ;;  %v3777_v42 = vunpack.c.l.bf16 (%p1104_p6), %v5735_v23  ;;  %v5757_v19 = vld [vmem:[%s7193_s4 + $0x30] sm:$0xff] (%p1104_p6)   ;;  %v5762_v35 = vld [vmem:[%s7193_s4 + $0x38] sm:$0xff] (%p1104_p6)  }
 0x16e   : > { %v820_v20 = vadd.f32 %v819_v15, %v5571_v44  ;;  %v955_v31 = vadd.f32 %v954_v34, %v892_v48  ;;  %v3778_v15 = vunpack.c.h.bf16 (%p1104_p6), %v5735_v23  ;;  %v5768_v34 = vld [vmem:[%s7193_s4 + $0x40] sm:$0xff] (%p1104_p6)  }
 0x170   : > { %v821_v18 = vadd.f32 %v820_v20, %v5587_v43  ;;  %v956_v27 = vadd.f32 %v955_v31, %v893_v14  ;;  %v5773_v14 = vld [vmem:[%s7193_s4 + $0x48] sm:$0xff] (%p1104_p6)   ;;  %v3781_v20 = vunpack.c.l.bf16 (%p1104_p6), %v5743_v12  ;;  %v3782_v31 = vunpack.c.h.bf16 (%p1104_p6), %v5743_v12 }
 0x172   : > { %v957_v17 = vadd.f32 %v956_v27, %v894_v49  ;;  %v822_v51 = vadd.f32 %v821_v18, %v5607_v58  ;;  %v3785_v18 = vunpack.c.l.bf16 (%p1104_p6), %v5748_v10  ;;  %v3786_v49 = vunpack.c.h.bf16 (%p1104_p6), %v5748_v10  ;;  %v5782_v27 = vld [vmem:[%s7193_s4 + $0x50] sm:$0xff] (%p1104_p6)  }
 0x174   : > { %v958_v53 = vadd.f32 %v957_v17, %v895_v38  ;;  %v823_v32 = vadd.f32 %v822_v51, %v5621_v8  ;;  %v762_v8 = vld [vmem:[#allocation2] sm:$0x1]  ;;  %v3789_v51 = vunpack.c.l.bf16 (%p1104_p6), %v5757_v19  ;;  %v3790_v38 = vunpack.c.h.bf16 (%p1104_p6), %v5757_v19 }
 0x176   : > { %v959_v44 = vadd.f32 %v958_v53, %v896_v39  ;;  %v824_v54 = vadd.f32 %v823_v32, %v5638_v25  ;;  %v3793_v53 = vunpack.c.l.bf16 (%p1104_p6), %v5762_v35  ;;  %v5790_v32 = vld [vmem:[%s7193_s4 + $0x58] sm:$0xff] (%p1104_p6)   ;;  %v5795_v39 = vld [vmem:[%s7193_s4 + $0x60] sm:$0xff] (%p1104_p6)  }
 0x178   : > { %v960_v43 = vadd.f32 %v959_v44, %v897_v46  ;;  %v825_v41 = vadd.f32 %v824_v54, %v759_v30  ;;  %v3794_v54 = vunpack.c.h.bf16 (%p1104_p6), %v5762_v35  ;;  %v3797_v46 = vunpack.c.l.bf16 (%p1104_p6), %v5768_v34 }
 0x17a   : > { %v826_v52 = vrot.slane %v825_v41, 4  ;;  %v961_v57 = vadd.f32 %v960_v43, %v898_v55  ;;  %v3798_v43 = vunpack.c.h.bf16 (%p1104_p6), %v5768_v34  ;;  %v5810_v55 = vld [vmem:[%s7193_s4 + $0x68] sm:$0xff] (%p1104_p6)  }
 0x17c   : > { %v827_v47 = vadd.f32 %v826_v52, %v825_v41  ;;  %v962_v45 = vrot.slane %v961_v57, 4  ;;  %v3801_v41 = vunpack.c.l.bf16 (%p1104_p6), %v5773_v14  ;;  %v5815_v52 = vld [vmem:[%s7193_s4 + $0x70] sm:$0xff] (%p1104_p6)  }
 0x17e   : > { %v828_v58 = vrot.slane %v827_v47, 2  ;;  %v963_v11 = vadd.f32 %v962_v45, %v961_v57  ;;  %v1116_v57 = vld [vmem:[%s7191_s2] sm:$0x1] (%p1104_p6)  ;;  %v3802_v45 = vunpack.c.h.bf16 (%p1104_p6), %v5773_v14 }
 0x180   : > { %v829_v37 = vadd.f32 %v828_v58, %v827_v47  ;;  %v964_v62 = vrot.slane %v963_v11, 2  ;;  %v3805_v58 = vunpack.c.l.bf16 (%p1104_p6), %v5782_v27 }
 0x182   : > { %v830_v50 = vrot.slane %v829_v37, 1  ;;  %v965_v0 = vadd.f32 %v964_v62, %v963_v11  ;;  %v3806_v11 = vunpack.c.h.bf16 (%p1104_p6), %v5782_v27  ;;  %v3809_v62 = vunpack.c.l.bf16 (%p1104_p6), %v5790_v32 }
 0x184   : > { %v831_v2 = vadd.f32 %v830_v50, %v829_v37  ;;  %v966_v36 = vrot.slane %v965_v0, 1  ;;  %v5826_v37 = vld [vmem:[%s7193_s4 + $0x78] sm:$0xff] (%p1104_p6)   ;;  %v3810_v50 = vunpack.c.h.bf16 (%p1104_p6), %v5790_v32 }
 0x186   : > { %v832_v1 = vadd.f32 %v831_v2, %v762_v8  ;;  %v967_v60 = vadd.f32 %v966_v36, %v965_v0  ;;  %1108 = sbr.rel (!%p1104_p6) target bundleno = 718 (0x2ce), region = 44  ;;  %v3813_v0 = vunpack.c.l.bf16 (%p1104_p6), %v5795_v39  ;;  %v3814_v8 = vunpack.c.h.bf16 (%p1104_p6), %v5795_v39  ;;  %v5835_v2 = vld [vmem:[%s7193_s4 + $0x80] sm:$0xff] (%p1104_p6)   ;;  %v5840_v36 = vld [vmem:[%s7193_s4 + $0x88] sm:$0xff] (%p1104_p6)  }
 0x188   : > { %833 = vst [vmem:[#allocation2] sm:$0x1] %v832_v1  ;;  %v968_v25 = vadd.f32 %v967_v60, %v834_v7  ;;  %v3817_v1 = vunpack.c.l.bf16 (%p1104_p6), %v5810_v55  ;;  %v3818_v60 = vunpack.c.h.bf16 (%p1104_p6), %v5810_v55 }
 0x18a   : > { %969 = vst [vmem:[#allocation3] sm:$0x1] %v968_v25  ;;  %v3821_v25 = vunpack.c.l.bf16 (%p1104_p6), %v5815_v52 }
 0x18f   : > { %v1109_v30 = vld [vmem:[#allocation2] sm:$0x1] }
 0x190   : > { %v5713_v24 = vmul.f32 0.00048828125, %v1109_v30  ;;  %v5850_v30 = vld [vmem:[%s7193_s4 + $0x90] sm:$0xff]  }
 0x191   : > { %v1111_v5 = vld [vmem:[#allocation3] sm:$0x1] }
 0x192   : > { %v1112_v61 = vmul.f32 0.00048828125, %v1111_v5  ;;  %v1113_v4 = vmul.f32 %v5713_v24, %v5713_v24 }
 0x194   : > { %v1114_v3 = vsub.f32 %v1112_v61, %v1113_v4  ;;  %v3822_v61 = vunpack.c.h.bf16 %v5815_v52  ;;  %v3825_v4 = vunpack.c.l.bf16 %v5826_v37  ;;  %v7196_v52 = vunpack.c.h.bf16 %v5826_v37 }
 0x195   : > { %v7198_v37 = vunpack.c.h.bf16 %v5835_v2 }
 0x196   : > { %v1115_v59 = vmax.f32 %v1114_v3, 0.0 }
 0x198   : > { %v1117_v56 = vadd.f32 1e-05, %v1115_v59  ;;  %v5858_v59 = vld [vmem:[%s7193_s4 + $0x98] sm:$0xff]  }
 0x19a   : > { %5237 = vrsqrt.f32 %v1117_v56  ;;  %vm1124_vm1 = vweird.f32 %v1117_v56 }
 0x1a0   : > { %v5238_v40 = vpop.eup %5237 }
 0x1a1   : > { %v1119_v16 = vmul.f32 %v5238_v40, %v1117_v56  ;;  %vm1125_vm2 = vweird.f32 %v5238_v40  ;;  %v1129_v56 = vld [vmem:[%s7192_s3] sm:$0x1] }
 0x1a2   : > { %vm5799_vm3 = vmor %vm1124_vm1, %vm1125_vm2 }
 0x1a3   : > { %v1120_v21 = vmul.f32 %v5238_v40, %v1119_v16 }
 0x1a5   : > { %v1121_v48 = vmul.f32 0.5, %v1120_v21 }
 0x1a7   : > { %v1122_v17 = vsub.f32 1.5, %v1121_v48  ;;  %v5870_v48 = vld [vmem:[%s7193_s4 + $0xa0] sm:$0xff]  }
 0x1a9   : > { %v1123_v47 = vmul.f32 %v5238_v40, %v1122_v17 }
 0x1ab   : > { %v1127_v7 = vsel %vm5799_vm3, %v5238_v40, %v1123_v47 }
 0x1ac   : > { %v1128_v5 = vmul.f32 %v1127_v7, %v1116_v57  ;;  %v3837_v57 = vunpack.c.l.bf16 %v5850_v30 }
 0x1ae   : > { %v1130_v17 = vmul.f32 %v1128_v5, %v5713_v24  ;;  %v5873_v44 = vperm.slane %v1128_v5, 0 }
 0x1b0   : > { %v1131_v40 = vsub.f32 %v1129_v56, %v1130_v17  ;;  %v1263_v3 = vmul.f32 %v3765_v6, %v5873_v44  ;;  %v1264_v24 = vmul.f32 %v3766_v13, %v5873_v44  ;;  %v1265_v5 = vmul.f32 %v3769_v28, %v5873_v44 }
 0x1b1   : > { %v1266_v16 = vmul.f32 %v3770_v33, %v5873_v44  ;;  %v1267_v56 = vmul.f32 %v3773_v26, %v5873_v44  ;;  %v1268_v6 = vmul.f32 %v3774_v29, %v5873_v44  ;;  %v1269_v22 = vmul.f32 %v3777_v42, %v5873_v44 }
 0x1b2   : > { %v5902_v13 = vperm.slane %v1131_v40, 0  ;;  %v1270_v28 = vmul.f32 %v3778_v15, %v5873_v44  ;;  %v1271_v63 = vmul.f32 %v3781_v20, %v5873_v44  ;;  %v1272_v33 = vmul.f32 %v3782_v31, %v5873_v44 }
 0x1b3   : > { %v1273_v9 = vmul.f32 %v3785_v18, %v5873_v44  ;;  %v1274_v26 = vmul.f32 %v3786_v49, %v5873_v44  ;;  %v1275_v29 = vmul.f32 %v3789_v51, %v5873_v44  ;;  %v1276_v23 = vmul.f32 %v3790_v38, %v5873_v44 }
 0x1b4   : > { %v1330_v42 = vadd.f32 %v5902_v13, %v1263_v3  ;;  %v1331_v15 = vadd.f32 %v5902_v13, %v1264_v24  ;;  %v1332_v20 = vadd.f32 %v5902_v13, %v1265_v5  ;;  %v1333_v12 = vadd.f32 %v5902_v13, %v1266_v16 }
 0x1b5   : > { %v1334_v31 = vadd.f32 %v5902_v13, %v1267_v56  ;;  %v1335_v18 = vadd.f32 %v5902_v13, %v1268_v6  ;;  %v1336_v40 = vadd.f32 %v5902_v13, %v1269_v22  ;;  %v1337_v10 = vadd.f32 %v5902_v13, %v1270_v28 }
 0x1b6   : > { %v1394_v49 = vmax.f32 %v1330_v42, 0.0  ;;  %v1395_v51 = vmax.f32 %v1331_v15, 0.0  ;;  %v1396_v17 = vmax.f32 %v1332_v20, 0.0  ;;  %v1397_v38 = vmax.f32 %v1333_v12, 0.0 }
 0x1b7   : > { %v1398_v19 = vmax.f32 %v1334_v31, 0.0  ;;  %v1399_v3 = vmax.f32 %v1335_v18, 0.0  ;;  %v1400_v21 = vmax.f32 %v1336_v40, 0.0  ;;  %v1401_v24 = vmax.f32 %v1337_v10, 0.0 }
 0x1b8   : > { %v3894_v7 = vpack.c.bf16 %v1395_v51, %v1394_v49  ;;  %v3899_v5 = vpack.c.bf16 %v1397_v38, %v1396_v17  ;;  %v1338_v16 = vadd.f32 %v5902_v13, %v1271_v63  ;;  %v1339_v56 = vadd.f32 %v5902_v13, %v1272_v33 }
 0x1b9   : > { %v3904_v47 = vpack.c.bf16 %v1399_v3, %v1398_v19  ;;  %v3909_v6 = vpack.c.bf16 %v1401_v24, %v1400_v21  ;;  %v1340_v22 = vadd.f32 %v5902_v13, %v1273_v9  ;;  %v1341_v28 = vadd.f32 %v5902_v13, %v1274_v26 }
 0x1ba   : > { %3895 = vst [vmem:[%s7193_s4] sm:$0xff] %v3894_v7   ;;  %v1402_v42 = vmax.f32 %v1338_v16, 0.0  ;;  %v1403_v15 = vmax.f32 %v1339_v56, 0.0  ;;  %v1342_v20 = vadd.f32 %v5902_v13, %v1275_v29  ;;  %v1343_v12 = vadd.f32 %v5902_v13, %v1276_v23 }
 0x1bb   : > { %4977 = vst [vmem:[%s7193_s4 + $0x8] sm:$0xff] %v3899_v5   ;;  %v1404_v19 = vmax.f32 %v1340_v22, 0.0  ;;  %v1405_v21 = vmax.f32 %v1341_v28, 0.0  ;;  %v1277_v63 = vmul.f32 %v3793_v53, %v5873_v44  ;;  %v1278_v7 = vmul.f32 %v3794_v54, %v5873_v44 }
 0x1bc   : > { %4978 = vst [vmem:[%s7193_s4 + $0x10] sm:$0xff] %v3904_v47   ;;  %v3914_v33 = vpack.c.bf16 %v1403_v15, %v1402_v42  ;;  %v1406_v9 = vmax.f32 %v1342_v20, 0.0  ;;  %v1407_v26 = vmax.f32 %v1343_v12, 0.0  ;;  %v1279_v29 = vmul.f32 %v3797_v46, %v5873_v44 }
 0x1bd   : > { %4979 = vst [vmem:[%s7193_s4 + $0x18] sm:$0xff] %v3909_v6   ;;  %v3919_v53 = vpack.c.bf16 %v1405_v21, %v1404_v19  ;;  %v1344_v23 = vadd.f32 %v5902_v13, %v1277_v63  ;;  %v1345_v35 = vadd.f32 %v5902_v13, %v1278_v7  ;;  %v1280_v54 = vmul.f32 %v3798_v43, %v5873_v44 }
 0x1be   : > { %4980 = vst [vmem:[%s7193_s4 + $0x20] sm:$0xff] %v3914_v33   ;;  %v3924_v47 = vpack.c.bf16 %v1407_v26, %v1406_v9  ;;  %v1346_v46 = vadd.f32 %v5902_v13, %v1279_v29  ;;  %v1281_v31 = vmul.f32 %v3801_v41, %v5873_v44  ;;  %v1282_v18 = vmul.f32 %v3802_v45, %v5873_v44 }
 0x1bf   : > { %4981 = vst [vmem:[%s7193_s4 + $0x28] sm:$0xff] %v3919_v53   ;;  %v1408_v34 = vmax.f32 %v1344_v23, 0.0  ;;  %v1409_v43 = vmax.f32 %v1345_v35, 0.0  ;;  %v1347_v40 = vadd.f32 %v5902_v13, %v1280_v54  ;;  %v1283_v10 = vmul.f32 %v3805_v58, %v5873_v44 }
 0x1c0   : > { %4982 = vst [vmem:[%s7193_s4 + $0x30] sm:$0xff] %v3924_v47   ;;  %v1410_v41 = vmax.f32 %v1346_v46, 0.0  ;;  %v1348_v14 = vadd.f32 %v5902_v13, %v1281_v31  ;;  %v1349_v45 = vadd.f32 %v5902_v13, %v1282_v18  ;;  %v1284_v49 = vmul.f32 %v3806_v11, %v5873_v44 }
 0x1c1   : > { %v3929_v51 = vpack.c.bf16 %v1409_v43, %v1408_v34  ;;  %v1411_v17 = vmax.f32 %v1347_v40, 0.0  ;;  %v1350_v38 = vadd.f32 %v5902_v13, %v1283_v10  ;;  %v1285_v58 = vmul.f32 %v3809_v62, %v5873_v44 }
 0x1c2   : > { %v1412_v3 = vmax.f32 %v1348_v14, 0.0  ;;  %v1413_v24 = vmax.f32 %v1349_v45, 0.0  ;;  %v1351_v5 = vadd.f32 %v5902_v13, %v1284_v49  ;;  %v1286_v16 = vmul.f32 %v3810_v50, %v5873_v44 }
 0x1c3   : > { %4983 = vst [vmem:[%s7193_s4 + $0x38] sm:$0xff] %v3929_v51   ;;  %v3934_v27 = vpack.c.bf16 %v1411_v17, %v1410_v41  ;;  %v1414_v11 = vmax.f32 %v1350_v38, 0.0  ;;  %v1352_v56 = vadd.f32 %v5902_v13, %v1285_v58  ;;  %v1287_v62 = vmul.f32 %v3813_v0, %v5873_v44 }
 0x1c4   : > { %v3939_v6 = vpack.c.bf16 %v1413_v24, %v1412_v3  ;;  %v1415_v22 = vmax.f32 %v1351_v5, 0.0  ;;  %v1353_v28 = vadd.f32 %v5902_v13, %v1286_v16  ;;  %v1288_v32 = vmul.f32 %v3814_v8, %v5873_v44 }
 0x1c5   : > { %4984 = vst [vmem:[%s7193_s4 + $0x40] sm:$0xff] %v3934_v27   ;;  %v1416_v50 = vmax.f32 %v1352_v56, 0.0  ;;  %v1354_v42 = vadd.f32 %v5902_v13, %v1287_v62  ;;  %v1289_v15 = vmul.f32 %v3817_v1, %v5873_v44  ;;  %v1290_v0 = vmul.f32 %v3818_v60, %v5873_v44 }
 0x1c6   : > { %4985 = vst [vmem:[%s7193_s4 + $0x48] sm:$0xff] %v3939_v6   ;;  %v3944_v39 = vpack.c.bf16 %v1415_v22, %v1414_v11  ;;  %v1417_v8 = vmax.f32 %v1353_v28, 0.0  ;;  %v1355_v20 = vadd.f32 %v5902_v13, %v1288_v32  ;;  %v1291_v12 = vmul.f32 %v3821_v25, %v5873_v44  ;;  %v4966_v6 = vld [vmem:[%s7193_s4 + $0xa8] sm:$0xff]  }
 0x1c7   : > { %v1418_v19 = vmax.f32 %v1354_v42, 0.0  ;;  %v1356_v21 = vadd.f32 %v5902_v13, %v1289_v15  ;;  %v1357_v1 = vadd.f32 %v5902_v13, %v1290_v0  ;;  %v1292_v55 = vmul.f32 %v3822_v61, %v5873_v44 }
 0x1c8   : > { %4986 = vst [vmem:[%s7193_s4 + $0x50] sm:$0xff] %v3944_v39   ;;  %v3949_v60 = vpack.c.bf16 %v1417_v8, %v1416_v50  ;;  %v1419_v63 = vmax.f32 %v1355_v20, 0.0  ;;  %v1358_v7 = vadd.f32 %v5902_v13, %v1291_v12  ;;  %v1293_v25 = vmul.f32 %v3825_v4, %v5873_v44 }
 0x1c9   : > { %v1420_v33 = vmax.f32 %v1356_v21, 0.0  ;;  %v1421_v9 = vmax.f32 %v1357_v1, 0.0  ;;  %v1359_v26 = vadd.f32 %v5902_v13, %v1292_v55  ;;  %v1294_v61 = vmul.f32 %v7196_v52, %v5873_v44  ;;  %v4968_v55 = vld [vmem:[%s7193_s4 + $0xb8] sm:$0xff]   ;;  %v4969_v52 = vld [vmem:[%s7193_s4 + $0xc0] sm:$0xff]  }
 0x1ca   : > { %4987 = vst [vmem:[%s7193_s4 + $0x58] sm:$0xff] %v3949_v60   ;;  %v3954_v29 = vpack.c.bf16 %v1419_v63, %v1418_v19  ;;  %v1422_v53 = vmax.f32 %v1358_v7, 0.0  ;;  %v1360_v23 = vadd.f32 %v5902_v13, %v1293_v25  ;;  %v7197_v35 = vunpack.c.l.bf16 %v5835_v2 }
 0x1cb   : > { %v3959_v54 = vpack.c.bf16 %v1421_v9, %v1420_v33  ;;  %v1423_v47 = vmax.f32 %v1359_v26, 0.0  ;;  %v1361_v46 = vadd.f32 %v5902_v13, %v1294_v61  ;;  %v1296_v31 = vmul.f32 %v7198_v37, %v5873_v44 }
 0x1cc   : > { %v1295_v4 = vmul.f32 %v7197_v35, %v5873_v44  ;;  %4988 = vst [vmem:[%s7193_s4 + $0x60] sm:$0xff] %v3954_v29   ;;  %v1424_v18 = vmax.f32 %v1360_v23, 0.0  ;;  %v7199_v43 = vunpack.c.l.bf16 %v5840_v36  ;;  %v7200_v10 = vunpack.c.h.bf16 %v5840_v36 }
 0x1cd   : > { %4989 = vst [vmem:[%s7193_s4 + $0x68] sm:$0xff] %v3959_v54   ;;  %v3964_v2 = vpack.c.bf16 %v1423_v47, %v1422_v53  ;;  %v1425_v14 = vmax.f32 %v1361_v46, 0.0  ;;  %v1363_v45 = vadd.f32 %v5902_v13, %v1296_v31  ;;  %v1299_v49 = vmul.f32 %v3837_v57, %v5873_v44 }
 0x1ce   : > { %v1362_v34 = vadd.f32 %v5902_v13, %v1295_v4  ;;  %v1297_v40 = vmul.f32 %v7199_v43, %v5873_v44  ;;  %v1298_v41 = vmul.f32 %v7200_v10, %v5873_v44  ;;  %v7201_v36 = vunpack.c.h.bf16 %v5850_v30 }
 0x1cf   : > { %4990 = vst [vmem:[%s7193_s4 + $0x70] sm:$0xff] %v3964_v2   ;;  %v3969_v3 = vpack.c.bf16 %v1425_v14, %v1424_v18  ;;  %v1427_v24 = vmax.f32 %v1363_v45, 0.0  ;;  %v1366_v5 = vadd.f32 %v5902_v13, %v1299_v49  ;;  %v7202_v57 = vunpack.c.l.bf16 %v5858_v59 }
 0x1d0   : > { %v1426_v51 = vmax.f32 %v1362_v34, 0.0  ;;  %v1364_v17 = vadd.f32 %v5902_v13, %v1297_v40  ;;  %v1365_v38 = vadd.f32 %v5902_v13, %v1298_v41  ;;  %v1300_v58 = vmul.f32 %v7201_v36, %v5873_v44  ;;  %v4970_v34 = vld [vmem:[%s7193_s4 + $0xc8] sm:$0xff]  }
 0x1d1   : > { %v1301_v16 = vmul.f32 %v7202_v57, %v5873_v44  ;;  %v7203_v30 = vunpack.c.h.bf16 %v5858_v59  ;;  %4991 = vst [vmem:[%s7193_s4 + $0x78] sm:$0xff] %v3969_v3   ;;  %v1430_v28 = vmax.f32 %v1366_v5, 0.0  ;;  %v7204_v50 = vunpack.c.l.bf16 %v5870_v48  ;;  %v4967_v59 = vld [vmem:[%s7193_s4 + $0xb0] sm:$0xff]  }
 0x1d2   : > { %v1428_v27 = vmax.f32 %v1364_v17, 0.0  ;;  %v1429_v11 = vmax.f32 %v1365_v38, 0.0  ;;  %v1367_v56 = vadd.f32 %v5902_v13, %v1300_v58  ;;  %v3974_v22 = vpack.c.bf16 %v1427_v24, %v1426_v51  ;;  %v4971_v51 = vld [vmem:[%s7193_s4 + $0xd0] sm:$0xff]  }
 0x1d3   : > { %v1302_v62 = vmul.f32 %v7203_v30, %v5873_v44  ;;  %v1368_v32 = vadd.f32 %v5902_v13, %v1301_v16  ;;  %v1303_v42 = vmul.f32 %v7204_v50, %v5873_v44  ;;  %v7205_v8 = vunpack.c.h.bf16 %v5870_v48  ;;  %v4972_v16 = vld [vmem:[%s7193_s4 + $0xd8] sm:$0xff]  }
 0x1d4   : > { %v3979_v15 = vpack.c.bf16 %v1429_v11, %v1428_v27  ;;  %v1431_v0 = vmax.f32 %v1367_v56, 0.0  ;;  %4992 = vst [vmem:[%s7193_s4 + $0x80] sm:$0xff] %v3974_v22   ;;  %v3849_v21 = vunpack.c.l.bf16 %v4966_v6  ;;  %v3850_v1 = vunpack.c.h.bf16 %v4966_v6 }
 0x1d5   : > { %v1369_v39 = vadd.f32 %v5902_v13, %v1302_v62  ;;  %v1304_v20 = vmul.f32 %v7205_v8, %v5873_v44  ;;  %v1432_v12 = vmax.f32 %v1368_v32, 0.0  ;;  %v1370_v19 = vadd.f32 %v5902_v13, %v1303_v42  ;;  %v4973_v32 = vld [vmem:[%s7193_s4 + $0xe0] sm:$0xff]  }
 0x1d6   : > { %4993 = vst [vmem:[%s7193_s4 + $0x88] sm:$0xff] %v3979_v15   ;;  %v3984_v60 = vpack.c.bf16 %v1431_v0, %v1430_v28  ;;  %v3853_v7 = vunpack.c.l.bf16 %v4967_v59  ;;  %v1305_v33 = vmul.f32 %v3849_v21, %v5873_v44  ;;  %v1306_v9 = vmul.f32 %v3850_v1, %v5873_v44 }
 0x1d7   : > { %v1433_v48 = vmax.f32 %v1369_v39, 0.0  ;;  %v1371_v63 = vadd.f32 %v5902_v13, %v1304_v20  ;;  %v1434_v25 = vmax.f32 %v1370_v19, 0.0  ;;  %v3854_v26 = vunpack.c.h.bf16 %v4967_v59 }
 0x1d8   : > { %4994 = vst [vmem:[%s7193_s4 + $0x90] sm:$0xff] %v3984_v60   ;;  %v1307_v53 = vmul.f32 %v3853_v7, %v5873_v44  ;;  %v3857_v23 = vunpack.c.l.bf16 %v4968_v55  ;;  %v1372_v35 = vadd.f32 %v5902_v13, %v1305_v33  ;;  %v1373_v4 = vadd.f32 %v5902_v13, %v1306_v9 }
 0x1d9   : > { %v3989_v61 = vpack.c.bf16 %v1433_v48, %v1432_v12  ;;  %v1435_v29 = vmax.f32 %v1371_v63, 0.0  ;;  %v1308_v54 = vmul.f32 %v3854_v26, %v5873_v44  ;;  %v3858_v47 = vunpack.c.h.bf16 %v4968_v55  ;;  %v4974_v55 = vld [vmem:[%s7193_s4 + $0xe8] sm:$0xff]  }
 0x1da   : > { %v1374_v37 = vadd.f32 %v5902_v13, %v1307_v53  ;;  %v1309_v31 = vmul.f32 %v3857_v23, %v5873_v44  ;;  %v3861_v18 = vunpack.c.l.bf16 %v4969_v52  ;;  %v1436_v43 = vmax.f32 %v1372_v35, 0.0 }
 0x1db   : > { %4995 = vst [vmem:[%s7193_s4 + $0x98] sm:$0xff] %v3989_v61   ;;  %v3994_v46 = vpack.c.bf16 %v1435_v29, %v1434_v25  ;;  %v1437_v40 = vmax.f32 %v1373_v4, 0.0  ;;  %v1375_v10 = vadd.f32 %v5902_v13, %v1308_v54  ;;  %v1310_v41 = vmul.f32 %v3858_v47, %v5873_v44 }
 0x1dc   : > { %v1438_v2 = vmax.f32 %v1374_v37, 0.0  ;;  %v1376_v14 = vadd.f32 %v5902_v13, %v1309_v31  ;;  %v3862_v45 = vunpack.c.h.bf16 %v4969_v52  ;;  %v1311_v49 = vmul.f32 %v3861_v18, %v5873_v44  ;;  %v4975_v52 = vld [vmem:[%s7193_s4 + $0xf0] sm:$0xff]  }
 0x1dd   : > { %4996 = vst [vmem:[%s7193_s4 + $0xa0] sm:$0xff] %v3994_v46   ;;  %v3999_v17 = vpack.c.bf16 %v1437_v40, %v1436_v43  ;;  %v1439_v38 = vmax.f32 %v1375_v10, 0.0  ;;  %v1377_v36 = vadd.f32 %v5902_v13, %v1310_v41  ;;  %v3865_v58 = vunpack.c.l.bf16 %v4970_v34  ;;  %v4976_v46 = vld [vmem:[%s7193_s4 + $0xf8] sm:$0xff]  }
 0x1de   : > { %v1440_v3 = vmax.f32 %v1376_v14, 0.0  ;;  %v1312_v24 = vmul.f32 %v3862_v45, %v5873_v44  ;;  %v1378_v5 = vadd.f32 %v5902_v13, %v1311_v49  ;;  %v3866_v57 = vunpack.c.h.bf16 %v4970_v34 }
 0x1df   : > { %4997 = vst [vmem:[%s7193_s4 + $0xa8] sm:$0xff] %v3999_v17   ;;  %v4004_v27 = vpack.c.bf16 %v1439_v38, %v1438_v2  ;;  %v1441_v11 = vmax.f32 %v1377_v36, 0.0  ;;  %v1313_v56 = vmul.f32 %v3865_v58, %v5873_v44  ;;  %v3869_v30 = vunpack.c.l.bf16 %v4971_v51  ;;  %v5008_v2 = vld [vmem:[%s7193_s4 + $0x100] sm:$0xff]  }
 0x1e0   : > { %v1379_v62 = vadd.f32 %v5902_v13, %v1312_v24  ;;  %v1442_v6 = vmax.f32 %v1378_v5, 0.0  ;;  %v1314_v22 = vmul.f32 %v3866_v57, %v5873_v44  ;;  %v3870_v28 = vunpack.c.h.bf16 %v4971_v51 }
 0x1e1   : > { %4998 = vst [vmem:[%s7193_s4 + $0xb0] sm:$0xff] %v4004_v27   ;;  %v4009_v50 = vpack.c.bf16 %v1441_v11, %v1440_v3  ;;  %v1380_v42 = vadd.f32 %v5902_v13, %v1313_v56  ;;  %v1315_v59 = vmul.f32 %v3869_v30, %v5873_v44  ;;  %v3873_v15 = vunpack.c.l.bf16 %v4972_v16 }
 0x1e2   : > { %v1443_v0 = vmax.f32 %v1379_v62, 0.0  ;;  %v1381_v39 = vadd.f32 %v5902_v13, %v1314_v22  ;;  %v1316_v8 = vmul.f32 %v3870_v28, %v5873_v44  ;;  %v3874_v20 = vunpack.c.h.bf16 %v4972_v16  ;;  %v5009_v16 = vld [vmem:[%s7193_s4 + $0x108] sm:$0xff]  }
 0x1e3   : > { %4999 = vst [vmem:[%s7193_s4 + $0xb8] sm:$0xff] %v4009_v50   ;;  %v1444_v12 = vmax.f32 %v1380_v42, 0.0  ;;  %v1382_v19 = vadd.f32 %v5902_v13, %v1315_v59  ;;  %v1317_v21 = vmul.f32 %v3873_v15, %v5873_v44  ;;  %v3877_v1 = vunpack.c.l.bf16 %v4973_v32 }
 0x1e4   : > { %v4014_v60 = vpack.c.bf16 %v1443_v0, %v1442_v6  ;;  %v1445_v48 = vmax.f32 %v1381_v39, 0.0  ;;  %v1383_v63 = vadd.f32 %v5902_v13, %v1316_v8  ;;  %v1318_v7 = vmul.f32 %v3874_v20, %v5873_v44 }
 0x1e5   : > { %v1446_v25 = vmax.f32 %v1382_v19, 0.0  ;;  %v1384_v33 = vadd.f32 %v5902_v13, %v1317_v21  ;;  %v3878_v9 = vunpack.c.h.bf16 %v4973_v32  ;;  %v1319_v26 = vmul.f32 %v3877_v1, %v5873_v44  ;;  %v5010_v32 = vld [vmem:[%s7193_s4 + $0x110] sm:$0xff]  }
 0x1e6   : > { %5000 = vst [vmem:[%s7193_s4 + $0xc0] sm:$0xff] %v4014_v60   ;;  %v4019_v61 = vpack.c.bf16 %v1445_v48, %v1444_v12  ;;  %v1447_v29 = vmax.f32 %v1383_v63, 0.0  ;;  %v1385_v53 = vadd.f32 %v5902_v13, %v1318_v7  ;;  %v3881_v23 = vunpack.c.l.bf16 %v4974_v55  ;;  %v5011_v12 = vld [vmem:[%s7193_s4 + $0x118] sm:$0xff]  }
 0x1e7   : > { %v1448_v35 = vmax.f32 %v1384_v33, 0.0  ;;  %v1320_v4 = vmul.f32 %v3878_v9, %v5873_v44  ;;  %v1386_v54 = vadd.f32 %v5902_v13, %v1319_v26  ;;  %v3882_v47 = vunpack.c.h.bf16 %v4974_v55 }
 0x1e8   : > { %5001 = vst [vmem:[%s7193_s4 + $0xc8] sm:$0xff] %v4019_v61   ;;  %v4024_v37 = vpack.c.bf16 %v1447_v29, %v1446_v25  ;;  %v1449_v31 = vmax.f32 %v1385_v53, 0.0  ;;  %v1321_v18 = vmul.f32 %v3881_v23, %v5873_v44  ;;  %v3885_v34 = vunpack.c.l.bf16 %v4975_v52  ;;  %v5012_v25 = vld [vmem:[%s7193_s4 + $0x120] sm:$0xff]  }
 0x1e9   : > { %v1387_v43 = vadd.f32 %v5902_v13, %v1320_v4  ;;  %v1450_v40 = vmax.f32 %v1386_v54, 0.0  ;;  %v1322_v10 = vmul.f32 %v3882_v47, %v5873_v44  ;;  %v3886_v41 = vunpack.c.h.bf16 %v4975_v52 }
 0x1ea   : > { %5002 = vst [vmem:[%s7193_s4 + $0xd0] sm:$0xff] %v4024_v37   ;;  %v4029_v14 = vpack.c.bf16 %v1449_v31, %v1448_v35  ;;  %v1388_v45 = vadd.f32 %v5902_v13, %v1321_v18  ;;  %v1323_v49 = vmul.f32 %v3885_v34, %v5873_v44  ;;  %v3889_v51 = vunpack.c.l.bf16 %v4976_v46 }
 0x1eb   : > { %v1451_v17 = vmax.f32 %v1387_v43, 0.0  ;;  %v1389_v38 = vadd.f32 %v5902_v13, %v1322_v10  ;;  %v1324_v36 = vmul.f32 %v3886_v41, %v5873_v44  ;;  %v3890_v58 = vunpack.c.h.bf16 %v4976_v46  ;;  %v5013_v46 = vld [vmem:[%s7193_s4 + $0x128] sm:$0xff]  }
 0x1ec   : > { %5003 = vst [vmem:[%s7193_s4 + $0xd8] sm:$0xff] %v4029_v14   ;;  %v1452_v3 = vmax.f32 %v1388_v45, 0.0  ;;  %v1390_v24 = vadd.f32 %v5902_v13, %v1323_v49  ;;  %v1325_v5 = vmul.f32 %v3889_v51, %v5873_v44  ;;  %v4053_v57 = vunpack.c.l.bf16 %v5008_v2 }
 0x1ed   : > { %v4034_v27 = vpack.c.bf16 %v1451_v17, %v1450_v40  ;;  %v1453_v11 = vmax.f32 %v1389_v38, 0.0  ;;  %v1391_v56 = vadd.f32 %v5902_v13, %v1324_v36  ;;  %v1326_v30 = vmul.f32 %v3890_v58, %v5873_v44 }
 0x1ee   : > { %v1454_v62 = vmax.f32 %v1390_v24, 0.0  ;;  %v1392_v6 = vadd.f32 %v5902_v13, %v1325_v5  ;;  %v4054_v22 = vunpack.c.h.bf16 %v5008_v2  ;;  %v1715_v28 = vmul.f32 %v4053_v57, %v5873_v44  ;;  %v5014_v2 = vld [vmem:[%s7193_s4 + $0x130] sm:$0xff]  }
 0x1ef   : > { %5004 = vst [vmem:[%s7193_s4 + $0xe0] sm:$0xff] %v4034_v27   ;;  %v4039_v50 = vpack.c.bf16 %v1453_v11, %v1452_v3  ;;  %v1455_v42 = vmax.f32 %v1391_v56, 0.0  ;;  %v1393_v59 = vadd.f32 %v5902_v13, %v1326_v30  ;;  %v4057_v15 = vunpack.c.l.bf16 %v5009_v16  ;;  %v5015_v3 = vld [vmem:[%s7193_s4 + $0x138] sm:$0xff]  }
 0x1f0   : > { %v1456_v0 = vmax.f32 %v1392_v6, 0.0  ;;  %v1716_v39 = vmul.f32 %v4054_v22, %v5873_v44  ;;  %v1779_v8 = vadd.f32 %v1715_v28, %v5902_v13  ;;  %v4058_v20 = vunpack.c.h.bf16 %v5009_v16 }
 0x1f1   : > { %5005 = vst [vmem:[%s7193_s4 + $0xe8] sm:$0xff] %v4039_v50   ;;  %v4044_v19 = vpack.c.bf16 %v1455_v42, %v1454_v62  ;;  %v1457_v21 = vmax.f32 %v1393_v59, 0.0  ;;  %v1717_v1 = vmul.f32 %v4057_v15, %v5873_v44  ;;  %v4061_v55 = vunpack.c.l.bf16 %v5010_v32  ;;  %v5016_v62 = vld [vmem:[%s7193_s4 + $0x140] sm:$0xff]  }
 0x1f2   : > { %v1780_v60 = vadd.f32 %v1716_v39, %v5902_v13  ;;  %v1843_v48 = vmax.f32 %v1779_v8, 0.0  ;;  %v1718_v63 = vmul.f32 %v4058_v20, %v5873_v44  ;;  %v4062_v7 = vunpack.c.h.bf16 %v5010_v32 }
 0x1f3   : > { %5006 = vst [vmem:[%s7193_s4 + $0xf0] sm:$0xff] %v4044_v19   ;;  %v4049_v33 = vpack.c.bf16 %v1457_v21, %v1456_v0  ;;  %v1781_v9 = vadd.f32 %v1717_v1, %v5902_v13  ;;  %v1719_v26 = vmul.f32 %v4061_v55, %v5873_v44  ;;  %v4065_v52 = vunpack.c.l.bf16 %v5011_v12 }
 0x1f4   : > { %v1844_v61 = vmax.f32 %v1780_v60, 0.0  ;;  %v1782_v29 = vadd.f32 %v1718_v63, %v5902_v13  ;;  %v1720_v53 = vmul.f32 %v4062_v7, %v5873_v44  ;;  %v4066_v23 = vunpack.c.h.bf16 %v5011_v12  ;;  %v5017_v12 = vld [vmem:[%s7193_s4 + $0x148] sm:$0xff]  }
 0x1f5   : > { %5007 = vst [vmem:[%s7193_s4 + $0xf8] sm:$0xff] %v4049_v33   ;;  %v1845_v35 = vmax.f32 %v1781_v9, 0.0  ;;  %v1783_v4 = vadd.f32 %v1719_v26, %v5902_v13  ;;  %v1721_v54 = vmul.f32 %v4065_v52, %v5873_v44  ;;  %v4069_v47 = vunpack.c.l.bf16 %v5012_v25 }
 0x1f6   : > { %v4182_v37 = vpack.c.bf16 %v1844_v61, %v1843_v48  ;;  %v1846_v31 = vmax.f32 %v1782_v29, 0.0  ;;  %v1784_v18 = vadd.f32 %v1720_v53, %v5902_v13  ;;  %v1722_v34 = vmul.f32 %v4066_v23, %v5873_v44 }
 0x1f7   : > { %v1847_v43 = vmax.f32 %v1783_v4, 0.0  ;;  %v1785_v40 = vadd.f32 %v1721_v54, %v5902_v13  ;;  %v4070_v10 = vunpack.c.h.bf16 %v5012_v25  ;;  %v1723_v41 = vmul.f32 %v4069_v47, %v5873_v44  ;;  %v5018_v25 = vld [vmem:[%s7193_s4 + $0x150] sm:$0xff]  }
 0x1f8   : > { %5040 = vst [vmem:[%s7193_s4 + $0x100] sm:$0xff] %v4182_v37   ;;  %v4187_v14 = vpack.c.bf16 %v1846_v31, %v1845_v35  ;;  %v1848_v45 = vmax.f32 %v1784_v18, 0.0  ;;  %v1786_v49 = vadd.f32 %v1722_v34, %v5902_v13  ;;  %v4073_v51 = vunpack.c.l.bf16 %v5013_v46  ;;  %v5019_v35 = vld [vmem:[%s7193_s4 + $0x158] sm:$0xff]  }
 0x1f9   : > { %v1849_v17 = vmax.f32 %v1785_v40, 0.0  ;;  %v1724_v38 = vmul.f32 %v4070_v10, %v5873_v44  ;;  %v1787_v36 = vadd.f32 %v1723_v41, %v5902_v13  ;;  %v4074_v58 = vunpack.c.h.bf16 %v5013_v46 }
 0x1fa   : > { %5041 = vst [vmem:[%s7193_s4 + $0x108] sm:$0xff] %v4187_v14   ;;  %v4192_v24 = vpack.c.bf16 %v1848_v45, %v1847_v43  ;;  %v1850_v5 = vmax.f32 %v1786_v49, 0.0  ;;  %v1725_v57 = vmul.f32 %v4073_v51, %v5873_v44  ;;  %v4077_v16 = vunpack.c.l.bf16 %v5014_v2  ;;  %v5020_v43 = vld [vmem:[%s7193_s4 + $0x160] sm:$0xff]  }
 0x1fb   : > { %v1788_v27 = vadd.f32 %v1724_v38, %v5902_v13  ;;  %v1851_v11 = vmax.f32 %v1787_v36, 0.0  ;;  %v1726_v56 = vmul.f32 %v4074_v58, %v5873_v44  ;;  %v4078_v30 = vunpack.c.h.bf16 %v5014_v2 }
 0x1fc   : > { %5042 = vst [vmem:[%s7193_s4 + $0x110] sm:$0xff] %v4192_v24   ;;  %v4197_v6 = vpack.c.bf16 %v1850_v5, %v1849_v17  ;;  %v1789_v22 = vadd.f32 %v1725_v57, %v5902_v13  ;;  %v1727_v28 = vmul.f32 %v4077_v16, %v5873_v44  ;;  %v4081_v32 = vunpack.c.l.bf16 %v5015_v3 }
 0x1fd   : > { %v1852_v50 = vmax.f32 %v1788_v27, 0.0  ;;  %v1790_v42 = vadd.f32 %v1726_v56, %v5902_v13  ;;  %v1728_v59 = vmul.f32 %v4078_v30, %v5873_v44  ;;  %v4082_v15 = vunpack.c.h.bf16 %v5015_v3  ;;  %v5021_v3 = vld [vmem:[%s7193_s4 + $0x168] sm:$0xff]  }
 0x1fe   : > { %5043 = vst [vmem:[%s7193_s4 + $0x118] sm:$0xff] %v4197_v6   ;;  %v1853_v0 = vmax.f32 %v1789_v22, 0.0  ;;  %v1791_v39 = vadd.f32 %v1727_v28, %v5902_v13  ;;  %v1729_v8 = vmul.f32 %v4081_v32, %v5873_v44  ;;  %v4085_v20 = vunpack.c.l.bf16 %v5016_v62 }
 0x1ff   : > { %v4202_v19 = vpack.c.bf16 %v1852_v50, %v1851_v11  ;;  %v1854_v21 = vmax.f32 %v1790_v42, 0.0  ;;  %v1792_v1 = vadd.f32 %v1728_v59, %v5902_v13  ;;  %v1730_v55 = vmul.f32 %v4082_v15, %v5873_v44 }
 0x200   : > { %v1855_v60 = vmax.f32 %v1791_v39, 0.0  ;;  %v1793_v48 = vadd.f32 %v1729_v8, %v5902_v13  ;;  %v4086_v63 = vunpack.c.h.bf16 %v5016_v62  ;;  %v1731_v7 = vmul.f32 %v4085_v20, %v5873_v44  ;;  %v5022_v62 = vld [vmem:[%s7193_s4 + $0x170] sm:$0xff]  }
 0x201   : > { %5044 = vst [vmem:[%s7193_s4 + $0x120] sm:$0xff] %v4202_v19   ;;  %v4207_v33 = vpack.c.bf16 %v1854_v21, %v1853_v0  ;;  %v1856_v9 = vmax.f32 %v1792_v1, 0.0  ;;  %v1794_v26 = vadd.f32 %v1730_v55, %v5902_v13  ;;  %v4089_v52 = vunpack.c.l.bf16 %v5017_v12  ;;  %v5023_v0 = vld [vmem:[%s7193_s4 + $0x178] sm:$0xff]  }
 0x202   : > { %v1857_v61 = vmax.f32 %v1793_v48, 0.0  ;;  %v1732_v29 = vmul.f32 %v4086_v63, %v5873_v44  ;;  %v1795_v53 = vadd.f32 %v1731_v7, %v5902_v13  ;;  %v4090_v23 = vunpack.c.h.bf16 %v5017_v12 }
 0x203   : > { %5045 = vst [vmem:[%s7193_s4 + $0x128] sm:$0xff] %v4207_v33   ;;  %v4212_v4 = vpack.c.bf16 %v1856_v9, %v1855_v60  ;;  %v1858_v54 = vmax.f32 %v1794_v26, 0.0  ;;  %v1733_v47 = vmul.f32 %v4089_v52, %v5873_v44  ;;  %v4093_v46 = vunpack.c.l.bf16 %v5018_v25  ;;  %v5024_v60 = vld [vmem:[%s7193_s4 + $0x180] sm:$0xff]  }
 0x204   : > { %v1796_v37 = vadd.f32 %v1732_v29, %v5902_v13  ;;  %v1859_v31 = vmax.f32 %v1795_v53, 0.0  ;;  %v1734_v18 = vmul.f32 %v4090_v23, %v5873_v44  ;;  %v4094_v34 = vunpack.c.h.bf16 %v5018_v25 }
 0x205   : > { %5046 = vst [vmem:[%s7193_s4 + $0x130] sm:$0xff] %v4212_v4   ;;  %v4217_v40 = vpack.c.bf16 %v1858_v54, %v1857_v61  ;;  %v1797_v10 = vadd.f32 %v1733_v47, %v5902_v13  ;;  %v1735_v41 = vmul.f32 %v4093_v46, %v5873_v44  ;;  %v4097_v2 = vunpack.c.l.bf16 %v5019_v35 }
 0x206   : > { %v1860_v14 = vmax.f32 %v1796_v37, 0.0  ;;  %v1798_v45 = vadd.f32 %v1734_v18, %v5902_v13  ;;  %v1736_v49 = vmul.f32 %v4094_v34, %v5873_v44  ;;  %v4098_v51 = vunpack.c.h.bf16 %v5019_v35  ;;  %v5025_v35 = vld [vmem:[%s7193_s4 + $0x188] sm:$0xff]  }
 0x207   : > { %5047 = vst [vmem:[%s7193_s4 + $0x138] sm:$0xff] %v4217_v40   ;;  %v1861_v17 = vmax.f32 %v1797_v10, 0.0  ;;  %v1799_v38 = vadd.f32 %v1735_v41, %v5902_v13  ;;  %v1737_v36 = vmul.f32 %v4097_v2, %v5873_v44  ;;  %v4101_v58 = vunpack.c.l.bf16 %v5020_v43 }
 0x208   : > { %v4222_v24 = vpack.c.bf16 %v1860_v14, %v1859_v31  ;;  %v1862_v5 = vmax.f32 %v1798_v45, 0.0  ;;  %v1800_v57 = vadd.f32 %v1736_v49, %v5902_v13  ;;  %v1738_v16 = vmul.f32 %v4098_v51, %v5873_v44 }
 0x209   : > { %v1863_v27 = vmax.f32 %v1799_v38, 0.0  ;;  %v1801_v11 = vadd.f32 %v1737_v36, %v5902_v13  ;;  %v4102_v56 = vunpack.c.h.bf16 %v5020_v43  ;;  %v1739_v30 = vmul.f32 %v4101_v58, %v5873_v44  ;;  %v5026_v43 = vld [vmem:[%s7193_s4 + $0x190] sm:$0xff]  }
 0x20a   : > { %5048 = vst [vmem:[%s7193_s4 + $0x140] sm:$0xff] %v4222_v24   ;;  %v4227_v6 = vpack.c.bf16 %v1862_v5, %v1861_v17  ;;  %v1864_v22 = vmax.f32 %v1800_v57, 0.0  ;;  %v1802_v28 = vadd.f32 %v1738_v16, %v5902_v13  ;;  %v4105_v32 = vunpack.c.l.bf16 %v5021_v3  ;;  %v5027_v17 = vld [vmem:[%s7193_s4 + $0x198] sm:$0xff]  }
 0x20b   : > { %v1865_v50 = vmax.f32 %v1801_v11, 0.0  ;;  %v1740_v42 = vmul.f32 %v4102_v56, %v5873_v44  ;;  %v1803_v59 = vadd.f32 %v1739_v30, %v5902_v13  ;;  %v4106_v15 = vunpack.c.h.bf16 %v5021_v3 }
 0x20c   : > { %5049 = vst [vmem:[%s7193_s4 + $0x148] sm:$0xff] %v4227_v6   ;;  %v4232_v39 = vpack.c.bf16 %v1864_v22, %v1863_v27  ;;  %v1866_v8 = vmax.f32 %v1802_v28, 0.0  ;;  %v1741_v20 = vmul.f32 %v4105_v32, %v5873_v44  ;;  %v4109_v12 = vunpack.c.l.bf16 %v5022_v62  ;;  %v5028_v27 = vld [vmem:[%s7193_s4 + $0x1a0] sm:$0xff]  }
 0x20d   : > { %v1804_v19 = vadd.f32 %v1740_v42, %v5902_v13  ;;  %v1867_v21 = vmax.f32 %v1803_v59, 0.0  ;;  %v1742_v1 = vmul.f32 %v4106_v15, %v5873_v44  ;;  %v4110_v55 = vunpack.c.h.bf16 %v5022_v62 }
 0x20e   : > { %5050 = vst [vmem:[%s7193_s4 + $0x150] sm:$0xff] %v4232_v39   ;;  %v4237_v48 = vpack.c.bf16 %v1866_v8, %v1865_v50  ;;  %v1805_v63 = vadd.f32 %v1741_v20, %v5902_v13  ;;  %v1743_v7 = vmul.f32 %v4109_v12, %v5873_v44  ;;  %v4113_v25 = vunpack.c.l.bf16 %v5023_v0 }
 0x20f   : > { %v1868_v33 = vmax.f32 %v1804_v19, 0.0  ;;  %v1806_v9 = vadd.f32 %v1742_v1, %v5902_v13  ;;  %v1744_v26 = vmul.f32 %v4110_v55, %v5873_v44  ;;  %v4114_v52 = vunpack.c.h.bf16 %v5023_v0  ;;  %v5029_v0 = vld [vmem:[%s7193_s4 + $0x1a8] sm:$0xff]  }
 0x210   : > { %5051 = vst [vmem:[%s7193_s4 + $0x158] sm:$0xff] %v4237_v48   ;;  %v1869_v61 = vmax.f32 %v1805_v63, 0.0  ;;  %v1807_v29 = vadd.f32 %v1743_v7, %v5902_v13  ;;  %v1745_v53 = vmul.f32 %v4113_v25, %v5873_v44  ;;  %v4117_v23 = vunpack.c.l.bf16 %v5024_v60 }
 0x211   : > { %v4242_v4 = vpack.c.bf16 %v1868_v33, %v1867_v21  ;;  %v1870_v54 = vmax.f32 %v1806_v9, 0.0  ;;  %v1808_v47 = vadd.f32 %v1744_v26, %v5902_v13  ;;  %v1746_v46 = vmul.f32 %v4114_v52, %v5873_v44 }
 0x212   : > { %v1871_v37 = vmax.f32 %v1807_v29, 0.0  ;;  %v1809_v31 = vadd.f32 %v1745_v53, %v5902_v13  ;;  %v4118_v18 = vunpack.c.h.bf16 %v5024_v60  ;;  %v1747_v34 = vmul.f32 %v4117_v23, %v5873_v44  ;;  %v5030_v60 = vld [vmem:[%s7193_s4 + $0x1b0] sm:$0xff]  }
 0x213   : > { %5052 = vst [vmem:[%s7193_s4 + $0x160] sm:$0xff] %v4242_v4   ;;  %v4247_v40 = vpack.c.bf16 %v1870_v54, %v1869_v61  ;;  %v1872_v10 = vmax.f32 %v1808_v47, 0.0  ;;  %v1810_v41 = vadd.f32 %v1746_v46, %v5902_v13  ;;  %v4121_v2 = vunpack.c.l.bf16 %v5025_v35  ;;  %v5031_v61 = vld [vmem:[%s7193_s4 + $0x1b8] sm:$0xff]  }
 0x214   : > { %v1873_v14 = vmax.f32 %v1809_v31, 0.0  ;;  %v1748_v45 = vmul.f32 %v4118_v18, %v5873_v44  ;;  %v1811_v49 = vadd.f32 %v1747_v34, %v5902_v13  ;;  %v4122_v51 = vunpack.c.h.bf16 %v5025_v35 }
 0x215   : > { %5053 = vst [vmem:[%s7193_s4 + $0x168] sm:$0xff] %v4247_v40   ;;  %v4252_v38 = vpack.c.bf16 %v1872_v10, %v1871_v37  ;;  %v1874_v36 = vmax.f32 %v1810_v41, 0.0  ;;  %v1749_v58 = vmul.f32 %v4121_v2, %v5873_v44  ;;  %v4125_v3 = vunpack.c.l.bf16 %v5026_v43  ;;  %v5032_v37 = vld [vmem:[%s7193_s4 + $0x1c0] sm:$0xff]  }
 0x216   : > { %v1812_v24 = vadd.f32 %v1748_v45, %v5902_v13  ;;  %v1875_v5 = vmax.f32 %v1811_v49, 0.0  ;;  %v1750_v57 = vmul.f32 %v4122_v51, %v5873_v44  ;;  %v4126_v16 = vunpack.c.h.bf16 %v5026_v43 }
 0x217   : > { %5054 = vst [vmem:[%s7193_s4 + $0x170] sm:$0xff] %v4252_v38   ;;  %v4257_v11 = vpack.c.bf16 %v1874_v36, %v1873_v14  ;;  %v1813_v56 = vadd.f32 %v1749_v58, %v5902_v13  ;;  %v1751_v30 = vmul.f32 %v4125_v3, %v5873_v44  ;;  %v4129_v62 = vunpack.c.l.bf16 %v5027_v17 }
 0x218   : > { %v1876_v6 = vmax.f32 %v1812_v24, 0.0  ;;  %v1814_v22 = vadd.f32 %v1750_v57, %v5902_v13  ;;  %v1752_v28 = vmul.f32 %v4126_v16, %v5873_v44  ;;  %v4130_v32 = vunpack.c.h.bf16 %v5027_v17  ;;  %v5033_v17 = vld [vmem:[%s7193_s4 + $0x1c8] sm:$0xff]  }
 0x219   : > { %5055 = vst [vmem:[%s7193_s4 + $0x178] sm:$0xff] %v4257_v11   ;;  %v1877_v50 = vmax.f32 %v1813_v56, 0.0  ;;  %v1815_v42 = vadd.f32 %v1751_v30, %v5902_v13  ;;  %v1753_v59 = vmul.f32 %v4129_v62, %v5873_v44  ;;  %v4133_v15 = vunpack.c.l.bf16 %v5028_v27 }
 0x21a   : > { %v4262_v39 = vpack.c.bf16 %v1876_v6, %v1875_v5  ;;  %v1878_v8 = vmax.f32 %v1814_v22, 0.0  ;;  %v1816_v20 = vadd.f32 %v1752_v28, %v5902_v13  ;;  %v1754_v12 = vmul.f32 %v4130_v32, %v5873_v44 }
 0x21b   : > { %v1879_v19 = vmax.f32 %v1815_v42, 0.0  ;;  %v1817_v21 = vadd.f32 %v1753_v59, %v5902_v13  ;;  %v4134_v1 = vunpack.c.h.bf16 %v5028_v27  ;;  %v1755_v55 = vmul.f32 %v4133_v15, %v5873_v44  ;;  %v5034_v27 = vld [vmem:[%s7193_s4 + $0x1d0] sm:$0xff]  }
 0x21c   : > { %5056 = vst [vmem:[%s7193_s4 + $0x180] sm:$0xff] %v4262_v39   ;;  %v4267_v48 = vpack.c.bf16 %v1878_v8, %v1877_v50  ;;  %v1880_v63 = vmax.f32 %v1816_v20, 0.0  ;;  %v1818_v7 = vadd.f32 %v1754_v12, %v5902_v13  ;;  %v4137_v25 = vunpack.c.l.bf16 %v5029_v0  ;;  %v5035_v50 = vld [vmem:[%s7193_s4 + $0x1d8] sm:$0xff]  }
 0x21d   : > { %v1881_v33 = vmax.f32 %v1817_v21, 0.0  ;;  %v1756_v9 = vmul.f32 %v4134_v1, %v5873_v44  ;;  %v1819_v26 = vadd.f32 %v1755_v55, %v5902_v13  ;;  %v4138_v52 = vunpack.c.h.bf16 %v5029_v0 }
 0x21e   : > { %5057 = vst [vmem:[%s7193_s4 + $0x188] sm:$0xff] %v4267_v48   ;;  %v4272_v29 = vpack.c.bf16 %v1880_v63, %v1879_v19  ;;  %v1882_v53 = vmax.f32 %v1818_v7, 0.0  ;;  %v1757_v23 = vmul.f32 %v4137_v25, %v5873_v44  ;;  %v4141_v35 = vunpack.c.l.bf16 %v5030_v60  ;;  %v5036_v19 = vld [vmem:[%s7193_s4 + $0x1e0] sm:$0xff]  }
 0x21f   : > { %v1820_v4 = vadd.f32 %v1756_v9, %v5902_v13  ;;  %v1883_v54 = vmax.f32 %v1819_v26, 0.0  ;;  %v1758_v47 = vmul.f32 %v4138_v52, %v5873_v44  ;;  %v4142_v46 = vunpack.c.h.bf16 %v5030_v60 }
 0x220   : > { %5058 = vst [vmem:[%s7193_s4 + $0x190] sm:$0xff] %v4272_v29   ;;  %v4277_v31 = vpack.c.bf16 %v1882_v53, %v1881_v33  ;;  %v1821_v18 = vadd.f32 %v1757_v23, %v5902_v13  ;;  %v1759_v34 = vmul.f32 %v4141_v35, %v5873_v44  ;;  %v4145_v43 = vunpack.c.l.bf16 %v5031_v61 }
 0x221   : > { %v1884_v40 = vmax.f32 %v1820_v4, 0.0  ;;  %v1822_v10 = vadd.f32 %v1758_v47, %v5902_v13  ;;  %v1760_v41 = vmul.f32 %v4142_v46, %v5873_v44  ;;  %v4146_v2 = vunpack.c.h.bf16 %v5031_v61  ;;  %v5037_v61 = vld [vmem:[%s7193_s4 + $0x1e8] sm:$0xff]  }
 0x222   : > { %5059 = vst [vmem:[%s7193_s4 + $0x198] sm:$0xff] %v4277_v31   ;;  %v1885_v14 = vmax.f32 %v1821_v18, 0.0  ;;  %v1823_v45 = vadd.f32 %v1759_v34, %v5902_v13  ;;  %v1761_v49 = vmul.f32 %v4145_v43, %v5873_v44  ;;  %v4149_v51 = vunpack.c.l.bf16 %v5032_v37 }
 0x223   : > { %v4282_v38 = vpack.c.bf16 %v1884_v40, %v1883_v54  ;;  %v1886_v36 = vmax.f32 %v1822_v10, 0.0  ;;  %v1824_v58 = vadd.f32 %v1760_v41, %v5902_v13  ;;  %v1762_v3 = vmul.f32 %v4146_v2, %v5873_v44 }
 0x224   : > { %v1887_v24 = vmax.f32 %v1823_v45, 0.0  ;;  %v1825_v5 = vadd.f32 %v1761_v49, %v5902_v13  ;;  %v4150_v57 = vunpack.c.h.bf16 %v5032_v37  ;;  %v1763_v16 = vmul.f32 %v4149_v51, %v5873_v44  ;;  %v5038_v37 = vld [vmem:[%s7193_s4 + $0x1f0] sm:$0xff]  }
 0x225   : > { %5060 = vst [vmem:[%s7193_s4 + $0x1a0] sm:$0xff] %v4282_v38   ;;  %v4287_v11 = vpack.c.bf16 %v1886_v36, %v1885_v14  ;;  %v1888_v56 = vmax.f32 %v1824_v58, 0.0  ;;  %v1826_v30 = vadd.f32 %v1762_v3, %v5902_v13  ;;  %v4153_v62 = vunpack.c.l.bf16 %v5033_v17  ;;  %v5039_v14 = vld [vmem:[%s7193_s4 + $0x1f8] sm:$0xff]  }
 0x226   : > { %v1889_v6 = vmax.f32 %v1825_v5, 0.0  ;;  %v1764_v22 = vmul.f32 %v4150_v57, %v5873_v44  ;;  %v1827_v28 = vadd.f32 %v1763_v16, %v5902_v13  ;;  %v4154_v32 = vunpack.c.h.bf16 %v5033_v17 }
 0x227   : > { %5061 = vst [vmem:[%s7193_s4 + $0x1a8] sm:$0xff] %v4287_v11   ;;  %v4292_v42 = vpack.c.bf16 %v1888_v56, %v1887_v24  ;;  %v1890_v59 = vmax.f32 %v1826_v30, 0.0  ;;  %v1765_v15 = vmul.f32 %v4153_v62, %v5873_v44  ;;  %v4157_v0 = vunpack.c.l.bf16 %v5034_v27  ;;  %v5072_v24 = vld [vmem:[%s7193_s4 + $0x200] sm:$0xff]  }
 0x228   : > { %v1828_v39 = vadd.f32 %v1764_v22, %v5902_v13  ;;  %v1891_v8 = vmax.f32 %v1827_v28, 0.0  ;;  %v1766_v20 = vmul.f32 %v4154_v32, %v5873_v44  ;;  %v4158_v12 = vunpack.c.h.bf16 %v5034_v27 }
 0x229   : > { %5062 = vst [vmem:[%s7193_s4 + $0x1b0] sm:$0xff] %v4292_v42   ;;  %v4297_v21 = vpack.c.bf16 %v1890_v59, %v1889_v6  ;;  %v1829_v1 = vadd.f32 %v1765_v15, %v5902_v13  ;;  %v1767_v55 = vmul.f32 %v4157_v0, %v5873_v44  ;;  %v4161_v60 = vunpack.c.l.bf16 %v5035_v50 }
 0x22a   : > { %v1892_v48 = vmax.f32 %v1828_v39, 0.0  ;;  %v1830_v63 = vadd.f32 %v1766_v20, %v5902_v13  ;;  %v1768_v7 = vmul.f32 %v4158_v12, %v5873_v44  ;;  %v4162_v25 = vunpack.c.h.bf16 %v5035_v50  ;;  %v5073_v50 = vld [vmem:[%s7193_s4 + $0x208] sm:$0xff]  }
 0x22b   : > { %5063 = vst [vmem:[%s7193_s4 + $0x1b8] sm:$0xff] %v4297_v21   ;;  %v1893_v33 = vmax.f32 %v1829_v1, 0.0  ;;  %v1831_v9 = vadd.f32 %v1767_v55, %v5902_v13  ;;  %v1769_v26 = vmul.f32 %v4161_v60, %v5873_v44  ;;  %v4165_v52 = vunpack.c.l.bf16 %v5036_v19 }
 0x22c   : > { %v4302_v29 = vpack.c.bf16 %v1892_v48, %v1891_v8  ;;  %v1894_v53 = vmax.f32 %v1830_v63, 0.0  ;;  %v1832_v23 = vadd.f32 %v1768_v7, %v5902_v13  ;;  %v1770_v35 = vmul.f32 %v4162_v25, %v5873_v44 }
 0x22d   : > { %v1895_v4 = vmax.f32 %v1831_v9, 0.0  ;;  %v1833_v54 = vadd.f32 %v1769_v26, %v5902_v13  ;;  %v4166_v47 = vunpack.c.h.bf16 %v5036_v19  ;;  %v1771_v46 = vmul.f32 %v4165_v52, %v5873_v44  ;;  %v5074_v19 = vld [vmem:[%s7193_s4 + $0x210] sm:$0xff]  }
 0x22e   : > { %5064 = vst [vmem:[%s7193_s4 + $0x1c0] sm:$0xff] %v4302_v29   ;;  %v4307_v31 = vpack.c.bf16 %v1894_v53, %v1893_v33  ;;  %v1896_v18 = vmax.f32 %v1832_v23, 0.0  ;;  %v1834_v34 = vadd.f32 %v1770_v35, %v5902_v13  ;;  %v4169_v43 = vunpack.c.l.bf16 %v5037_v61  ;;  %v5075_v33 = vld [vmem:[%s7193_s4 + $0x218] sm:$0xff]  }
 0x22f   : > { %v1897_v40 = vmax.f32 %v1833_v54, 0.0  ;;  %v1772_v10 = vmul.f32 %v4166_v47, %v5873_v44  ;;  %v1835_v41 = vadd.f32 %v1771_v46, %v5902_v13  ;;  %v4170_v2 = vunpack.c.h.bf16 %v5037_v61 }
 0x230   : > { %5065 = vst [vmem:[%s7193_s4 + $0x1c8] sm:$0xff] %v4307_v31   ;;  %v4312_v45 = vpack.c.bf16 %v1896_v18, %v1895_v4  ;;  %v1898_v49 = vmax.f32 %v1834_v34, 0.0  ;;  %v1773_v51 = vmul.f32 %v4169_v43, %v5873_v44  ;;  %v4173_v17 = vunpack.c.l.bf16 %v5038_v37  ;;  %v5076_v4 = vld [vmem:[%s7193_s4 + $0x220] sm:$0xff]  }
 0x231   : > { %v1836_v38 = vadd.f32 %v1772_v10, %v5902_v13  ;;  %v1899_v36 = vmax.f32 %v1835_v41, 0.0  ;;  %v1774_v58 = vmul.f32 %v4170_v2, %v5873_v44  ;;  %v4174_v3 = vunpack.c.h.bf16 %v5038_v37 }
 0x232   : > { %5066 = vst [vmem:[%s7193_s4 + $0x1d0] sm:$0xff] %v4312_v45   ;;  %v4317_v5 = vpack.c.bf16 %v1898_v49, %v1897_v40  ;;  %v1837_v57 = vadd.f32 %v1773_v51, %v5902_v13  ;;  %v1775_v16 = vmul.f32 %v4173_v17, %v5873_v44  ;;  %v4177_v27 = vunpack.c.l.bf16 %v5039_v14 }
 0x233   : > { %v1900_v11 = vmax.f32 %v1836_v38, 0.0  ;;  %v1838_v56 = vadd.f32 %v1774_v58, %v5902_v13  ;;  %v1776_v30 = vmul.f32 %v4174_v3, %v5873_v44  ;;  %v4178_v62 = vunpack.c.h.bf16 %v5039_v14  ;;  %v5077_v14 = vld [vmem:[%s7193_s4 + $0x228] sm:$0xff]  }
 0x234   : > { %5067 = vst [vmem:[%s7193_s4 + $0x1d8] sm:$0xff] %v4317_v5   ;;  %v1901_v6 = vmax.f32 %v1837_v57, 0.0  ;;  %v1839_v22 = vadd.f32 %v1775_v16, %v5902_v13  ;;  %v1777_v28 = vmul.f32 %v4177_v27, %v5873_v44  ;;  %v4341_v32 = vunpack.c.l.bf16 %v5072_v24 }
 0x235   : > { %v4322_v42 = vpack.c.bf16 %v1900_v11, %v1899_v36  ;;  %v1902_v59 = vmax.f32 %v1838_v56, 0.0  ;;  %v1840_v15 = vadd.f32 %v1776_v30, %v5902_v13  ;;  %v1778_v0 = vmul.f32 %v4178_v62, %v5873_v44 }
 0x236   : > { %v1903_v39 = vmax.f32 %v1839_v22, 0.0  ;;  %v1841_v8 = vadd.f32 %v1777_v28, %v5902_v13  ;;  %v4342_v20 = vunpack.c.h.bf16 %v5072_v24  ;;  %v2164_v12 = vmul.f32 %v4341_v32, %v5873_v44  ;;  %v5078_v24 = vld [vmem:[%s7193_s4 + $0x230] sm:$0xff]  }
 0x237   : > { %5068 = vst [vmem:[%s7193_s4 + $0x1e0] sm:$0xff] %v4322_v42   ;;  %v4327_v21 = vpack.c.bf16 %v1902_v59, %v1901_v6  ;;  %v1904_v1 = vmax.f32 %v1840_v15, 0.0  ;;  %v1842_v55 = vadd.f32 %v1778_v0, %v5902_v13  ;;  %v4345_v60 = vunpack.c.l.bf16 %v5073_v50  ;;  %v5079_v6 = vld [vmem:[%s7193_s4 + $0x238] sm:$0xff]  }
 0x238   : > { %v1905_v48 = vmax.f32 %v1841_v8, 0.0  ;;  %v2165_v63 = vmul.f32 %v4342_v20, %v5873_v44  ;;  %v2228_v7 = vadd.f32 %v2164_v12, %v5902_v13  ;;  %v4346_v25 = vunpack.c.h.bf16 %v5073_v50 }
 0x239   : > { %5069 = vst [vmem:[%s7193_s4 + $0x1e8] sm:$0xff] %v4327_v21   ;;  %v4332_v9 = vpack.c.bf16 %v1904_v1, %v1903_v39  ;;  %v1906_v26 = vmax.f32 %v1842_v55, 0.0  ;;  %v2166_v52 = vmul.f32 %v4345_v60, %v5873_v44  ;;  %v4349_v61 = vunpack.c.l.bf16 %v5074_v19  ;;  %v5080_v39 = vld [vmem:[%s7193_s4 + $0x240] sm:$0xff]  }
 0x23a   : > { %v2229_v29 = vadd.f32 %v2165_v63, %v5902_v13  ;;  %v2292_v53 = vmax.f32 %v2228_v7, 0.0  ;;  %v2167_v23 = vmul.f32 %v4346_v25, %v5873_v44  ;;  %v4350_v35 = vunpack.c.h.bf16 %v5074_v19 }
 0x23b   : > { %5070 = vst [vmem:[%s7193_s4 + $0x1f0] sm:$0xff] %v4332_v9   ;;  %v4337_v54 = vpack.c.bf16 %v1906_v26, %v1905_v48  ;;  %v2230_v47 = vadd.f32 %v2166_v52, %v5902_v13  ;;  %v2168_v46 = vmul.f32 %v4349_v61, %v5873_v44  ;;  %v4353_v37 = vunpack.c.l.bf16 %v5075_v33 }
 0x23c   : > { %v2293_v31 = vmax.f32 %v2229_v29, 0.0  ;;  %v2231_v18 = vadd.f32 %v2167_v23, %v5902_v13  ;;  %v2169_v34 = vmul.f32 %v4350_v35, %v5873_v44  ;;  %v4354_v43 = vunpack.c.h.bf16 %v5075_v33  ;;  %v5081_v33 = vld [vmem:[%s7193_s4 + $0x248] sm:$0xff]  }
 0x23d   : > { %5071 = vst [vmem:[%s7193_s4 + $0x1f8] sm:$0xff] %v4337_v54   ;;  %v2294_v40 = vmax.f32 %v2230_v47, 0.0  ;;  %v2232_v10 = vadd.f32 %v2168_v46, %v5902_v13  ;;  %v2170_v41 = vmul.f32 %v4353_v37, %v5873_v44  ;;  %v4357_v2 = vunpack.c.l.bf16 %v5076_v4 }
 0x23e   : > { %v4470_v45 = vpack.c.bf16 %v2293_v31, %v2292_v53  ;;  %v2295_v49 = vmax.f32 %v2231_v18, 0.0  ;;  %v2233_v51 = vadd.f32 %v2169_v34, %v5902_v13  ;;  %v2171_v17 = vmul.f32 %v4354_v43, %v5873_v44 }
 0x23f   : > { %v2296_v38 = vmax.f32 %v2232_v10, 0.0  ;;  %v2234_v36 = vadd.f32 %v2170_v41, %v5902_v13  ;;  %v4358_v58 = vunpack.c.h.bf16 %v5076_v4  ;;  %v2172_v3 = vmul.f32 %v4357_v2, %v5873_v44  ;;  %v5082_v4 = vld [vmem:[%s7193_s4 + $0x250] sm:$0xff]  }
 0x240   : > { %5104 = vst [vmem:[%s7193_s4 + $0x200] sm:$0xff] %v4470_v45   ;;  %v4475_v5 = vpack.c.bf16 %v2295_v49, %v2294_v40  ;;  %v2297_v57 = vmax.f32 %v2233_v51, 0.0  ;;  %v2235_v16 = vadd.f32 %v2171_v17, %v5902_v13  ;;  %v4361_v27 = vunpack.c.l.bf16 %v5077_v14  ;;  %v5083_v40 = vld [vmem:[%s7193_s4 + $0x258] sm:$0xff]  }
 0x241   : > { %v2298_v11 = vmax.f32 %v2234_v36, 0.0  ;;  %v2173_v56 = vmul.f32 %v4358_v58, %v5873_v44  ;;  %v2236_v30 = vadd.f32 %v2172_v3, %v5902_v13  ;;  %v4362_v62 = vunpack.c.h.bf16 %v5077_v14 }
 0x242   : > { %5105 = vst [vmem:[%s7193_s4 + $0x208] sm:$0xff] %v4475_v5   ;;  %v4480_v22 = vpack.c.bf16 %v2297_v57, %v2296_v38  ;;  %v2299_v28 = vmax.f32 %v2235_v16, 0.0  ;;  %v2174_v32 = vmul.f32 %v4361_v27, %v5873_v44  ;;  %v4365_v50 = vunpack.c.l.bf16 %v5078_v24  ;;  %v5084_v38 = vld [vmem:[%s7193_s4 + $0x260] sm:$0xff]  }
 0x243   : > { %v2237_v42 = vadd.f32 %v2173_v56, %v5902_v13  ;;  %v2300_v59 = vmax.f32 %v2236_v30, 0.0  ;;  %v2175_v15 = vmul.f32 %v4362_v62, %v5873_v44  ;;  %v4366_v0 = vunpack.c.h.bf16 %v5078_v24 }
 0x244   : > { %5106 = vst [vmem:[%s7193_s4 + $0x210] sm:$0xff] %v4480_v22   ;;  %v4485_v8 = vpack.c.bf16 %v2299_v28, %v2298_v11  ;;  %v2238_v20 = vadd.f32 %v2174_v32, %v5902_v13  ;;  %v2176_v12 = vmul.f32 %v4365_v50, %v5873_v44  ;;  %v4369_v19 = vunpack.c.l.bf16 %v5079_v6 }
 0x245   : > { %v2301_v21 = vmax.f32 %v2237_v42, 0.0  ;;  %v2239_v1 = vadd.f32 %v2175_v15, %v5902_v13  ;;  %v2177_v55 = vmul.f32 %v4366_v0, %v5873_v44  ;;  %v4370_v60 = vunpack.c.h.bf16 %v5079_v6  ;;  %v5085_v6 = vld [vmem:[%s7193_s4 + $0x268] sm:$0xff]  }
 0x246   : > { %5107 = vst [vmem:[%s7193_s4 + $0x218] sm:$0xff] %v4485_v8   ;;  %v2302_v48 = vmax.f32 %v2238_v20, 0.0  ;;  %v2240_v63 = vadd.f32 %v2176_v12, %v5902_v13  ;;  %v2178_v7 = vmul.f32 %v4369_v19, %v5873_v44  ;;  %v4373_v25 = vunpack.c.l.bf16 %v5080_v39 }
 0x247   : > { %v4490_v9 = vpack.c.bf16 %v2301_v21, %v2300_v59  ;;  %v2303_v26 = vmax.f32 %v2239_v1, 0.0  ;;  %v2241_v52 = vadd.f32 %v2177_v55, %v5902_v13  ;;  %v2179_v61 = vmul.f32 %v4370_v60, %v5873_v44 }
 0x248   : > { %v2304_v29 = vmax.f32 %v2240_v63, 0.0  ;;  %v2242_v53 = vadd.f32 %v2178_v7, %v5902_v13  ;;  %v4374_v23 = vunpack.c.h.bf16 %v5080_v39  ;;  %v2180_v35 = vmul.f32 %v4373_v25, %v5873_v44  ;;  %v5086_v39 = vld [vmem:[%s7193_s4 + $0x270] sm:$0xff]  }
 0x249   : > { %5108 = vst [vmem:[%s7193_s4 + $0x220] sm:$0xff] %v4490_v9   ;;  %v4495_v54 = vpack.c.bf16 %v2303_v26, %v2302_v48  ;;  %v2305_v47 = vmax.f32 %v2241_v52, 0.0  ;;  %v2243_v46 = vadd.f32 %v2179_v61, %v5902_v13  ;;  %v4377_v37 = vunpack.c.l.bf16 %v5081_v33  ;;  %v5087_v48 = vld [vmem:[%s7193_s4 + $0x278] sm:$0xff]  }
 0x24a   : > { %v2306_v31 = vmax.f32 %v2242_v53, 0.0  ;;  %v2181_v18 = vmul.f32 %v4374_v23, %v5873_v44  ;;  %v2244_v34 = vadd.f32 %v2180_v35, %v5902_v13  ;;  %v4378_v43 = vunpack.c.h.bf16 %v5081_v33 }
 0x24b   : > { %5109 = vst [vmem:[%s7193_s4 + $0x228] sm:$0xff] %v4495_v54   ;;  %v4500_v10 = vpack.c.bf16 %v2305_v47, %v2304_v29  ;;  %v2307_v41 = vmax.f32 %v2243_v46, 0.0  ;;  %v2182_v2 = vmul.f32 %v4377_v37, %v5873_v44  ;;  %v4381_v14 = vunpack.c.l.bf16 %v5082_v4  ;;  %v5088_v29 = vld [vmem:[%s7193_s4 + $0x280] sm:$0xff]  }
 0x24c   : > { %v2245_v45 = vadd.f32 %v2181_v18, %v5902_v13  ;;  %v2308_v49 = vmax.f32 %v2244_v34, 0.0  ;;  %v2183_v51 = vmul.f32 %v4378_v43, %v5873_v44  ;;  %v4382_v17 = vunpack.c.h.bf16 %v5082_v4 }
 0x24d   : > { %5110 = vst [vmem:[%s7193_s4 + $0x230] sm:$0xff] %v4500_v10   ;;  %v4505_v36 = vpack.c.bf16 %v2307_v41, %v2306_v31  ;;  %v2246_v58 = vadd.f32 %v2182_v2, %v5902_v13  ;;  %v2184_v3 = vmul.f32 %v4381_v14, %v5873_v44  ;;  %v4385_v24 = vunpack.c.l.bf16 %v5083_v40 }
 0x24e   : > { %v2309_v5 = vmax.f32 %v2245_v45, 0.0  ;;  %v2247_v57 = vadd.f32 %v2183_v51, %v5902_v13  ;;  %v2185_v16 = vmul.f32 %v4382_v17, %v5873_v44  ;;  %v4386_v27 = vunpack.c.h.bf16 %v5083_v40  ;;  %v5089_v40 = vld [vmem:[%s7193_s4 + $0x288] sm:$0xff]  }
 0x24f   : > { %5111 = vst [vmem:[%s7193_s4 + $0x238] sm:$0xff] %v4505_v36   ;;  %v2310_v11 = vmax.f32 %v2246_v58, 0.0  ;;  %v2248_v56 = vadd.f32 %v2184_v3, %v5902_v13  ;;  %v2186_v30 = vmul.f32 %v4385_v24, %v5873_v44  ;;  %v4389_v62 = vunpack.c.l.bf16 %v5084_v38 }
 0x250   : > { %v4510_v22 = vpack.c.bf16 %v2309_v5, %v2308_v49  ;;  %v2311_v28 = vmax.f32 %v2247_v57, 0.0  ;;  %v2249_v32 = vadd.f32 %v2185_v16, %v5902_v13  ;;  %v2187_v50 = vmul.f32 %v4386_v27, %v5873_v44 }
 0x251   : > { %v2312_v42 = vmax.f32 %v2248_v56, 0.0  ;;  %v2250_v59 = vadd.f32 %v2186_v30, %v5902_v13  ;;  %v4390_v15 = vunpack.c.h.bf16 %v5084_v38  ;;  %v2188_v0 = vmul.f32 %v4389_v62, %v5873_v44  ;;  %v5090_v38 = vld [vmem:[%s7193_s4 + $0x290] sm:$0xff]  }
 0x252   : > { %5112 = vst [vmem:[%s7193_s4 + $0x240] sm:$0xff] %v4510_v22   ;;  %v4515_v8 = vpack.c.bf16 %v2311_v28, %v2310_v11  ;;  %v2313_v20 = vmax.f32 %v2249_v32, 0.0  ;;  %v2251_v12 = vadd.f32 %v2187_v50, %v5902_v13  ;;  %v4393_v19 = vunpack.c.l.bf16 %v5085_v6  ;;  %v5091_v11 = vld [vmem:[%s7193_s4 + $0x298] sm:$0xff]  }
 0x253   : > { %v2314_v21 = vmax.f32 %v2250_v59, 0.0  ;;  %v2189_v1 = vmul.f32 %v4390_v15, %v5873_v44  ;;  %v2252_v55 = vadd.f32 %v2188_v0, %v5902_v13  ;;  %v4394_v60 = vunpack.c.h.bf16 %v5085_v6 }
 0x254   : > { %5113 = vst [vmem:[%s7193_s4 + $0x248] sm:$0xff] %v4515_v8   ;;  %v4520_v63 = vpack.c.bf16 %v2313_v20, %v2312_v42  ;;  %v2315_v7 = vmax.f32 %v2251_v12, 0.0  ;;  %v2190_v25 = vmul.f32 %v4393_v19, %v5873_v44  ;;  %v4397_v33 = vunpack.c.l.bf16 %v5086_v39  ;;  %v5092_v42 = vld [vmem:[%s7193_s4 + $0x2a0] sm:$0xff]  }
 0x255   : > { %v2253_v9 = vadd.f32 %v2189_v1, %v5902_v13  ;;  %v2316_v26 = vmax.f32 %v2252_v55, 0.0  ;;  %v2191_v52 = vmul.f32 %v4394_v60, %v5873_v44  ;;  %v4398_v61 = vunpack.c.h.bf16 %v5086_v39 }
 0x256   : > { %5114 = vst [vmem:[%s7193_s4 + $0x250] sm:$0xff] %v4520_v63   ;;  %v4525_v53 = vpack.c.bf16 %v2315_v7, %v2314_v21  ;;  %v2254_v23 = vadd.f32 %v2190_v25, %v5902_v13  ;;  %v2192_v35 = vmul.f32 %v4397_v33, %v5873_v44  ;;  %v4401_v4 = vunpack.c.l.bf16 %v5087_v48 }
 0x257   : > { %v2317_v54 = vmax.f32 %v2253_v9, 0.0  ;;  %v2255_v47 = vadd.f32 %v2191_v52, %v5902_v13  ;;  %v2193_v46 = vmul.f32 %v4398_v61, %v5873_v44  ;;  %v4402_v37 = vunpack.c.h.bf16 %v5087_v48  ;;  %v5093_v48 = vld [vmem:[%s7193_s4 + $0x2a8] sm:$0xff]  }
 0x258   : > { %5115 = vst [vmem:[%s7193_s4 + $0x258] sm:$0xff] %v4525_v53   ;;  %v2318_v31 = vmax.f32 %v2254_v23, 0.0  ;;  %v2256_v18 = vadd.f32 %v2192_v35, %v5902_v13  ;;  %v2194_v34 = vmul.f32 %v4401_v4, %v5873_v44  ;;  %v4405_v43 = vunpack.c.l.bf16 %v5088_v29 }
 0x259   : > { %v4530_v10 = vpack.c.bf16 %v2317_v54, %v2316_v26  ;;  %v2319_v41 = vmax.f32 %v2255_v47, 0.0  ;;  %v2257_v2 = vadd.f32 %v2193_v46, %v5902_v13  ;;  %v2195_v14 = vmul.f32 %v4402_v37, %v5873_v44 }
 0x25a   : > { %v2320_v45 = vmax.f32 %v2256_v18, 0.0  ;;  %v2258_v49 = vadd.f32 %v2194_v34, %v5902_v13  ;;  %v4406_v51 = vunpack.c.h.bf16 %v5088_v29  ;;  %v2196_v17 = vmul.f32 %v4405_v43, %v5873_v44  ;;  %v5094_v29 = vld [vmem:[%s7193_s4 + $0x2b0] sm:$0xff]  }
 0x25b   : > { %5116 = vst [vmem:[%s7193_s4 + $0x260] sm:$0xff] %v4530_v10   ;;  %v4535_v36 = vpack.c.bf16 %v2319_v41, %v2318_v31  ;;  %v2321_v58 = vmax.f32 %v2257_v2, 0.0  ;;  %v2259_v3 = vadd.f32 %v2195_v14, %v5902_v13  ;;  %v4409_v24 = vunpack.c.l.bf16 %v5089_v40  ;;  %v5095_v31 = vld [vmem:[%s7193_s4 + $0x2b8] sm:$0xff]  }
 0x25c   : > { %v2322_v5 = vmax.f32 %v2258_v49, 0.0  ;;  %v2197_v57 = vmul.f32 %v4406_v51, %v5873_v44  ;;  %v2260_v16 = vadd.f32 %v2196_v17, %v5902_v13  ;;  %v4410_v27 = vunpack.c.h.bf16 %v5089_v40 }
 0x25d   : > { %5117 = vst [vmem:[%s7193_s4 + $0x268] sm:$0xff] %v4535_v36   ;;  %v4540_v56 = vpack.c.bf16 %v2321_v58, %v2320_v45  ;;  %v2323_v30 = vmax.f32 %v2259_v3, 0.0  ;;  %v2198_v62 = vmul.f32 %v4409_v24, %v5873_v44  ;;  %v4413_v6 = vunpack.c.l.bf16 %v5090_v38  ;;  %v5096_v45 = vld [vmem:[%s7193_s4 + $0x2c0] sm:$0xff]  }
 0x25e   : > { %v2261_v22 = vadd.f32 %v2197_v57, %v5902_v13  ;;  %v2324_v28 = vmax.f32 %v2260_v16, 0.0  ;;  %v2199_v32 = vmul.f32 %v4410_v27, %v5873_v44  ;;  %v4414_v50 = vunpack.c.h.bf16 %v5090_v38 }
 0x25f   : > { %5118 = vst [vmem:[%s7193_s4 + $0x270] sm:$0xff] %v4540_v56   ;;  %v4545_v59 = vpack.c.bf16 %v2323_v30, %v2322_v5  ;;  %v2262_v15 = vadd.f32 %v2198_v62, %v5902_v13  ;;  %v2200_v0 = vmul.f32 %v4413_v6, %v5873_v44  ;;  %v4417_v39 = vunpack.c.l.bf16 %v5091_v11 }
 0x260   : > { %v2325_v8 = vmax.f32 %v2261_v22, 0.0  ;;  %v2263_v20 = vadd.f32 %v2199_v32, %v5902_v13  ;;  %v2201_v12 = vmul.f32 %v4414_v50, %v5873_v44  ;;  %v4418_v19 = vunpack.c.h.bf16 %v5091_v11  ;;  %v5097_v11 = vld [vmem:[%s7193_s4 + $0x2c8] sm:$0xff]  }
 0x261   : > { %5119 = vst [vmem:[%s7193_s4 + $0x278] sm:$0xff] %v4545_v59   ;;  %v2326_v21 = vmax.f32 %v2262_v15, 0.0  ;;  %v2264_v1 = vadd.f32 %v2200_v0, %v5902_v13  ;;  %v2202_v55 = vmul.f32 %v4417_v39, %v5873_v44  ;;  %v4421_v60 = vunpack.c.l.bf16 %v5092_v42 }
 0x262   : > { %v4550_v63 = vpack.c.bf16 %v2325_v8, %v2324_v28  ;;  %v2327_v7 = vmax.f32 %v2263_v20, 0.0  ;;  %v2265_v25 = vadd.f32 %v2201_v12, %v5902_v13  ;;  %v2203_v33 = vmul.f32 %v4418_v19, %v5873_v44 }
 0x263   : > { %v2328_v9 = vmax.f32 %v2264_v1, 0.0  ;;  %v2266_v26 = vadd.f32 %v2202_v55, %v5902_v13  ;;  %v4422_v52 = vunpack.c.h.bf16 %v5092_v42  ;;  %v2204_v61 = vmul.f32 %v4421_v60, %v5873_v44  ;;  %v5098_v42 = vld [vmem:[%s7193_s4 + $0x2d0] sm:$0xff]  }
 0x264   : > { %5120 = vst [vmem:[%s7193_s4 + $0x280] sm:$0xff] %v4550_v63   ;;  %v4555_v53 = vpack.c.bf16 %v2327_v7, %v2326_v21  ;;  %v2329_v23 = vmax.f32 %v2265_v25, 0.0  ;;  %v2267_v35 = vadd.f32 %v2203_v33, %v5902_v13  ;;  %v4425_v4 = vunpack.c.l.bf16 %v5093_v48  ;;  %v5099_v21 = vld [vmem:[%s7193_s4 + $0x2d8] sm:$0xff]  }
 0x265   : > { %v2330_v54 = vmax.f32 %v2266_v26, 0.0  ;;  %v2205_v47 = vmul.f32 %v4422_v52, %v5873_v44  ;;  %v2268_v46 = vadd.f32 %v2204_v61, %v5902_v13  ;;  %v4426_v37 = vunpack.c.h.bf16 %v5093_v48 }
 0x266   : > { %5121 = vst [vmem:[%s7193_s4 + $0x288] sm:$0xff] %v4555_v53   ;;  %v4560_v18 = vpack.c.bf16 %v2329_v23, %v2328_v9  ;;  %v2331_v34 = vmax.f32 %v2267_v35, 0.0  ;;  %v2206_v43 = vmul.f32 %v4425_v4, %v5873_v44  ;;  %v4429_v40 = vunpack.c.l.bf16 %v5094_v29  ;;  %v5100_v9 = vld [vmem:[%s7193_s4 + $0x2e0] sm:$0xff]  }
 0x267   : > { %v2269_v10 = vadd.f32 %v2205_v47, %v5902_v13  ;;  %v2332_v41 = vmax.f32 %v2268_v46, 0.0  ;;  %v2207_v2 = vmul.f32 %v4426_v37, %v5873_v44  ;;  %v4430_v14 = vunpack.c.h.bf16 %v5094_v29 }
 0x268   : > { %5122 = vst [vmem:[%s7193_s4 + $0x290] sm:$0xff] %v4560_v18   ;;  %v4565_v49 = vpack.c.bf16 %v2331_v34, %v2330_v54  ;;  %v2270_v51 = vadd.f32 %v2206_v43, %v5902_v13  ;;  %v2208_v17 = vmul.f32 %v4429_v40, %v5873_v44  ;;  %v4433_v38 = vunpack.c.l.bf16 %v5095_v31 }
 0x269   : > { %v2333_v36 = vmax.f32 %v2269_v10, 0.0  ;;  %v2271_v58 = vadd.f32 %v2207_v2, %v5902_v13  ;;  %v2209_v3 = vmul.f32 %v4430_v14, %v5873_v44  ;;  %v4434_v24 = vunpack.c.h.bf16 %v5095_v31  ;;  %v5101_v31 = vld [vmem:[%s7193_s4 + $0x2e8] sm:$0xff]  }
 0x26a   : > { %5123 = vst [vmem:[%s7193_s4 + $0x298] sm:$0xff] %v4565_v49   ;;  %v2334_v5 = vmax.f32 %v2270_v51, 0.0  ;;  %v2272_v57 = vadd.f32 %v2208_v17, %v5902_v13  ;;  %v2210_v16 = vmul.f32 %v4433_v38, %v5873_v44  ;;  %v4437_v27 = vunpack.c.l.bf16 %v5096_v45 }
 0x26b   : > { %v4570_v56 = vpack.c.bf16 %v2333_v36, %v2332_v41  ;;  %v2335_v30 = vmax.f32 %v2271_v58, 0.0  ;;  %v2273_v62 = vadd.f32 %v2209_v3, %v5902_v13  ;;  %v2211_v6 = vmul.f32 %v4434_v24, %v5873_v44 }
 0x26c   : > { %v2336_v22 = vmax.f32 %v2272_v57, 0.0  ;;  %v2274_v28 = vadd.f32 %v2210_v16, %v5902_v13  ;;  %v4438_v32 = vunpack.c.h.bf16 %v5096_v45  ;;  %v2212_v50 = vmul.f32 %v4437_v27, %v5873_v44  ;;  %v5102_v45 = vld [vmem:[%s7193_s4 + $0x2f0] sm:$0xff]  }
 0x26d   : > { %5124 = vst [vmem:[%s7193_s4 + $0x2a0] sm:$0xff] %v4570_v56   ;;  %v4575_v59 = vpack.c.bf16 %v2335_v30, %v2334_v5  ;;  %v2337_v15 = vmax.f32 %v2273_v62, 0.0  ;;  %v2275_v0 = vadd.f32 %v2211_v6, %v5902_v13  ;;  %v4441_v39 = vunpack.c.l.bf16 %v5097_v11  ;;  %v5103_v5 = vld [vmem:[%s7193_s4 + $0x2f8] sm:$0xff]  }
 0x26e   : > { %v2338_v8 = vmax.f32 %v2274_v28, 0.0  ;;  %v2213_v20 = vmul.f32 %v4438_v32, %v5873_v44  ;;  %v2276_v12 = vadd.f32 %v2212_v50, %v5902_v13  ;;  %v4442_v19 = vunpack.c.h.bf16 %v5097_v11 }
 0x26f   : > { %5125 = vst [vmem:[%s7193_s4 + $0x2a8] sm:$0xff] %v4575_v59   ;;  %v4580_v1 = vpack.c.bf16 %v2337_v15, %v2336_v22  ;;  %v2339_v55 = vmax.f32 %v2275_v0, 0.0  ;;  %v2214_v60 = vmul.f32 %v4441_v39, %v5873_v44  ;;  %v4445_v48 = vunpack.c.l.bf16 %v5098_v42  ;;  %v5136_v22 = vld [vmem:[%s7193_s4 + $0x300] sm:$0xff]  }
 0x270   : > { %v2277_v63 = vadd.f32 %v2213_v20, %v5902_v13  ;;  %v2340_v7 = vmax.f32 %v2276_v12, 0.0  ;;  %v2215_v25 = vmul.f32 %v4442_v19, %v5873_v44  ;;  %v4446_v33 = vunpack.c.h.bf16 %v5098_v42 }
 0x271   : > { %5126 = vst [vmem:[%s7193_s4 + $0x2b0] sm:$0xff] %v4580_v1   ;;  %v4585_v26 = vpack.c.bf16 %v2339_v55, %v2338_v8  ;;  %v2278_v52 = vadd.f32 %v2214_v60, %v5902_v13  ;;  %v2216_v61 = vmul.f32 %v4445_v48, %v5873_v44  ;;  %v4449_v29 = vunpack.c.l.bf16 %v5099_v21 }
 0x272   : > { %v2341_v53 = vmax.f32 %v2277_v63, 0.0  ;;  %v2279_v23 = vadd.f32 %v2215_v25, %v5902_v13  ;;  %v2217_v35 = vmul.f32 %v4446_v33, %v5873_v44  ;;  %v4450_v4 = vunpack.c.h.bf16 %v5099_v21  ;;  %v5137_v21 = vld [vmem:[%s7193_s4 + $0x308] sm:$0xff]  }
 0x273   : > { %5127 = vst [vmem:[%s7193_s4 + $0x2b8] sm:$0xff] %v4585_v26   ;;  %v2342_v54 = vmax.f32 %v2278_v52, 0.0  ;;  %v2280_v47 = vadd.f32 %v2216_v61, %v5902_v13  ;;  %v2218_v46 = vmul.f32 %v4449_v29, %v5873_v44  ;;  %v4453_v37 = vunpack.c.l.bf16 %v5100_v9 }
 0x274   : > { %v4590_v18 = vpack.c.bf16 %v2341_v53, %v2340_v7  ;;  %v2343_v34 = vmax.f32 %v2279_v23, 0.0  ;;  %v2281_v43 = vadd.f32 %v2217_v35, %v5902_v13  ;;  %v2219_v40 = vmul.f32 %v4450_v4, %v5873_v44 }
 0x275   : > { %v2344_v10 = vmax.f32 %v2280_v47, 0.0  ;;  %v2282_v41 = vadd.f32 %v2218_v46, %v5902_v13  ;;  %v4454_v2 = vunpack.c.h.bf16 %v5100_v9  ;;  %v2220_v14 = vmul.f32 %v4453_v37, %v5873_v44  ;;  %v5138_v9 = vld [vmem:[%s7193_s4 + $0x310] sm:$0xff]  }
 0x276   : > { %5128 = vst [vmem:[%s7193_s4 + $0x2c0] sm:$0xff] %v4590_v18   ;;  %v4595_v49 = vpack.c.bf16 %v2343_v34, %v2342_v54  ;;  %v2345_v51 = vmax.f32 %v2281_v43, 0.0  ;;  %v2283_v17 = vadd.f32 %v2219_v40, %v5902_v13  ;;  %v4457_v38 = vunpack.c.l.bf16 %v5101_v31  ;;  %v5139_v54 = vld [vmem:[%s7193_s4 + $0x318] sm:$0xff]  }
 0x277   : > { %v2346_v36 = vmax.f32 %v2282_v41, 0.0  ;;  %v2221_v58 = vmul.f32 %v4454_v2, %v5873_v44  ;;  %v2284_v3 = vadd.f32 %v2220_v14, %v5902_v13  ;;  %v4458_v24 = vunpack.c.h.bf16 %v5101_v31 }
 0x278   : > { %5129 = vst [vmem:[%s7193_s4 + $0x2c8] sm:$0xff] %v4595_v49   ;;  %v4600_v57 = vpack.c.bf16 %v2345_v51, %v2344_v10  ;;  %v2347_v16 = vmax.f32 %v2283_v17, 0.0  ;;  %v2222_v27 = vmul.f32 %v4457_v38, %v5873_v44  ;;  %v4461_v11 = vunpack.c.l.bf16 %v5102_v45  ;;  %v5140_v10 = vld [vmem:[%s7193_s4 + $0x320] sm:$0xff]  }
 0x279   : > { %v2285_v56 = vadd.f32 %v2221_v58, %v5902_v13  ;;  %v2348_v30 = vmax.f32 %v2284_v3, 0.0  ;;  %v2223_v62 = vmul.f32 %v4458_v24, %v5873_v44  ;;  %v4462_v6 = vunpack.c.h.bf16 %v5102_v45 }
 0x27a   : > { %5130 = vst [vmem:[%s7193_s4 + $0x2d0] sm:$0xff] %v4600_v57   ;;  %v4605_v28 = vpack.c.bf16 %v2347_v16, %v2346_v36  ;;  %v2286_v32 = vadd.f32 %v2222_v27, %v5902_v13  ;;  %v2224_v50 = vmul.f32 %v4461_v11, %v5873_v44  ;;  %v4465_v42 = vunpack.c.l.bf16 %v5103_v5 }
 0x27b   : > { %v2349_v59 = vmax.f32 %v2285_v56, 0.0  ;;  %v2287_v15 = vadd.f32 %v2223_v62, %v5902_v13  ;;  %v2225_v0 = vmul.f32 %v4462_v6, %v5873_v44  ;;  %v4466_v39 = vunpack.c.h.bf16 %v5103_v5  ;;  %v5141_v5 = vld [vmem:[%s7193_s4 + $0x328] sm:$0xff]  }
 0x27c   : > { %5131 = vst [vmem:[%s7193_s4 + $0x2d8] sm:$0xff] %v4605_v28   ;;  %v2350_v8 = vmax.f32 %v2286_v32, 0.0  ;;  %v2288_v20 = vadd.f32 %v2224_v50, %v5902_v13  ;;  %v2226_v12 = vmul.f32 %v4465_v42, %v5873_v44  ;;  %v4629_v19 = vunpack.c.l.bf16 %v5136_v22 }
 0x27d   : > { %v4610_v1 = vpack.c.bf16 %v2349_v59, %v2348_v30  ;;  %v2351_v55 = vmax.f32 %v2287_v15, 0.0  ;;  %v2289_v60 = vadd.f32 %v2225_v0, %v5902_v13  ;;  %v2227_v48 = vmul.f32 %v4466_v39, %v5873_v44 }
 0x27e   : > { %v2352_v63 = vmax.f32 %v2288_v20, 0.0  ;;  %v2290_v7 = vadd.f32 %v2226_v12, %v5902_v13  ;;  %v4630_v25 = vunpack.c.h.bf16 %v5136_v22  ;;  %v2613_v33 = vmul.f32 %v4629_v19, %v5873_v44  ;;  %v5142_v22 = vld [vmem:[%s7193_s4 + $0x330] sm:$0xff]  }
 0x27f   : > { %5132 = vst [vmem:[%s7193_s4 + $0x2e0] sm:$0xff] %v4610_v1   ;;  %v4615_v26 = vpack.c.bf16 %v2351_v55, %v2350_v8  ;;  %v2353_v52 = vmax.f32 %v2289_v60, 0.0  ;;  %v2291_v61 = vadd.f32 %v2227_v48, %v5902_v13  ;;  %v4633_v29 = vunpack.c.l.bf16 %v5137_v21  ;;  %v5143_v8 = vld [vmem:[%s7193_s4 + $0x338] sm:$0xff]  }
 0x280   : > { %v2354_v53 = vmax.f32 %v2290_v7, 0.0  ;;  %v2614_v23 = vmul.f32 %v4630_v25, %v5873_v44  ;;  %v2677_v35 = vadd.f32 %v2613_v33, %v5902_v13  ;;  %v4634_v4 = vunpack.c.h.bf16 %v5137_v21 }
 0x281   : > { %5133 = vst [vmem:[%s7193_s4 + $0x2e8] sm:$0xff] %v4615_v26   ;;  %v4620_v47 = vpack.c.bf16 %v2353_v52, %v2352_v63  ;;  %v2355_v46 = vmax.f32 %v2291_v61, 0.0  ;;  %v2615_v37 = vmul.f32 %v4633_v29, %v5873_v44  ;;  %v4637_v31 = vunpack.c.l.bf16 %v5138_v9  ;;  %v5144_v63 = vld [vmem:[%s7193_s4 + $0x340] sm:$0xff]  }
 0x282   : > { %v2678_v18 = vadd.f32 %v2614_v23, %v5902_v13  ;;  %v2741_v34 = vmax.f32 %v2677_v35, 0.0  ;;  %v2616_v43 = vmul.f32 %v4634_v4, %v5873_v44  ;;  %v4638_v40 = vunpack.c.h.bf16 %v5138_v9 }
 0x283   : > { %5134 = vst [vmem:[%s7193_s4 + $0x2f0] sm:$0xff] %v4620_v47   ;;  %v4625_v41 = vpack.c.bf16 %v2355_v46, %v2354_v53  ;;  %v2679_v2 = vadd.f32 %v2615_v37, %v5902_v13  ;;  %v2617_v14 = vmul.f32 %v4637_v31, %v5873_v44  ;;  %v4641_v45 = vunpack.c.l.bf16 %v5139_v54 }
 0x284   : > { %v2742_v49 = vmax.f32 %v2678_v18, 0.0  ;;  %v2680_v51 = vadd.f32 %v2616_v43, %v5902_v13  ;;  %v2618_v17 = vmul.f32 %v4638_v40, %v5873_v44  ;;  %v4642_v38 = vunpack.c.h.bf16 %v5139_v54  ;;  %v5145_v54 = vld [vmem:[%s7193_s4 + $0x348] sm:$0xff]  }
 0x285   : > { %5135 = vst [vmem:[%s7193_s4 + $0x2f8] sm:$0xff] %v4625_v41   ;;  %v2743_v36 = vmax.f32 %v2679_v2, 0.0  ;;  %v2681_v58 = vadd.f32 %v2617_v14, %v5902_v13  ;;  %v2619_v3 = vmul.f32 %v4641_v45, %v5873_v44  ;;  %v4645_v24 = vunpack.c.l.bf16 %v5140_v10 }
 0x286   : > { %v4758_v57 = vpack.c.bf16 %v2742_v49, %v2741_v34  ;;  %v2744_v16 = vmax.f32 %v2680_v51, 0.0  ;;  %v2682_v27 = vadd.f32 %v2618_v17, %v5902_v13  ;;  %v2620_v11 = vmul.f32 %v4642_v38, %v5873_v44 }
 0x287   : > { %v2745_v56 = vmax.f32 %v2681_v58, 0.0  ;;  %v2683_v30 = vadd.f32 %v2619_v3, %v5902_v13  ;;  %v4646_v62 = vunpack.c.h.bf16 %v5140_v10  ;;  %v2621_v6 = vmul.f32 %v4645_v24, %v5873_v44  ;;  %v5146_v10 = vld [vmem:[%s7193_s4 + $0x350] sm:$0xff]  }
 0x288   : > { %5168 = vst [vmem:[%s7193_s4 + $0x300] sm:$0xff] %v4758_v57   ;;  %v4763_v28 = vpack.c.bf16 %v2744_v16, %v2743_v36  ;;  %v2746_v32 = vmax.f32 %v2682_v27, 0.0  ;;  %v2684_v50 = vadd.f32 %v2620_v11, %v5902_v13  ;;  %v4649_v42 = vunpack.c.l.bf16 %v5141_v5  ;;  %v5147_v36 = vld [vmem:[%s7193_s4 + $0x358] sm:$0xff]  }
 0x289   : > { %v2747_v59 = vmax.f32 %v2683_v30, 0.0  ;;  %v2622_v15 = vmul.f32 %v4646_v62, %v5873_v44  ;;  %v2685_v0 = vadd.f32 %v2621_v6, %v5902_v13  ;;  %v4650_v39 = vunpack.c.h.bf16 %v5141_v5 }
 0x28a   : > { %5169 = vst [vmem:[%s7193_s4 + $0x308] sm:$0xff] %v4763_v28   ;;  %v4768_v20 = vpack.c.bf16 %v2746_v32, %v2745_v56  ;;  %v2748_v12 = vmax.f32 %v2684_v50, 0.0  ;;  %v2623_v19 = vmul.f32 %v4649_v42, %v5873_v44  ;;  %v4653_v21 = vunpack.c.l.bf16 %v5142_v22  ;;  %v5148_v56 = vld [vmem:[%s7193_s4 + $0x360] sm:$0xff]  }
 0x28b   : > { %v2686_v1 = vadd.f32 %v2622_v15, %v5902_v13  ;;  %v2749_v55 = vmax.f32 %v2685_v0, 0.0  ;;  %v2624_v60 = vmul.f32 %v4650_v39, %v5873_v44  ;;  %v4654_v48 = vunpack.c.h.bf16 %v5142_v22 }
 0x28c   : > { %5170 = vst [vmem:[%s7193_s4 + $0x310] sm:$0xff] %v4768_v20   ;;  %v4773_v7 = vpack.c.bf16 %v2748_v12, %v2747_v59  ;;  %v2687_v25 = vadd.f32 %v2623_v19, %v5902_v13  ;;  %v2625_v33 = vmul.f32 %v4653_v21, %v5873_v44  ;;  %v4657_v9 = vunpack.c.l.bf16 %v5143_v8 }
 0x28d   : > { %v2750_v26 = vmax.f32 %v2686_v1, 0.0  ;;  %v2688_v52 = vadd.f32 %v2624_v60, %v5902_v13  ;;  %v2626_v61 = vmul.f32 %v4654_v48, %v5873_v44  ;;  %v4658_v29 = vunpack.c.h.bf16 %v5143_v8  ;;  %v5149_v8 = vld [vmem:[%s7193_s4 + $0x368] sm:$0xff]  }
 0x28e   : > { %5171 = vst [vmem:[%s7193_s4 + $0x318] sm:$0xff] %v4773_v7   ;;  %v2751_v53 = vmax.f32 %v2687_v25, 0.0  ;;  %v2689_v23 = vadd.f32 %v2625_v33, %v5902_v13  ;;  %v2627_v35 = vmul.f32 %v4657_v9, %v5873_v44  ;;  %v4661_v4 = vunpack.c.l.bf16 %v5144_v63 }
 0x28f   : > { %v4778_v47 = vpack.c.bf16 %v2750_v26, %v2749_v55  ;;  %v2752_v46 = vmax.f32 %v2688_v52, 0.0  ;;  %v2690_v37 = vadd.f32 %v2626_v61, %v5902_v13  ;;  %v2628_v31 = vmul.f32 %v4658_v29, %v5873_v44 }
 0x290   : > { %v2753_v18 = vmax.f32 %v2689_v23, 0.0  ;;  %v2691_v34 = vadd.f32 %v2627_v35, %v5902_v13  ;;  %v4662_v43 = vunpack.c.h.bf16 %v5144_v63  ;;  %v2629_v40 = vmul.f32 %v4661_v4, %v5873_v44  ;;  %v5150_v63 = vld [vmem:[%s7193_s4 + $0x370] sm:$0xff]  }
 0x291   : > { %5172 = vst [vmem:[%s7193_s4 + $0x320] sm:$0xff] %v4778_v47   ;;  %v4783_v41 = vpack.c.bf16 %v2752_v46, %v2751_v53  ;;  %v2754_v2 = vmax.f32 %v2690_v37, 0.0  ;;  %v2692_v14 = vadd.f32 %v2628_v31, %v5902_v13  ;;  %v4665_v45 = vunpack.c.l.bf16 %v5145_v54  ;;  %v5151_v53 = vld [vmem:[%s7193_s4 + $0x378] sm:$0xff]  }
 0x292   : > { %v2755_v49 = vmax.f32 %v2691_v34, 0.0  ;;  %v2630_v51 = vmul.f32 %v4662_v43, %v5873_v44  ;;  %v2693_v17 = vadd.f32 %v2629_v40, %v5902_v13  ;;  %v4666_v38 = vunpack.c.h.bf16 %v5145_v54 }
 0x293   : > { %5173 = vst [vmem:[%s7193_s4 + $0x328] sm:$0xff] %v4783_v41   ;;  %v4788_v58 = vpack.c.bf16 %v2754_v2, %v2753_v18  ;;  %v2756_v3 = vmax.f32 %v2692_v14, 0.0  ;;  %v2631_v24 = vmul.f32 %v4665_v45, %v5873_v44  ;;  %v4669_v5 = vunpack.c.l.bf16 %v5146_v10  ;;  %v5152_v18 = vld [vmem:[%s7193_s4 + $0x380] sm:$0xff]  }
 0x294   : > { %v2694_v57 = vadd.f32 %v2630_v51, %v5902_v13  ;;  %v2757_v16 = vmax.f32 %v2693_v17, 0.0  ;;  %v2632_v27 = vmul.f32 %v4666_v38, %v5873_v44  ;;  %v4670_v11 = vunpack.c.h.bf16 %v5146_v10 }
 0x295   : > { %5174 = vst [vmem:[%s7193_s4 + $0x330] sm:$0xff] %v4788_v58   ;;  %v4793_v30 = vpack.c.bf16 %v2756_v3, %v2755_v49  ;;  %v2695_v62 = vadd.f32 %v2631_v24, %v5902_v13  ;;  %v2633_v6 = vmul.f32 %v4669_v5, %v5873_v44  ;;  %v4673_v22 = vunpack.c.l.bf16 %v5147_v36 }
 0x296   : > { %v2758_v28 = vmax.f32 %v2694_v57, 0.0  ;;  %v2696_v32 = vadd.f32 %v2632_v27, %v5902_v13  ;;  %v2634_v50 = vmul.f32 %v4670_v11, %v5873_v44  ;;  %v4674_v42 = vunpack.c.h.bf16 %v5147_v36  ;;  %v5153_v36 = vld [vmem:[%s7193_s4 + $0x388] sm:$0xff]  }
 0x297   : > { %5175 = vst [vmem:[%s7193_s4 + $0x338] sm:$0xff] %v4793_v30   ;;  %v2759_v59 = vmax.f32 %v2695_v62, 0.0  ;;  %v2697_v15 = vadd.f32 %v2633_v6, %v5902_v13  ;;  %v2635_v0 = vmul.f32 %v4673_v22, %v5873_v44  ;;  %v4677_v39 = vunpack.c.l.bf16 %v5148_v56 }
 0x298   : > { %v4798_v20 = vpack.c.bf16 %v2758_v28, %v2757_v16  ;;  %v2760_v12 = vmax.f32 %v2696_v32, 0.0  ;;  %v2698_v19 = vadd.f32 %v2634_v50, %v5902_v13  ;;  %v2636_v21 = vmul.f32 %v4674_v42, %v5873_v44 }
 0x299   : > { %v2761_v1 = vmax.f32 %v2697_v15, 0.0  ;;  %v2699_v55 = vadd.f32 %v2635_v0, %v5902_v13  ;;  %v4678_v60 = vunpack.c.h.bf16 %v5148_v56  ;;  %v2637_v48 = vmul.f32 %v4677_v39, %v5873_v44  ;;  %v5154_v56 = vld [vmem:[%s7193_s4 + $0x390] sm:$0xff]  }
 0x29a   : > { %5176 = vst [vmem:[%s7193_s4 + $0x340] sm:$0xff] %v4798_v20   ;;  %v4803_v7 = vpack.c.bf16 %v2760_v12, %v2759_v59  ;;  %v2762_v25 = vmax.f32 %v2698_v19, 0.0  ;;  %v2700_v33 = vadd.f32 %v2636_v21, %v5902_v13  ;;  %v4681_v9 = vunpack.c.l.bf16 %v5149_v8  ;;  %v5155_v59 = vld [vmem:[%s7193_s4 + $0x398] sm:$0xff]  }
 0x29b   : > { %v2763_v26 = vmax.f32 %v2699_v55, 0.0  ;;  %v2638_v52 = vmul.f32 %v4678_v60, %v5873_v44  ;;  %v2701_v61 = vadd.f32 %v2637_v48, %v5902_v13  ;;  %v4682_v29 = vunpack.c.h.bf16 %v5149_v8 }
 0x29c   : > { %5177 = vst [vmem:[%s7193_s4 + $0x348] sm:$0xff] %v4803_v7   ;;  %v4808_v23 = vpack.c.bf16 %v2762_v25, %v2761_v1  ;;  %v2764_v35 = vmax.f32 %v2700_v33, 0.0  ;;  %v2639_v4 = vmul.f32 %v4681_v9, %v5873_v44  ;;  %v4685_v54 = vunpack.c.l.bf16 %v5150_v63  ;;  %v5156_v1 = vld [vmem:[%s7193_s4 + $0x3a0] sm:$0xff]  }
 0x29d   : > { %v2702_v47 = vadd.f32 %v2638_v52, %v5902_v13  ;;  %v2765_v46 = vmax.f32 %v2701_v61, 0.0  ;;  %v2640_v37 = vmul.f32 %v4682_v29, %v5873_v44  ;;  %v4686_v31 = vunpack.c.h.bf16 %v5150_v63 }
 0x29e   : > { %5178 = vst [vmem:[%s7193_s4 + $0x350] sm:$0xff] %v4808_v23   ;;  %v4813_v34 = vpack.c.bf16 %v2764_v35, %v2763_v26  ;;  %v2703_v43 = vadd.f32 %v2639_v4, %v5902_v13  ;;  %v2641_v40 = vmul.f32 %v4685_v54, %v5873_v44  ;;  %v4689_v10 = vunpack.c.l.bf16 %v5151_v53 }
 0x29f   : > { %v2766_v41 = vmax.f32 %v2702_v47, 0.0  ;;  %v2704_v2 = vadd.f32 %v2640_v37, %v5902_v13  ;;  %v2642_v14 = vmul.f32 %v4686_v31, %v5873_v44  ;;  %v4690_v45 = vunpack.c.h.bf16 %v5151_v53  ;;  %v5157_v53 = vld [vmem:[%s7193_s4 + $0x3a8] sm:$0xff]  }
 0x2a0   : > { %5179 = vst [vmem:[%s7193_s4 + $0x358] sm:$0xff] %v4813_v34   ;;  %v2767_v49 = vmax.f32 %v2703_v43, 0.0  ;;  %v2705_v51 = vadd.f32 %v2641_v40, %v5902_v13  ;;  %v2643_v17 = vmul.f32 %v4689_v10, %v5873_v44  ;;  %v4693_v38 = vunpack.c.l.bf16 %v5152_v18 }
 0x2a1   : > { %v4818_v58 = vpack.c.bf16 %v2766_v41, %v2765_v46  ;;  %v2768_v3 = vmax.f32 %v2704_v2, 0.0  ;;  %v2706_v24 = vadd.f32 %v2642_v14, %v5902_v13  ;;  %v2644_v5 = vmul.f32 %v4690_v45, %v5873_v44 }
 0x2a2   : > { %v2769_v57 = vmax.f32 %v2705_v51, 0.0  ;;  %v2707_v16 = vadd.f32 %v2643_v17, %v5902_v13  ;;  %v4694_v27 = vunpack.c.h.bf16 %v5152_v18  ;;  %v2645_v11 = vmul.f32 %v4693_v38, %v5873_v44  ;;  %v5158_v18 = vld [vmem:[%s7193_s4 + $0x3b0] sm:$0xff]  }
 0x2a3   : > { %5180 = vst [vmem:[%s7193_s4 + $0x360] sm:$0xff] %v4818_v58   ;;  %v4823_v30 = vpack.c.bf16 %v2768_v3, %v2767_v49  ;;  %v2770_v62 = vmax.f32 %v2706_v24, 0.0  ;;  %v2708_v6 = vadd.f32 %v2644_v5, %v5902_v13  ;;  %v4697_v22 = vunpack.c.l.bf16 %v5153_v36  ;;  %v5159_v49 = vld [vmem:[%s7193_s4 + $0x3b8] sm:$0xff]  }
 0x2a4   : > { %v2771_v28 = vmax.f32 %v2707_v16, 0.0  ;;  %v2646_v32 = vmul.f32 %v4694_v27, %v5873_v44  ;;  %v2709_v50 = vadd.f32 %v2645_v11, %v5902_v13  ;;  %v4698_v42 = vunpack.c.h.bf16 %v5153_v36 }
 0x2a5   : > { %5181 = vst [vmem:[%s7193_s4 + $0x368] sm:$0xff] %v4823_v30   ;;  %v4828_v15 = vpack.c.bf16 %v2770_v62, %v2769_v57  ;;  %v2772_v0 = vmax.f32 %v2708_v6, 0.0  ;;  %v2647_v39 = vmul.f32 %v4697_v22, %v5873_v44  ;;  %v4701_v8 = vunpack.c.l.bf16 %v5154_v56  ;;  %v5160_v57 = vld [vmem:[%s7193_s4 + $0x3c0] sm:$0xff]  }
 0x2a6   : > { %v2710_v20 = vadd.f32 %v2646_v32, %v5902_v13  ;;  %v2773_v12 = vmax.f32 %v2709_v50, 0.0  ;;  %v2648_v19 = vmul.f32 %v4698_v42, %v5873_v44  ;;  %v4702_v21 = vunpack.c.h.bf16 %v5154_v56 }
 0x2a7   : > { %5182 = vst [vmem:[%s7193_s4 + $0x370] sm:$0xff] %v4828_v15   ;;  %v4833_v55 = vpack.c.bf16 %v2772_v0, %v2771_v28  ;;  %v2711_v60 = vadd.f32 %v2647_v39, %v5902_v13  ;;  %v2649_v48 = vmul.f32 %v4701_v8, %v5873_v44  ;;  %v4705_v63 = vunpack.c.l.bf16 %v5155_v59 }
 0x2a8   : > { %v2774_v7 = vmax.f32 %v2710_v20, 0.0  ;;  %v2712_v25 = vadd.f32 %v2648_v19, %v5902_v13  ;;  %v2650_v33 = vmul.f32 %v4702_v21, %v5873_v44  ;;  %v4706_v9 = vunpack.c.h.bf16 %v5155_v59  ;;  %v5161_v59 = vld [vmem:[%s7193_s4 + $0x3c8] sm:$0xff]  }
 0x2a9   : > { %5183 = vst [vmem:[%s7193_s4 + $0x378] sm:$0xff] %v4833_v55   ;;  %v2775_v26 = vmax.f32 %v2711_v60, 0.0  ;;  %v2713_v52 = vadd.f32 %v2649_v48, %v5902_v13  ;;  %v2651_v61 = vmul.f32 %v4705_v63, %v5873_v44  ;;  %v4709_v29 = vunpack.c.l.bf16 %v5156_v1 }
 0x2aa   : > { %v4838_v23 = vpack.c.bf16 %v2774_v7, %v2773_v12  ;;  %v2776_v35 = vmax.f32 %v2712_v25, 0.0  ;;  %v2714_v4 = vadd.f32 %v2650_v33, %v5902_v13  ;;  %v2652_v54 = vmul.f32 %v4706_v9, %v5873_v44 }
 0x2ab   : > { %v2777_v47 = vmax.f32 %v2713_v52, 0.0  ;;  %v2715_v46 = vadd.f32 %v2651_v61, %v5902_v13  ;;  %v4710_v37 = vunpack.c.h.bf16 %v5156_v1  ;;  %v2653_v31 = vmul.f32 %v4709_v29, %v5873_v44  ;;  %v5162_v1 = vld [vmem:[%s7193_s4 + $0x3d0] sm:$0xff]  }
 0x2ac   : > { %5184 = vst [vmem:[%s7193_s4 + $0x380] sm:$0xff] %v4838_v23   ;;  %v4843_v34 = vpack.c.bf16 %v2776_v35, %v2775_v26  ;;  %v2778_v43 = vmax.f32 %v2714_v4, 0.0  ;;  %v2716_v40 = vadd.f32 %v2652_v54, %v5902_v13  ;;  %v4713_v10 = vunpack.c.l.bf16 %v5157_v53  ;;  %v5163_v26 = vld [vmem:[%s7193_s4 + $0x3d8] sm:$0xff]  }
 0x2ad   : > { %v2779_v41 = vmax.f32 %v2715_v46, 0.0  ;;  %v2654_v2 = vmul.f32 %v4710_v37, %v5873_v44  ;;  %v2717_v14 = vadd.f32 %v2653_v31, %v5902_v13  ;;  %v4714_v45 = vunpack.c.h.bf16 %v5157_v53 }
 0x2ae   : > { %5185 = vst [vmem:[%s7193_s4 + $0x388] sm:$0xff] %v4843_v34   ;;  %v4848_v51 = vpack.c.bf16 %v2778_v43, %v2777_v47  ;;  %v2780_v17 = vmax.f32 %v2716_v40, 0.0  ;;  %v2655_v38 = vmul.f32 %v4713_v10, %v5873_v44  ;;  %v4717_v36 = vunpack.c.l.bf16 %v5158_v18  ;;  %v5164_v47 = vld [vmem:[%s7193_s4 + $0x3e0] sm:$0xff]  }
 0x2af   : > { %v2718_v58 = vadd.f32 %v2654_v2, %v5902_v13  ;;  %v2781_v3 = vmax.f32 %v2717_v14, 0.0  ;;  %v2656_v24 = vmul.f32 %v4714_v45, %v5873_v44  ;;  %v4718_v5 = vunpack.c.h.bf16 %v5158_v18 }
 0x2b0   : > { %5186 = vst [vmem:[%s7193_s4 + $0x390] sm:$0xff] %v4848_v51   ;;  %v4853_v16 = vpack.c.bf16 %v2780_v17, %v2779_v41  ;;  %v2719_v27 = vadd.f32 %v2655_v38, %v5902_v13  ;;  %v2657_v11 = vmul.f32 %v4717_v36, %v5873_v44  ;;  %v4721_v56 = vunpack.c.l.bf16 %v5159_v49 }
 0x2b1   : > { %v2782_v30 = vmax.f32 %v2718_v58, 0.0  ;;  %v2720_v62 = vadd.f32 %v2656_v24, %v5902_v13  ;;  %v2658_v6 = vmul.f32 %v4718_v5, %v5873_v44  ;;  %v4722_v22 = vunpack.c.h.bf16 %v5159_v49  ;;  %v5165_v49 = vld [vmem:[%s7193_s4 + $0x3e8] sm:$0xff]  }
 0x2b2   : > { %5187 = vst [vmem:[%s7193_s4 + $0x398] sm:$0xff] %v4853_v16   ;;  %v2783_v28 = vmax.f32 %v2719_v27, 0.0  ;;  %v2721_v32 = vadd.f32 %v2657_v11, %v5902_v13  ;;  %v2659_v50 = vmul.f32 %v4721_v56, %v5873_v44  ;;  %v4725_v42 = vunpack.c.l.bf16 %v5160_v57 }
 0x2b3   : > { %v4858_v15 = vpack.c.bf16 %v2782_v30, %v2781_v3  ;;  %v2784_v0 = vmax.f32 %v2720_v62, 0.0  ;;  %v2722_v39 = vadd.f32 %v2658_v6, %v5902_v13  ;;  %v2660_v8 = vmul.f32 %v4722_v22, %v5873_v44 }
 0x2b4   : > { %v2785_v20 = vmax.f32 %v2721_v32, 0.0  ;;  %v2723_v12 = vadd.f32 %v2659_v50, %v5902_v13  ;;  %v4726_v19 = vunpack.c.h.bf16 %v5160_v57  ;;  %v2661_v21 = vmul.f32 %v4725_v42, %v5873_v44  ;;  %v5166_v57 = vld [vmem:[%s7193_s4 + $0x3f0] sm:$0xff]  }
 0x2b5   : > { %5188 = vst [vmem:[%s7193_s4 + $0x3a0] sm:$0xff] %v4858_v15   ;;  %v4863_v55 = vpack.c.bf16 %v2784_v0, %v2783_v28  ;;  %v2786_v60 = vmax.f32 %v2722_v39, 0.0  ;;  %v2724_v48 = vadd.f32 %v2660_v8, %v5902_v13  ;;  %v4729_v63 = vunpack.c.l.bf16 %v5161_v59  ;;  %v5167_v28 = vld [vmem:[%s7193_s4 + $0x3f8] sm:$0xff]  }
 0x2b6   : > { %v2787_v7 = vmax.f32 %v2723_v12, 0.0  ;;  %v2662_v25 = vmul.f32 %v4726_v19, %v5873_v44  ;;  %v2725_v33 = vadd.f32 %v2661_v21, %v5902_v13  ;;  %v4730_v9 = vunpack.c.h.bf16 %v5161_v59 }
 0x2b7   : > { %5189 = vst [vmem:[%s7193_s4 + $0x3a8] sm:$0xff] %v4863_v55   ;;  %v4868_v52 = vpack.c.bf16 %v2786_v60, %v2785_v20  ;;  %v2788_v61 = vmax.f32 %v2724_v48, 0.0  ;;  %v2663_v29 = vmul.f32 %v4729_v63, %v5873_v44  ;;  %v4733_v53 = vunpack.c.l.bf16 %v5162_v1 }
 0x2b8   : > { %v2726_v23 = vadd.f32 %v2662_v25, %v5902_v13  ;;  %v2789_v35 = vmax.f32 %v2725_v33, 0.0  ;;  %v2664_v4 = vmul.f32 %v4730_v9, %v5873_v44  ;;  %v4734_v54 = vunpack.c.h.bf16 %v5162_v1 }
 0x2b9   : > { %5190 = vst [vmem:[%s7193_s4 + $0x3b0] sm:$0xff] %v4868_v52   ;;  %v4873_v46 = vpack.c.bf16 %v2788_v61, %v2787_v7  ;;  %v2727_v37 = vadd.f32 %v2663_v29, %v5902_v13  ;;  %v2665_v31 = vmul.f32 %v4733_v53, %v5873_v44  ;;  %v4737_v18 = vunpack.c.l.bf16 %v5163_v26 }
 0x2ba   : > { %v2790_v34 = vmax.f32 %v2726_v23, 0.0  ;;  %v2728_v43 = vadd.f32 %v2664_v4, %v5902_v13  ;;  %v2666_v40 = vmul.f32 %v4734_v54, %v5873_v44  ;;  %v4738_v10 = vunpack.c.h.bf16 %v5163_v26 }
 0x2bb   : > { %5191 = vst [vmem:[%s7193_s4 + $0x3b8] sm:$0xff] %v4873_v46   ;;  %v2791_v41 = vmax.f32 %v2727_v37, 0.0  ;;  %v2729_v2 = vadd.f32 %v2665_v31, %v5902_v13  ;;  %v2667_v14 = vmul.f32 %v4737_v18, %v5873_v44  ;;  %v4741_v45 = vunpack.c.l.bf16 %v5164_v47 }
 0x2bc   : > { %v4878_v51 = vpack.c.bf16 %v2790_v34, %v2789_v35  ;;  %v2792_v17 = vmax.f32 %v2728_v43, 0.0  ;;  %v2730_v38 = vadd.f32 %v2666_v40, %v5902_v13  ;;  %v2668_v36 = vmul.f32 %v4738_v10, %v5873_v44 }
 0x2bd   : > { %v2793_v58 = vmax.f32 %v2729_v2, 0.0  ;;  %v2731_v3 = vadd.f32 %v2667_v14, %v5902_v13  ;;  %v4742_v24 = vunpack.c.h.bf16 %v5164_v47  ;;  %v2669_v5 = vmul.f32 %v4741_v45, %v5873_v44 }
 0x2be   : > { %5192 = vst [vmem:[%s7193_s4 + $0x3c0] sm:$0xff] %v4878_v51   ;;  %v4883_v16 = vpack.c.bf16 %v2792_v17, %v2791_v41  ;;  %v2794_v27 = vmax.f32 %v2730_v38, 0.0  ;;  %v2732_v11 = vadd.f32 %v2668_v36, %v5902_v13  ;;  %v4745_v56 = vunpack.c.l.bf16 %v5165_v49 }
 0x2bf   : > { %v2795_v30 = vmax.f32 %v2731_v3, 0.0  ;;  %v2670_v62 = vmul.f32 %v4742_v24, %v5873_v44  ;;  %v2733_v6 = vadd.f32 %v2669_v5, %v5902_v13  ;;  %v4746_v22 = vunpack.c.h.bf16 %v5165_v49 }
 0x2c0   : > { %5193 = vst [vmem:[%s7193_s4 + $0x3c8] sm:$0xff] %v4883_v16   ;;  %v4888_v32 = vpack.c.bf16 %v2794_v27, %v2793_v58  ;;  %v2796_v50 = vmax.f32 %v2732_v11, 0.0  ;;  %v2671_v42 = vmul.f32 %v4745_v56, %v5873_v44  ;;  %v4749_v59 = vunpack.c.l.bf16 %v5166_v57 }
 0x2c1   : > { %v2734_v15 = vadd.f32 %v2670_v62, %v5902_v13  ;;  %v2797_v0 = vmax.f32 %v2733_v6, 0.0  ;;  %v2672_v39 = vmul.f32 %v4746_v22, %v5873_v44  ;;  %v4750_v8 = vunpack.c.h.bf16 %v5166_v57 }
 0x2c2   : > { %5194 = vst [vmem:[%s7193_s4 + $0x3d0] sm:$0xff] %v4888_v32   ;;  %v4893_v20 = vpack.c.bf16 %v2796_v50, %v2795_v30  ;;  %v2735_v12 = vadd.f32 %v2671_v42, %v5902_v13  ;;  %v2673_v19 = vmul.f32 %v4749_v59, %v5873_v44  ;;  %v4753_v21 = vunpack.c.l.bf16 %v5167_v28 }
 0x2c3   : > { %v2798_v1 = vmax.f32 %v2734_v15, 0.0  ;;  %v2736_v55 = vadd.f32 %v2672_v39, %v5902_v13  ;;  %v2674_v60 = vmul.f32 %v4750_v8, %v5873_v44  ;;  %v4754_v48 = vunpack.c.h.bf16 %v5167_v28 }
 0x2c4   : > { %5195 = vst [vmem:[%s7193_s4 + $0x3d8] sm:$0xff] %v4893_v20   ;;  %v2799_v63 = vmax.f32 %v2735_v12, 0.0  ;;  %v2737_v7 = vadd.f32 %v2673_v19, %v5902_v13  ;;  %v2675_v25 = vmul.f32 %v4753_v21, %v5873_v44 }
 0x2c5   : > { %v4898_v33 = vpack.c.bf16 %v2798_v1, %v2797_v0  ;;  %v2800_v9 = vmax.f32 %v2736_v55, 0.0  ;;  %v2738_v26 = vadd.f32 %v2674_v60, %v5902_v13  ;;  %v2676_v52 = vmul.f32 %v4754_v48, %v5873_v44 }
 0x2c6   : > { %v2801_v61 = vmax.f32 %v2737_v7, 0.0  ;;  %v2739_v29 = vadd.f32 %v2675_v25, %v5902_v13 }
 0x2c7   : > { %5196 = vst [vmem:[%s7193_s4 + $0x3e0] sm:$0xff] %v4898_v33   ;;  %v4903_v53 = vpack.c.bf16 %v2800_v9, %v2799_v63  ;;  %v2802_v23 = vmax.f32 %v2738_v26, 0.0  ;;  %v2740_v35 = vadd.f32 %v2676_v52, %v5902_v13 }
 0x2c8   : > { %v2803_v4 = vmax.f32 %v2739_v29, 0.0 }
 0x2c9   : > { %5197 = vst [vmem:[%s7193_s4 + $0x3e8] sm:$0xff] %v4903_v53   ;;  %v4908_v54 = vpack.c.bf16 %v2802_v23, %v2801_v61  ;;  %v2804_v47 = vmax.f32 %v2740_v35, 0.0 }
 0x2cb   : > { %5198 = vst [vmem:[%s7193_s4 + $0x3f0] sm:$0xff] %v4908_v54   ;;  %v4913_v44 = vpack.c.bf16 %v2804_v47, %v2803_v4 }
 0x2cd   : > { %5199 = vst [vmem:[%s7193_s4 + $0x3f8] sm:$0xff] %v4913_v44  }
 0x2ce PF: > { %s14_s17 = sadd.s32 1, %s5261_s17   ;;  %s7206_s15 = smov %s5257_s16 }
 0x2cf   : > { %p11_p7 = scmp.ge.s32.totalorder %s14_s17, 6   ;;  %s7207_s16 = smov %s7209_s18 }
 0x2d1   :  { %13 = sbr.rel (!%p11_p7) target bundleno = 2 (0x2), region = 77 }

// kernel: netG64_forward.9
= control target key start
LH: loop header
LB: loop body
LE: loop exit
PB: predicated region body
PF: predicated region fallthrough
CT: control target
= control target key end

     0   :  { %s1214_s9 = smov 0   ;;  %s1359_s0 = inlined_call_operand.vmem [shape: bf16[2048,128], index: 0, kind: input, shape index: {}]   ;;  %s1360_s1 = inlined_call_operand.vmem [shape: bf16[128,128], index: 1, kind: input, shape index: {}]   ;;  %s1361_s2 = inlined_call_operand.vmem [shape: f32[2048,128], index: 2, kind: output, shape index: {}]  }
   0x1 LB: > { %s820_s10 = sadd.s32 4294967295, %s1197_s9   ;;  %p824_p0 = scmp.ge.s32.totalorder %s1197_s9, 1  ;;  %s1197_s9 = sphi %s1214_s9, %s12_s9  }
   0x2   : > { %p113_p1 = scmp.lt.s32.totalorder %s1197_s9, 5 }
   0x4   : > { %p114_p2 = pnand %p824_p0, %p113_p1 }
   0x5   : > { %s825_s19 = sshll.u32 (!%p114_p2), %s820_s10, 6 }
   0x6   : > { %117 = sbr.rel (%p114_p2) target bundleno = 305 (0x131), region = 28  ;;  %p136_p3 = scmp.lt.s32.totalorder (!%p114_p2), %s825_s19, 255 }
   0xb   : > { %v1030_v0 = vld [vmem:[%s1360_s1 + $0x38] sm:$0xff]  ;;  %v1029_v1 = vld [vmem:[%s1360_s1 + $0x30] sm:$0xff]  ;;  %v1028_v2 = vld [vmem:[%s1360_s1 + $0x28] sm:$0xff]  ;;  %s1363_s19 = smov (!%p136_p3, %s825_s19), 255 }
   0xc   : > { %467 = vmatpush.bf16.msra.mxu0 %v1030_v0  ;;  %1031 = vmatpush.bf16.msra.mxu1 %v1030_v0  ;;  %v1027_v3 = vld [vmem:[%s1360_s1 + $0x20] sm:$0xff]  ;;  %v1026_v4 = vld [vmem:[%s1360_s1 + $0x18] sm:$0xff]  ;;  %v1025_v5 = vld [vmem:[%s1360_s1 + $0x10] sm:$0xff]  ;;  %s826_s26 = sshll.u32 %s1363_s19, 2  ;;  %s828_s4 = sshll.u32 %s1363_s19, 3 }
   0xd   : > { %1032 = vmatpush.bf16.msra.mxu2 %v1030_v0  ;;  %1033 = vmatpush.bf16.msra.mxu3 %v1030_v0  ;;  %v1024_v6 = vld [vmem:[%s1360_s1 + $0x8] sm:$0xff]  ;;  %v1023_v7 = vld [vmem:[%s1360_s1] sm:$0xff]  ;;  %s1252_s3 = scalar_lea.vmem %s1359_s0, %s826_s26  ;;  %s1290_s7 = scalar_lea.vmem %s1361_s2, %s828_s4 }
   0xe   : > { %v991_v8 = vld [vmem:[%s1252_s3] sm:$0xff]  ;;  %v992_v12 = vld [vmem:[%s1252_s3 + $0x8] sm:$0xff]  ;;  %v993_v16 = vld [vmem:[%s1252_s3 + $0x10] sm:$0xff] }
   0xf   : > { %v999_v9 = vld [vmem:[%s1252_s3 + $0x40] sm:$0xff]  ;;  %v1000_v13 = vld [vmem:[%s1252_s3 + $0x48] sm:$0xff]  ;;  %v1001_v17 = vld [vmem:[%s1252_s3 + $0x50] sm:$0xff] }
  0x10   : > { %468 = vmatpush.bf16.msra.mxu0 %v1029_v1  ;;  %1034 = vmatpush.bf16.msra.mxu1 %v1029_v1  ;;  %v1007_v10 = vld [vmem:[%s1252_s3 + $0x80] sm:$0xff]  ;;  %v1008_v14 = vld [vmem:[%s1252_s3 + $0x88] sm:$0xff]  ;;  %v1009_v18 = vld [vmem:[%s1252_s3 + $0x90] sm:$0xff] }
  0x11   : > { %1035 = vmatpush.bf16.msra.mxu2 %v1029_v1  ;;  %1036 = vmatpush.bf16.msra.mxu3 %v1029_v1  ;;  %v1015_v11 = vld [vmem:[%s1252_s3 + $0xc0] sm:$0xff]  ;;  %v1016_v15 = vld [vmem:[%s1252_s3 + $0xc8] sm:$0xff]  ;;  %v1017_v19 = vld [vmem:[%s1252_s3 + $0xd0] sm:$0xff] }
  0x12   : > { %v994_v20 = vld [vmem:[%s1252_s3 + $0x18] sm:$0xff]  ;;  %v995_v24 = vld [vmem:[%s1252_s3 + $0x20] sm:$0xff]  ;;  %v996_v28 = vld [vmem:[%s1252_s3 + $0x28] sm:$0xff] }
  0x13   : > { %v1002_v21 = vld [vmem:[%s1252_s3 + $0x58] sm:$0xff]  ;;  %v1003_v25 = vld [vmem:[%s1252_s3 + $0x60] sm:$0xff]  ;;  %v1004_v29 = vld [vmem:[%s1252_s3 + $0x68] sm:$0xff] }
  0x14   : > { %469 = vmatpush.bf16.msra.mxu0 %v1028_v2  ;;  %1037 = vmatpush.bf16.msra.mxu1 %v1028_v2  ;;  %v1010_v22 = vld [vmem:[%s1252_s3 + $0x98] sm:$0xff]  ;;  %v1011_v26 = vld [vmem:[%s1252_s3 + $0xa0] sm:$0xff]  ;;  %v1012_v30 = vld [vmem:[%s1252_s3 + $0xa8] sm:$0xff] }
  0x15   : > { %1038 = vmatpush.bf16.msra.mxu2 %v1028_v2  ;;  %1039 = vmatpush.bf16.msra.mxu3 %v1028_v2  ;;  %v1018_v23 = vld [vmem:[%s1252_s3 + $0xd8] sm:$0xff]  ;;  %v1019_v27 = vld [vmem:[%s1252_s3 + $0xe0] sm:$0xff]  ;;  %v1020_v31 = vld [vmem:[%s1252_s3 + $0xe8] sm:$0xff] }
  0x16   : > { %v997_v32 = vld [vmem:[%s1252_s3 + $0x30] sm:$0xff]  ;;  %v998_v36 = vld [vmem:[%s1252_s3 + $0x38] sm:$0xff] }
  0x17   : > { %v1005_v33 = vld [vmem:[%s1252_s3 + $0x70] sm:$0xff]  ;;  %v1006_v37 = vld [vmem:[%s1252_s3 + $0x78] sm:$0xff] }
  0x18   : > { %470 = vmatpush.bf16.msra.mxu0 %v1027_v3  ;;  %1040 = vmatpush.bf16.msra.mxu1 %v1027_v3  ;;  %v1013_v34 = vld [vmem:[%s1252_s3 + $0xb0] sm:$0xff]  ;;  %v1014_v38 = vld [vmem:[%s1252_s3 + $0xb8] sm:$0xff] }
  0x19   : > { %1041 = vmatpush.bf16.msra.mxu2 %v1027_v3  ;;  %1042 = vmatpush.bf16.msra.mxu3 %v1027_v3  ;;  %v1021_v35 = vld [vmem:[%s1252_s3 + $0xf0] sm:$0xff]  ;;  %v1022_v39 = vld [vmem:[%s1252_s3 + $0xf8] sm:$0xff] }
  0x1c   : > { %471 = vmatpush.bf16.msra.mxu0 %v1026_v4  ;;  %1043 = vmatpush.bf16.msra.mxu1 %v1026_v4 }
  0x1d   : > { %1044 = vmatpush.bf16.msra.mxu2 %v1026_v4  ;;  %1045 = vmatpush.bf16.msra.mxu3 %v1026_v4 }
  0x20   : > { %472 = vmatpush.bf16.msra.mxu0 %v1025_v5  ;;  %1046 = vmatpush.bf16.msra.mxu1 %v1025_v5 }
  0x21   : > { %1047 = vmatpush.bf16.msra.mxu2 %v1025_v5  ;;  %1048 = vmatpush.bf16.msra.mxu3 %v1025_v5 }
  0x24   : > { %473 = vmatpush.bf16.msra.mxu0 %v1024_v6  ;;  %1049 = vmatpush.bf16.msra.mxu1 %v1024_v6 }
  0x25   : > { %1050 = vmatpush.bf16.msra.mxu2 %v1024_v6  ;;  %1051 = vmatpush.bf16.msra.mxu3 %v1024_v6 }
  0x28   : > { %474 = vmatpush.bf16.msra.mxu0 %v1023_v7  ;;  %1052 = vmatpush.bf16.msra.mxu1 %v1023_v7 }
  0x29   : > { %1053 = vmatpush.bf16.msra.mxu2 %v1023_v7  ;;  %1054 = vmatpush.bf16.msra.mxu3 %v1023_v7 }
  0x2b   : > { %475 = vmatmul.bf16.vlgmr.msra.gmra.mxu0 %v991_v8  ;;  %515 = vmatmul.bf16.vlgmr.msra.gmra.mxu1 %v999_v9 }
  0x2c   : > { %555 = vmatmul.bf16.vlgmr.msra.gmra.mxu2 %v1007_v10  ;;  %595 = vmatmul.bf16.vlgmr.msra.gmra.mxu3 %v1015_v11 }
  0x3b   : > { %480 = vmatmul.bf16.gmra.mxu0 %v992_v12  ;;  %520 = vmatmul.bf16.gmra.mxu1 %v1000_v13 }
  0x3c   : > { %560 = vmatmul.bf16.gmra.mxu2 %v1008_v14  ;;  %600 = vmatmul.bf16.gmra.mxu3 %v1016_v15 }
  0x4b   : > { %485 = vmatmul.bf16.gmra.mxu0 %v993_v16  ;;  %525 = vmatmul.bf16.gmra.mxu1 %v1001_v17 }
  0x4c   : > { %565 = vmatmul.bf16.gmra.mxu2 %v1009_v18  ;;  %605 = vmatmul.bf16.gmra.mxu3 %v1017_v19 }
  0x5b   : > { %490 = vmatmul.bf16.gmra.mxu0 %v994_v20  ;;  %530 = vmatmul.bf16.gmra.mxu1 %v1002_v21 }
  0x5c   : > { %570 = vmatmul.bf16.gmra.mxu2 %v1010_v22  ;;  %610 = vmatmul.bf16.gmra.mxu3 %v1018_v23 }
  0x6b   : > { %495 = vmatmul.bf16.gmra.mxu0 %v995_v24  ;;  %535 = vmatmul.bf16.gmra.mxu1 %v1003_v25 }
  0x6c   : > { %575 = vmatmul.bf16.gmra.mxu2 %v1011_v26  ;;  %615 = vmatmul.bf16.gmra.mxu3 %v1019_v27 }
  0x7b   : > { %500 = vmatmul.bf16.gmra.mxu0 %v996_v28  ;;  %540 = vmatmul.bf16.gmra.mxu1 %v1004_v29 }
  0x7c   : > { %580 = vmatmul.bf16.gmra.mxu2 %v1012_v30  ;;  %620 = vmatmul.bf16.gmra.mxu3 %v1020_v31 }
  0x8b   : > { %505 = vmatmul.bf16.gmra.mxu0 %v997_v32  ;;  %545 = vmatmul.bf16.gmra.mxu1 %v1005_v33 }
  0x8c   : > { %585 = vmatmul.bf16.gmra.mxu2 %v1013_v34  ;;  %625 = vmatmul.bf16.gmra.mxu3 %v1021_v35 }
  0x9b   : > { %510 = vmatmul.bf16.gmra.mxu0 %v998_v36  ;;  %550 = vmatmul.bf16.gmra.mxu1 %v1006_v37 }
  0x9c   : > { %590 = vmatmul.bf16.gmra.mxu2 %v1014_v38  ;;  %630 = vmatmul.bf16.gmra.mxu3 %v1022_v39 }
  0xa8   : > { %v476_v40 = vpop.f32.mrf.mxu0  ;;  %v516_v41 = vpop.f32.mrf.mxu1 }
  0xa9   : > { %1063 = vtanh.f32 %v476_v40 }
  0xaa   : > { %1065 = vtanh.f32 %v516_v41 }
  0xaf   : > { %v1064_v42 = vpop.eup %1063  ;;  %v556_v43 = vpop.f32.mrf.mxu2 }
  0xb0   : > { %v596_v44 = vpop.f32.mrf.mxu3  ;;  %v1066_v45 = vpop.eup %1065  ;;  %700 = vst [vmem:[%s1290_s7] sm:$0xff] %v1064_v42  ;;  %1067 = vtanh.f32 %v556_v43 }
  0xb1   : > { %v478_v46 = vpop.f32.mrf.mxu0  ;;  %v518_v47 = vpop.f32.mrf.mxu1  ;;  %716 = vst [vmem:[%s1290_s7 + $0x80] sm:$0xff] %v1066_v45  ;;  %1069 = vtanh.f32 %v596_v44 }
  0xb2   : > { %1071 = vtanh.f32 %v478_v46 }
  0xb3   : > { %1073 = vtanh.f32 %v518_v47 }
  0xb6   : > { %v1068_v48 = vpop.eup %1067 }
  0xb7   : > { %v1070_v49 = vpop.eup %1069  ;;  %732 = vst [vmem:[%s1290_s7 + $0x100] sm:$0xff] %v1068_v48  ;;  %v558_v50 = vpop.f32.mrf.mxu2 }
  0xb8   : > { %v598_v51 = vpop.f32.mrf.mxu3  ;;  %v1072_v52 = vpop.eup %1071  ;;  %748 = vst [vmem:[%s1290_s7 + $0x180] sm:$0xff] %v1070_v49  ;;  %1075 = vtanh.f32 %v558_v50 }
  0xb9   : > { %v481_v53 = vpop.f32.mrf.mxu0  ;;  %v521_v54 = vpop.f32.mrf.mxu1  ;;  %701 = vst [vmem:[%s1290_s7 + $0x8] sm:$0xff] %v1072_v52  ;;  %1077 = vtanh.f32 %v598_v51 }
  0xba   : > { %v1074_v55 = vpop.eup %1073  ;;  %1079 = vtanh.f32 %v481_v53 }
  0xbb   : > { %717 = vst [vmem:[%s1290_s7 + $0x88] sm:$0xff] %v1074_v55  ;;  %1081 = vtanh.f32 %v521_v54 }
  0xbe   : > { %v1076_v56 = vpop.eup %1075 }
  0xbf   : > { %v1078_v57 = vpop.eup %1077  ;;  %733 = vst [vmem:[%s1290_s7 + $0x108] sm:$0xff] %v1076_v56  ;;  %v561_v58 = vpop.f32.mrf.mxu2 }
  0xc0   : > { %v601_v59 = vpop.f32.mrf.mxu3  ;;  %v1080_v60 = vpop.eup %1079  ;;  %749 = vst [vmem:[%s1290_s7 + $0x188] sm:$0xff] %v1078_v57  ;;  %1083 = vtanh.f32 %v561_v58 }
  0xc1   : > { %v483_v61 = vpop.f32.mrf.mxu0  ;;  %v523_v62 = vpop.f32.mrf.mxu1  ;;  %702 = vst [vmem:[%s1290_s7 + $0x10] sm:$0xff] %v1080_v60  ;;  %1085 = vtanh.f32 %v601_v59 }
  0xc2   : > { %v1082_v63 = vpop.eup %1081  ;;  %1087 = vtanh.f32 %v483_v61 }
  0xc3   : > { %718 = vst [vmem:[%s1290_s7 + $0x90] sm:$0xff] %v1082_v63  ;;  %1089 = vtanh.f32 %v523_v62 }
  0xc6   : > { %v1084_v0 = vpop.eup %1083 }
  0xc7   : > { %v1086_v1 = vpop.eup %1085  ;;  %734 = vst [vmem:[%s1290_s7 + $0x110] sm:$0xff] %v1084_v0  ;;  %v563_v2 = vpop.f32.mrf.mxu2 }
  0xc8   : > { %v603_v3 = vpop.f32.mrf.mxu3  ;;  %v1088_v4 = vpop.eup %1087  ;;  %750 = vst [vmem:[%s1290_s7 + $0x190] sm:$0xff] %v1086_v1  ;;  %1091 = vtanh.f32 %v563_v2 }
  0xc9   : > { %v486_v5 = vpop.f32.mrf.mxu0  ;;  %v526_v6 = vpop.f32.mrf.mxu1  ;;  %703 = vst [vmem:[%s1290_s7 + $0x18] sm:$0xff] %v1088_v4  ;;  %1093 = vtanh.f32 %v603_v3 }
  0xca   : > { %v1090_v7 = vpop.eup %1089  ;;  %1095 = vtanh.f32 %v486_v5 }
  0xcb   : > { %719 = vst [vmem:[%s1290_s7 + $0x98] sm:$0xff] %v1090_v7  ;;  %1097 = vtanh.f32 %v526_v6 }
  0xce   : > { %v1092_v8 = vpop.eup %1091 }
  0xcf   : > { %v1094_v9 = vpop.eup %1093  ;;  %735 = vst [vmem:[%s1290_s7 + $0x118] sm:$0xff] %v1092_v8  ;;  %v566_v10 = vpop.f32.mrf.mxu2 }
  0xd0   : > { %v606_v11 = vpop.f32.mrf.mxu3  ;;  %v1096_v12 = vpop.eup %1095  ;;  %751 = vst [vmem:[%s1290_s7 + $0x198] sm:$0xff] %v1094_v9  ;;  %1099 = vtanh.f32 %v566_v10 }
  0xd1   : > { %v488_v13 = vpop.f32.mrf.mxu0  ;;  %v528_v14 = vpop.f32.mrf.mxu1  ;;  %704 = vst [vmem:[%s1290_s7 + $0x20] sm:$0xff] %v1096_v12  ;;  %1101 = vtanh.f32 %v606_v11 }
  0xd2   : > { %v1098_v15 = vpop.eup %1097  ;;  %1103 = vtanh.f32 %v488_v13 }
  0xd3   : > { %720 = vst [vmem:[%s1290_s7 + $0xa0] sm:$0xff] %v1098_v15  ;;  %1105 = vtanh.f32 %v528_v14 }
  0xd6   : > { %v1100_v16 = vpop.eup %1099 }
  0xd7   : > { %v1102_v17 = vpop.eup %1101  ;;  %736 = vst [vmem:[%s1290_s7 + $0x120] sm:$0xff] %v1100_v16  ;;  %v568_v18 = vpop.f32.mrf.mxu2 }
  0xd8   : > { %v608_v19 = vpop.f32.mrf.mxu3  ;;  %v1104_v20 = vpop.eup %1103  ;;  %752 = vst [vmem:[%s1290_s7 + $0x1a0] sm:$0xff] %v1102_v17  ;;  %1107 = vtanh.f32 %v568_v18 }
  0xd9   : > { %v491_v21 = vpop.f32.mrf.mxu0  ;;  %v531_v22 = vpop.f32.mrf.mxu1  ;;  %705 = vst [vmem:[%s1290_s7 + $0x28] sm:$0xff] %v1104_v20  ;;  %1109 = vtanh.f32 %v608_v19 }
  0xda   : > { %v1106_v23 = vpop.eup %1105  ;;  %1111 = vtanh.f32 %v491_v21 }
  0xdb   : > { %721 = vst [vmem:[%s1290_s7 + $0xa8] sm:$0xff] %v1106_v23  ;;  %1113 = vtanh.f32 %v531_v22 }
  0xde   : > { %v1108_v24 = vpop.eup %1107 }
  0xdf   : > { %v1110_v25 = vpop.eup %1109  ;;  %737 = vst [vmem:[%s1290_s7 + $0x128] sm:$0xff] %v1108_v24  ;;  %v571_v26 = vpop.f32.mrf.mxu2 }
  0xe0   : > { %v611_v27 = vpop.f32.mrf.mxu3  ;;  %v1112_v28 = vpop.eup %1111  ;;  %753 = vst [vmem:[%s1290_s7 + $0x1a8] sm:$0xff] %v1110_v25  ;;  %1115 = vtanh.f32 %v571_v26 }
  0xe1   : > { %v493_v29 = vpop.f32.mrf.mxu0  ;;  %v533_v30 = vpop.f32.mrf.mxu1  ;;  %706 = vst [vmem:[%s1290_s7 + $0x30] sm:$0xff] %v1112_v28  ;;  %1117 = vtanh.f32 %v611_v27 }
  0xe2   : > { %v1114_v31 = vpop.eup %1113  ;;  %1119 = vtanh.f32 %v493_v29 }
  0xe3   : > { %722 = vst [vmem:[%s1290_s7 + $0xb0] sm:$0xff] %v1114_v31  ;;  %1121 = vtanh.f32 %v533_v30 }
  0xe6   : > { %v1116_v32 = vpop.eup %1115 }
  0xe7   : > { %v1118_v33 = vpop.eup %1117  ;;  %738 = vst [vmem:[%s1290_s7 + $0x130] sm:$0xff] %v1116_v32  ;;  %v573_v34 = vpop.f32.mrf.mxu2 }
  0xe8   : > { %v613_v35 = vpop.f32.mrf.mxu3  ;;  %v1120_v36 = vpop.eup %1119  ;;  %754 = vst [vmem:[%s1290_s7 + $0x1b0] sm:$0xff] %v1118_v33  ;;  %1123 = vtanh.f32 %v573_v34 }
  0xe9   : > { %v496_v37 = vpop.f32.mrf.mxu0  ;;  %v536_v38 = vpop.f32.mrf.mxu1  ;;  %707 = vst [vmem:[%s1290_s7 + $0x38] sm:$0xff] %v1120_v36  ;;  %1125 = vtanh.f32 %v613_v35 }
  0xea   : > { %v1122_v39 = vpop.eup %1121  ;;  %1127 = vtanh.f32 %v496_v37 }
  0xeb   : > { %723 = vst [vmem:[%s1290_s7 + $0xb8] sm:$0xff] %v1122_v39  ;;  %1129 = vtanh.f32 %v536_v38 }
  0xee   : > { %v1124_v40 = vpop.eup %1123 }
  0xef   : > { %v1126_v41 = vpop.eup %1125  ;;  %739 = vst [vmem:[%s1290_s7 + $0x138] sm:$0xff] %v1124_v40  ;;  %v576_v42 = vpop.f32.mrf.mxu2 }
  0xf0   : > { %v616_v43 = vpop.f32.mrf.mxu3  ;;  %v1128_v44 = vpop.eup %1127  ;;  %755 = vst [vmem:[%s1290_s7 + $0x1b8] sm:$0xff] %v1126_v41  ;;  %1131 = vtanh.f32 %v576_v42 }
  0xf1   : > { %v498_v45 = vpop.f32.mrf.mxu0  ;;  %v538_v46 = vpop.f32.mrf.mxu1  ;;  %708 = vst [vmem:[%s1290_s7 + $0x40] sm:$0xff] %v1128_v44  ;;  %1133 = vtanh.f32 %v616_v43 }
  0xf2   : > { %v1130_v47 = vpop.eup %1129  ;;  %1135 = vtanh.f32 %v498_v45 }
  0xf3   : > { %724 = vst [vmem:[%s1290_s7 + $0xc0] sm:$0xff] %v1130_v47  ;;  %1137 = vtanh.f32 %v538_v46 }
  0xf6   : > { %v1132_v48 = vpop.eup %1131 }
  0xf7   : > { %v1134_v49 = vpop.eup %1133  ;;  %740 = vst [vmem:[%s1290_s7 + $0x140] sm:$0xff] %v1132_v48  ;;  %v578_v50 = vpop.f32.mrf.mxu2 }
  0xf8   : > { %v618_v51 = vpop.f32.mrf.mxu3  ;;  %v1136_v52 = vpop.eup %1135  ;;  %756 = vst [vmem:[%s1290_s7 + $0x1c0] sm:$0xff] %v1134_v49  ;;  %1139 = vtanh.f32 %v578_v50 }
  0xf9   : > { %v501_v53 = vpop.f32.mrf.mxu0  ;;  %v541_v54 = vpop.f32.mrf.mxu1  ;;  %709 = vst [vmem:[%s1290_s7 + $0x48] sm:$0xff] %v1136_v52  ;;  %1141 = vtanh.f32 %v618_v51 }
  0xfa   : > { %v1138_v55 = vpop.eup %1137  ;;  %1143 = vtanh.f32 %v501_v53 }
  0xfb   : > { %725 = vst [vmem:[%s1290_s7 + $0xc8] sm:$0xff] %v1138_v55  ;;  %1145 = vtanh.f32 %v541_v54 }
  0xfe   : > { %v1140_v56 = vpop.eup %1139 }
  0xff   : > { %v1142_v57 = vpop.eup %1141  ;;  %741 = vst [vmem:[%s1290_s7 + $0x148] sm:$0xff] %v1140_v56  ;;  %v581_v58 = vpop.f32.mrf.mxu2 }
 0x100   : > { %v621_v59 = vpop.f32.mrf.mxu3  ;;  %v1144_v60 = vpop.eup %1143  ;;  %757 = vst [vmem:[%s1290_s7 + $0x1c8] sm:$0xff] %v1142_v57  ;;  %1147 = vtanh.f32 %v581_v58 }
 0x101   : > { %v503_v61 = vpop.f32.mrf.mxu0  ;;  %v543_v62 = vpop.f32.mrf.mxu1  ;;  %710 = vst [vmem:[%s1290_s7 + $0x50] sm:$0xff] %v1144_v60  ;;  %1149 = vtanh.f32 %v621_v59 }
 0x102   : > { %v1146_v63 = vpop.eup %1145  ;;  %1151 = vtanh.f32 %v503_v61 }
 0x103   : > { %726 = vst [vmem:[%s1290_s7 + $0xd0] sm:$0xff] %v1146_v63  ;;  %1153 = vtanh.f32 %v543_v62 }
 0x106   : > { %v1148_v0 = vpop.eup %1147 }
 0x107   : > { %v1150_v1 = vpop.eup %1149  ;;  %742 = vst [vmem:[%s1290_s7 + $0x150] sm:$0xff] %v1148_v0  ;;  %v583_v2 = vpop.f32.mrf.mxu2 }
 0x108   : > { %v623_v3 = vpop.f32.mrf.mxu3  ;;  %v1152_v4 = vpop.eup %1151  ;;  %758 = vst [vmem:[%s1290_s7 + $0x1d0] sm:$0xff] %v1150_v1  ;;  %1155 = vtanh.f32 %v583_v2 }
 0x109   : > { %v506_v5 = vpop.f32.mrf.mxu0  ;;  %v546_v6 = vpop.f32.mrf.mxu1  ;;  %711 = vst [vmem:[%s1290_s7 + $0x58] sm:$0xff] %v1152_v4  ;;  %1157 = vtanh.f32 %v623_v3 }
 0x10a   : > { %v1154_v7 = vpop.eup %1153  ;;  %1159 = vtanh.f32 %v506_v5 }
 0x10b   : > { %727 = vst [vmem:[%s1290_s7 + $0xd8] sm:$0xff] %v1154_v7  ;;  %1161 = vtanh.f32 %v546_v6 }
 0x10e   : > { %v1156_v8 = vpop.eup %1155 }
 0x10f   : > { %v1158_v9 = vpop.eup %1157  ;;  %743 = vst [vmem:[%s1290_s7 + $0x158] sm:$0xff] %v1156_v8  ;;  %v586_v10 = vpop.f32.mrf.mxu2 }
 0x110   : > { %v626_v11 = vpop.f32.mrf.mxu3  ;;  %v1160_v12 = vpop.eup %1159  ;;  %759 = vst [vmem:[%s1290_s7 + $0x1d8] sm:$0xff] %v1158_v9  ;;  %1163 = vtanh.f32 %v586_v10 }
 0x111   : > { %v508_v13 = vpop.f32.mrf.mxu0  ;;  %v548_v14 = vpop.f32.mrf.mxu1  ;;  %712 = vst [vmem:[%s1290_s7 + $0x60] sm:$0xff] %v1160_v12  ;;  %1165 = vtanh.f32 %v626_v11 }
 0x112   : > { %v1162_v15 = vpop.eup %1161  ;;  %1167 = vtanh.f32 %v508_v13 }
 0x113   : > { %728 = vst [vmem:[%s1290_s7 + $0xe0] sm:$0xff] %v1162_v15  ;;  %1169 = vtanh.f32 %v548_v14 }
 0x116   : > { %v1164_v16 = vpop.eup %1163 }
 0x117   : > { %v1166_v17 = vpop.eup %1165  ;;  %744 = vst [vmem:[%s1290_s7 + $0x160] sm:$0xff] %v1164_v16  ;;  %v588_v18 = vpop.f32.mrf.mxu2 }
 0x118   : > { %v628_v19 = vpop.f32.mrf.mxu3  ;;  %v1168_v20 = vpop.eup %1167  ;;  %760 = vst [vmem:[%s1290_s7 + $0x1e0] sm:$0xff] %v1166_v17  ;;  %1171 = vtanh.f32 %v588_v18 }
 0x119   : > { %v511_v21 = vpop.f32.mrf.mxu0  ;;  %v551_v22 = vpop.f32.mrf.mxu1  ;;  %713 = vst [vmem:[%s1290_s7 + $0x68] sm:$0xff] %v1168_v20  ;;  %1173 = vtanh.f32 %v628_v19 }
 0x11a   : > { %v1170_v23 = vpop.eup %1169  ;;  %1175 = vtanh.f32 %v511_v21 }
 0x11b   : > { %729 = vst [vmem:[%s1290_s7 + $0xe8] sm:$0xff] %v1170_v23  ;;  %1177 = vtanh.f32 %v551_v22 }
 0x11e   : > { %v1172_v24 = vpop.eup %1171 }
 0x11f   : > { %v1174_v25 = vpop.eup %1173  ;;  %745 = vst [vmem:[%s1290_s7 + $0x168] sm:$0xff] %v1172_v24  ;;  %v591_v26 = vpop.f32.mrf.mxu2 }
 0x120   : > { %v631_v27 = vpop.f32.mrf.mxu3  ;;  %v1176_v28 = vpop.eup %1175  ;;  %761 = vst [vmem:[%s1290_s7 + $0x1e8] sm:$0xff] %v1174_v25  ;;  %1179 = vtanh.f32 %v591_v26 }
 0x121   : > { %v513_v29 = vpop.f32.mrf.mxu0  ;;  %v553_v30 = vpop.f32.mrf.mxu1  ;;  %714 = vst [vmem:[%s1290_s7 + $0x70] sm:$0xff] %v1176_v28  ;;  %1181 = vtanh.f32 %v631_v27 }
 0x122   : > { %v1178_v31 = vpop.eup %1177  ;;  %1183 = vtanh.f32 %v513_v29 }
 0x123   : > { %730 = vst [vmem:[%s1290_s7 + $0xf0] sm:$0xff] %v1178_v31  ;;  %1185 = vtanh.f32 %v553_v30 }
 0x126   : > { %v1180_v32 = vpop.eup %1179 }
 0x127   : > { %v1182_v33 = vpop.eup %1181  ;;  %746 = vst [vmem:[%s1290_s7 + $0x170] sm:$0xff] %v1180_v32  ;;  %v593_v34 = vpop.f32.mrf.mxu2 }
 0x128   : > { %v633_v35 = vpop.f32.mrf.mxu3  ;;  %v1184_v36 = vpop.eup %1183  ;;  %762 = vst [vmem:[%s1290_s7 + $0x1f0] sm:$0xff] %v1182_v33  ;;  %1187 = vtanh.f32 %v593_v34 }
 0x129   : > { %v1186_v37 = vpop.eup %1185  ;;  %715 = vst [vmem:[%s1290_s7 + $0x78] sm:$0xff] %v1184_v36  ;;  %1189 = vtanh.f32 %v633_v35 }
 0x12a   : > { %731 = vst [vmem:[%s1290_s7 + $0xf8] sm:$0xff] %v1186_v37 }
 0x12e   : > { %v1188_v38 = vpop.eup %1187 }
 0x12f   : > { %v1190_v39 = vpop.eup %1189  ;;  %747 = vst [vmem:[%s1290_s7 + $0x178] sm:$0xff] %v1188_v38 }
 0x130   : > { %763 = vst [vmem:[%s1290_s7 + $0x1f8] sm:$0xff] %v1190_v39 }
 0x131 PF: > { %s12_s9 = sadd.s32 1, %s1197_s9  }
 0x132   : > { %p9_p4 = scmp.ge.s32.totalorder %s12_s9, 6  }
 0x134   :  { %11 = sbr.rel (!%p9_p4) target bundleno = 1 (0x1), region = 58 }

</bundles_post_ra>
